<compile_context>
chip_gen: v7x
topology: tpu7x:2x2x1
jax: 0.10.0
libtpu: 0.0.40
codegen_flags: <defaults>
</compile_context>

<pallas_src>
import functools
import math

import jax
import jax.numpy as jnp
from jax import lax
from jax.experimental import pallas as pl
from jax.experimental.pallas import tpu as pltpu

ENCODER_DIM = 2048
EMBED_DIM = 512
DECODER_DIM = 512


def _round_up(x, m):
    return ((x + m - 1) // m) * m


def _vmem_limit(requested):
    """Generation-aware scoped-VMEM request (never more than 3/4 of physical)."""
    cap = 128 * 1024 * 1024
    try:
        cap = int(pltpu.get_tpu_info().vmem_capacity_bytes)
    except Exception:
        pass
    return int(min(requested, cap * 3 // 4))


# ---------------------------------------------------------------------------
# Kernels
# ---------------------------------------------------------------------------
def _emb_proj_kernel(emb_ref, w_ref, b_ref, out_ref):
    """Row-tiled input projection of the embeddings: (rows, EMB) @ (EMB, 4D) + b_ih."""
    out_ref[...] = (jnp.dot(emb_ref[...], w_ref[...],
                            preferred_element_type=jnp.float32) + b_ref[...])


def _init_kernel(enc_ref, whc_ref, bhc_ref, wenc_ref, benc_ref,
                 h0c0_ref, encatt_ref, *, num_pixels):
    """t==0 init: mean-pool -> [h_lin | c_lin], and the loop-invariant enc_att."""
    B, P_pad, E = enc_ref.shape
    D = wenc_ref.shape[1]
    enc = enc_ref[...]                                              # bf16 (B, P_pad, E)
    # mean over the *real* pixels only (padded rows are zero)
    avg = jnp.sum(enc.astype(jnp.float32), axis=1) * (1.0 / num_pixels)
    h0c0_ref[...] = (jnp.dot(avg.astype(jnp.bfloat16), whc_ref[...],
                             preferred_element_type=jnp.float32) + bhc_ref[...])
    enc2d = enc.reshape(B * P_pad, E)
    encatt_ref[...] = (jnp.dot(enc2d, wenc_ref[...],
                               preferred_element_type=jnp.float32)
                       + benc_ref[...]).reshape(B, P_pad, D)


def _decoder_block_kernel(declen_ref, enc_ref, encatt_ref, h0c0_ref, embp_ref,
                          whf_ref, bhf_ref, watt_ref, batt_ref, wiha_ref,
                          hseq_ref, alpha_ref,
                          h_s, c_s, *, num_pixels, steps_per_block):
    """STEPS_PER_BLOCK timesteps of the attention-LSTM recurrence per grid step."""
    tb = pl.program_id(0)
    B, P_pad, E = enc_ref.shape
    D = h_s.shape[1]

    @pl.when(tb == 0)
    def _init():
        h_s[...] = h0c0_ref[:, :D]
        c_s[...] = h0c0_ref[:, D:]

    enc = enc_ref[...]                                              # bf16 (B, P_pad, E)
    encatt = encatt_ref[...]                                        # f32  (B, P_pad, D)
    declen = declen_ref[...]                                        # (B, 1) int32
    t0 = tb * steps_per_block

    h = h_s[...]
    c = c_s[...]

    # Fully unrolled inner loop (static ref indices): amortises the per-grid-step
    # pipeline overhead and gives the LLO scheduler a long window to overlap MXU
    # pushes, EUP sigmoid/tanh and VPU gating across timesteps.
    for ts in range(steps_per_block):
        t = t0 + ts

        # --- fused h projections: [dec_att | f_beta | lstm_hh] in one MXU push -
        hproj = (jnp.dot(h.astype(jnp.bfloat16), whf_ref[...],
                         preferred_element_type=jnp.float32) + bhf_ref[...])
        dec_att = hproj[:, :D]                                      # (B, D)
        fb = hproj[:, D:D + E]                                      # (B, E)
        hh = hproj[:, D + E:]                                       # (B, 4D)

        # --- attention ---------------------------------------------------------
        pre = jnp.maximum(encatt + dec_att[:, None, :], 0.0)        # (B, P_pad, D)
        # score reduction on the MXU: (B*P, D) @ (D, 128), real weight in col 0
        att = lax.dot_general(pre.astype(jnp.bfloat16), watt_ref[...],
                              dimension_numbers=(((2,), (0,)), ((), ())),
                              preferred_element_type=jnp.float32)[:, :, 0]
        att = att + batt_ref[...]                                   # (B, P_pad)
        if num_pixels != P_pad:                                     # mask pad pixels
            pix = lax.broadcasted_iota(jnp.int32, (B, P_pad), 1)
            att = jnp.where(pix < num_pixels, att, -1e30)
        att_max = jnp.max(att, axis=1, keepdims=True)
        ex = jnp.exp(att - att_max)
        alpha = ex * pl.reciprocal(jnp.sum(ex, axis=1, keepdims=True), approx=True)

        # attention pooling on the MXU (batched contraction over pixels)
        awe = jnp.einsum('bqp,bpe->bqe',
                         alpha.astype(jnp.bfloat16)[:, None, :], enc,
                         preferred_element_type=jnp.float32)[:, 0, :]   # (B, E)
        gate = jax.nn.sigmoid(fb)
        awe = gate * awe

        # --- LSTMCell -----------------------------------------------------------
        gates = (embp_ref[ts] + hh
                 + jnp.dot(awe.astype(jnp.bfloat16), wiha_ref[...],
                           preferred_element_type=jnp.float32))     # (B, 4D)
        i_g = jax.nn.sigmoid(gates[:, 0:D])
        f_g = jax.nn.sigmoid(gates[:, D:2 * D])
        g_g = jnp.tanh(gates[:, 2 * D:3 * D])
        o_g = jax.nn.sigmoid(gates[:, 3 * D:4 * D])
        c_new = f_g * c + i_g * g_g
        h_new = o_g * jnp.tanh(c_new)

        # Rows with dec_len <= t are "outside batch_size_t": freeze state, zero alpha.
        mask = declen > t                                           # (B, 1) bool
        h = jnp.where(mask, h_new, h)
        c = jnp.where(mask, c_new, c)
        hseq_ref[ts] = h                                            # (B, D)
        alpha_ref[ts] = jnp.where(mask, alpha, 0.0)                 # (B, P_pad)

    h_s[...] = h
    c_s[...] = c


def _fc_kernel(mask_ref, h_ref, wfc_ref, bfc_ref, out_ref):
    """Vocab projection, tiled over rows (B*T) and 512-wide vocab tiles."""
    # TODO(synk): nn.Dropout(p=0.5) on h treated as identity (eval-mode determinism).
    logits = (jnp.dot(h_ref[...], wfc_ref[...],
                      preferred_element_type=jnp.float32) + bfc_ref[...])
    out_ref[...] = (logits * mask_ref[...]).astype(out_ref.dtype)


# ---------------------------------------------------------------------------
# Parameters (deterministic, synthetic) + packing into kernel-ready layout
# ---------------------------------------------------------------------------
def make_params(key, vocab_size):
    keys = jax.random.split(key, 16)

    def uni(k, shape, bound):
        return jax.random.uniform(k, shape, jnp.float32, minval=-bound, maxval=bound)

    E, D, EMB, V = ENCODER_DIM, DECODER_DIM, EMBED_DIM, vocab_size
    p = {}
    p["embedding"] = uni(keys[0], (V, EMB), 0.1)
    p["enc_att_w"] = uni(keys[1], (512, E), 1.0 / math.sqrt(E))
    p["enc_att_b"] = uni(keys[2], (512,), 1.0 / math.sqrt(E))
    p["dec_att_w"] = uni(keys[3], (512, D), 1.0 / math.sqrt(D))
    p["dec_att_b"] = jnp.zeros((512,), jnp.float32)
    p["att_w"] = uni(keys[4], (1, 512), 1.0 / math.sqrt(512))
    p["att_b"] = jnp.zeros((1,), jnp.float32)
    p["h_lin_w"] = uni(keys[5], (D, E), 1.0 / math.sqrt(E))
    p["h_lin_b"] = jnp.zeros((D,), jnp.float32)
    p["c_lin_w"] = uni(keys[6], (D, E), 1.0 / math.sqrt(E))
    p["c_lin_b"] = jnp.zeros((D,), jnp.float32)
    p["f_beta_w"] = uni(keys[7], (E, D), 1.0 / math.sqrt(D))
    p["f_beta_b"] = jnp.zeros((E,), jnp.float32)
    p["lstm_w_ih"] = uni(keys[8], (4 * D, EMB + E), 1.0 / math.sqrt(D))   # [i,f,g,o]
    p["lstm_w_hh"] = uni(keys[9], (4 * D, D), 1.0 / math.sqrt(D))
    p["lstm_b_ih"] = uni(keys[10], (4 * D,), 1.0 / math.sqrt(D))
    p["lstm_b_hh"] = uni(keys[11], (4 * D,), 1.0 / math.sqrt(D))
    p["fc_w"] = uni(keys[12], (V, D), 0.1)                                # uniform(-0.1, 0.1)
    p["fc_b"] = jnp.zeros((V,), jnp.float32)                              # fill_(0)
    return p


def pack_params(p):
    """One-time packing: fuse, transpose and bf16-cast the matmul weights."""
    D, E, EMB = DECODER_DIM, ENCODER_DIM, EMBED_DIM
    V = p["fc_w"].shape[0]
    V_pad = _round_up(V, 512)                                 # >=512-wide vocab tiles
    w_ih = p["lstm_w_ih"]                                     # (4D, EMB+E)
    w_fc = p["fc_w"].T.astype(jnp.bfloat16)                   # (D, V)
    b_fc = p["fc_b"][None, :].astype(jnp.float32)             # (1, V)
    if V_pad != V:
        w_fc = jnp.pad(w_fc, ((0, 0), (0, V_pad - V)))
        b_fc = jnp.pad(b_fc, ((0, 0), (0, V_pad - V)))
    # att weight packed into column 0 of a (D, 128) matrix so the score reduction
    # runs on the MXU instead of a VPU multiply + XLU lane reduce.
    w_att_col = jnp.zeros((D, 128), jnp.float32).at[:, 0].set(p["att_w"][0])
    return {
        "embedding": p["embedding"],
        "vocab_size": V,
        "w_hc": jnp.concatenate([p["h_lin_w"].T, p["c_lin_w"].T], axis=1).astype(jnp.bfloat16),
        "b_hc": jnp.concatenate([p["h_lin_b"], p["c_lin_b"]])[None, :].astype(jnp.float32),
        "w_enc": p["enc_att_w"].T.astype(jnp.bfloat16),
        "b_enc": p["enc_att_b"][None, :].astype(jnp.float32),
        "w_hfused": jnp.concatenate(
            [p["dec_att_w"].T, p["f_beta_w"].T, p["lstm_w_hh"].T], axis=1).astype(jnp.bfloat16),
        "b_hfused": jnp.concatenate(
            [p["dec_att_b"], p["f_beta_b"], p["lstm_b_hh"]])[None, :].astype(jnp.float32),
        "w_att": w_att_col.astype(jnp.bfloat16),                       # (D, 128) bf16
        "b_att": p["att_b"].reshape(1, 1).astype(jnp.float32),
        "w_ih_emb": w_ih[:, :EMB].T.astype(jnp.bfloat16),              # (EMB, 4D)
        "w_ih_awe": w_ih[:, EMB:].T.astype(jnp.bfloat16),              # (E, 4D)
        "b_ih": p["lstm_b_ih"][None, :].astype(jnp.float32),           # (1, 4D)
        "w_fc": w_fc,                                                  # (D, V_pad) bf16
        "b_fc": b_fc,                                                  # (1, V_pad) f32
    }


# ---------------------------------------------------------------------------
# Wrapper (forward pass)
# ---------------------------------------------------------------------------
def decoder_forward(packed, encoder_out, encoded_captions, caption_lengths,
                    *, steps_per_block=4, predictions_dtype=jnp.float32):
    D, E, EMB = DECODER_DIM, ENCODER_DIM, EMBED_DIM
    n4d = 4 * D
    B = encoder_out.shape[0]
    enc = encoder_out.reshape(B, -1, E).astype(jnp.float32)       # (B, num_pixels, 2048)
    P = enc.shape[1]
    # Pixel axis is only ever the second-to-last dim -> sublane padding only
    # (16 covers both bf16 enc and f32 enc_att); no 128 padding.
    P_pad = _round_up(P, 16)
    if P_pad != P:
        enc = jnp.pad(enc, ((0, 0), (0, P_pad - P), (0, 0)))
    enc_bf16 = enc.astype(jnp.bfloat16)

    V = packed["vocab_size"]
    V_pad = packed["w_fc"].shape[1]

    dec_len = [int(l) - 1 for l in caption_lengths]
    T = max(dec_len)
    TS = int(steps_per_block)
    T_pad = _round_up(T, TS)
    declen_arr = jnp.asarray(dec_len, dtype=jnp.int32)[:, None]   # (B, 1)

    vmem = pl.BlockSpec(memory_space=pltpu.MemorySpace.VMEM)

    # ---- t==0 init kernel: h0|c0 and the loop-invariant enc_att projection --
    # (keeps w_hc / w_enc out of the recurrent kernel's resident VMEM)
    h0c0, enc_att = pl.pallas_call(
        functools.partial(_init_kernel, num_pixels=P),
        out_shape=(jax.ShapeDtypeStruct((B, 2 * D), jnp.float32),
                   jax.ShapeDtypeStruct((B, P_pad, D), jnp.float32)),
        in_specs=[vmem] * 5,
        out_specs=(vmem, vmem),
        compiler_params=pltpu.CompilerParams(
            vmem_limit_bytes=_vmem_limit(32 * 1024 * 1024)),
    )(enc_bf16, packed["w_hc"], packed["b_hc"], packed["w_enc"], packed["b_enc"])

    # ---- prologue: input projection of embeddings, row-tiled ----------------
    # Embedding lookup (gather) kept as JAX glue; hot path is in the kernels.
    emb = packed["embedding"][encoded_captions]                   # (B, L, EMBED_DIM)
    emb_t = jnp.transpose(emb[:, :T, :], (1, 0, 2))               # (T, B, EMB)
    if T_pad != T:
        emb_t = jnp.pad(emb_t, ((0, T_pad - T), (0, 0), (0, 0)))
    emb2d = emb_t.reshape(T_pad * B, EMB).astype(jnp.bfloat16)

    R = T_pad * B
    tr = 512 if R > 1024 else R
    R_pad = _round_up(R, tr)
    if R_pad != R:
        emb2d = jnp.pad(emb2d, ((0, R_pad - R), (0, 0)))
    emb_proj2d = pl.pallas_call(
        _emb_proj_kernel,
        out_shape=jax.ShapeDtypeStruct((R_pad, n4d), jnp.float32),
        grid=(R_pad // tr,),
        in_specs=[
            pl.BlockSpec((tr, EMB), lambda r: (r, 0)),            # emb rows (streamed)
            pl.BlockSpec((EMB, n4d), lambda r: (0, 0)),           # w_ih_emb
            pl.BlockSpec((1, n4d), lambda r: (0, 0)),             # b_ih
        ],
        out_specs=pl.BlockSpec((tr, n4d), lambda r: (r, 0)),
        compiler_params=pltpu.CompilerParams(
            dimension_semantics=("parallel",),
            vmem_limit_bytes=_vmem_limit(32 * 1024 * 1024)),
    )(emb2d, packed["w_ih_emb"], packed["b_ih"])
    emb_proj = emb_proj2d[:R].reshape(T_pad, B, n4d)

    # ---- recurrent attention-LSTM kernel, TS timesteps per grid step --------
    hseq_tm, alphas_tm = pl.pallas_call(
        functools.partial(_decoder_block_kernel, num_pixels=P,
                          steps_per_block=TS),
        out_shape=(jax.ShapeDtypeStruct((T_pad, B, D), jnp.float32),
                   jax.ShapeDtypeStruct((T_pad, B, P_pad), jnp.float32)),
        grid=(T_pad // TS,),
        in_specs=[
            pl.BlockSpec((B, 1), lambda tb: (0, 0)),              # dec_len
            pl.BlockSpec((B, P_pad, E), lambda tb: (0, 0, 0)),    # enc (bf16, resident)
            pl.BlockSpec((B, P_pad, D), lambda tb: (0, 0, 0)),    # enc_att (resident)
            pl.BlockSpec((B, 2 * D), lambda tb: (0, 0)),          # h0|c0
            pl.BlockSpec((TS, B, n4d), lambda tb: (tb, 0, 0)),    # emb_proj (streamed)
            pl.BlockSpec((D, D + E + n4d), lambda tb: (0, 0)),    # w_hfused
            pl.BlockSpec((1, D + E + n4d), lambda tb: (0, 0)),    # b_hfused
            pl.BlockSpec((D, 128), lambda tb: (0, 0)),            # w_att (col 0)
            pl.BlockSpec((1, 1), lambda tb: (0, 0)),              # b_att
            pl.BlockSpec((E, n4d), lambda tb: (0, 0)),            # w_ih_awe
        ],
        out_specs=(pl.BlockSpec((TS, B, D), lambda tb: (tb, 0, 0)),
                   pl.BlockSpec((TS, B, P_pad), lambda tb: (tb, 0, 0))),
        scratch_shapes=[pltpu.VMEM((B, D), jnp.float32),          # h
                        pltpu.VMEM((B, D), jnp.float32)],         # c
        compiler_params=pltpu.CompilerParams(
            dimension_semantics=("arbitrary",),
            vmem_limit_bytes=_vmem_limit(48 * 1024 * 1024)),
    )(declen_arr, enc_bf16, enc_att, h0c0, emb_proj,
      packed["w_hfused"], packed["b_hfused"], packed["w_att"], packed["b_att"],
      packed["w_ih_awe"])

    # ---- vocab projection, tiled over (rows, vocab) --------------------------
    # Rows are reordered to batch-major in the (small) h tensor so the big
    # predictions tensor is written directly in (B, T, V) order.
    h_bt2d = jnp.transpose(hseq_tm[:T], (1, 0, 2)).reshape(B * T, D).astype(jnp.bfloat16)
    mask2d = (declen_arr > jnp.arange(T, dtype=jnp.int32)[None, :]).astype(
        jnp.float32).reshape(B * T, 1)

    M = B * T
    tm = 256 if M > 256 else M
    M_pad = _round_up(M, tm)
    if M_pad != M:
        h_bt2d = jnp.pad(h_bt2d, ((0, M_pad - M), (0, 0)))
        mask2d = jnp.pad(mask2d, ((0, M_pad - M), (0, 0)))

    if V_pad >= 2048 and V_pad % 1024 == 0:
        tv = 1024
    elif V_pad > 512:
        tv = 512
    else:
        tv = 256                                                  # keep >=2 tiles
    preds2d = pl.pallas_call(
        _fc_kernel,
        out_shape=jax.ShapeDtypeStruct((M_pad, V_pad), predictions_dtype),
        grid=(M_pad // tm, V_pad // tv),
        in_specs=[
            pl.BlockSpec((tm, 1), lambda m, v: (m, 0)),           # mask rows
            pl.BlockSpec((tm, D), lambda m, v: (m, 0)),           # h rows (bf16)
            pl.BlockSpec((D, tv), lambda m, v: (0, v)),           # w_fc tile
            pl.BlockSpec((1, tv), lambda m, v: (0, v)),           # b_fc tile
        ],
        out_specs=pl.BlockSpec((tm, tv), lambda m, v: (m, v)),
        compiler_params=pltpu.CompilerParams(
            dimension_semantics=("parallel", "parallel"),
            vmem_limit_bytes=_vmem_limit(32 * 1024 * 1024)),
    )(mask2d, h_bt2d, packed["w_fc"], packed["b_fc"])

    predictions = preds2d[:M].reshape(B, T, V_pad)
    if V_pad != V:
        predictions = predictions[:, :, :V]
    alphas = jnp.transpose(alphas_tm[:T], (1, 0, 2))
    if P_pad != P:
        alphas = alphas[:, :, :P]
    return predictions, encoded_captions, dec_len, alphas


# ---------------------------------------------------------------------------
# Demo
# ---------------------------------------------------------------------------
if __name__ == "__main__":
    key = jax.random.PRNGKey(0)
    vocab = [f"w{i}" for i in range(1000)]          # vocab_size = 1000 (pads to 1024)
    V = len(vocab)
    B, Hs, Ws = 4, 4, 4                             # num_pixels = 16 (no padding needed)
    max_cap_len = 7
    caption_lengths = [7, 6, 5, 4]                  # sorted descending, as the PyTorch loop assumes

    kp, ke, kc = jax.random.split(key, 3)
    params = make_params(kp, V)
    packed = pack_params(params)
    encoder_out = jax.random.normal(ke, (B, Hs, Ws, ENCODER_DIM), jnp.float32)
    encoded_captions = jax.random.randint(kc, (B, max_cap_len), 0, V, dtype=jnp.int32)

    predictions, caps_out, dec_len, alphas = decoder_forward(
        packed, encoder_out, encoded_captions, caption_lengths)
    jax.block_until_ready((predictions, alphas))

    assert predictions.shape == (B, max(dec_len), V)
    assert alphas.shape == (B, max(dec_len), Hs * Ws)
    assert bool(jnp.all(jnp.isfinite(predictions)))
    assert bool(jnp.all(jnp.isfinite(alphas)))
    print("KERNEL_OK")
</pallas_src>

<mosaic_0001>
module attributes {stable_mosaic.version = 11 : i64} {
  func.func @_init_kernel(%arg0: memref<4x16x2048xbf16, #tpu.memory_space<vmem>>, %arg1: memref<2048x1024xbf16, #tpu.memory_space<vmem>>, %arg2: memref<1x1024xf32, #tpu.memory_space<vmem>>, %arg3: memref<2048x512xbf16, #tpu.memory_space<vmem>>, %arg4: memref<1x512xf32, #tpu.memory_space<vmem>>, %arg5: memref<4x1024xf32, #tpu.memory_space<vmem>>, %arg6: memref<4x16x512xf32, #tpu.memory_space<vmem>>) attributes {dimension_semantics = [], scalar_prefetch = 0 : i64, scratch_operands = 0 : i64, tpu.core_type = #tpu.core_type<tc>} {
    %c0 = arith.constant 0 : index
    %c0_0 = arith.constant 0 : index
    %c0_1 = arith.constant 0 : index
    %0 = vector.load %arg0[%c0, %c0_0, %c0_1] : memref<4x16x2048xbf16, #tpu.memory_space<vmem>>, vector<4x16x2048xbf16>
    %1 = arith.extf %0 : vector<4x16x2048xbf16> to vector<4x16x2048xf32>
    %cst = arith.constant dense<0.000000e+00> : vector<4x2048xf32>
    %2 = vector.multi_reduction <add>, %1, %cst [1] : vector<4x16x2048xf32> to vector<4x2048xf32>
    %cst_2 = arith.constant 6.250000e-02 : f32
    %3 = vector.broadcast %cst_2 : f32 to vector<4x2048xf32>
    %4 = arith.mulf %2, %3 : vector<4x2048xf32>
    %5 = arith.truncf %4 : vector<4x2048xf32> to vector<4x2048xbf16>
    %c0_3 = arith.constant 0 : index
    %c0_4 = arith.constant 0 : index
    %6 = vector.load %arg1[%c0_3, %c0_4] : memref<2048x1024xbf16, #tpu.memory_space<vmem>>, vector<2048x1024xbf16>
    %cst_5 = arith.constant dense<0.000000e+00> : vector<4x1024xf32>
    %7 = tpu.matmul %5, %6, %cst_5 {dimension_numbers = #tpu.dot_dimension_numbers<[1], [0], [0], [1], [0, 0, 1, 1], [], []>} : vector<4x2048xbf16>, vector<2048x1024xbf16>, vector<4x1024xf32> -> vector<4x1024xf32>
    %c0_6 = arith.constant 0 : index
    %c0_7 = arith.constant 0 : index
    %8 = vector.load %arg2[%c0_6, %c0_7] : memref<1x1024xf32, #tpu.memory_space<vmem>>, vector<1x1024xf32>
    %9 = vector.broadcast %8 : vector<1x1024xf32> to vector<4x1024xf32>
    %10 = arith.addf %7, %9 : vector<4x1024xf32>
    %c0_8 = arith.constant 0 : index
    %c0_9 = arith.constant 0 : index
    %11 = vector.load %arg5[%c0_8, %c0_9] : memref<4x1024xf32, #tpu.memory_space<vmem>>, vector<4x1024xf32>
    tpu.vector_store %arg5[%c0_8, %c0_9], %10 {strides = array<i32>} : memref<4x1024xf32, #tpu.memory_space<vmem>>, vector<4x1024xf32>,
    %12 = vector.shape_cast %0 : vector<4x16x2048xbf16> to vector<64x2048xbf16>
    %c0_10 = arith.constant 0 : index
    %c0_11 = arith.constant 0 : index
    %13 = vector.load %arg3[%c0_10, %c0_11] : memref<2048x512xbf16, #tpu.memory_space<vmem>>, vector<2048x512xbf16>
    %cst_12 = arith.constant dense<0.000000e+00> : vector<64x512xf32>
    %14 = tpu.matmul %12, %13, %cst_12 {dimension_numbers = #tpu.dot_dimension_numbers<[1], [0], [0], [1], [0, 0, 1, 1], [], []>} : vector<64x2048xbf16>, vector<2048x512xbf16>, vector<64x512xf32> -> vector<64x512xf32>
    %c0_13 = arith.constant 0 : index
    %c0_14 = arith.constant 0 : index
    %15 = vector.load %arg4[%c0_13, %c0_14] : memref<1x512xf32, #tpu.memory_space<vmem>>, vector<1x512xf32>
    %16 = vector.broadcast %15 : vector<1x512xf32> to vector<64x512xf32>
    %17 = arith.addf %14, %16 : vector<64x512xf32>
    %18 = vector.shape_cast %17 : vector<64x512xf32> to vector<4x16x512xf32>
    %c0_15 = arith.constant 0 : index
    %c0_16 = arith.constant 0 : index
    %c0_17 = arith.constant 0 : index
    %19 = vector.load %arg6[%c0_15, %c0_16, %c0_17] : memref<4x16x512xf32, #tpu.memory_space<vmem>>, vector<4x16x512xf32>
    tpu.vector_store %arg6[%c0_15, %c0_16, %c0_17], %18 {strides = array<i32>} : memref<4x16x512xf32, #tpu.memory_space<vmem>>, vector<4x16x512xf32>,
    return
  }
}

</mosaic_0001>

<bundles_post_ra>
// kernel: tpu_custom_call.1
= control target key start
LH: loop header
LB: loop body
LE: loop exit
PB: predicated region body
PF: predicated region fallthrough
CT: control target
= control target key end

     0   :  { %12 = vsyncpa [#allocation3], 0  ;;  %s17221_s0 = inlined_call_operand.hbm [shape: bf16[4,16,2048], index: 0, kind: input, shape index: {}]   ;;  %s17222_s1 = inlined_call_operand.hbm [shape: bf16[2048,1024], index: 1, kind: input, shape index: {}]   ;;  %s17223_s2 = inlined_call_operand.hbm [shape: f32[1,1024], index: 2, kind: input, shape index: {}]   ;;  %s17224_s3 = inlined_call_operand.hbm [shape: bf16[2048,512], index: 3, kind: input, shape index: {}]   ;;  %s17225_s4 = inlined_call_operand.hbm [shape: f32[1,512], index: 4, kind: input, shape index: {}]   ;;  %s17226_s5 = inlined_call_operand.hbm [shape: f32[4,1024], index: 5, kind: output, shape index: {0}]   ;;  %s17227_s6 = inlined_call_operand.hbm [shape: f32[4,16,512], index: 6, kind: output, shape index: {1}]  }
   0x1   :  { %13 = vsyncpa [#allocation6], 0 }
   0x2   :  { %14 = vsyncpa [#allocation9], 0 }
   0x3   :  { %15 = vsyncpa [#allocation4], 0 }
   0x4   :  { %16 = vsyncpa [#allocation13], 0  ;;  %s16218_s21 = smov [#allocation5]   ;;  %s16054_s25 = scalar_lea.hbm %s17222_s1, 131072 }
   0x5   :  { %s34_s22 = sshll.u32 %s16218_s21, 4  ;;  %p16055_p0 = scmp.ne.s32.totalorder %s17222_s1, %s16054_s25  ;;  %s35_s22 = int_to_ptr.vmem [resolvable:$true] %s34_s22 }
   0x6   :  { %p16058_p1 = scmp.lt.u32.totalorder %s16054_s25, %s17222_s1 }
   0x8   :  { %p16060_p2 = pnand %p16058_p1, %p16055_p0 }
   0xa   :  { %16063 = shalt.err (!%p16060_p2)
}
   0xb   :  { %s16064_s30 = scalar_lea.vmem %s35_s22, 131072  ;;  %p16069_p4 = scmp.lt.s32.totalorder %s35_s22, %s35_s22 }
   0xc   :  { %p16065_p3 = scmp.ne.s32.totalorder %s35_s22, %s16064_s30  ;;  %p16070_p5 = scmp.lt.s32.totalorder %s16064_s30, %s16064_s30 }
   0xe   :  { %p16071_p6 = por %p16070_p5, %p16069_p4 }
  0x10   :  { %p16072_p7 = pnand %p16071_p6, %p16065_p3 }
  0x12   :  { %16075 = shalt.err (!%p16072_p7)
}
  0x13   :  { %s16219_s7 = smov 512   ;;  %s16220_s8 = smov 32  }
  0x14   :  { %40 = dma.hbm_to_vmem [thread:$0]  %s17222_s1, 131072, %s35_s22, [#allocation6], %s16219_s7, %s16219_s7, %s16220_s8  }
  0x15   :  { %s16221_s11 = smov [#allocation8]   ;;  %s16076_s15 = scalar_lea.hbm %s17224_s3, 65536 }
  0x16   :  { %s56_s12 = sshll.u32 %s16221_s11, 4  ;;  %p16077_p8 = scmp.ne.s32.totalorder %s17224_s3, %s16076_s15  ;;  %s57_s12 = int_to_ptr.vmem [resolvable:$true] %s56_s12 }
  0x17   :  { %p16080_p9 = scmp.lt.u32.totalorder %s16076_s15, %s17224_s3 }
  0x19   :  { %p16082_p10 = pnand %p16080_p9, %p16077_p8 }
  0x1b   :  { %16085 = shalt.err (!%p16082_p10)
}
  0x1c   :  { %s16086_s20 = scalar_lea.vmem %s57_s12, 65536  ;;  %p16091_p12 = scmp.lt.s32.totalorder %s57_s12, %s57_s12 }
  0x1d   :  { %p16087_p11 = scmp.ne.s32.totalorder %s57_s12, %s16086_s20  ;;  %p16092_p13 = scmp.lt.s32.totalorder %s16086_s20, %s16086_s20 }
  0x1f   :  { %p16093_p0 = por %p16092_p13, %p16091_p12 }
  0x21   :  { %p16094_p1 = pnand %p16093_p0, %p16087_p11 }
  0x23   :  { %16097 = shalt.err (!%p16094_p1)
}
  0x24   :  { %s16222_s1 = smov 256   ;;  %s16223_s21 = smov 16  }
  0x25   :  { %62 = dma.hbm_to_vmem [thread:$0]  %s17224_s3, 65536, %s57_s12, [#allocation9], %s16222_s1, %s16222_s1, %s16223_s21  }
  0x26   :  { %s16224_s24 = smov [#allocation2]   ;;  %s16098_s28 = scalar_lea.hbm %s17221_s0, 8192 }
  0x27   :  { %s22_s25 = sshll.u32 %s16224_s24, 4  ;;  %p16099_p2 = scmp.ne.s32.totalorder %s17221_s0, %s16098_s28  ;;  %s23_s25 = int_to_ptr.vmem [resolvable:$true] %s22_s25 }
  0x28   :  { %p16102_p3 = scmp.lt.u32.totalorder %s16098_s28, %s17221_s0 }
  0x2a   :  { %p16104_p4 = pnand %p16102_p3, %p16099_p2 }
  0x2c   :  { %16107 = shalt.err (!%p16104_p4)
}
  0x2d   :  { %s16108_s11 = scalar_lea.vmem %s23_s25, 8192  ;;  %p16113_p6 = scmp.lt.s32.totalorder %s23_s25, %s23_s25 }
  0x2e   :  { %p16109_p5 = scmp.ne.s32.totalorder %s23_s25, %s16108_s11  ;;  %p16114_p7 = scmp.lt.s32.totalorder %s16108_s11, %s16108_s11 }
  0x30   :  { %p16115_p8 = por %p16114_p7, %p16113_p6 }
  0x32   :  { %p16116_p9 = pnand %p16115_p8, %p16109_p5 }
  0x34   :  { %16119 = shalt.err (!%p16116_p9)
}
  0x35   :  { %s16225_s3 = smov 1024   ;;  %s16226_s12 = smov 64  }
  0x36   :  { %28 = dma.hbm_to_vmem [thread:$0]  %s17221_s0, 8192, %s23_s25, [#allocation3], %s16225_s3, %s16225_s3, %s16226_s12  }
  0x37   :  { %s16227_s15 = smov [#allocation7]   ;;  %s16228_s17 = smov [#allocation10]  }
  0x38   :  { %s47_s16 = sshll.u32 %s16227_s15, 4  ;;  %s69_s18 = sshll.u32 %s16228_s17, 4  ;;  %s48_s16 = int_to_ptr.vmem [resolvable:$true] %s47_s16  ;;  %s70_s18 = int_to_ptr.vmem [resolvable:$true] %s69_s18 }
  0x39   :  { %s16120_s1 = scalar_lea.hbm %s17223_s2, 128 }
  0x3a   :  { %p16121_p10 = scmp.ne.s32.totalorder %s17223_s2, %s16120_s1  ;;  %p16124_p11 = scmp.lt.u32.totalorder %s16120_s1, %s17223_s2 }
  0x3c   :  { %p16126_p12 = pnand %p16124_p11, %p16121_p10 }
  0x3e   :  { %16129 = shalt.err (!%p16126_p12)
}
  0x3f   :  { %s16130_s0 = scalar_lea.vmem %s48_s16, 128  ;;  %p16135_p0 = scmp.lt.s32.totalorder %s48_s16, %s48_s16 }
  0x40   :  { %p16131_p13 = scmp.ne.s32.totalorder %s48_s16, %s16130_s0  ;;  %p16136_p1 = scmp.lt.s32.totalorder %s16130_s0, %s16130_s0 }
  0x42   :  { %p16137_p2 = por %p16136_p1, %p16135_p0 }
  0x44   :  { %p16138_p3 = pnand %p16137_p2, %p16131_p13 }
  0x46   :  { %16141 = shalt.err (!%p16138_p3)
}
  0x47   :  { %50 = dma.hbm_to_vmem [thread:$0]  %s17223_s2, 128, %s48_s16, [#allocation6]  }
  0x48   :  { %s16142_s29 = scalar_lea.hbm %s17225_s4, 64 }
  0x49   :  { %p16143_p4 = scmp.ne.s32.totalorder %s17225_s4, %s16142_s29  ;;  %p16146_p5 = scmp.lt.u32.totalorder %s16142_s29, %s17225_s4 }
  0x4b   :  { %p16148_p6 = pnand %p16146_p5, %p16143_p4 }
  0x4d   :  { %16151 = shalt.err (!%p16148_p6)
}
  0x4e   :  { %s16152_s3 = scalar_lea.vmem %s70_s18, 64  ;;  %p16157_p8 = scmp.lt.s32.totalorder %s70_s18, %s70_s18 }
  0x4f   :  { %p16153_p7 = scmp.ne.s32.totalorder %s70_s18, %s16152_s3  ;;  %p16158_p9 = scmp.lt.s32.totalorder %s16152_s3, %s16152_s3 }
  0x51   :  { %p16159_p10 = por %p16158_p9, %p16157_p8 }
  0x53   :  { %p16160_p11 = pnand %p16159_p10, %p16153_p7 }
  0x55   :  { %16163 = shalt.err (!%p16160_p11)
}
  0x56   :  { %72 = dma.hbm_to_vmem [thread:$0]  %s17225_s4, 64, %s70_s18, [#allocation9]  }
  0x57   :  { %16208 = dma.done.wait [#allocation3], 8192  }
  0x58   :  { %16209 = vsyncadd [#allocation3], 4294959104 }
  0x59   :  { %16210 = dma.done.wait [#allocation6], 131200  }
  0x5a   :  { %16211 = vsyncadd [#allocation6], 4294836096 }
  0x5b   :  { %16212 = dma.done.wait [#allocation9], 65600  }
  0x5c   :  { %16213 = vsyncadd [#allocation9], 4294901696  ;;  %v856_v0 = vld [vmem:[#allocation5] sm:$0xff]  ;;  %v857_v2 = vld [vmem:[#allocation5 + $0x8] sm:$0xff]  ;;  %vm2050_vm0 = vcmask 1041409   ;;  %vm2052_vm1 = vcmask 1042434  }
  0x5d   :  { %v860_v1 = vld [vmem:[#allocation5 + $0x20] sm:$0xff]  ;;  %v861_v4 = vld [vmem:[#allocation5 + $0x28] sm:$0xff]  ;;  %vm2054_vm2 = vcmask 1043459   ;;  %s16229_s4 = smov [#allocation11]  }
  0x5e   :  { %v13233_v3 = vcombine.high %v856_v0, %v860_v1  ;;  %v13232_v5 = vcombine.low %v856_v0, %v860_v1  ;;  %v864_v6 = vld [vmem:[#allocation5 + $0x40] sm:$0xff]  ;;  %v13235_v8 = vcombine.high %v857_v2, %v861_v4  ;;  %v13234_v9 = vcombine.low %v857_v2, %v861_v4  ;;  %v865_v11 = vld [vmem:[#allocation5 + $0x48] sm:$0xff]  ;;  %s13205_s13 = sshll.u32 %s16229_s4, 4  ;;  %s13206_s13 = int_to_ptr.vmem [resolvable:$true] %s13205_s13 }
  0x5f   :  { %v868_v7 = vld [vmem:[#allocation5 + $0x60] sm:$0xff]  ;;  %v869_v12 = vld [vmem:[#allocation5 + $0x68] sm:$0xff]  ;;  %s16164_s14 = scalar_lea.vmem %s13206_s13, 512  ;;  %p16169_p13 = scmp.lt.s32.totalorder %s13206_s13, %s13206_s13 }
  0x60   :  { %v13241_v10 = vcombine.high %v864_v6, %v868_v7  ;;  %v872_v13 = vld [vmem:[#allocation5 + $0x80] sm:$0xff]  ;;  %7253 = vmatprep.subr.bf16.mxu0 %v13233_v3  ;;  %v13243_v14 = vcombine.high %v865_v11, %v869_v12  ;;  %v873_v16 = vld [vmem:[#allocation5 + $0x88] sm:$0xff]  ;;  %7581 = vmatprep.subr.bf16.mxu1 %v13235_v8  ;;  %v13240_v18 = vcombine.low %v864_v6, %v868_v7  ;;  %p16165_p12 = scmp.ne.s32.totalorder %s13206_s13, %s16164_s14  ;;  %p16170_p0 = scmp.lt.s32.totalorder %s16164_s14, %s16164_s14 }
  0x61   :  { %v876_v15 = vld [vmem:[#allocation5 + $0xa0] sm:$0xff]  ;;  %v877_v17 = vld [vmem:[#allocation5 + $0xa8] sm:$0xff]  ;;  %7254 = vmatpush1.bf16.msra.mxu0 %v13232_v5  ;;  %7582 = vmatpush1.bf16.msra.mxu1 %v13234_v9  ;;  %v13242_v19 = vcombine.low %v865_v11, %v869_v12 }
  0x62   :  { %7255 = vmatprep.subr.bf16.mxu0 %v13241_v10  ;;  %v13249_v20 = vcombine.high %v872_v13, %v876_v15  ;;  %7583 = vmatprep.subr.bf16.mxu1 %v13243_v14  ;;  %v13251_v21 = vcombine.high %v873_v16, %v877_v17  ;;  %v880_v22 = vld [vmem:[#allocation5 + $0xc0] sm:$0xff]  ;;  %v881_v24 = vld [vmem:[#allocation5 + $0xc8] sm:$0xff]  ;;  %v13248_v26 = vcombine.low %v872_v13, %v876_v15  ;;  %p16171_p1 = por %p16170_p0, %p16169_p13 }
  0x63   :  { %v884_v23 = vld [vmem:[#allocation5 + $0xe0] sm:$0xff]  ;;  %v885_v25 = vld [vmem:[#allocation5 + $0xe8] sm:$0xff]  ;;  %v13250_v27 = vcombine.low %v873_v16, %v877_v17 }
  0x64   :  { %v13257_v28 = vcombine.high %v880_v22, %v884_v23  ;;  %v13259_v29 = vcombine.high %v881_v24, %v885_v25  ;;  %v888_v30 = vld [vmem:[#allocation5 + $0x100] sm:$0xff]  ;;  %v889_v32 = vld [vmem:[#allocation5 + $0x108] sm:$0xff]  ;;  %v13256_v35 = vcombine.low %v880_v22, %v884_v23  ;;  %v13258_v39 = vcombine.low %v881_v24, %v885_v25  ;;  %p16172_p2 = pnand %p16171_p1, %p16165_p12 }
  0x65   :  { %7256 = vmatpush1.bf16.msra.mxu0 %v13240_v18  ;;  %7584 = vmatpush1.bf16.msra.mxu1 %v13242_v19  ;;  %v892_v31 = vld [vmem:[#allocation5 + $0x120] sm:$0xff]  ;;  %v893_v33 = vld [vmem:[#allocation5 + $0x128] sm:$0xff] }
  0x66   :  { %7257 = vmatprep.subr.bf16.mxu0 %v13249_v20  ;;  %7585 = vmatprep.subr.bf16.mxu1 %v13251_v21  ;;  %v16329_v34 = vld [vmem:[#allocation5 + $0x140] sm:$0xff]  ;;  %v16333_v37 = vld [vmem:[#allocation5 + $0x148] sm:$0xff]  ;;  %v13265_v40 = vcombine.high %v888_v30, %v892_v31  ;;  %v13267_v44 = vcombine.high %v889_v32, %v893_v33  ;;  %v13264_v48 = vcombine.low %v888_v30, %v892_v31 }
  0x67   :  { %v16331_v36 = vld [vmem:[#allocation5 + $0x160] sm:$0xff]  ;;  %v16335_v38 = vld [vmem:[#allocation5 + $0x168] sm:$0xff]  ;;  %v13266_v52 = vcombine.low %v889_v32, %v893_v33 }
  0x68   :  { %v16337_v41 = vld [vmem:[#allocation5 + $0x180] sm:$0xff]  ;;  %v16341_v43 = vld [vmem:[#allocation5 + $0x188] sm:$0xff]  ;;  %v13273_v53 = vcombine.high %v16329_v34, %v16331_v36  ;;  %v13275_v54 = vcombine.high %v16333_v37, %v16335_v38  ;;  %v13272_v55 = vcombine.low %v16329_v34, %v16331_v36  ;;  %v13274_v59 = vcombine.low %v16333_v37, %v16335_v38 }
  0x69   :  { %7258 = vmatpush1.bf16.msra.mxu0 %v13248_v26  ;;  %7586 = vmatpush1.bf16.msra.mxu1 %v13250_v27  ;;  %v16339_v42 = vld [vmem:[#allocation5 + $0x1a0] sm:$0xff]  ;;  %v16343_v45 = vld [vmem:[#allocation5 + $0x1a8] sm:$0xff] }
  0x6a   :  { %7259 = vmatprep.subr.bf16.mxu0 %v13257_v28  ;;  %7587 = vmatprep.subr.bf16.mxu1 %v13259_v29  ;;  %v16345_v46 = vld [vmem:[#allocation5 + $0x1c0] sm:$0xff]  ;;  %v16349_v49 = vld [vmem:[#allocation5 + $0x1c8] sm:$0xff]  ;;  %v13281_v60 = vcombine.high %v16337_v41, %v16339_v42  ;;  %v13280_v61 = vcombine.low %v16337_v41, %v16339_v42  ;;  %v13283_v1 = vcombine.high %v16341_v43, %v16343_v45 }
  0x6b   :  { %v16347_v47 = vld [vmem:[#allocation5 + $0x1e0] sm:$0xff]  ;;  %v16351_v50 = vld [vmem:[#allocation5 + $0x1e8] sm:$0xff]  ;;  %v13282_v2 = vcombine.low %v16341_v43, %v16343_v45 }
  0x6c   :  { %v16353_v51 = vld [vmem:[#allocation5 + $0x200] sm:$0xff]  ;;  %v16363_v57 = vld [vmem:[#allocation5 + $0x208] sm:$0xff]  ;;  %v13289_v3 = vcombine.high %v16345_v46, %v16347_v47  ;;  %v13288_v4 = vcombine.low %v16345_v46, %v16347_v47  ;;  %v13291_v8 = vcombine.high %v16349_v49, %v16351_v50  ;;  %v13290_v9 = vcombine.low %v16349_v49, %v16351_v50 }
  0x6d   :  { %7260 = vmatpush1.bf16.msra.mxu0 %v13256_v35  ;;  %v16361_v56 = vld [vmem:[#allocation5 + $0x220] sm:$0xff]  ;;  %v16365_v58 = vld [vmem:[#allocation5 + $0x228] sm:$0xff]  ;;  %7588 = vmatpush1.bf16.msra.mxu1 %v13258_v39 }
  0x6e   :  { %7261 = vmatprep.subr.bf16.mxu0 %v13265_v40  ;;  %v16373_v62 = vld [vmem:[#allocation5 + $0x240] sm:$0xff]  ;;  %v16377_v0 = vld [vmem:[#allocation5 + $0x248] sm:$0xff]  ;;  %7589 = vmatprep.subr.bf16.mxu1 %v13267_v44  ;;  %v13297_v10 = vcombine.high %v16353_v51, %v16361_v56  ;;  %v13299_v11 = vcombine.high %v16363_v57, %v16365_v58  ;;  %v13296_v14 = vcombine.low %v16353_v51, %v16361_v56 }
  0x6f   :  { %v16375_v63 = vld [vmem:[#allocation5 + $0x260] sm:$0xff]  ;;  %v16387_v5 = vld [vmem:[#allocation5 + $0x268] sm:$0xff]  ;;  %v13298_v15 = vcombine.low %v16363_v57, %v16365_v58 }
  0x70   :  { %v16389_v6 = vld [vmem:[#allocation5 + $0x280] sm:$0xff]  ;;  %v16401_v12 = vld [vmem:[#allocation5 + $0x288] sm:$0xff]  ;;  %v17229_v51 = vcombine.high %v16377_v0, %v16387_v5 }
  0x71   :  { %v16391_v7 = vld [vmem:[#allocation5 + $0x2a0] sm:$0xff]  ;;  %v16403_v13 = vld [vmem:[#allocation5 + $0x2a8] sm:$0xff]  ;;  %7262 = vmatpush1.bf16.msra.mxu0 %v13264_v48  ;;  %7590 = vmatpush1.bf16.msra.mxu1 %v13266_v52 }
  0x72   :  { %v16413_v18 = vld [vmem:[#allocation5 + $0x2c0] sm:$0xff]  ;;  %v16417_v20 = vld [vmem:[#allocation5 + $0x2c8] sm:$0xff]  ;;  %7263 = vmatprep.subr.bf16.mxu0 %v13273_v53  ;;  %7591 = vmatprep.subr.bf16.mxu1 %v13275_v54 }
  0x73   :  { %v16415_v19 = vld [vmem:[#allocation5 + $0x2e0] sm:$0xff]  ;;  %v16425_v24 = vld [vmem:[#allocation5 + $0x2e8] sm:$0xff] }
  0x74   :  { %v88_v25 = vld [vmem:[#allocation2] sm:$0xff]  ;;  %v13321_v54 = vcombine.high %v16413_v18, %v16415_v19 }
  0x75   :  { %v96_v26 = vld [vmem:[#allocation2 + $0x40] sm:$0xff]  ;;  %v153_v32 = vunpack.c.h.bf16 %v88_v25  ;;  %7264 = vmatpush1.bf16.msra.mxu0 %v13272_v55  ;;  %7592 = vmatpush1.bf16.msra.mxu1 %v13274_v59  ;;  %v152_v27 = vunpack.c.l.bf16 %v88_v25  ;;  %v13320_v55 = vcombine.low %v16413_v18, %v16415_v19  ;;  %v973_v18 = vld [vmem:[#allocation5 + $0x3a8] sm:$0xff] }
  0x76   :  { %v104_v29 = vld [vmem:[#allocation2 + $0x80] sm:$0xff]  ;;  %v169_v33 = vunpack.c.h.bf16 %v96_v26  ;;  %7265 = vmatprep.subr.bf16.mxu0 %v13281_v60  ;;  %7593 = vmatprep.subr.bf16.mxu1 %v13283_v1  ;;  %v168_v21 = vunpack.c.l.bf16 %v96_v26 }
  0x77   :  { %v112_v30 = vld [vmem:[#allocation2 + $0xc0] sm:$0xff]  ;;  %v185_v38 = vunpack.c.h.bf16 %v104_v29 }
  0x78   :  { %v120_v31 = vld [vmem:[#allocation2 + $0x100] sm:$0xff]  ;;  %v201_v39 = vunpack.c.h.bf16 %v112_v30  ;;  %v287_v53 = vadd.f32 %v169_v33, %v153_v32  ;;  %v184_v32 = vunpack.c.l.bf16 %v104_v29  ;;  %v200_v59 = vunpack.c.l.bf16 %v112_v30 }
  0x79   :  { %v128_v35 = vld [vmem:[#allocation2 + $0x140] sm:$0xff]  ;;  %v217_v40 = vunpack.c.h.bf16 %v120_v31  ;;  %7266 = vmatpush1.bf16.msra.mxu0 %v13280_v61  ;;  %7594 = vmatpush1.bf16.msra.mxu1 %v13282_v2 }
  0x7a   :  { %v136_v36 = vld [vmem:[#allocation2 + $0x180] sm:$0xff]  ;;  %v233_v44 = vunpack.c.h.bf16 %v128_v35  ;;  %v399_v34 = vadd.f32 %v201_v39, %v185_v38  ;;  %v288_v23 = vrot.slane %v287_v53, 4  ;;  %v216_v38 = vunpack.c.l.bf16 %v120_v31  ;;  %7267 = vmatprep.subr.bf16.mxu0 %v13289_v3  ;;  %7595 = vmatprep.subr.bf16.mxu1 %v13291_v8 }
  0x7b   :  { %v144_v37 = vld [vmem:[#allocation2 + $0x1c0] sm:$0xff]  ;;  %v249_v48 = vunpack.c.h.bf16 %v136_v36  ;;  %v232_v25 = vunpack.c.l.bf16 %v128_v35  ;;  %v248_v26 = vunpack.c.l.bf16 %v136_v36  ;;  %v392_v31 = vadd.f32 %v200_v59, %v184_v32 }
  0x7c   :  { %v265_v52 = vunpack.c.h.bf16 %v144_v37  ;;  %v511_v22 = vadd.f32 %v233_v44, %v217_v40  ;;  %v400_v16 = vrot.slane %v399_v34, 4  ;;  %v289_v60 = vadd.f32 %v288_v23, %v287_v53 }
  0x7d   :  { %v264_v29 = vunpack.c.l.bf16 %v144_v37  ;;  %v280_v23 = vadd.f32 %v168_v21, %v152_v27  ;;  %v504_v43 = vadd.f32 %v232_v25, %v216_v38  ;;  %7268 = vmatpush1.bf16.msra.mxu0 %v13288_v4  ;;  %7596 = vmatpush1.bf16.msra.mxu1 %v13290_v9  ;;  %v17231_v25 = vcombine.low %v16377_v0, %v16387_v5  ;;  %v953_v5 = vld [vmem:[#allocation5 + $0x308] sm:$0xff] }
  0x7e   :  { %v623_v17 = vadd.f32 %v265_v52, %v249_v48  ;;  %v512_v33 = vrot.slane %v511_v22, 4  ;;  %v401_v1 = vadd.f32 %v400_v16, %v399_v34  ;;  %v290_v41 = vrot.slane %v289_v60, 2  ;;  %7269 = vmatprep.subr.bf16.mxu0 %v13297_v10  ;;  %7597 = vmatprep.subr.bf16.mxu1 %v13299_v11 }
  0x7f   :  { %v616_v45 = vadd.f32 %v264_v29, %v248_v26  ;;  %v281_v34 = vrot.slane %v280_v23, 4  ;;  %v505_v21 = vrot.slane %v504_v43, 4  ;;  %v17228_v11 = vcombine.high %v16373_v62, %v16375_v63 }
  0x80   :  { %v624_v28 = vrot.slane %v623_v17, 4  ;;  %v513_v42 = vadd.f32 %v512_v33, %v511_v22  ;;  %v402_v30 = vrot.slane %v401_v1, 2  ;;  %v291_v2 = vadd.f32 %v290_v41, %v289_v60 }
  0x81   :  { %v617_v22 = vrot.slane %v616_v45, 4  ;;  %v282_v27 = vadd.f32 %v281_v34, %v280_v23  ;;  %v506_v50 = vadd.f32 %v505_v21, %v504_v43  ;;  %7270 = vmatpush1.bf16.msra.mxu0 %v13296_v14  ;;  %7598 = vmatpush1.bf16.msra.mxu1 %v13298_v15  ;;  %v17230_v15 = vcombine.low %v16373_v62, %v16375_v63  ;;  %v952_v63 = vld [vmem:[#allocation5 + $0x300] sm:$0xff] }
  0x82   :  { %v625_v61 = vadd.f32 %v624_v28, %v623_v17  ;;  %v514_v3 = vrot.slane %v513_v42, 2  ;;  %v403_v8 = vadd.f32 %v402_v30, %v401_v1  ;;  %v393_v17 = vrot.slane %v392_v31, 4  ;;  %7271 = vmatprep.subr.bf16.mxu0 %v17228_v11  ;;  %7599 = vmatprep.subr.bf16.mxu1 %v17229_v51  ;;  %v956_v23 = vld [vmem:[#allocation5 + $0x320] sm:$0xff] }
  0x83   :  { %v292_v46 = vrot.slane %v291_v2, 1  ;;  %v618_v9 = vadd.f32 %v617_v22, %v616_v45  ;;  %v283_v37 = vrot.slane %v282_v27, 2  ;;  %v507_v44 = vrot.slane %v506_v50, 2  ;;  %v972_v51 = vld [vmem:[#allocation5 + $0x3a0] sm:$0xff] }
  0x84   :  { %v626_v16 = vrot.slane %v625_v61, 2  ;;  %v515_v47 = vadd.f32 %v514_v3, %v513_v42  ;;  %v404_v28 = vrot.slane %v403_v8, 1  ;;  %v394_v49 = vadd.f32 %v393_v17, %v392_v31 }
  0x85   :  { %v293_v10 = vadd.f32 %v292_v46, %v291_v2  ;;  %v619_v48 = vrot.slane %v618_v9, 2  ;;  %v284_v53 = vadd.f32 %v283_v37, %v282_v27  ;;  %v508_v57 = vadd.f32 %v507_v44, %v506_v50  ;;  %7272 = vmatpush1.bf16.msra.mxu0 %v17230_v15  ;;  %7600 = vmatpush1.bf16.msra.mxu1 %v17231_v25  ;;  %v957_v2 = vld [vmem:[#allocation5 + $0x328] sm:$0xff]  ;;  %v960_v50 = vld [vmem:[#allocation5 + $0x340] sm:$0xff] }
  0x86   :  { %v627_v4 = vadd.f32 %v626_v16, %v625_v61  ;;  %v516_v35 = vrot.slane %v515_v47, 1  ;;  %v405_v39 = vadd.f32 %v404_v28, %v403_v8  ;;  %v395_v40 = vrot.slane %v394_v49, 2  ;;  %v980_v15 = vld [vmem:[#allocation5 + $0x3e0] sm:$0xff] }
  0x87   :  { %v729_v52 = vmul.f32 0.0625, %v293_v10  ;;  %v620_v58 = vadd.f32 %v619_v48, %v618_v9  ;;  %v285_v1 = vrot.slane %v284_v53, 1  ;;  %v17232_v26 = vcombine.high %v16389_v6, %v16391_v7  ;;  %v964_v9 = vld [vmem:[#allocation5 + $0x360] sm:$0xff] }
  0x88   :  { %v628_v36 = vrot.slane %v627_v4, 1  ;;  %v517_v56 = vadd.f32 %v516_v35, %v515_v47  ;;  %v745_v32 = vmul.f32 0.0625, %v405_v39  ;;  %v396_v59 = vadd.f32 %v395_v40, %v394_v49  ;;  %v965_v35 = vld [vmem:[#allocation5 + $0x368] sm:$0xff]  ;;  %v968_v48 = vld [vmem:[#allocation5 + $0x380] sm:$0xff] }
  0x89   :  { %v793_v38 = vpack.c.bf16 %v729_v52, %v729_v52  ;;  %7273 = vmatprep.subr.bf16.mxu0 %v17232_v26  ;;  %v509_v42 = vrot.slane %v508_v57, 1  ;;  %v621_v61 = vrot.slane %v620_v58, 1  ;;  %v17233_v62 = vcombine.high %v16401_v12, %v16403_v13  ;;  %v969_v52 = vld [vmem:[#allocation5 + $0x388] sm:$0xff] }
  0x8a   :  { %v629_v14 = vadd.f32 %v628_v36, %v627_v4  ;;  %v761_v60 = vmul.f32 0.0625, %v517_v56  ;;  %v809_v29 = vpack.c.bf16 %v745_v32, %v745_v32  ;;  %v397_v41 = vrot.slane %v396_v59, 1 }
  0x8b   :  { %7601 = vmatprep.subr.bf16.mxu1 %v17233_v62  ;;  %v1987_v43 = vunpack.c.l.b16 %v793_v38  ;;  %v286_v45 = vadd.f32 %v285_v1, %v284_v53  ;;  %v13322_v0 = vcombine.low %v16417_v20, %v16425_v24  ;;  %v510_v34 = vadd.f32 %v509_v42, %v508_v57  ;;  %v981_v38 = vld [vmem:[#allocation5 + $0x3e8] sm:$0xff]  ;;  %v988_v42 = vld [vmem:[#allocation5 + $0x420] sm:$0xff] }
  0x8c   :  { %v777_v33 = vmul.f32 0.0625, %v629_v14  ;;  %v825_v30 = vpack.c.bf16 %v761_v60, %v761_v60  ;;  %v2003_v3 = vunpack.c.l.b16 %v809_v29  ;;  %v398_v16 = vadd.f32 %v397_v41, %v396_v59  ;;  %v984_v41 = vld [vmem:[#allocation5 + $0x400] sm:$0xff] }
  0x8d   :  { %v17234_v8 = vcombine.low %v16389_v6, %v16391_v7  ;;  %v622_v22 = vadd.f32 %v621_v61, %v620_v58  ;;  %v728_v46 = vmul.f32 0.0625, %v286_v45  ;;  %v17235_v47 = vcombine.low %v16401_v12, %v16403_v13  ;;  %v961_v13 = vld [vmem:[#allocation5 + $0x348] sm:$0xff]  ;;  %v976_v58 = vld [vmem:[#allocation5 + $0x3c0] sm:$0xff] }
  0x8e   :  { %v841_v31 = vpack.c.bf16 %v777_v33, %v777_v33  ;;  %v2019_v17 = vunpack.c.l.b16 %v825_v30  ;;  %v13329_v4 = vcombine.high %v952_v63, %v956_v23  ;;  %v2056_v27 = vsel %vm2050_vm0, %v2003_v3, %v1987_v43  ;;  %v977_v33 = vld [vmem:[#allocation5 + $0x3c8] sm:$0xff] }
  0x8f   :  { %7274 = vmatpush1.bf16.msra.mxu0 %v17234_v8  ;;  %7602 = vmatpush1.bf16.msra.mxu1 %v17235_v47  ;;  %v744_v28 = vmul.f32 0.0625, %v398_v16  ;;  %v760_v49 = vmul.f32 0.0625, %v510_v34  ;;  %v17236_v6 = vcombine.high %v16417_v20, %v16425_v24  ;;  %v13331_v7 = vcombine.high %v953_v5, %v957_v2  ;;  %v16513_v30 = vld [vmem:[#allocation2 + $0x8] sm:$0xff]  ;;  %v992_v34 = vld [vmem:[#allocation5 + $0x440] sm:$0xff] }
  0x90   :  { %v2035_v21 = vunpack.c.l.b16 %v841_v31  ;;  %7275 = vmatprep.subr.bf16.mxu0 %v13321_v54  ;;  %v2057_v10 = vsel %vm2052_vm1, %v2019_v17, %v2056_v27  ;;  %v792_v12 = vpack.c.bf16 %v728_v46, %v728_v46  ;;  %v13328_v37 = vcombine.low %v952_v63, %v956_v23  ;;  %v985_v63 = vld [vmem:[#allocation5 + $0x408] sm:$0xff]  ;;  %v996_v8 = vld [vmem:[#allocation5 + $0x460] sm:$0xff] }
  0x91   :  { %7603 = vmatprep.subr.bf16.mxu1 %v17236_v6  ;;  %v808_v54 = vpack.c.bf16 %v744_v28, %v744_v28  ;;  %v776_v20 = vmul.f32 0.0625, %v622_v22  ;;  %v13330_v24 = vcombine.low %v953_v5, %v957_v2  ;;  %v13337_v39 = vcombine.high %v960_v50, %v964_v9  ;;  %v989_v23 = vld [vmem:[#allocation5 + $0x428] sm:$0xff] }
  0x92   :  { %v2058_v36 = vsel %vm2054_vm2, %v2035_v21, %v2057_v10  ;;  %v824_v40 = vpack.c.bf16 %v760_v49, %v760_v49  ;;  %v13339_v44 = vcombine.high %v961_v13, %v965_v35  ;;  %v1986_v56 = vunpack.c.l.b16 %v792_v12  ;;  %v16515_v31 = vld [vmem:[#allocation2 + $0x48] sm:$0xff] }
  0x93   :  { %7276 = vmatpush1.bf16.msra.mxu0 %v13320_v55  ;;  %v16507_v11 = vpack.c.b16 %v2058_v36, %v2058_v36  ;;  %7604 = vmatpush1.bf16.msra.mxu1 %v13322_v0  ;;  %v2002_v14 = vunpack.c.l.b16 %v808_v54  ;;  %v13336_v19 = vcombine.low %v960_v50, %v964_v9  ;;  %v840_v55 = vpack.c.bf16 %v776_v20, %v776_v20  ;;  %v16517_v43 = vld [vmem:[#allocation2 + $0x88] sm:$0xff]  ;;  %v1000_v36 = vld [vmem:[#allocation5 + $0x480] sm:$0xff] }
  0x94   :  { %7277 = vmatprep.subr.bf16.mxu0 %v13329_v4  ;;  %7605 = vmatprep.subr.bf16.mxu1 %v13331_v7  ;;  %v13338_v53 = vcombine.low %v961_v13, %v965_v35  ;;  %v13345_v32 = vcombine.high %v968_v48, %v972_v51  ;;  %v2018_v59 = vunpack.c.l.b16 %v824_v40  ;;  %v13347_v57 = vcombine.high %v969_v52, %v973_v18  ;;  %v16519_v45 = vld [vmem:[#allocation2 + $0xc8] sm:$0xff]  ;;  %v1004_v54 = vld [vmem:[#allocation5 + $0x4a0] sm:$0xff] }
  0x95   :  { %7285 = vmatprep.mubr.bf16.mxu0 %v16507_v11  ;;  %7613 = vmatprep.mubr.bf16.mxu1 %v16507_v11  ;;  %v2051_v60 = vsel %vm2050_vm0, %v2002_v14, %v1986_v56  ;;  %v13344_v1 = vcombine.low %v968_v48, %v972_v51  ;;  %v2034_v25 = vunpack.c.l.b16 %v840_v55  ;;  %v13346_v26 = vcombine.low %v969_v52, %v973_v18  ;;  %v16522_v17 = vld [vmem:[#allocation5 + $0x448] sm:$0xff]  ;;  %v16545_v56 = vld [vmem:[#allocation5 + $0x4c0] sm:$0xff] }
  0x96   :  { %v13353_v29 = vcombine.high %v976_v58, %v980_v15  ;;  %v2053_v61 = vsel %vm2052_vm1, %v2018_v59, %v2051_v60  ;;  %v13355_v62 = vcombine.high %v977_v33, %v981_v38  ;;  %v13352_v0 = vcombine.low %v976_v58, %v980_v15  ;;  %v997_v21 = vld [vmem:[#allocation5 + $0x468] sm:$0xff]  ;;  %v16547_v14 = vld [vmem:[#allocation5 + $0x4e0] sm:$0xff] }
  0x97   :  { %7278 = vmatpush1.bf16.msra.mxu0 %v13328_v37  ;;  %7606 = vmatpush1.bf16.msra.mxu1 %v13330_v24  ;;  %v2055_v5 = vsel %vm2054_vm2, %v2034_v25, %v2053_v61  ;;  %v13354_v2 = vcombine.low %v977_v33, %v981_v38  ;;  %v13361_v3 = vcombine.high %v984_v41, %v988_v42  ;;  %v16524_v22 = vld [vmem:[#allocation2 + $0x108] sm:$0xff]  ;;  %v155_v47 = vunpack.c.h.bf16 %v16513_v30  ;;  %v16562_v61 = vld [vmem:[#allocation5 + $0x520] sm:$0xff] }
  0x98   :  { %7279 = vmatprep.subr.bf16.mxu0 %v13337_v39  ;;  %7607 = vmatprep.subr.bf16.mxu1 %v13339_v44  ;;  %v13363_v16 = vcombine.high %v985_v63, %v989_v23  ;;  %v16526_v46 = vld [vmem:[#allocation2 + $0x148] sm:$0xff]  ;;  %v171_v4 = vunpack.c.h.bf16 %v16515_v31  ;;  %v187_v27 = vunpack.c.h.bf16 %v16517_v43  ;;  %v203_v28 = vunpack.c.h.bf16 %v16519_v45 }
  0x99   :  { %v16532_v49 = vpack.c.b16 %v2055_v5, %v2055_v5  ;;  %v16534_v6 = vld [vmem:[#allocation2 + $0x188] sm:$0xff]  ;;  %v13360_v50 = vcombine.low %v984_v41, %v988_v42  ;;  %v13362_v9 = vcombine.low %v985_v63, %v989_v23  ;;  %v13369_v10 = vcombine.high %v992_v34, %v996_v8  ;;  %v16560_v42 = vld [vmem:[#allocation5 + $0x500] sm:$0xff] }
  0x9a   :  { %v16536_v7 = vld [vmem:[#allocation2 + $0x1c8] sm:$0xff]  ;;  %v13371_v12 = vcombine.high %v16522_v17, %v997_v21  ;;  %v219_v13 = vunpack.c.h.bf16 %v16524_v22  ;;  %v235_v35 = vunpack.c.h.bf16 %v16526_v46  ;;  %v251_v37 = vunpack.c.h.bf16 %v16534_v6 }
  0x9b   :  { %7280 = vmatpush1.bf16.msra.mxu0 %v13336_v19  ;;  %7608 = vmatpush1.bf16.msra.mxu1 %v13338_v53  ;;  %v267_v20 = vunpack.c.h.bf16 %v16536_v7  ;;  %v301_v24 = vadd.f32 %v171_v4, %v155_v47  ;;  %v413_v39 = vadd.f32 %v203_v28, %v187_v27  ;;  %v1001_v40 = vld [vmem:[#allocation5 + $0x488] sm:$0xff]  ;;  %v13368_v51 = vcombine.low %v992_v34, %v996_v8 }
  0x9c   :  { %7281 = vmatprep.subr.bf16.mxu0 %v13345_v32  ;;  %7609 = vmatprep.subr.bf16.mxu1 %v13347_v57  ;;  %v1005_v44 = vld [vmem:[#allocation5 + $0x4a8] sm:$0xff]  ;;  %v525_v48 = vadd.f32 %v235_v35, %v219_v13  ;;  %v13370_v55 = vcombine.low %v16522_v17, %v997_v21  ;;  %v13376_v53 = vcombine.low %v1000_v36, %v1004_v54  ;;  %v186_v34 = vunpack.c.l.bf16 %v16517_v43 }
  0x9d   :  { %v302_v52 = vrot.slane %v301_v24, 4  ;;  %v414_v18 = vrot.slane %v413_v39, 4  ;;  %v637_v19 = vadd.f32 %v267_v20, %v251_v37  ;;  %v13377_v32 = vcombine.high %v1000_v36, %v1004_v54  ;;  %v16550_v59 = vld [vmem:[#allocation5 + $0x4c8] sm:$0xff] }
  0x9e   :  { %v16552_v57 = vld [vmem:[#allocation5 + $0x4e8] sm:$0xff]  ;;  %v526_v58 = vrot.slane %v525_v48, 4  ;;  %v13379_v15 = vcombine.high %v1001_v40, %v1005_v44  ;;  %v13384_v25 = vcombine.low %v16545_v56, %v16547_v14  ;;  %v202_v47 = vunpack.c.l.bf16 %v16519_v45  ;;  %v1024_v45 = vld [vmem:[#allocation5 + $0x540] sm:$0xff] }
  0x9f   :  { %7282 = vmatpush1.bf16.msra.mxu0 %v13344_v1  ;;  %7610 = vmatpush1.bf16.msra.mxu1 %v13346_v26  ;;  %v303_v60 = vadd.f32 %v302_v52, %v301_v24  ;;  %v415_v33 = vadd.f32 %v414_v18, %v413_v39  ;;  %v638_v38 = vrot.slane %v637_v19, 4  ;;  %v13378_v1 = vcombine.low %v1001_v40, %v1005_v44  ;;  %v16566_v5 = vld [vmem:[#allocation5 + $0x528] sm:$0xff] }
  0xa0   :  { %7283 = vmatprep.subr.bf16.mxu0 %v13353_v29  ;;  %7611 = vmatprep.subr.bf16.mxu1 %v13355_v62  ;;  %v13385_v26 = vcombine.high %v16545_v56, %v16547_v14  ;;  %v527_v29 = vadd.f32 %v526_v58, %v525_v48  ;;  %v13387_v41 = vcombine.high %v16550_v59, %v16552_v57  ;;  %v218_v35 = vunpack.c.l.bf16 %v16524_v22  ;;  %v1029_v37 = vld [vmem:[#allocation5 + $0x568] sm:$0xff] }
  0xa1   :  { %v304_v62 = vrot.slane %v303_v60, 2  ;;  %v416_v63 = vrot.slane %v415_v33, 2  ;;  %v639_v23 = vadd.f32 %v638_v38, %v637_v19  ;;  %v13386_v4 = vcombine.low %v16550_v59, %v16552_v57  ;;  %v1032_v19 = vld [vmem:[#allocation5 + $0x580] sm:$0xff]  ;;  %v1037_v58 = vld [vmem:[#allocation5 + $0x5a8] sm:$0xff] }
  0xa2   :  { %v13392_v27 = vcombine.low %v16560_v42, %v16562_v61  ;;  %v13393_v28 = vcombine.high %v16560_v42, %v16562_v61  ;;  %v234_v36 = vunpack.c.l.bf16 %v16526_v46  ;;  %v406_v40 = vadd.f32 %v202_v47, %v186_v34  ;;  %v1040_v61 = vld [vmem:[#allocation5 + $0x5c0] sm:$0xff] }
  0xa3   :  { %7284 = vmatpush1.bf16.msra.mxu0 %v13352_v0  ;;  %7612 = vmatpush1.bf16.msra.mxu1 %v13354_v2  ;;  %v16564_v0 = vld [vmem:[#allocation5 + $0x508] sm:$0xff]  ;;  %v528_v2 = vrot.slane %v527_v29, 2  ;;  %v305_v8 = vadd.f32 %v304_v62, %v303_v60  ;;  %v417_v17 = vadd.f32 %v416_v63, %v415_v33  ;;  %v640_v21 = vrot.slane %v639_v23, 2  ;;  %v1044_v62 = vld [vmem:[#allocation5 + $0x5e0] sm:$0xff] }
  0xa4   :  { %7294 = vmatprep.subr.bf16.mxu0 %v13361_v3  ;;  %7622 = vmatprep.subr.bf16.mxu1 %v13363_v16  ;;  %v154_v3 = vunpack.c.l.bf16 %v16513_v30  ;;  %v170_v16 = vunpack.c.l.bf16 %v16515_v31  ;;  %v13395_v31 = vcombine.high %v16564_v0, %v16566_v5  ;;  %v13394_v44 = vcombine.low %v16564_v0, %v16566_v5  ;;  %v1041_v63 = vld [vmem:[#allocation5 + $0x5c8] sm:$0xff] }
  0xa5   :  { %v529_v30 = vadd.f32 %v528_v2, %v527_v29  ;;  %v306_v43 = vrot.slane %v305_v8, 1  ;;  %v266_v56 = vunpack.c.l.bf16 %v16536_v7  ;;  %v518_v57 = vadd.f32 %v234_v36, %v218_v35 }
  0xa6   :  { %7286 = vmatmul.mubr.bf16.vlgmr.msra.gmra.mrb[0].mxu0 %v16532_v49  ;;  %7614 = vmatmul.mubr.bf16.vlgmr.msra.gmra.mrb[0].mxu1 %v16532_v49  ;;  %v294_v54 = vadd.f32 %v170_v16, %v154_v3  ;;  %v407_v60 = vrot.slane %v406_v40, 4  ;;  %v1045_v3 = vld [vmem:[#allocation5 + $0x5e8] sm:$0xff]  ;;  %v13416_v36 = vcombine.low %v1040_v61, %v1044_v62 }
  0xa7   :  { %7295 = vmatpush1.bf16.msra.mxu0 %v13360_v50  ;;  %7623 = vmatpush1.bf16.msra.mxu1 %v13362_v9  ;;  %v418_v50 = vrot.slane %v417_v17, 1  ;;  %v641_v9 = vadd.f32 %v640_v21, %v639_v23  ;;  %v530_v13 = vrot.slane %v529_v30, 1  ;;  %v307_v20 = vadd.f32 %v306_v43, %v305_v8  ;;  %v1049_v43 = vld [vmem:[#allocation5 + $0x608] sm:$0xff] }
  0xa8   :  { %7296 = vmatprep.subr.bf16.mxu0 %v13369_v10  ;;  %7624 = vmatprep.subr.bf16.mxu1 %v13371_v12  ;;  %v1028_v10 = vld [vmem:[#allocation5 + $0x560] sm:$0xff]  ;;  %v16580_v12 = vld [vmem:[#allocation5 + $0x548] sm:$0xff]  ;;  %v295_v59 = vrot.slane %v294_v54, 4  ;;  %v519_v5 = vrot.slane %v518_v57, 4  ;;  %v408_v8 = vadd.f32 %v407_v60, %v406_v40 }
  0xa9   :  { %v419_v24 = vadd.f32 %v418_v50, %v417_v17  ;;  %v642_v39 = vrot.slane %v641_v9, 1  ;;  %v531_v48 = vadd.f32 %v530_v13, %v529_v30  ;;  %v13401_v14 = vcombine.high %v1024_v45, %v1028_v10  ;;  %v1048_v30 = vld [vmem:[#allocation5 + $0x600] sm:$0xff] }
  0xaa   :  { %v731_v52 = vmul.f32 0.0625, %v307_v20  ;;  %v13403_v18 = vcombine.high %v16580_v12, %v1029_v37  ;;  %v13400_v33 = vcombine.low %v1024_v45, %v1028_v10  ;;  %v296_v0 = vadd.f32 %v295_v59, %v294_v54  ;;  %v1056_v20 = vld [vmem:[#allocation5 + $0x640] sm:$0xff] }
  0xab   :  { %7297 = vmatpush1.bf16.msra.mxu0 %v13368_v51  ;;  %7625 = vmatpush1.bf16.msra.mxu1 %v13370_v55  ;;  %v250_v51 = vunpack.c.l.bf16 %v16534_v6  ;;  %v643_v22 = vadd.f32 %v642_v39, %v641_v9  ;;  %v747_v46 = vmul.f32 0.0625, %v419_v24  ;;  %v1036_v55 = vld [vmem:[#allocation5 + $0x5a0] sm:$0xff]  ;;  %v520_v45 = vadd.f32 %v519_v5, %v518_v57  ;;  %v1057_v39 = vld [vmem:[#allocation5 + $0x648] sm:$0xff] }
  0xac   :  { %7298 = vmatprep.subr.bf16.mxu0 %v13377_v32  ;;  %7626 = vmatprep.subr.bf16.mxu1 %v13379_v15  ;;  %v763_v32 = vmul.f32 0.0625, %v531_v48  ;;  %v795_v15 = vpack.c.bf16 %v731_v52, %v731_v52  ;;  %v13409_v42 = vcombine.high %v1032_v19, %v1036_v55  ;;  %v13408_v47 = vcombine.low %v1032_v19, %v1036_v55  ;;  %v1060_v24 = vld [vmem:[#allocation5 + $0x660] sm:$0xff]  ;;  %v16597_v55 = vld [vmem:[#allocation5 + $0x688] sm:$0xff] }
  0xad   :  { %v779_v6 = vmul.f32 0.0625, %v643_v22  ;;  %v811_v7 = vpack.c.bf16 %v747_v46, %v747_v46  ;;  %v297_v9 = vrot.slane %v296_v0, 2  ;;  %v13419_v10 = vcombine.high %v1041_v63, %v1045_v3  ;;  %v1068_v19 = vld [vmem:[#allocation5 + $0x6a0] sm:$0xff]  ;;  %v1069_v57 = vld [vmem:[#allocation5 + $0x6a8] sm:$0xff] }
  0xae   :  { %v827_v38 = vpack.c.bf16 %v763_v32, %v763_v32  ;;  %v1989_v29 = vunpack.c.l.b16 %v795_v15  ;;  %v409_v13 = vrot.slane %v408_v8, 2  ;;  %v13418_v54 = vcombine.low %v1041_v63, %v1045_v3  ;;  %v16599_v15 = vld [vmem:[#allocation2 + $0x10] sm:$0xff]  ;;  %v16601_v60 = vld [vmem:[#allocation5 + $0x6c0] sm:$0xff] }
  0xaf   :  { %7299 = vmatpush1.bf16.msra.mxu0 %v13376_v53  ;;  %7627 = vmatpush1.bf16.msra.mxu1 %v13378_v1  ;;  %v1033_v53 = vld [vmem:[#allocation5 + $0x588] sm:$0xff]  ;;  %v630_v1 = vadd.f32 %v266_v56, %v250_v51  ;;  %v298_v40 = vadd.f32 %v297_v9, %v296_v0  ;;  %v13433_v46 = vcombine.high %v1056_v20, %v1060_v24  ;;  %v16616_v0 = vld [vmem:[#allocation2 + $0x110] sm:$0xff] }
  0xb0   :  { %7300 = vmatprep.subr.bf16.mxu0 %v13385_v26  ;;  %7628 = vmatprep.subr.bf16.mxu1 %v13387_v41  ;;  %v843_v26 = vpack.c.bf16 %v779_v6, %v779_v6  ;;  %v2005_v41 = vunpack.c.l.b16 %v811_v7  ;;  %v2021_v23 = vunpack.c.l.b16 %v827_v38  ;;  %v13411_v2 = vcombine.high %v1033_v53, %v1037_v58  ;;  %v1061_v51 = vld [vmem:[#allocation5 + $0x668] sm:$0xff] }
  0xb1   :  { %v631_v21 = vrot.slane %v630_v1, 4  ;;  %v410_v56 = vadd.f32 %v409_v13, %v408_v8  ;;  %v13435_v59 = vcombine.high %v1057_v39, %v1061_v51  ;;  %v13432_v7 = vcombine.low %v1056_v20, %v1060_v24  ;;  %v16623_v8 = vld [vmem:[#allocation2 + $0x150] sm:$0xff]  ;;  %v1085_v13 = vld [vmem:[#allocation5 + $0x728] sm:$0xff]  ;;  %v16646_v20 = vld [vmem:[#allocation5 + $0x760] sm:$0xff] }
  0xb2   :  { %v2037_v16 = vunpack.c.l.b16 %v843_v26  ;;  %v2062_v34 = vsel %vm2050_vm0, %v2005_v41, %v1989_v29  ;;  %v13434_v38 = vcombine.low %v1057_v39, %v1061_v51  ;;  %v16607_v26 = vld [vmem:[#allocation5 + $0x6e8] sm:$0xff]  ;;  %v13443_v63 = vcombine.high %v16597_v55, %v1069_v57 }
  0xb3   :  { %7301 = vmatpush1.bf16.msra.mxu0 %v13384_v25  ;;  %7629 = vmatpush1.bf16.msra.mxu1 %v13386_v4  ;;  %v13402_v25 = vcombine.low %v16580_v12, %v1029_v37  ;;  %v2063_v17 = vsel %vm2052_vm1, %v2021_v23, %v2062_v34  ;;  %v13410_v4 = vcombine.low %v1033_v53, %v1037_v58  ;;  %v1053_v12 = vld [vmem:[#allocation5 + $0x628] sm:$0xff]  ;;  %v299_v53 = vrot.slane %v298_v40, 1  ;;  %v16621_v34 = vld [vmem:[#allocation5 + $0x720] sm:$0xff] }
  0xb4   :  { %7302 = vmatprep.subr.bf16.mxu0 %v13393_v28  ;;  %7630 = vmatprep.subr.bf16.mxu1 %v13395_v31  ;;  %v13417_v28 = vcombine.high %v1040_v61, %v1044_v62  ;;  %v1052_v31 = vld [vmem:[#allocation5 + $0x620] sm:$0xff]  ;;  %v632_v35 = vadd.f32 %v631_v21, %v630_v1  ;;  %v13427_v48 = vcombine.high %v1049_v43, %v1053_v12  ;;  %v411_v58 = vrot.slane %v410_v56, 1  ;;  %v16611_v61 = vld [vmem:[#allocation2 + $0x90] sm:$0xff] }
  0xb5   :  { %v13425_v37 = vcombine.high %v1048_v30, %v1052_v31  ;;  %v13424_v22 = vcombine.low %v1048_v30, %v1052_v31  ;;  %v13426_v52 = vcombine.low %v1049_v43, %v1053_v12  ;;  %v300_v29 = vadd.f32 %v299_v53, %v298_v40  ;;  %v16613_v62 = vld [vmem:[#allocation2 + $0xd0] sm:$0xff]  ;;  %v1081_v12 = vld [vmem:[#allocation5 + $0x708] sm:$0xff] }
  0xb6   :  { %v412_v23 = vadd.f32 %v411_v58, %v410_v56  ;;  %v16631_v31 = vld [vmem:[#allocation2 + $0x190] sm:$0xff]  ;;  %v221_v9 = vunpack.c.h.bf16 %v16616_v0  ;;  %v237_v39 = vunpack.c.h.bf16 %v16623_v8  ;;  %v13459_v56 = vcombine.high %v1081_v12, %v1085_v13 }
  0xb7   :  { %7303 = vmatpush1.bf16.msra.mxu0 %v13392_v27  ;;  %7631 = vmatpush1.bf16.msra.mxu1 %v13394_v44  ;;  %v2064_v27 = vsel %vm2054_vm2, %v2037_v16, %v2063_v17  ;;  %v521_v44 = vrot.slane %v520_v45, 2  ;;  %v16619_v16 = vld [vmem:[#allocation5 + $0x700] sm:$0xff]  ;;  %v157_v17 = vunpack.c.h.bf16 %v16599_v15  ;;  %v730_v30 = vmul.f32 0.0625, %v300_v29  ;;  %v16633_v43 = vld [vmem:[#allocation2 + $0x1d0] sm:$0xff]  ;;  %v1097_v29 = vld [vmem:[#allocation5 + $0x788] sm:$0xff] }
  0xb8   :  { %7304 = vmatprep.subr.bf16.mxu0 %v13401_v14  ;;  %7632 = vmatprep.subr.bf16.mxu1 %v13403_v18  ;;  %v16593_v50 = vpack.c.b16 %v2064_v27, %v2064_v27  ;;  %v633_v14 = vrot.slane %v632_v35, 2  ;;  %v1064_v18 = vld [vmem:[#allocation5 + $0x680] sm:$0xff]  ;;  %v253_v40 = vunpack.c.h.bf16 %v16631_v31 }
  0xb9   :  { %v522_v32 = vadd.f32 %v521_v44, %v520_v45  ;;  %v13441_v1 = vcombine.high %v1064_v18, %v1068_v19  ;;  %v13440_v5 = vcombine.low %v1064_v18, %v1068_v19  ;;  %v269_v44 = vunpack.c.h.bf16 %v16633_v43  ;;  %v1093_v18 = vld [vmem:[#allocation5 + $0x768] sm:$0xff] }
  0xba   :  { %7326 = vmatprep.mubr.bf16.mxu0 %v16593_v50  ;;  %7654 = vmatprep.mubr.bf16.mxu1 %v16593_v50  ;;  %v634_v6 = vadd.f32 %v633_v14, %v632_v35  ;;  %v746_v35 = vmul.f32 0.0625, %v412_v23  ;;  %v16651_v14 = vld [vmem:[#allocation5 + $0x748] sm:$0xff] }
  0xbb   :  { %7305 = vmatpush1.bf16.msra.mxu0 %v13400_v33  ;;  %7633 = vmatpush1.bf16.msra.mxu1 %v13402_v25  ;;  %v16603_v33 = vld [vmem:[#allocation5 + $0x6e0] sm:$0xff]  ;;  %v16605_v25 = vld [vmem:[#allocation5 + $0x6c8] sm:$0xff]  ;;  %v523_v41 = vrot.slane %v522_v32, 1 }
  0xbc   :  { %7306 = vmatprep.subr.bf16.mxu0 %v13409_v42  ;;  %7634 = vmatprep.subr.bf16.mxu1 %v13411_v2  ;;  %v16609_v42 = vld [vmem:[#allocation2 + $0x50] sm:$0xff]  ;;  %v13442_v2 = vcombine.low %v16597_v55, %v1069_v57  ;;  %v635_v3 = vrot.slane %v634_v6, 1  ;;  %v13449_v27 = vcombine.high %v16601_v60, %v16603_v33  ;;  %v13448_v45 = vcombine.low %v16601_v60, %v16603_v33 }
  0xbd   :  { %v173_v21 = vunpack.c.h.bf16 %v16609_v42  ;;  %v810_v19 = vpack.c.bf16 %v746_v35, %v746_v35  ;;  %v13458_v57 = vcombine.low %v1081_v12, %v1085_v13  ;;  %v1108_v12 = vld [vmem:[#allocation5 + $0x7e0] sm:$0xff]  ;;  %v1105_v13 = vld [vmem:[#allocation5 + $0x7c8] sm:$0xff] }
  0xbe   :  { %v636_v24 = vadd.f32 %v635_v3, %v634_v6 }
  0xbf   :  { %7307 = vmatpush1.bf16.msra.mxu0 %v13408_v47  ;;  %7635 = vmatpush1.bf16.msra.mxu1 %v13410_v4  ;;  %v189_v47 = vunpack.c.h.bf16 %v16611_v61  ;;  %v205_v4 = vunpack.c.h.bf16 %v16613_v62 }
  0xc0   :  { %7308 = vmatprep.subr.bf16.mxu0 %v13417_v28  ;;  %7636 = vmatprep.subr.bf16.mxu1 %v13419_v10  ;;  %v524_v28 = vadd.f32 %v523_v41, %v522_v32  ;;  %v13451_v10 = vcombine.high %v16605_v25, %v16607_v26  ;;  %v651_v32 = vadd.f32 %v269_v44, %v253_v40 }
  0xc1   :  { %v427_v51 = vadd.f32 %v205_v4, %v189_v47 }
  0xc3   :  { %7309 = vmatpush1.bf16.msra.mxu0 %v13416_v36  ;;  %7637 = vmatpush1.bf16.msra.mxu1 %v13418_v54  ;;  %v13450_v36 = vcombine.low %v16605_v25, %v16607_v26  ;;  %v13457_v54 = vcombine.high %v16619_v16, %v16621_v34  ;;  %v428_v53 = vrot.slane %v427_v51, 4  ;;  %v1096_v25 = vld [vmem:[#allocation5 + $0x780] sm:$0xff] }
  0xc4   :  { %7310 = vmatprep.subr.bf16.mxu0 %v13425_v37  ;;  %7638 = vmatprep.subr.bf16.mxu1 %v13427_v48  ;;  %v16644_v37 = vld [vmem:[#allocation5 + $0x740] sm:$0xff]  ;;  %v315_v48 = vadd.f32 %v173_v21, %v157_v17  ;;  %v13466_v21 = vcombine.low %v16651_v14, %v1093_v18 }
  0xc5   :  { %v13465_v58 = vcombine.high %v16644_v37, %v16646_v20  ;;  %v429_v33 = vadd.f32 %v428_v53, %v427_v51  ;;  %v1100_v26 = vld [vmem:[#allocation5 + $0x7a0] sm:$0xff]  ;;  %v13464_v17 = vcombine.low %v16644_v37, %v16646_v20 }
  0xc6   :  { %v316_v55 = vrot.slane %v315_v48, 4  ;;  %v13472_v40 = vcombine.low %v1096_v25, %v1100_v26 }
  0xc7   :  { %7311 = vmatpush1.bf16.msra.mxu0 %v13424_v22  ;;  %7639 = vmatpush1.bf16.msra.mxu1 %v13426_v52  ;;  %v762_v22 = vmul.f32 0.0625, %v524_v28  ;;  %v794_v52 = vpack.c.bf16 %v730_v30, %v730_v30 }
  0xc8   :  { %7312 = vmatprep.subr.bf16.mxu0 %v13433_v46  ;;  %7640 = vmatprep.subr.bf16.mxu1 %v13435_v59  ;;  %v539_v46 = vadd.f32 %v237_v39, %v221_v9  ;;  %v13456_v59 = vcombine.low %v16619_v16, %v16621_v34  ;;  %v317_v60 = vadd.f32 %v316_v55, %v315_v48  ;;  %v430_v16 = vrot.slane %v429_v33, 2 }
  0xc9   :  { %v826_v41 = vpack.c.bf16 %v762_v22, %v762_v22  ;;  %v13473_v9 = vcombine.high %v1096_v25, %v1100_v26 }
  0xca   :  { %v540_v6 = vrot.slane %v539_v46, 4  ;;  %v318_v3 = vrot.slane %v317_v60, 2  ;;  %v431_v28 = vadd.f32 %v430_v16, %v429_v33 }
  0xcb   :  { %7313 = vmatpush1.bf16.msra.mxu0 %v13432_v7  ;;  %7641 = vmatpush1.bf16.msra.mxu1 %v13434_v38  ;;  %v778_v7 = vmul.f32 0.0625, %v636_v24  ;;  %v652_v38 = vrot.slane %v651_v32, 4  ;;  %v2020_v35 = vunpack.c.l.b16 %v826_v41  ;;  %v1120_v41 = vld [vmem:[#allocation5 + $0x840] sm:$0xff] }
  0xcc   :  { %7314 = vmatprep.subr.bf16.mxu0 %v13441_v1  ;;  %7642 = vmatprep.subr.bf16.mxu1 %v13443_v63  ;;  %v13467_v1 = vcombine.high %v16651_v14, %v1093_v18  ;;  %v1988_v63 = vunpack.c.l.b16 %v794_v52  ;;  %v541_v23 = vadd.f32 %v540_v6, %v539_v46  ;;  %v432_v24 = vrot.slane %v431_v28, 1  ;;  %v1112_v46 = vld [vmem:[#allocation5 + $0x800] sm:$0xff] }
  0xcd   :  { %v653_v34 = vadd.f32 %v652_v38, %v651_v32  ;;  %v842_v4 = vpack.c.bf16 %v778_v7, %v778_v7  ;;  %v1116_v18 = vld [vmem:[#allocation5 + $0x820] sm:$0xff] }
  0xce   :  { %v542_v47 = vrot.slane %v541_v23, 2  ;;  %v433_v14 = vadd.f32 %v432_v24, %v431_v28 }
  0xcf   :  { %7315 = vmatpush1.bf16.msra.mxu0 %v13440_v5  ;;  %7643 = vmatpush1.bf16.msra.mxu1 %v13442_v2  ;;  %v1101_v5 = vld [vmem:[#allocation5 + $0x7a8] sm:$0xff]  ;;  %v2004_v2 = vunpack.c.l.b16 %v810_v19  ;;  %v654_v30 = vrot.slane %v653_v34, 2  ;;  %v2036_v51 = vunpack.c.l.b16 %v842_v4  ;;  %v13488_v4 = vcombine.low %v1112_v46, %v1116_v18 }
  0xd0   :  { %7316 = vmatprep.subr.bf16.mxu0 %v13449_v27  ;;  %7644 = vmatprep.subr.bf16.mxu1 %v13451_v10  ;;  %v319_v27 = vadd.f32 %v318_v3, %v317_v60  ;;  %v1104_v10 = vld [vmem:[#allocation5 + $0x7c0] sm:$0xff]  ;;  %v13474_v44 = vcombine.low %v1097_v29, %v1101_v5  ;;  %v1113_v19 = vld [vmem:[#allocation5 + $0x808] sm:$0xff]  ;;  %v749_v6 = vmul.f32 0.0625, %v433_v14 }
  0xd1   :  { %v2059_v37 = vsel %vm2050_vm0, %v2004_v2, %v1988_v63  ;;  %v655_v39 = vadd.f32 %v654_v30, %v653_v34  ;;  %v13481_v52 = vcombine.high %v1104_v10, %v1108_v12  ;;  %v13480_v7 = vcombine.low %v1104_v10, %v1108_v12  ;;  %v1124_v63 = vld [vmem:[#allocation5 + $0x860] sm:$0xff]  ;;  %v1125_v3 = vld [vmem:[#allocation5 + $0x868] sm:$0xff] }
  0xd2   :  { %v320_v20 = vrot.slane %v319_v27, 1  ;;  %v2060_v55 = vsel %vm2052_vm1, %v2020_v35, %v2059_v37  ;;  %v813_v25 = vpack.c.bf16 %v749_v6, %v749_v6  ;;  %v1132_v10 = vld [vmem:[#allocation5 + $0x8a0] sm:$0xff]  ;;  %v1129_v12 = vld [vmem:[#allocation5 + $0x888] sm:$0xff] }
  0xd3   :  { %7317 = vmatpush1.bf16.msra.mxu0 %v13448_v45  ;;  %7645 = vmatpush1.bf16.msra.mxu1 %v13450_v36  ;;  %v13475_v45 = vcombine.high %v1097_v29, %v1101_v5  ;;  %v543_v36 = vadd.f32 %v542_v47, %v541_v23  ;;  %v656_v22 = vrot.slane %v655_v39, 1  ;;  %v2061_v33 = vsel %vm2054_vm2, %v2036_v51, %v2060_v55  ;;  %v1121_v23 = vld [vmem:[#allocation5 + $0x848] sm:$0xff] }
  0xd4   :  { %7318 = vmatprep.subr.bf16.mxu0 %v13457_v54  ;;  %7646 = vmatprep.subr.bf16.mxu1 %v13459_v56  ;;  %v1109_v54 = vld [vmem:[#allocation5 + $0x7e8] sm:$0xff]  ;;  %v321_v56 = vadd.f32 %v320_v20, %v319_v27  ;;  %v13489_v29 = vcombine.high %v1112_v46, %v1116_v18  ;;  %v13499_v35 = vcombine.high %v1121_v23, %v1125_v3  ;;  %v1144_v46 = vld [vmem:[#allocation5 + $0x900] sm:$0xff]  ;;  %v156_v55 = vunpack.c.l.bf16 %v16599_v15 }
  0xd5   :  { %v544_v48 = vrot.slane %v543_v36, 1  ;;  %v13483_v32 = vcombine.high %v1105_v13, %v1109_v54  ;;  %v13482_v26 = vcombine.low %v1105_v13, %v1109_v54  ;;  %v13496_v20 = vcombine.low %v1120_v41, %v1124_v63  ;;  %v1148_v18 = vld [vmem:[#allocation5 + $0x920] sm:$0xff] }
  0xd6   :  { %v13498_v24 = vcombine.low %v1121_v23, %v1125_v3  ;;  %v220_v15 = vunpack.c.l.bf16 %v16616_v0  ;;  %v16695_v23 = vld [vmem:[#allocation2 + $0xd8] sm:$0xff]  ;;  %v16699_v0 = vld [vmem:[#allocation5 + $0x9a0] sm:$0xff]  ;;  %v16703_v3 = vld [vmem:[#allocation5 + $0x9a8] sm:$0xff] }
  0xd7   :  { %7319 = vmatpush1.bf16.msra.mxu0 %v13456_v59  ;;  %7647 = vmatpush1.bf16.msra.mxu1 %v13458_v57  ;;  %v545_v53 = vadd.f32 %v544_v48, %v543_v36  ;;  %v1117_v59 = vld [vmem:[#allocation5 + $0x828] sm:$0xff]  ;;  %v657_v57 = vadd.f32 %v656_v22, %v655_v39 }
  0xd8   :  { %7320 = vmatprep.subr.bf16.mxu0 %v13465_v58  ;;  %7648 = vmatprep.subr.bf16.mxu1 %v13467_v1  ;;  %v733_v58 = vmul.f32 0.0625, %v321_v56  ;;  %v13491_v2 = vcombine.high %v1113_v19, %v1117_v59  ;;  %v13490_v30 = vcombine.low %v1113_v19, %v1117_v59  ;;  %v1133_v36 = vld [vmem:[#allocation5 + $0x8a8] sm:$0xff]  ;;  %v204_v59 = vunpack.c.l.bf16 %v16613_v62 }
  0xd9   :  { %v765_v60 = vmul.f32 0.0625, %v545_v53  ;;  %v781_v38 = vmul.f32 0.0625, %v657_v57  ;;  %v1137_v48 = vld [vmem:[#allocation5 + $0x8c8] sm:$0xff]  ;;  %v13507_v51 = vcombine.high %v1129_v12, %v1133_v36  ;;  %v13506_v22 = vcombine.low %v1129_v12, %v1133_v36 }
  0xda   :  { %v797_v1 = vpack.c.bf16 %v733_v58, %v733_v58  ;;  %v1141_v56 = vld [vmem:[#allocation5 + $0x8e8] sm:$0xff]  ;;  %v172_v53 = vunpack.c.l.bf16 %v16609_v42  ;;  %v236_v42 = vunpack.c.l.bf16 %v16623_v8 }
  0xdb   :  { %7321 = vmatpush1.bf16.msra.mxu0 %v13464_v17  ;;  %7649 = vmatpush1.bf16.msra.mxu1 %v13466_v21  ;;  %v829_v5 = vpack.c.bf16 %v765_v60, %v765_v60  ;;  %v845_v16 = vpack.c.bf16 %v781_v38, %v781_v38  ;;  %v2007_v17 = vunpack.c.l.b16 %v813_v25  ;;  %v16664_v21 = vpack.c.b16 %v2061_v33, %v2061_v33  ;;  %v1145_v19 = vld [vmem:[#allocation5 + $0x908] sm:$0xff]  ;;  %v16679_v60 = vld [vmem:[#allocation5 + $0x940] sm:$0xff] }
  0xdc   :  { %7322 = vmatprep.subr.bf16.mxu0 %v13473_v9  ;;  %7650 = vmatprep.subr.bf16.mxu1 %v13475_v45  ;;  %v1991_v34 = vunpack.c.l.b16 %v797_v1  ;;  %v13497_v9 = vcombine.high %v1120_v41, %v1124_v63  ;;  %v1128_v45 = vld [vmem:[#allocation5 + $0x880] sm:$0xff]  ;;  %v13515_v57 = vcombine.high %v1137_v48, %v1141_v56  ;;  %v1149_v58 = vld [vmem:[#allocation5 + $0x928] sm:$0xff]  ;;  %v308_v62 = vadd.f32 %v172_v53, %v156_v55  ;;  %v16693_v41 = vld [vmem:[#allocation2 + $0x98] sm:$0xff] }
  0xdd   :  { %v2023_v47 = vunpack.c.l.b16 %v829_v5  ;;  %v2039_v27 = vunpack.c.l.b16 %v845_v16  ;;  %v13505_v39 = vcombine.high %v1128_v45, %v1132_v10  ;;  %v13504_v14 = vcombine.low %v1128_v45, %v1132_v10  ;;  %v16681_v33 = vld [vmem:[#allocation5 + $0x960] sm:$0xff]  ;;  %v16683_v38 = vld [vmem:[#allocation5 + $0x948] sm:$0xff]  ;;  %v16713_v45 = vld [vmem:[#allocation2 + $0x158] sm:$0xff] }
  0xde   :  { %v2068_v28 = vsel %vm2050_vm0, %v2007_v17, %v1991_v34  ;;  %v16685_v1 = vld [vmem:[#allocation5 + $0x968] sm:$0xff]  ;;  %v13523_v63 = vcombine.high %v1145_v19, %v1149_v58  ;;  %v13520_v5 = vcombine.low %v1144_v46, %v1148_v18  ;;  %v13522_v16 = vcombine.low %v1145_v19, %v1149_v58  ;;  %v16715_v10 = vld [vmem:[#allocation2 + $0x198] sm:$0xff] }
  0xdf   :  { %7323 = vmatpush1.bf16.msra.mxu0 %v13472_v40  ;;  %7651 = vmatpush1.bf16.msra.mxu1 %v13474_v44  ;;  %v2069_v13 = vsel %vm2052_vm1, %v2023_v47, %v2068_v28  ;;  %v1136_v40 = vld [vmem:[#allocation5 + $0x8c0] sm:$0xff]  ;;  %v16701_v8 = vld [vmem:[#allocation5 + $0x988] sm:$0xff]  ;;  %v252_v34 = vunpack.c.l.bf16 %v16631_v31  ;;  %v268_v17 = vunpack.c.l.bf16 %v16633_v43  ;;  %v532_v47 = vadd.f32 %v236_v42, %v220_v15  ;;  %v16717_v31 = vld [vmem:[#allocation2 + $0x1d8] sm:$0xff] }
  0xe0   :  { %7324 = vmatprep.subr.bf16.mxu0 %v13481_v52  ;;  %7652 = vmatprep.subr.bf16.mxu1 %v13483_v32  ;;  %v2070_v54 = vsel %vm2054_vm2, %v2039_v27, %v2069_v13  ;;  %v1140_v44 = vld [vmem:[#allocation5 + $0x8e0] sm:$0xff]  ;;  %v188_v32 = vunpack.c.l.bf16 %v16611_v61  ;;  %v13521_v61 = vcombine.high %v1144_v46, %v1148_v18  ;;  %v13531_v27 = vcombine.high %v16683_v38, %v16685_v1  ;;  %v1173_v46 = vld [vmem:[#allocation5 + $0x9e8] sm:$0xff] }
  0xe1   :  { %v16670_v37 = vpack.c.b16 %v2070_v54, %v2070_v54  ;;  %v13513_v52 = vcombine.high %v1136_v40, %v1140_v44  ;;  %v13512_v6 = vcombine.low %v1136_v40, %v1140_v44  ;;  %v309_v28 = vrot.slane %v308_v62, 4  ;;  %v1168_v44 = vld [vmem:[#allocation5 + $0x9c0] sm:$0xff]  ;;  %v1177_v42 = vld [vmem:[#allocation5 + $0xa08] sm:$0xff] }
  0xe2   :  { %v420_v25 = vadd.f32 %v204_v59, %v188_v32  ;;  %v191_v13 = vunpack.c.h.bf16 %v16693_v41  ;;  %v13528_v36 = vcombine.low %v16679_v60, %v16681_v33  ;;  %v13530_v54 = vcombine.low %v16683_v38, %v16685_v1  ;;  %v1176_v1 = vld [vmem:[#allocation5 + $0xa00] sm:$0xff] }
  0xe3   :  { %7325 = vmatpush1.bf16.msra.mxu0 %v13480_v7  ;;  %7653 = vmatpush1.bf16.msra.mxu1 %v13482_v26  ;;  %v13514_v7 = vcombine.low %v1137_v48, %v1141_v56  ;;  %v16689_v26 = vld [vmem:[#allocation2 + $0x18] sm:$0xff]  ;;  %v644_v40 = vadd.f32 %v268_v17, %v252_v34  ;;  %v1172_v48 = vld [vmem:[#allocation5 + $0x9e0] sm:$0xff]  ;;  %v310_v56 = vadd.f32 %v309_v28, %v308_v62  ;;  %v255_v18 = vunpack.c.h.bf16 %v16715_v10 }
  0xe4   :  { %7335 = vmatprep.subr.bf16.mxu0 %v13489_v29  ;;  %7663 = vmatprep.subr.bf16.mxu1 %v13491_v2  ;;  %v16691_v29 = vld [vmem:[#allocation2 + $0x58] sm:$0xff]  ;;  %v16697_v2 = vld [vmem:[#allocation5 + $0x980] sm:$0xff]  ;;  %v159_v43 = vunpack.c.h.bf16 %v16689_v26  ;;  %v271_v19 = vunpack.c.h.bf16 %v16717_v31  ;;  %v13538_v59 = vcombine.low %v16701_v8, %v16703_v3 }
  0xe5   :  { %v175_v12 = vunpack.c.h.bf16 %v16691_v29  ;;  %v13536_v32 = vcombine.low %v16697_v2, %v16699_v0  ;;  %v645_v58 = vrot.slane %v644_v40, 4  ;;  %v1180_v15 = vld [vmem:[#allocation5 + $0xa20] sm:$0xff] }
  0xe6   :  { %7327 = vmatmul.mubr.bf16.vlgmr.msra.gmra.mrb[0].mxu0 %v16664_v21  ;;  %7655 = vmatmul.mubr.bf16.vlgmr.msra.gmra.mrb[0].mxu1 %v16664_v21  ;;  %v1188_v28 = vld [vmem:[#allocation5 + $0xa60] sm:$0xff] }
  0xe7   :  { %7336 = vmatpush1.bf16.msra.mxu0 %v13488_v4  ;;  %7664 = vmatpush1.bf16.msra.mxu1 %v13490_v30  ;;  %v13529_v4 = vcombine.high %v16679_v60, %v16681_v33  ;;  %v421_v30 = vrot.slane %v420_v25, 4  ;;  %v329_v55 = vadd.f32 %v175_v12, %v159_v43  ;;  %v665_v60 = vadd.f32 %v271_v19, %v255_v18 }
  0xe8   :  { %7337 = vmatprep.subr.bf16.mxu0 %v13497_v9  ;;  %7665 = vmatprep.subr.bf16.mxu1 %v13499_v35  ;;  %v16711_v9 = vld [vmem:[#allocation2 + $0x118] sm:$0xff]  ;;  %v207_v35 = vunpack.c.h.bf16 %v16695_v23  ;;  %v13545_v33 = vcombine.high %v1168_v44, %v1172_v48  ;;  %v646_v34 = vadd.f32 %v645_v58, %v644_v40 }
  0xe9   :  { %7367 = vmatprep.mubr.bf16.mxu0 %v16670_v37  ;;  %7695 = vmatprep.mubr.bf16.mxu1 %v16670_v37 }
  0xea   :  { %v441_v53 = vadd.f32 %v207_v35, %v191_v13  ;;  %v1189_v35 = vld [vmem:[#allocation5 + $0xa68] sm:$0xff] }
  0xeb   :  { %7338 = vmatpush1.bf16.msra.mxu0 %v13496_v20  ;;  %7666 = vmatpush1.bf16.msra.mxu1 %v13498_v24  ;;  %v13537_v20 = vcombine.high %v16697_v2, %v16699_v0  ;;  %v13539_v24 = vcombine.high %v16701_v8, %v16703_v3  ;;  %v666_v8 = vrot.slane %v665_v60, 4  ;;  %v13544_v3 = vcombine.low %v1168_v44, %v1172_v48 }
  0xec   :  { %7339 = vmatprep.subr.bf16.mxu0 %v13505_v39  ;;  %7667 = vmatprep.subr.bf16.mxu1 %v13507_v51  ;;  %v533_v39 = vrot.slane %v532_v47, 4  ;;  %v1169_v51 = vld [vmem:[#allocation5 + $0x9c8] sm:$0xff]  ;;  %v647_v44 = vrot.slane %v646_v34, 2 }
  0xed   :  { %v13547_v38 = vcombine.high %v1169_v51, %v1173_v46 }
  0xee   :  { %v648_v58 = vadd.f32 %v647_v44, %v646_v34  ;;  %v1220_v44 = vld [vmem:[#allocation5 + $0xb60] sm:$0xff] }
  0xef   :  { %7340 = vmatpush1.bf16.msra.mxu0 %v13504_v14  ;;  %7668 = vmatpush1.bf16.msra.mxu1 %v13506_v22  ;;  %v422_v14 = vadd.f32 %v421_v30, %v420_v25  ;;  %v223_v22 = vunpack.c.h.bf16 %v16711_v9  ;;  %v1181_v25 = vld [vmem:[#allocation5 + $0xa28] sm:$0xff] }
  0xf0   :  { %7341 = vmatprep.subr.bf16.mxu0 %v13513_v52  ;;  %7669 = vmatprep.subr.bf16.mxu1 %v13515_v57  ;;  %v239_v52 = vunpack.c.h.bf16 %v16713_v45  ;;  %v1185_v30 = vld [vmem:[#allocation5 + $0xa48] sm:$0xff]  ;;  %v13555_v13 = vcombine.high %v1177_v42, %v1181_v25 }
  0xf2   :  { %v553_v57 = vadd.f32 %v239_v52, %v223_v22  ;;  %v1196_v22 = vld [vmem:[#allocation5 + $0xaa0] sm:$0xff]  ;;  %v1193_v52 = vld [vmem:[#allocation5 + $0xa88] sm:$0xff] }
  0xf3   :  { %7342 = vmatpush1.bf16.msra.mxu0 %v13512_v6  ;;  %7670 = vmatpush1.bf16.msra.mxu1 %v13514_v7  ;;  %v330_v6 = vrot.slane %v329_v55, 4  ;;  %v442_v7 = vrot.slane %v441_v53, 4 }
  0xf4   :  { %7343 = vmatprep.subr.bf16.mxu0 %v13521_v61  ;;  %7671 = vmatprep.subr.bf16.mxu1 %v13523_v63  ;;  %v534_v61 = vadd.f32 %v533_v39, %v532_v47  ;;  %v554_v62 = vrot.slane %v553_v57, 4  ;;  %v311_v63 = vrot.slane %v310_v56, 2  ;;  %v13554_v39 = vcombine.low %v1177_v42, %v1181_v25 }
  0xf5   :  { %v331_v2 = vadd.f32 %v330_v6, %v329_v55  ;;  %v443_v0 = vadd.f32 %v442_v7, %v441_v53  ;;  %v13563_v55 = vcombine.high %v1185_v30, %v1189_v35  ;;  %v1197_v53 = vld [vmem:[#allocation5 + $0xaa8] sm:$0xff] }
  0xf6   :  { %v555_v17 = vadd.f32 %v554_v62, %v553_v57  ;;  %v535_v47 = vrot.slane %v534_v61, 2  ;;  %v13562_v57 = vcombine.low %v1185_v30, %v1189_v35  ;;  %v1205_v62 = vld [vmem:[#allocation5 + $0xae8] sm:$0xff]  ;;  %v1212_v30 = vld [vmem:[#allocation5 + $0xb20] sm:$0xff] }
  0xf7   :  { %7344 = vmatpush1.bf16.msra.mxu0 %v13520_v5  ;;  %7672 = vmatpush1.bf16.msra.mxu1 %v13522_v16  ;;  %v423_v5 = vrot.slane %v422_v14, 2  ;;  %v13546_v16 = vcombine.low %v1169_v51, %v1173_v46  ;;  %v332_v43 = vrot.slane %v331_v2, 2  ;;  %v444_v12 = vrot.slane %v443_v0, 2  ;;  %v1192_v51 = vld [vmem:[#allocation5 + $0xa80] sm:$0xff] }
  0xf8   :  { %7345 = vmatprep.subr.bf16.mxu0 %v13529_v4  ;;  %7673 = vmatprep.subr.bf16.mxu1 %v13531_v27  ;;  %v13553_v4 = vcombine.high %v1176_v1, %v1180_v15  ;;  %v1184_v27 = vld [vmem:[#allocation5 + $0xa40] sm:$0xff]  ;;  %v556_v48 = vrot.slane %v555_v17, 2  ;;  %v536_v46 = vadd.f32 %v535_v47, %v534_v61  ;;  %v13569_v7 = vcombine.high %v1192_v51, %v1196_v22 }
  0xf9   :  { %v13561_v40 = vcombine.high %v1184_v27, %v1188_v28  ;;  %v333_v18 = vadd.f32 %v332_v43, %v331_v2  ;;  %v445_v19 = vadd.f32 %v444_v12, %v443_v0  ;;  %v13571_v61 = vcombine.high %v1193_v52, %v1197_v53  ;;  %v1209_v12 = vld [vmem:[#allocation5 + $0xb08] sm:$0xff] }
  0xfa   :  { %v557_v6 = vadd.f32 %v556_v48, %v555_v17  ;;  %v13570_v0 = vcombine.low %v1193_v52, %v1197_v53  ;;  %v1217_v48 = vld [vmem:[#allocation5 + $0xb48] sm:$0xff] }
  0xfb   :  { %7346 = vmatpush1.bf16.msra.mxu0 %v13528_v36  ;;  %7674 = vmatpush1.bf16.msra.mxu1 %v13530_v54  ;;  %v312_v36 = vadd.f32 %v311_v63, %v310_v56  ;;  %v424_v54 = vadd.f32 %v423_v5, %v422_v14  ;;  %v446_v42 = vrot.slane %v445_v19, 1  ;;  %v13568_v5 = vcombine.low %v1192_v51, %v1196_v22 }
  0xfc   :  { %7347 = vmatprep.subr.bf16.mxu0 %v13537_v20  ;;  %7675 = vmatprep.subr.bf16.mxu1 %v13539_v24  ;;  %v13552_v20 = vcombine.low %v1176_v1, %v1180_v15  ;;  %v667_v24 = vadd.f32 %v666_v8, %v665_v60  ;;  %v1200_v60 = vld [vmem:[#allocation5 + $0xac0] sm:$0xff]  ;;  %v537_v1 = vrot.slane %v536_v46, 1  ;;  %v334_v15 = vrot.slane %v333_v18, 1 }
  0xfd   :  { %v313_v56 = vrot.slane %v312_v36, 1  ;;  %v425_v14 = vrot.slane %v424_v54, 1 }
  0xfe   :  { %v538_v34 = vadd.f32 %v537_v1, %v536_v46  ;;  %v335_v17 = vadd.f32 %v334_v15, %v333_v18  ;;  %v1221_v18 = vld [vmem:[#allocation5 + $0xb68] sm:$0xff] }
  0xff   :  { %7348 = vmatpush1.bf16.msra.mxu0 %v13536_v32  ;;  %7676 = vmatpush1.bf16.msra.mxu1 %v13538_v59  ;;  %v668_v32 = vrot.slane %v667_v24, 2  ;;  %v13560_v59 = vcombine.low %v1184_v27, %v1188_v28  ;;  %v314_v25 = vadd.f32 %v313_v56, %v312_v36  ;;  %v426_v63 = vadd.f32 %v425_v14, %v424_v54  ;;  %v1208_v28 = vld [vmem:[#allocation5 + $0xb00] sm:$0xff]  ;;  %v1229_v15 = vld [vmem:[#allocation5 + $0xba8] sm:$0xff] }
 0x100   :  { %7349 = vmatprep.subr.bf16.mxu0 %v13545_v33  ;;  %7677 = vmatprep.subr.bf16.mxu1 %v13547_v38  ;;  %v1204_v33 = vld [vmem:[#allocation5 + $0xae0] sm:$0xff]  ;;  %v1201_v38 = vld [vmem:[#allocation5 + $0xac8] sm:$0xff]  ;;  %v764_v51 = vmul.f32 0.0625, %v538_v34  ;;  %v735_v22 = vmul.f32 0.0625, %v335_v17  ;;  %v13584_v53 = vcombine.low %v1208_v28, %v1212_v30  ;;  %v13595_v1 = vcombine.high %v1217_v48, %v1221_v18 }
 0x101   :  { %v669_v2 = vadd.f32 %v668_v32, %v667_v24  ;;  %v13577_v8 = vcombine.high %v1200_v60, %v1204_v33  ;;  %v13579_v27 = vcombine.high %v1201_v38, %v1205_v62  ;;  %v732_v47 = vmul.f32 0.0625, %v314_v25 }
 0x102   :  { %v748_v43 = vmul.f32 0.0625, %v426_v63  ;;  %v13576_v36 = vcombine.low %v1200_v60, %v1204_v33  ;;  %v13578_v54 = vcombine.low %v1201_v38, %v1205_v62  ;;  %v828_v60 = vpack.c.bf16 %v764_v51, %v764_v51 }
 0x103   :  { %7350 = vmatpush1.bf16.msra.mxu0 %v13544_v3  ;;  %7678 = vmatpush1.bf16.msra.mxu1 %v13546_v16  ;;  %v649_v3 = vrot.slane %v648_v58, 1  ;;  %v558_v16 = vrot.slane %v557_v6, 1  ;;  %v670_v35 = vrot.slane %v669_v2, 1  ;;  %v799_v33 = vpack.c.bf16 %v735_v22, %v735_v22 }
 0x104   :  { %7351 = vmatprep.subr.bf16.mxu0 %v13553_v4  ;;  %7679 = vmatprep.subr.bf16.mxu1 %v13555_v13  ;;  %v447_v4 = vadd.f32 %v446_v42, %v445_v19  ;;  %v1213_v13 = vld [vmem:[#allocation5 + $0xb28] sm:$0xff]  ;;  %v796_v19 = vpack.c.bf16 %v732_v47, %v732_v47  ;;  %v13594_v63 = vcombine.low %v1217_v48, %v1221_v18  ;;  %v2022_v34 = vunpack.c.l.b16 %v828_v60  ;;  %v1256_v60 = vld [vmem:[#allocation5 + $0xc80] sm:$0xff] }
 0x105   :  { %v559_v24 = vadd.f32 %v558_v16, %v557_v6  ;;  %v13587_v46 = vcombine.high %v1209_v12, %v1213_v13  ;;  %v671_v56 = vadd.f32 %v670_v35, %v669_v2  ;;  %v13586_v14 = vcombine.low %v1209_v12, %v1213_v13  ;;  %v1228_v6 = vld [vmem:[#allocation5 + $0xba0] sm:$0xff]  ;;  %v1233_v16 = vld [vmem:[#allocation5 + $0xbc8] sm:$0xff] }
 0x106   :  { %v751_v52 = vmul.f32 0.0625, %v447_v4  ;;  %v1990_v42 = vunpack.c.l.b16 %v796_v19  ;;  %v1993_v17 = vunpack.c.l.b16 %v799_v33  ;;  %v1245_v48 = vld [vmem:[#allocation5 + $0xc28] sm:$0xff]  ;;  %v1260_v33 = vld [vmem:[#allocation5 + $0xca0] sm:$0xff] }
 0x107   :  { %7352 = vmatpush1.bf16.msra.mxu0 %v13552_v20  ;;  %7680 = vmatpush1.bf16.msra.mxu1 %v13554_v39  ;;  %v650_v20 = vadd.f32 %v649_v3, %v648_v58  ;;  %v13585_v39 = vcombine.high %v1208_v28, %v1212_v30  ;;  %v1224_v58 = vld [vmem:[#allocation5 + $0xb80] sm:$0xff]  ;;  %v783_v62 = vmul.f32 0.0625, %v671_v56  ;;  %v1237_v28 = vld [vmem:[#allocation5 + $0xbe8] sm:$0xff] }
 0x108   :  { %7353 = vmatprep.subr.bf16.mxu0 %v13561_v40  ;;  %7681 = vmatprep.subr.bf16.mxu1 %v13563_v55  ;;  %v1216_v40 = vld [vmem:[#allocation5 + $0xb40] sm:$0xff]  ;;  %v812_v55 = vpack.c.bf16 %v748_v43, %v748_v43  ;;  %v815_v38 = vpack.c.bf16 %v751_v52, %v751_v52  ;;  %v13600_v43 = vcombine.low %v1224_v58, %v1228_v6  ;;  %v1249_v56 = vld [vmem:[#allocation5 + $0xc48] sm:$0xff] }
 0x109   :  { %v13593_v32 = vcombine.high %v1216_v40, %v1220_v44  ;;  %v13592_v25 = vcombine.low %v1216_v40, %v1220_v44  ;;  %v1236_v3 = vld [vmem:[#allocation5 + $0xbe0] sm:$0xff]  ;;  %v847_v47 = vpack.c.bf16 %v783_v62, %v783_v62  ;;  %v13611_v44 = vcombine.high %v1233_v16, %v1237_v28 }
 0x10a   :  { %v2009_v4 = vunpack.c.l.b16 %v815_v38  ;;  %v13610_v18 = vcombine.low %v1233_v16, %v1237_v28  ;;  %v1257_v38 = vld [vmem:[#allocation5 + $0xc88] sm:$0xff]  ;;  %v16754_v16 = vld [vmem:[#allocation5 + $0xd20] sm:$0xff] }
 0x10b   :  { %7354 = vmatpush1.bf16.msra.mxu0 %v13560_v59  ;;  %7682 = vmatpush1.bf16.msra.mxu1 %v13562_v57  ;;  %v780_v59 = vmul.f32 0.0625, %v650_v20  ;;  %v767_v57 = vmul.f32 0.0625, %v559_v24  ;;  %v1244_v20 = vld [vmem:[#allocation5 + $0xc20] sm:$0xff]  ;;  %v1241_v24 = vld [vmem:[#allocation5 + $0xc08] sm:$0xff]  ;;  %v2041_v51 = vunpack.c.l.b16 %v847_v47 }
 0x10c   :  { %7355 = vmatprep.subr.bf16.mxu0 %v13569_v7  ;;  %7683 = vmatprep.subr.bf16.mxu1 %v13571_v61  ;;  %v1225_v7 = vld [vmem:[#allocation5 + $0xb88] sm:$0xff]  ;;  %v2006_v61 = vunpack.c.l.b16 %v812_v55  ;;  %v2074_v40 = vsel %vm2050_vm0, %v2009_v4, %v1993_v17  ;;  %v1248_v55 = vld [vmem:[#allocation5 + $0xc40] sm:$0xff] }
 0x10d   :  { %v831_v2 = vpack.c.bf16 %v767_v57, %v767_v57  ;;  %v13602_v12 = vcombine.low %v1225_v7, %v1229_v15  ;;  %v16757_v28 = vld [vmem:[#allocation5 + $0xd08] sm:$0xff]  ;;  %v16759_v47 = vld [vmem:[#allocation2 + $0x20] sm:$0xff] }
 0x10e   :  { %v2065_v30 = vsel %vm2050_vm0, %v2006_v61, %v1990_v42 }
 0x10f   :  { %7356 = vmatpush1.bf16.msra.mxu0 %v13568_v5  ;;  %7684 = vmatpush1.bf16.msra.mxu1 %v13570_v0  ;;  %v844_v5 = vpack.c.bf16 %v780_v59, %v780_v59  ;;  %v13601_v0 = vcombine.high %v1224_v58, %v1228_v6  ;;  %v2025_v35 = vunpack.c.l.b16 %v831_v2  ;;  %v13618_v6 = vcombine.low %v1241_v24, %v1245_v48  ;;  %v1265_v2 = vld [vmem:[#allocation5 + $0xcc8] sm:$0xff] }
 0x110   :  { %7357 = vmatprep.subr.bf16.mxu0 %v13577_v8  ;;  %7685 = vmatprep.subr.bf16.mxu1 %v13579_v27  ;;  %v1232_v8 = vld [vmem:[#allocation5 + $0xbc0] sm:$0xff]  ;;  %v13603_v27 = vcombine.high %v1225_v7, %v1229_v15  ;;  %v1261_v15 = vld [vmem:[#allocation5 + $0xca8] sm:$0xff] }
 0x111   :  { %v2038_v13 = vunpack.c.l.b16 %v844_v5  ;;  %v13608_v22 = vcombine.low %v1232_v8, %v1236_v3  ;;  %v1268_v5 = vld [vmem:[#allocation5 + $0xce0] sm:$0xff]  ;;  %v13634_v17 = vcombine.low %v1257_v38, %v1261_v15 }
 0x113   :  { %7358 = vmatpush1.bf16.msra.mxu0 %v13576_v36  ;;  %7686 = vmatpush1.bf16.msra.mxu1 %v13578_v54  ;;  %v13609_v36 = vcombine.high %v1232_v8, %v1236_v3  ;;  %v1240_v54 = vld [vmem:[#allocation5 + $0xc00] sm:$0xff]  ;;  %v1269_v8 = vld [vmem:[#allocation5 + $0xce8] sm:$0xff] }
 0x114   :  { %7359 = vmatprep.subr.bf16.mxu0 %v13585_v39  ;;  %7687 = vmatprep.subr.bf16.mxu1 %v13587_v46  ;;  %v2066_v39 = vsel %vm2052_vm1, %v2022_v34, %v2065_v30  ;;  %v2075_v46 = vsel %vm2052_vm1, %v2025_v35, %v2074_v40  ;;  %v13617_v19 = vcombine.high %v1240_v54, %v1244_v20  ;;  %v16752_v3 = vld [vmem:[#allocation5 + $0xd00] sm:$0xff]  ;;  %v1277_v30 = vld [vmem:[#allocation5 + $0xd28] sm:$0xff] }
 0x115   :  { %v2067_v52 = vsel %vm2054_vm2, %v2038_v13, %v2066_v39  ;;  %v2076_v57 = vsel %vm2054_vm2, %v2041_v51, %v2075_v46  ;;  %v13616_v58 = vcombine.low %v1240_v54, %v1244_v20  ;;  %v13632_v34 = vcombine.low %v1256_v60, %v1260_v33  ;;  %v16765_v13 = vld [vmem:[#allocation5 + $0xd40] sm:$0xff] }
 0x116   :  { %v16744_v59 = vpack.c.b16 %v2067_v52, %v2067_v52  ;;  %v16747_v42 = vpack.c.b16 %v2076_v57, %v2076_v57  ;;  %v16767_v35 = vld [vmem:[#allocation5 + $0xd60] sm:$0xff]  ;;  %v174_v54 = vunpack.c.l.bf16 %v16691_v29  ;;  %v190_v20 = vunpack.c.l.bf16 %v16693_v41  ;;  %v1285_v29 = vld [vmem:[#allocation5 + $0xd68] sm:$0xff] }
 0x117   :  { %7360 = vmatpush1.bf16.msra.mxu0 %v13584_v53  ;;  %7688 = vmatpush1.bf16.msra.mxu1 %v13586_v14  ;;  %v1252_v53 = vld [vmem:[#allocation5 + $0xc60] sm:$0xff]  ;;  %v13619_v14 = vcombine.high %v1241_v24, %v1245_v48  ;;  %v206_v24 = vunpack.c.l.bf16 %v16695_v23  ;;  %v13649_v48 = vcombine.high %v16752_v3, %v16754_v16  ;;  %v222_v51 = vunpack.c.l.bf16 %v16711_v9 }
 0x118   :  { %7361 = vmatprep.subr.bf16.mxu0 %v13593_v32  ;;  %7689 = vmatprep.subr.bf16.mxu1 %v13595_v1  ;;  %v1253_v32 = vld [vmem:[#allocation5 + $0xc68] sm:$0xff]  ;;  %v13625_v7 = vcombine.high %v1248_v55, %v1252_v53  ;;  %v13624_v61 = vcombine.low %v1248_v55, %v1252_v53  ;;  %v16773_v39 = vld [vmem:[#allocation2 + $0xe0] sm:$0xff]  ;;  %v161_v52 = vunpack.c.h.bf16 %v16759_v47  ;;  %v13651_v9 = vcombine.high %v16757_v28, %v1277_v30 }
 0x119   :  { %v13627_v1 = vcombine.high %v1249_v56, %v1253_v32  ;;  %v13626_v62 = vcombine.low %v1249_v56, %v1253_v32  ;;  %v16781_v41 = vld [vmem:[#allocation2 + $0x120] sm:$0xff]  ;;  %v434_v55 = vadd.f32 %v206_v24, %v190_v20  ;;  %v13650_v32 = vcombine.low %v16757_v28, %v1277_v30  ;;  %v1301_v20 = vld [vmem:[#allocation5 + $0xde8] sm:$0xff] }
 0x11a   :  { %v16783_v23 = vld [vmem:[#allocation2 + $0x160] sm:$0xff]  ;;  %v13657_v57 = vcombine.high %v16765_v13, %v16767_v35 }
 0x11b   :  { %7362 = vmatpush1.bf16.msra.mxu0 %v13592_v25  ;;  %7690 = vmatpush1.bf16.msra.mxu1 %v13594_v63  ;;  %v13633_v25 = vcombine.high %v1256_v60, %v1260_v33  ;;  %v1264_v63 = vld [vmem:[#allocation5 + $0xcc0] sm:$0xff]  ;;  %v241_v60 = vunpack.c.h.bf16 %v16783_v23 }
 0x11c   :  { %7363 = vmatprep.subr.bf16.mxu0 %v13601_v0  ;;  %7691 = vmatprep.subr.bf16.mxu1 %v13603_v27  ;;  %v13635_v0 = vcombine.high %v1257_v38, %v1261_v15  ;;  %v13641_v4 = vcombine.high %v1264_v63, %v1268_v5  ;;  %v13643_v27 = vcombine.high %v1265_v2, %v1269_v8  ;;  %v16790_v53 = vld [vmem:[#allocation2 + $0x1a0] sm:$0xff] }
 0x11d   :  { %v13640_v40 = vcombine.low %v1264_v63, %v1268_v5  ;;  %v16792_v56 = vld [vmem:[#allocation2 + $0x1e0] sm:$0xff]  ;;  %v1293_v63 = vld [vmem:[#allocation5 + $0xda8] sm:$0xff] }
 0x11e   :  { %v1288_v33 = vld [vmem:[#allocation5 + $0xd80] sm:$0xff] }
 0x11f   :  { %7364 = vmatpush1.bf16.msra.mxu0 %v13600_v43  ;;  %7692 = vmatpush1.bf16.msra.mxu1 %v13602_v12  ;;  %v16761_v43 = vld [vmem:[#allocation2 + $0x60] sm:$0xff] }
 0x120   :  { %7365 = vmatprep.subr.bf16.mxu0 %v13609_v36  ;;  %7693 = vmatprep.subr.bf16.mxu1 %v13611_v44  ;;  %v16763_v12 = vld [vmem:[#allocation2 + $0xa0] sm:$0xff]  ;;  %v158_v36 = vunpack.c.l.bf16 %v16689_v26  ;;  %v13642_v44 = vcombine.low %v1265_v2, %v1269_v8  ;;  %v16779_v26 = vld [vmem:[#allocation5 + $0xd48] sm:$0xff]  ;;  %v177_v46 = vunpack.c.h.bf16 %v16761_v43  ;;  %v273_v2 = vunpack.c.h.bf16 %v16792_v56 }
 0x121   :  { %v1292_v38 = vld [vmem:[#allocation5 + $0xda0] sm:$0xff]  ;;  %v13658_v8 = vcombine.low %v16779_v26, %v1285_v29 }
 0x123   :  { %7366 = vmatpush1.bf16.msra.mxu0 %v13608_v22  ;;  %7694 = vmatpush1.bf16.msra.mxu1 %v13610_v18  ;;  %v238_v22 = vunpack.c.l.bf16 %v16713_v45  ;;  %v193_v18 = vunpack.c.h.bf16 %v16763_v12  ;;  %v322_v45 = vadd.f32 %v174_v54, %v158_v36 }
 0x124   :  { %7376 = vmatprep.subr.bf16.mxu0 %v13617_v19  ;;  %7704 = vmatprep.subr.bf16.mxu1 %v13619_v14  ;;  %v209_v19 = vunpack.c.h.bf16 %v16773_v39  ;;  %v13648_v14 = vcombine.low %v16752_v3, %v16754_v16 }
 0x125   :  { %v546_v15 = vadd.f32 %v238_v22, %v222_v51  ;;  %v323_v5 = vrot.slane %v322_v45, 4 }
 0x126   :  { %7368 = vmatmul.mubr.bf16.vlgmr.msra.gmra.mrb[0].mxu0 %v16744_v59  ;;  %7696 = vmatmul.mubr.bf16.vlgmr.msra.gmra.mrb[0].mxu1 %v16744_v59 }
 0x127   :  { %7377 = vmatpush1.bf16.msra.mxu0 %v13616_v58  ;;  %7705 = vmatpush1.bf16.msra.mxu1 %v13618_v6  ;;  %v254_v58 = vunpack.c.l.bf16 %v16715_v10  ;;  %v270_v6 = vunpack.c.l.bf16 %v16717_v31  ;;  %v435_v10 = vrot.slane %v434_v55, 4  ;;  %v257_v31 = vunpack.c.h.bf16 %v16790_v53 }
 0x128   :  { %7378 = vmatprep.subr.bf16.mxu0 %v13625_v7  ;;  %7706 = vmatprep.subr.bf16.mxu1 %v13627_v1  ;;  %v225_v7 = vunpack.c.h.bf16 %v16781_v41  ;;  %v1289_v1 = vld [vmem:[#allocation5 + $0xd88] sm:$0xff]  ;;  %v547_v28 = vrot.slane %v546_v15, 4  ;;  %v324_v24 = vadd.f32 %v323_v5, %v322_v45 }
 0x129   :  { %7408 = vmatprep.mubr.bf16.mxu0 %v16747_v42  ;;  %7736 = vmatprep.mubr.bf16.mxu1 %v16747_v42  ;;  %v658_v3 = vadd.f32 %v270_v6, %v254_v58  ;;  %v13667_v54 = vcombine.high %v1289_v1, %v1293_v63 }
 0x12a   :  { %v567_v16 = vadd.f32 %v241_v60, %v225_v7  ;;  %v325_v45 = vrot.slane %v324_v24, 2 }
 0x12b   :  { %7379 = vmatpush1.bf16.msra.mxu0 %v13624_v61  ;;  %7707 = vmatpush1.bf16.msra.mxu1 %v13626_v62  ;;  %v343_v61 = vadd.f32 %v177_v46, %v161_v52  ;;  %v455_v62 = vadd.f32 %v209_v19, %v193_v18  ;;  %v659_v51 = vrot.slane %v658_v3, 4  ;;  %v1305_v52 = vld [vmem:[#allocation5 + $0xe08] sm:$0xff]  ;;  %v548_v46 = vadd.f32 %v547_v28, %v546_v15 }
 0x12c   :  { %7380 = vmatprep.subr.bf16.mxu0 %v13633_v25  ;;  %7708 = vmatprep.subr.bf16.mxu1 %v13635_v0  ;;  %v13659_v25 = vcombine.high %v16779_v26, %v1285_v29  ;;  %v13656_v0 = vcombine.low %v16765_v13, %v16767_v35  ;;  %v679_v13 = vadd.f32 %v273_v2, %v257_v31  ;;  %v568_v22 = vrot.slane %v567_v16, 4  ;;  %v1304_v26 = vld [vmem:[#allocation5 + $0xe00] sm:$0xff] }
 0x12d   :  { %v344_v30 = vrot.slane %v343_v61, 4  ;;  %v456_v36 = vrot.slane %v455_v62, 4  ;;  %v13666_v35 = vcombine.low %v1289_v1, %v1293_v63  ;;  %v1308_v29 = vld [vmem:[#allocation5 + $0xe20] sm:$0xff]  ;;  %v660_v6 = vadd.f32 %v659_v51, %v658_v3  ;;  %v1313_v1 = vld [vmem:[#allocation5 + $0xe48] sm:$0xff] }
 0x12e   :  { %v569_v7 = vadd.f32 %v568_v22, %v567_v16  ;;  %v13681_v60 = vcombine.high %v1304_v26, %v1308_v29  ;;  %v549_v15 = vrot.slane %v548_v46, 2  ;;  %v1317_v63 = vld [vmem:[#allocation5 + $0xe68] sm:$0xff]  ;;  %v326_v5 = vadd.f32 %v325_v45, %v324_v24  ;;  %v1328_v22 = vld [vmem:[#allocation5 + $0xec0] sm:$0xff] }
 0x12f   :  { %7381 = vmatpush1.bf16.msra.mxu0 %v13632_v34  ;;  %7709 = vmatpush1.bf16.msra.mxu1 %v13634_v17  ;;  %v13665_v34 = vcombine.high %v1288_v33, %v1292_v38  ;;  %v1296_v17 = vld [vmem:[#allocation5 + $0xdc0] sm:$0xff]  ;;  %v345_v18 = vadd.f32 %v344_v30, %v343_v61  ;;  %v457_v19 = vadd.f32 %v456_v36, %v455_v62  ;;  %v661_v3 = vrot.slane %v660_v6, 2 }
 0x130   :  { %7382 = vmatprep.subr.bf16.mxu0 %v13641_v4  ;;  %7710 = vmatprep.subr.bf16.mxu1 %v13643_v27  ;;  %v1300_v4 = vld [vmem:[#allocation5 + $0xde0] sm:$0xff]  ;;  %v1297_v27 = vld [vmem:[#allocation5 + $0xdc8] sm:$0xff]  ;;  %v13680_v31 = vcombine.low %v1304_v26, %v1308_v29  ;;  %v570_v16 = vrot.slane %v569_v7, 2  ;;  %v13691_v36 = vcombine.high %v1313_v1, %v1317_v63 }
 0x131   :  { %v13674_v58 = vcombine.low %v1297_v27, %v1301_v20  ;;  %v346_v61 = vrot.slane %v345_v18, 2  ;;  %v458_v62 = vrot.slane %v457_v19, 2  ;;  %v1332_v26 = vld [vmem:[#allocation5 + $0xee0] sm:$0xff]  ;;  %v1329_v29 = vld [vmem:[#allocation5 + $0xec8] sm:$0xff] }
 0x133   :  { %7383 = vmatpush1.bf16.msra.mxu0 %v13640_v40  ;;  %7711 = vmatpush1.bf16.msra.mxu1 %v13642_v44  ;;  %v436_v40 = vadd.f32 %v435_v10, %v434_v55  ;;  %v13664_v44 = vcombine.low %v1288_v33, %v1292_v38  ;;  %v1312_v33 = vld [vmem:[#allocation5 + $0xe40] sm:$0xff]  ;;  %v347_v28 = vadd.f32 %v346_v61, %v345_v18 }
 0x134   :  { %7384 = vmatprep.subr.bf16.mxu0 %v13649_v48  ;;  %7712 = vmatprep.subr.bf16.mxu1 %v13651_v9  ;;  %v13673_v48 = vcombine.high %v1296_v17, %v1300_v4  ;;  %v13675_v9 = vcombine.high %v1297_v27, %v1301_v20  ;;  %v1316_v38 = vld [vmem:[#allocation5 + $0xe60] sm:$0xff]  ;;  %v550_v27 = vadd.f32 %v549_v15, %v548_v46  ;;  %v327_v20 = vrot.slane %v326_v5, 1 }
 0x135   :  { %v437_v55 = vrot.slane %v436_v40, 2  ;;  %v459_v30 = vadd.f32 %v458_v62, %v457_v19  ;;  %v348_v46 = vrot.slane %v347_v28, 1  ;;  %v1336_v15 = vld [vmem:[#allocation5 + $0xf00] sm:$0xff] }
 0x136   :  { %v1340_v61 = vld [vmem:[#allocation5 + $0xf20] sm:$0xff] }
 0x137   :  { %7385 = vmatpush1.bf16.msra.mxu0 %v13648_v14  ;;  %7713 = vmatpush1.bf16.msra.mxu1 %v13650_v32  ;;  %v1309_v14 = vld [vmem:[#allocation5 + $0xe28] sm:$0xff]  ;;  %v680_v32 = vrot.slane %v679_v13, 4  ;;  %v438_v10 = vadd.f32 %v437_v55, %v436_v40  ;;  %v460_v18 = vrot.slane %v459_v30, 1 }
 0x138   :  { %7386 = vmatprep.subr.bf16.mxu0 %v13657_v57  ;;  %7714 = vmatprep.subr.bf16.mxu1 %v13659_v25  ;;  %v13672_v57 = vcombine.low %v1296_v17, %v1300_v4  ;;  %v13683_v25 = vcombine.high %v1305_v52, %v1309_v14  ;;  %v1324_v17 = vld [vmem:[#allocation5 + $0xea0] sm:$0xff]  ;;  %v1321_v4 = vld [vmem:[#allocation5 + $0xe88] sm:$0xff] }
 0x139   :  { %v681_v2 = vadd.f32 %v680_v32, %v679_v13  ;;  %v439_v24 = vrot.slane %v438_v10, 1  ;;  %v13690_v13 = vcombine.low %v1313_v1, %v1317_v63  ;;  %v1337_v63 = vld [vmem:[#allocation5 + $0xf08] sm:$0xff] }
 0x13b   :  { %7387 = vmatpush1.bf16.msra.mxu0 %v13656_v0  ;;  %7715 = vmatpush1.bf16.msra.mxu1 %v13658_v8  ;;  %v13682_v0 = vcombine.low %v1305_v52, %v1309_v14  ;;  %v13689_v8 = vcombine.high %v1312_v33, %v1316_v38  ;;  %v682_v40 = vrot.slane %v681_v2, 2  ;;  %v551_v52 = vrot.slane %v550_v27, 1 }
 0x13c   :  { %7388 = vmatprep.subr.bf16.mxu0 %v13665_v34  ;;  %7716 = vmatprep.subr.bf16.mxu1 %v13667_v54  ;;  %v1320_v34 = vld [vmem:[#allocation5 + $0xe80] sm:$0xff]  ;;  %v1325_v54 = vld [vmem:[#allocation5 + $0xea8] sm:$0xff]  ;;  %v328_v14 = vadd.f32 %v327_v20, %v326_v5  ;;  %v440_v45 = vadd.f32 %v439_v24, %v438_v10  ;;  %v13712_v24 = vcombine.low %v1336_v15, %v1340_v61 }
 0x13d   :  { %v13697_v51 = vcombine.high %v1320_v34, %v1324_v17  ;;  %v13699_v19 = vcombine.high %v1321_v4, %v1325_v54  ;;  %v13696_v55 = vcombine.low %v1320_v34, %v1324_v17  ;;  %v683_v32 = vadd.f32 %v682_v40, %v681_v2  ;;  %v1341_v5 = vld [vmem:[#allocation5 + $0xf28] sm:$0xff]  ;;  %v1348_v34 = vld [vmem:[#allocation5 + $0xf60] sm:$0xff] }
 0x13e   :  { %v734_v62 = vmul.f32 0.0625, %v328_v14  ;;  %v1345_v17 = vld [vmem:[#allocation5 + $0xf48] sm:$0xff] }
 0x13f   :  { %7389 = vmatpush1.bf16.msra.mxu0 %v13664_v44  ;;  %7717 = vmatpush1.bf16.msra.mxu1 %v13666_v35  ;;  %v13688_v44 = vcombine.low %v1312_v33, %v1316_v38  ;;  %v662_v35 = vadd.f32 %v661_v3, %v660_v6  ;;  %v349_v33 = vadd.f32 %v348_v46, %v347_v28  ;;  %v684_v10 = vrot.slane %v683_v32, 1 }
 0x140   :  { %7390 = vmatprep.subr.bf16.mxu0 %v13673_v48  ;;  %7718 = vmatprep.subr.bf16.mxu1 %v13675_v9  ;;  %v571_v48 = vadd.f32 %v570_v16, %v569_v7  ;;  %v1333_v9 = vld [vmem:[#allocation5 + $0xee8] sm:$0xff]  ;;  %v461_v38 = vadd.f32 %v460_v18, %v459_v30  ;;  %v13713_v3 = vcombine.high %v1336_v15, %v1340_v61  ;;  %v1344_v16 = vld [vmem:[#allocation5 + $0xf40] sm:$0xff] }
 0x141   :  { %v663_v6 = vrot.slane %v662_v35, 1  ;;  %v13707_v1 = vcombine.high %v1329_v29, %v1333_v9  ;;  %v13706_v2 = vcombine.low %v1329_v29, %v1333_v9  ;;  %v13715_v30 = vcombine.high %v1337_v63, %v1341_v5 }
 0x142   :  { %v572_v7 = vrot.slane %v571_v48, 1  ;;  %v753_v28 = vmul.f32 0.0625, %v461_v38  ;;  %v685_v40 = vadd.f32 %v684_v10, %v683_v32 }
 0x143   :  { %7391 = vmatpush1.bf16.msra.mxu0 %v13672_v57  ;;  %7719 = vmatpush1.bf16.msra.mxu1 %v13674_v58  ;;  %v13698_v57 = vcombine.low %v1321_v4, %v1325_v54  ;;  %v13705_v58 = vcombine.high %v1328_v22, %v1332_v26  ;;  %v798_v54 = vpack.c.bf16 %v734_v62, %v734_v62  ;;  %v1365_v62 = vld [vmem:[#allocation5 + $0xfe8] sm:$0xff] }
 0x144   :  { %7392 = vmatprep.subr.bf16.mxu0 %v13681_v60  ;;  %7720 = vmatprep.subr.bf16.mxu1 %v13683_v25  ;;  %v552_v60 = vadd.f32 %v551_v52, %v550_v27  ;;  %v750_v25 = vmul.f32 0.0625, %v440_v45  ;;  %v737_v27 = vmul.f32 0.0625, %v349_v33  ;;  %v817_v46 = vpack.c.bf16 %v753_v28, %v753_v28  ;;  %v1361_v33 = vld [vmem:[#allocation5 + $0xfc8] sm:$0xff] }
 0x145   :  { %v1992_v9 = vunpack.c.l.b16 %v798_v54  ;;  %v785_v45 = vmul.f32 0.0625, %v685_v40  ;;  %v1376_v40 = vld [vmem:[#allocation5 + $0x1040] sm:$0xff] }
 0x146   :  { %v766_v4 = vmul.f32 0.0625, %v552_v60  ;;  %v814_v20 = vpack.c.bf16 %v750_v25, %v750_v25  ;;  %v801_v52 = vpack.c.bf16 %v737_v27, %v737_v27  ;;  %v1364_v60 = vld [vmem:[#allocation5 + $0xfe0] sm:$0xff]  ;;  %v2011_v15 = vunpack.c.l.b16 %v817_v46  ;;  %v1373_v27 = vld [vmem:[#allocation5 + $0x1028] sm:$0xff] }
 0x147   :  { %7393 = vmatpush1.bf16.msra.mxu0 %v13680_v31  ;;  %7721 = vmatpush1.bf16.msra.mxu1 %v13682_v0  ;;  %v13704_v31 = vcombine.low %v1328_v22, %v1332_v26  ;;  %v664_v0 = vadd.f32 %v663_v6, %v662_v35  ;;  %v1356_v22 = vld [vmem:[#allocation5 + $0xfa0] sm:$0xff]  ;;  %v1353_v26 = vld [vmem:[#allocation5 + $0xf88] sm:$0xff] }
 0x148   :  { %7394 = vmatprep.subr.bf16.mxu0 %v13689_v8  ;;  %7722 = vmatprep.subr.bf16.mxu1 %v13691_v36  ;;  %v573_v8 = vadd.f32 %v572_v7, %v571_v48  ;;  %v1349_v36 = vld [vmem:[#allocation5 + $0xf68] sm:$0xff]  ;;  %v830_v29 = vpack.c.bf16 %v766_v4, %v766_v4  ;;  %v2008_v14 = vunpack.c.l.b16 %v814_v20  ;;  %v1360_v7 = vld [vmem:[#allocation5 + $0xfc0] sm:$0xff]  ;;  %v13739_v4 = vcombine.high %v1361_v33, %v1365_v62 }
 0x149   :  { %v782_v35 = vmul.f32 0.0625, %v664_v0  ;;  %v13723_v18 = vcombine.high %v1345_v17, %v1349_v36  ;;  %v13722_v32 = vcombine.low %v1345_v17, %v1349_v36  ;;  %v13737_v0 = vcombine.high %v1360_v7, %v1364_v60  ;;  %v1384_v46 = vld [vmem:[#allocation5 + $0x1080] sm:$0xff] }
 0x14a   :  { %v769_v48 = vmul.f32 0.0625, %v573_v8  ;;  %v2024_v38 = vunpack.c.l.b16 %v830_v29  ;;  %v2071_v25 = vsel %vm2050_vm0, %v2008_v14, %v1992_v9  ;;  %v1368_v8 = vld [vmem:[#allocation5 + $0x1000] sm:$0xff]  ;;  %v13738_v20 = vcombine.low %v1361_v33, %v1365_v62  ;;  %v1389_v14 = vld [vmem:[#allocation5 + $0x10a8] sm:$0xff] }
 0x14b   :  { %7395 = vmatpush1.bf16.msra.mxu0 %v13688_v44  ;;  %7723 = vmatpush1.bf16.msra.mxu1 %v13690_v13  ;;  %v13714_v44 = vcombine.low %v1337_v63, %v1341_v5  ;;  %v13721_v13 = vcombine.high %v1344_v16, %v1348_v34  ;;  %v849_v63 = vpack.c.bf16 %v785_v45, %v785_v45  ;;  %v1397_v33 = vld [vmem:[#allocation5 + $0x10e8] sm:$0xff] }
 0x14c   :  { %7396 = vmatprep.subr.bf16.mxu0 %v13697_v51  ;;  %7724 = vmatprep.subr.bf16.mxu1 %v13699_v19  ;;  %v1352_v51 = vld [vmem:[#allocation5 + $0xf80] sm:$0xff]  ;;  %v1357_v19 = vld [vmem:[#allocation5 + $0xfa8] sm:$0xff] }
 0x14d   :  { %v13729_v6 = vcombine.high %v1352_v51, %v1356_v22  ;;  %v13731_v61 = vcombine.high %v1353_v26, %v1357_v19  ;;  %v13728_v5 = vcombine.low %v1352_v51, %v1356_v22  ;;  %v13730_v10 = vcombine.low %v1353_v26, %v1357_v19  ;;  %v1385_v19 = vld [vmem:[#allocation5 + $0x1088] sm:$0xff] }
 0x14e   :  { %v2043_v28 = vunpack.c.l.b16 %v849_v63  ;;  %v16827_v63 = vld [vmem:[#allocation5 + $0x1108] sm:$0xff] }
 0x14f   :  { %7397 = vmatpush1.bf16.msra.mxu0 %v13696_v55  ;;  %7725 = vmatpush1.bf16.msra.mxu1 %v13698_v57  ;;  %v13720_v55 = vcombine.low %v1344_v16, %v1348_v34  ;;  %v846_v57 = vpack.c.bf16 %v782_v35, %v782_v35  ;;  %v1369_v16 = vld [vmem:[#allocation5 + $0x1008] sm:$0xff]  ;;  %v2072_v34 = vsel %vm2052_vm1, %v2024_v38, %v2071_v25  ;;  %v16822_v38 = vld [vmem:[#allocation5 + $0x1100] sm:$0xff] }
 0x150   :  { %7398 = vmatprep.subr.bf16.mxu0 %v13705_v58  ;;  %7726 = vmatprep.subr.bf16.mxu1 %v13707_v1  ;;  %v833_v58 = vpack.c.bf16 %v769_v48, %v769_v48  ;;  %v1995_v1 = vunpack.c.l.b16 %v801_v52  ;;  %v13747_v35 = vcombine.high %v1369_v16, %v1373_v27  ;;  %v1381_v48 = vld [vmem:[#allocation5 + $0x1068] sm:$0xff]  ;;  %v13746_v29 = vcombine.low %v1369_v16, %v1373_v27 }
 0x151   :  { %v176_v16 = vunpack.c.l.bf16 %v16761_v43  ;;  %v1413_v43 = vld [vmem:[#allocation5 + $0x1168] sm:$0xff] }
 0x152   :  { %v2080_v17 = vsel %vm2050_vm0, %v2011_v15, %v1995_v1  ;;  %v16824_v1 = vld [vmem:[#allocation5 + $0x1120] sm:$0xff] }
 0x153   :  { %7399 = vmatpush1.bf16.msra.mxu0 %v13704_v31  ;;  %7727 = vmatpush1.bf16.msra.mxu1 %v13706_v2  ;;  %v2040_v31 = vunpack.c.l.b16 %v846_v57  ;;  %v2027_v2 = vunpack.c.l.b16 %v833_v58  ;;  %v1392_v58 = vld [vmem:[#allocation5 + $0x10c0] sm:$0xff] }
 0x154   :  { %7400 = vmatprep.subr.bf16.mxu0 %v13713_v3  ;;  %7728 = vmatprep.subr.bf16.mxu1 %v13715_v30  ;;  %v1372_v3 = vld [vmem:[#allocation5 + $0x1020] sm:$0xff]  ;;  %v13736_v30 = vcombine.low %v1360_v7, %v1364_v60  ;;  %v1393_v7 = vld [vmem:[#allocation5 + $0x10c8] sm:$0xff]  ;;  %v13763_v60 = vcombine.high %v1385_v19, %v1389_v14 }
 0x155   :  { %v2073_v36 = vsel %vm2054_vm2, %v2040_v31, %v2072_v34  ;;  %v2081_v54 = vsel %vm2052_vm1, %v2027_v2, %v2080_v17  ;;  %v13744_v26 = vcombine.low %v1368_v8, %v1372_v3  ;;  %v13771_v25 = vcombine.high %v1393_v7, %v1397_v33  ;;  %v16831_v31 = vld [vmem:[#allocation2 + $0x68] sm:$0xff] }
 0x156   :  { %v16814_v51 = vpack.c.b16 %v2073_v36, %v2073_v36  ;;  %v2082_v22 = vsel %vm2054_vm2, %v2043_v28, %v2081_v54  ;;  %v16833_v2 = vld [vmem:[#allocation2 + $0xa8] sm:$0xff]  ;;  %v192_v34 = vunpack.c.l.bf16 %v16763_v12  ;;  %v208_v17 = vunpack.c.l.bf16 %v16773_v39 }
 0x157   :  { %7401 = vmatpush1.bf16.msra.mxu0 %v13712_v24  ;;  %7729 = vmatpush1.bf16.msra.mxu1 %v13714_v44  ;;  %v13745_v24 = vcombine.high %v1368_v8, %v1372_v3  ;;  %v1380_v44 = vld [vmem:[#allocation5 + $0x1060] sm:$0xff]  ;;  %v16817_v45 = vpack.c.b16 %v2082_v22, %v2082_v22  ;;  %v160_v3 = vunpack.c.l.bf16 %v16759_v47  ;;  %v13770_v28 = vcombine.low %v1393_v7, %v1397_v33  ;;  %v16849_v47 = vld [vmem:[#allocation5 + $0x1148] sm:$0xff] }
 0x158   :  { %7402 = vmatprep.subr.bf16.mxu0 %v13721_v13  ;;  %7730 = vmatprep.subr.bf16.mxu1 %v13723_v18  ;;  %v1377_v13 = vld [vmem:[#allocation5 + $0x1048] sm:$0xff]  ;;  %v13753_v52 = vcombine.high %v1376_v40, %v1380_v44  ;;  %v1388_v18 = vld [vmem:[#allocation5 + $0x10a0] sm:$0xff]  ;;  %v224_v36 = vunpack.c.l.bf16 %v16781_v41  ;;  %v240_v54 = vunpack.c.l.bf16 %v16783_v23  ;;  %v13776_v22 = vcombine.low %v16822_v38, %v16824_v1 }
 0x159   :  { %v13755_v9 = vcombine.high %v1377_v13, %v1381_v48  ;;  %v13761_v57 = vcombine.high %v1384_v46, %v1388_v18  ;;  %v13760_v15 = vcombine.low %v1384_v46, %v1388_v18  ;;  %v16837_v8 = vld [vmem:[#allocation5 + $0x1160] sm:$0xff]  ;;  %v16851_v12 = vld [vmem:[#allocation2 + $0x128] sm:$0xff]  ;;  %v336_v23 = vadd.f32 %v176_v16, %v160_v3 }
 0x15a   :  { %v16853_v39 = vld [vmem:[#allocation2 + $0x168] sm:$0xff]  ;;  %v272_v46 = vunpack.c.l.bf16 %v16792_v56  ;;  %v227_v18 = vunpack.c.h.bf16 %v16851_v12 }
 0x15b   :  { %7403 = vmatpush1.bf16.msra.mxu0 %v13720_v55  ;;  %7731 = vmatpush1.bf16.msra.mxu1 %v13722_v32  ;;  %v13752_v55 = vcombine.low %v1376_v40, %v1380_v44  ;;  %v13754_v32 = vcombine.low %v1377_v13, %v1381_v48  ;;  %v195_v40 = vunpack.c.h.bf16 %v16833_v2  ;;  %v448_v13 = vadd.f32 %v208_v17, %v192_v34  ;;  %v16862_v48 = vld [vmem:[#allocation2 + $0x1e8] sm:$0xff] }
 0x15c   :  { %7404 = vmatprep.subr.bf16.mxu0 %v13729_v6  ;;  %7732 = vmatprep.subr.bf16.mxu1 %v13731_v61  ;;  %v1396_v6 = vld [vmem:[#allocation5 + $0x10e0] sm:$0xff]  ;;  %v13762_v61 = vcombine.low %v1385_v19, %v1389_v14  ;;  %v243_v19 = vunpack.c.h.bf16 %v16853_v39  ;;  %v1421_v7 = vld [vmem:[#allocation5 + $0x11a8] sm:$0xff]  ;;  %v275_v33 = vunpack.c.h.bf16 %v16862_v48 }
 0x15d   :  { %v13769_v62 = vcombine.high %v1392_v58, %v1396_v6  ;;  %v13768_v27 = vcombine.low %v1392_v58, %v1396_v6  ;;  %v1420_v14 = vld [vmem:[#allocation5 + $0x11a0] sm:$0xff]  ;;  %v13787_v6 = vcombine.high %v16849_v47, %v1413_v43 }
 0x15f   :  { %7405 = vmatpush1.bf16.msra.mxu0 %v13728_v5  ;;  %7733 = vmatpush1.bf16.msra.mxu1 %v13730_v10  ;;  %v1405_v5 = vld [vmem:[#allocation5 + $0x1128] sm:$0xff] }
 0x160   :  { %7406 = vmatprep.subr.bf16.mxu0 %v13737_v0  ;;  %7734 = vmatprep.subr.bf16.mxu1 %v13739_v4  ;;  %v16829_v10 = vld [vmem:[#allocation2 + $0x28] sm:$0xff]  ;;  %v16835_v0 = vld [vmem:[#allocation5 + $0x1140] sm:$0xff]  ;;  %v13779_v41 = vcombine.high %v16827_v63, %v1405_v5 }
 0x161   :  { %v16843_v4 = vld [vmem:[#allocation2 + $0xe8] sm:$0xff] }
 0x162   :  { %v211_v44 = vunpack.c.h.bf16 %v16843_v4 }
 0x163   :  { %7407 = vmatpush1.bf16.msra.mxu0 %v13736_v30  ;;  %7735 = vmatpush1.bf16.msra.mxu1 %v13738_v20  ;;  %v13777_v30 = vcombine.high %v16822_v38, %v16824_v1  ;;  %v163_v20 = vunpack.c.h.bf16 %v16829_v10  ;;  %v13784_v38 = vcombine.low %v16835_v0, %v16837_v8  ;;  %v13786_v1 = vcombine.low %v16849_v47, %v1413_v43 }
 0x164   :  { %7417 = vmatprep.subr.bf16.mxu0 %v13745_v24  ;;  %7745 = vmatprep.subr.bf16.mxu1 %v13747_v35  ;;  %v179_v24 = vunpack.c.h.bf16 %v16831_v31  ;;  %v16860_v35 = vld [vmem:[#allocation2 + $0x1a8] sm:$0xff]  ;;  %v469_v58 = vadd.f32 %v211_v44, %v195_v40 }
 0x165   :  { %v259_v56 = vunpack.c.h.bf16 %v16860_v35  ;;  %v1433_v40 = vld [vmem:[#allocation5 + $0x1208] sm:$0xff] }
 0x166   :  { %7409 = vmatmul.mubr.bf16.vlgmr.msra.gmra.mrb[0].mxu0 %v16814_v51  ;;  %7737 = vmatmul.mubr.bf16.vlgmr.msra.gmra.mrb[0].mxu1 %v16814_v51  ;;  %v470_v34 = vrot.slane %v469_v58, 4 }
 0x167   :  { %7418 = vmatpush1.bf16.msra.mxu0 %v13744_v26  ;;  %7746 = vmatpush1.bf16.msra.mxu1 %v13746_v29  ;;  %v13778_v26 = vcombine.low %v16827_v63, %v1405_v5  ;;  %v13785_v29 = vcombine.high %v16835_v0, %v16837_v8  ;;  %v1428_v63 = vld [vmem:[#allocation5 + $0x11e0] sm:$0xff]  ;;  %v1425_v5 = vld [vmem:[#allocation5 + $0x11c8] sm:$0xff]  ;;  %v693_v0 = vadd.f32 %v275_v33, %v259_v56 }
 0x168   :  { %7419 = vmatprep.subr.bf16.mxu0 %v13753_v52  ;;  %7747 = vmatprep.subr.bf16.mxu1 %v13755_v9  ;;  %v256_v52 = vunpack.c.l.bf16 %v16790_v53  ;;  %v1416_v9 = vld [vmem:[#allocation5 + $0x1180] sm:$0xff]  ;;  %v449_v53 = vrot.slane %v448_v13, 4 }
 0x169   :  { %7449 = vmatprep.mubr.bf16.mxu0 %v16817_v45  ;;  %7777 = vmatprep.mubr.bf16.mxu1 %v16817_v45 }
 0x16b   :  { %7420 = vmatpush1.bf16.msra.mxu0 %v13752_v55  ;;  %7748 = vmatpush1.bf16.msra.mxu1 %v13754_v32  ;;  %v1417_v55 = vld [vmem:[#allocation5 + $0x1188] sm:$0xff]  ;;  %v560_v32 = vadd.f32 %v240_v54, %v224_v36  ;;  %v13792_v36 = vcombine.low %v1416_v9, %v1420_v14 }
 0x16c   :  { %7421 = vmatprep.subr.bf16.mxu0 %v13761_v57  ;;  %7749 = vmatprep.subr.bf16.mxu1 %v13763_v60  ;;  %v357_v57 = vadd.f32 %v179_v24, %v163_v20  ;;  %v337_v60 = vrot.slane %v336_v23, 4  ;;  %v13795_v17 = vcombine.high %v1417_v55, %v1421_v7  ;;  %v13794_v8 = vcombine.low %v1417_v55, %v1421_v7  ;;  %v1432_v20 = vld [vmem:[#allocation5 + $0x1200] sm:$0xff]  ;;  %v1441_v7 = vld [vmem:[#allocation5 + $0x1248] sm:$0xff] }
 0x16d   :  { %v561_v3 = vrot.slane %v560_v32, 4  ;;  %v1436_v24 = vld [vmem:[#allocation5 + $0x1220] sm:$0xff] }
 0x16e   :  { %v358_v16 = vrot.slane %v357_v57, 4  ;;  %v1440_v55 = vld [vmem:[#allocation5 + $0x1240] sm:$0xff] }
 0x16f   :  { %7422 = vmatpush1.bf16.msra.mxu0 %v13760_v15  ;;  %7750 = vmatpush1.bf16.msra.mxu1 %v13762_v61  ;;  %v672_v15 = vadd.f32 %v272_v46, %v256_v52  ;;  %v581_v61 = vadd.f32 %v243_v19, %v227_v18  ;;  %v562_v44 = vadd.f32 %v561_v3, %v560_v32  ;;  %v694_v52 = vrot.slane %v693_v0, 4  ;;  %v1449_v3 = vld [vmem:[#allocation5 + $0x1288] sm:$0xff] }
 0x170   :  { %7423 = vmatprep.subr.bf16.mxu0 %v13769_v62  ;;  %7751 = vmatprep.subr.bf16.mxu1 %v13771_v25  ;;  %v13793_v62 = vcombine.high %v1416_v9, %v1420_v14  ;;  %v1424_v25 = vld [vmem:[#allocation5 + $0x11c0] sm:$0xff]  ;;  %v13809_v14 = vcombine.high %v1432_v20, %v1436_v24 }
 0x171   :  { %v13801_v54 = vcombine.high %v1424_v25, %v1428_v63  ;;  %v673_v47 = vrot.slane %v672_v15, 4  ;;  %v582_v43 = vrot.slane %v581_v61, 4  ;;  %v13800_v46 = vcombine.low %v1424_v25, %v1428_v63  ;;  %v1448_v63 = vld [vmem:[#allocation5 + $0x1280] sm:$0xff] }
 0x172   :  { %v563_v32 = vrot.slane %v562_v44, 2 }
 0x173   :  { %7424 = vmatpush1.bf16.msra.mxu0 %v13768_v27  ;;  %7752 = vmatpush1.bf16.msra.mxu1 %v13770_v28  ;;  %v1429_v27 = vld [vmem:[#allocation5 + $0x11e8] sm:$0xff]  ;;  %v338_v28 = vadd.f32 %v337_v60, %v336_v23  ;;  %v674_v19 = vadd.f32 %v673_v47, %v672_v15  ;;  %v583_v9 = vadd.f32 %v582_v43, %v581_v61 }
 0x174   :  { %7425 = vmatprep.subr.bf16.mxu0 %v13777_v30  ;;  %7753 = vmatprep.subr.bf16.mxu1 %v13779_v41  ;;  %v450_v30 = vadd.f32 %v449_v53, %v448_v13  ;;  %v359_v41 = vadd.f32 %v358_v16, %v357_v57  ;;  %v13802_v18 = vcombine.low %v1425_v5, %v1429_v27  ;;  %v1445_v53 = vld [vmem:[#allocation5 + $0x1268] sm:$0xff] }
 0x175   :  { %v339_v23 = vrot.slane %v338_v28, 2  ;;  %v675_v61 = vrot.slane %v674_v19, 2  ;;  %v584_v25 = vrot.slane %v583_v9, 2  ;;  %v564_v16 = vadd.f32 %v563_v32, %v562_v44 }
 0x176   :  { %v451_v13 = vrot.slane %v450_v30, 2  ;;  %v360_v57 = vrot.slane %v359_v41, 2 }
 0x177   :  { %7426 = vmatpush1.bf16.msra.mxu0 %v13776_v22  ;;  %7754 = vmatpush1.bf16.msra.mxu1 %v13778_v26  ;;  %v471_v22 = vadd.f32 %v470_v34, %v469_v58  ;;  %v13803_v26 = vcombine.high %v1425_v5, %v1429_v27  ;;  %v340_v56 = vadd.f32 %v339_v23, %v338_v28  ;;  %v1452_v5 = vld [vmem:[#allocation5 + $0x12a0] sm:$0xff]  ;;  %v565_v44 = vrot.slane %v564_v16, 1  ;;  %v1461_v23 = vld [vmem:[#allocation5 + $0x12e8] sm:$0xff] }
 0x178   :  { %7427 = vmatprep.subr.bf16.mxu0 %v13785_v29  ;;  %7755 = vmatprep.subr.bf16.mxu1 %v13787_v6  ;;  %v1437_v29 = vld [vmem:[#allocation5 + $0x1228] sm:$0xff]  ;;  %v1444_v6 = vld [vmem:[#allocation5 + $0x1260] sm:$0xff]  ;;  %v452_v33 = vadd.f32 %v451_v13, %v450_v30  ;;  %v361_v34 = vadd.f32 %v360_v57, %v359_v41  ;;  %v13819_v27 = vcombine.high %v1441_v7, %v1445_v53 }
 0x179   :  { %v472_v58 = vrot.slane %v471_v22, 2  ;;  %v13811_v60 = vcombine.high %v1433_v40, %v1437_v29  ;;  %v13817_v15 = vcombine.high %v1440_v55, %v1444_v6  ;;  %v341_v28 = vrot.slane %v340_v56, 1 }
 0x17a   :  { %v453_v30 = vrot.slane %v452_v33, 1  ;;  %v676_v47 = vadd.f32 %v675_v61, %v674_v19  ;;  %v585_v43 = vadd.f32 %v584_v25, %v583_v9  ;;  %v362_v41 = vrot.slane %v361_v34, 1 }
 0x17b   :  { %7428 = vmatpush1.bf16.msra.mxu0 %v13784_v38  ;;  %7756 = vmatpush1.bf16.msra.mxu1 %v13786_v1  ;;  %v13808_v38 = vcombine.low %v1432_v20, %v1436_v24  ;;  %v695_v1 = vadd.f32 %v694_v52, %v693_v0  ;;  %v13816_v0 = vcombine.low %v1440_v55, %v1444_v6  ;;  %v1456_v24 = vld [vmem:[#allocation5 + $0x12c0] sm:$0xff] }
 0x17c   :  { %7429 = vmatprep.subr.bf16.mxu0 %v13793_v62  ;;  %7757 = vmatprep.subr.bf16.mxu1 %v13795_v17  ;;  %v13810_v62 = vcombine.low %v1433_v40, %v1437_v29  ;;  %v473_v17 = vadd.f32 %v472_v58, %v471_v22  ;;  %v13825_v20 = vcombine.high %v1448_v63, %v1452_v5  ;;  %v1460_v40 = vld [vmem:[#allocation5 + $0x12e0] sm:$0xff]  ;;  %v677_v9 = vrot.slane %v676_v47, 1 }
 0x17d   :  { %v342_v13 = vadd.f32 %v341_v28, %v340_v56  ;;  %v454_v52 = vadd.f32 %v453_v30, %v452_v33  ;;  %v13833_v19 = vcombine.high %v1456_v24, %v1460_v40  ;;  %v586_v55 = vrot.slane %v585_v43, 1  ;;  %v1464_v58 = vld [vmem:[#allocation5 + $0x1300] sm:$0xff]  ;;  %v1465_v56 = vld [vmem:[#allocation5 + $0x1308] sm:$0xff] }
 0x17e   :  { %v474_v22 = vrot.slane %v473_v17, 1  ;;  %v566_v6 = vadd.f32 %v565_v44, %v564_v16  ;;  %v1469_v33 = vld [vmem:[#allocation5 + $0x1328] sm:$0xff]  ;;  %v678_v61 = vadd.f32 %v677_v9, %v676_v47 }
 0x17f   :  { %7430 = vmatpush1.bf16.msra.mxu0 %v13792_v36  ;;  %7758 = vmatpush1.bf16.msra.mxu1 %v13794_v8  ;;  %v1453_v36 = vld [vmem:[#allocation5 + $0x12a8] sm:$0xff]  ;;  %v696_v8 = vrot.slane %v695_v1, 2  ;;  %v587_v25 = vadd.f32 %v586_v55, %v585_v43 }
 0x180   :  { %7431 = vmatprep.subr.bf16.mxu0 %v13801_v54  ;;  %7759 = vmatprep.subr.bf16.mxu1 %v13803_v26  ;;  %v13818_v54 = vcombine.low %v1441_v7, %v1445_v53  ;;  %v1457_v26 = vld [vmem:[#allocation5 + $0x12c8] sm:$0xff]  ;;  %v13827_v29 = vcombine.high %v1449_v3, %v1453_v36  ;;  %v363_v7 = vadd.f32 %v362_v41, %v361_v34  ;;  %v736_v53 = vmul.f32 0.0625, %v342_v13 }
 0x181   :  { %v475_v32 = vadd.f32 %v474_v22, %v473_v17  ;;  %v13835_v57 = vcombine.high %v1457_v26, %v1461_v23  ;;  %v1473_v16 = vld [vmem:[#allocation5 + $0x1348] sm:$0xff]  ;;  %v768_v34 = vmul.f32 0.0625, %v566_v6  ;;  %v784_v43 = vmul.f32 0.0625, %v678_v61 }
 0x182   :  { %v739_v17 = vmul.f32 0.0625, %v363_v7  ;;  %v1477_v28 = vld [vmem:[#allocation5 + $0x1368] sm:$0xff]  ;;  %v800_v30 = vpack.c.bf16 %v736_v53, %v736_v53  ;;  %v1488_v7 = vld [vmem:[#allocation5 + $0x13c0] sm:$0xff] }
 0x183   :  { %7432 = vmatpush1.bf16.msra.mxu0 %v13800_v46  ;;  %7760 = vmatpush1.bf16.msra.mxu1 %v13802_v18  ;;  %v13824_v46 = vcombine.low %v1448_v63, %v1452_v5  ;;  %v697_v18 = vadd.f32 %v696_v8, %v695_v1  ;;  %v13832_v1 = vcombine.low %v1456_v24, %v1460_v40  ;;  %v1472_v5 = vld [vmem:[#allocation5 + $0x1340] sm:$0xff]  ;;  %v771_v24 = vmul.f32 0.0625, %v587_v25  ;;  %v1481_v44 = vld [vmem:[#allocation5 + $0x1388] sm:$0xff] }
 0x184   :  { %7433 = vmatprep.subr.bf16.mxu0 %v13809_v14  ;;  %7761 = vmatprep.subr.bf16.mxu1 %v13811_v60  ;;  %v13826_v14 = vcombine.low %v1449_v3, %v1453_v36  ;;  %v1468_v60 = vld [vmem:[#allocation5 + $0x1320] sm:$0xff]  ;;  %v13843_v36 = vcombine.high %v1465_v56, %v1469_v33  ;;  %v832_v41 = vpack.c.bf16 %v768_v34, %v768_v34  ;;  %v1485_v13 = vld [vmem:[#allocation5 + $0x13a8] sm:$0xff] }
 0x185   :  { %v13841_v63 = vcombine.high %v1464_v58, %v1468_v60  ;;  %v1476_v3 = vld [vmem:[#allocation5 + $0x1360] sm:$0xff]  ;;  %v803_v22 = vpack.c.bf16 %v739_v17, %v739_v17  ;;  %v848_v9 = vpack.c.bf16 %v784_v43, %v784_v43  ;;  %v835_v55 = vpack.c.bf16 %v771_v24, %v771_v24  ;;  %v1505_v24 = vld [vmem:[#allocation5 + $0x1448] sm:$0xff] }
 0x186   :  { %v13849_v47 = vcombine.high %v1472_v5, %v1476_v3  ;;  %v1480_v40 = vld [vmem:[#allocation5 + $0x1380] sm:$0xff] }
 0x187   :  { %7434 = vmatpush1.bf16.msra.mxu0 %v13808_v38  ;;  %7762 = vmatpush1.bf16.msra.mxu1 %v13810_v62  ;;  %v752_v38 = vmul.f32 0.0625, %v454_v52  ;;  %v698_v62 = vrot.slane %v697_v18, 1  ;;  %v1994_v52 = vunpack.c.l.b16 %v800_v30  ;;  %v2042_v61 = vunpack.c.l.b16 %v848_v9  ;;  %v1508_v43 = vld [vmem:[#allocation5 + $0x1460] sm:$0xff] }
 0x188   :  { %7435 = vmatprep.subr.bf16.mxu0 %v13817_v15  ;;  %7763 = vmatprep.subr.bf16.mxu1 %v13819_v27  ;;  %v13834_v15 = vcombine.low %v1457_v26, %v1461_v23  ;;  %v755_v27 = vmul.f32 0.0625, %v475_v32  ;;  %v1484_v26 = vld [vmem:[#allocation5 + $0x13a0] sm:$0xff]  ;;  %v13851_v23 = vcombine.high %v1473_v16, %v1477_v28  ;;  %v2029_v25 = vunpack.c.l.b16 %v835_v55 }
 0x189   :  { %v816_v8 = vpack.c.bf16 %v752_v38, %v752_v38  ;;  %v13857_v6 = vcombine.high %v1480_v40, %v1484_v26  ;;  %v1492_v32 = vld [vmem:[#allocation5 + $0x13e0] sm:$0xff]  ;;  %v13859_v38 = vcombine.high %v1481_v44, %v1485_v13 }
 0x18a   :  { %v13864_v30 = vcombine.low %v1488_v7, %v1492_v32 }
 0x18b   :  { %7436 = vmatpush1.bf16.msra.mxu0 %v13816_v0  ;;  %7764 = vmatpush1.bf16.msra.mxu1 %v13818_v54  ;;  %v13840_v0 = vcombine.low %v1464_v58, %v1468_v60  ;;  %v699_v54 = vadd.f32 %v698_v62, %v697_v18  ;;  %v13848_v18 = vcombine.low %v1472_v5, %v1476_v3  ;;  %v2026_v58 = vunpack.c.l.b16 %v832_v41  ;;  %v1496_v5 = vld [vmem:[#allocation5 + $0x1400] sm:$0xff] }
 0x18c   :  { %7437 = vmatprep.subr.bf16.mxu0 %v13825_v20  ;;  %7765 = vmatprep.subr.bf16.mxu1 %v13827_v29  ;;  %v13842_v20 = vcombine.low %v1465_v56, %v1469_v33  ;;  %v819_v29 = vpack.c.bf16 %v755_v27, %v755_v27  ;;  %v1997_v60 = vunpack.c.l.b16 %v803_v22  ;;  %v1493_v56 = vld [vmem:[#allocation5 + $0x13e8] sm:$0xff]  ;;  %v1500_v3 = vld [vmem:[#allocation5 + $0x1420] sm:$0xff] }
 0x18d   :  { %v13872_v22 = vcombine.low %v1496_v5, %v1500_v3 }
 0x18e   :  { %v2013_v53 = vunpack.c.l.b16 %v819_v29 }
 0x18f   :  { %7438 = vmatpush1.bf16.msra.mxu0 %v13824_v46  ;;  %7766 = vmatpush1.bf16.msra.mxu1 %v13826_v14  ;;  %v2010_v46 = vunpack.c.l.b16 %v816_v8  ;;  %v787_v14 = vmul.f32 0.0625, %v699_v54 }
 0x190   :  { %7439 = vmatprep.subr.bf16.mxu0 %v13833_v19  ;;  %7767 = vmatprep.subr.bf16.mxu1 %v13835_v57  ;;  %v13850_v19 = vcombine.low %v1473_v16, %v1477_v28  ;;  %v1489_v57 = vld [vmem:[#allocation5 + $0x13c8] sm:$0xff]  ;;  %v2086_v17 = vsel %vm2050_vm0, %v2013_v53, %v1997_v60  ;;  %v16892_v53 = vld [vmem:[#allocation5 + $0x1500] sm:$0xff] }
 0x191   :  { %v2077_v33 = vsel %vm2050_vm0, %v2010_v46, %v1994_v52  ;;  %v851_v62 = vpack.c.bf16 %v787_v14, %v787_v14  ;;  %v1497_v16 = vld [vmem:[#allocation5 + $0x1408] sm:$0xff]  ;;  %v13867_v27 = vcombine.high %v1489_v57, %v1493_v56  ;;  %v13866_v54 = vcombine.low %v1489_v57, %v1493_v56  ;;  %v1516_v52 = vld [vmem:[#allocation5 + $0x14a0] sm:$0xff] }
 0x192   :  { %v2078_v34 = vsel %vm2052_vm1, %v2026_v58, %v2077_v33  ;;  %v1513_v46 = vld [vmem:[#allocation5 + $0x1488] sm:$0xff] }
 0x193   :  { %7440 = vmatpush1.bf16.msra.mxu0 %v13832_v1  ;;  %7768 = vmatpush1.bf16.msra.mxu1 %v13834_v15  ;;  %v13856_v1 = vcombine.low %v1480_v40, %v1484_v26  ;;  %v13858_v15 = vcombine.low %v1481_v44, %v1485_v13  ;;  %v2045_v28 = vunpack.c.l.b16 %v851_v62  ;;  %v2079_v8 = vsel %vm2054_vm2, %v2042_v61, %v2078_v34  ;;  %v1509_v26 = vld [vmem:[#allocation5 + $0x1468] sm:$0xff]  ;;  %v1512_v13 = vld [vmem:[#allocation5 + $0x1480] sm:$0xff] }
 0x194   :  { %7441 = vmatprep.subr.bf16.mxu0 %v13841_v63  ;;  %7769 = vmatprep.subr.bf16.mxu1 %v13843_v36  ;;  %v13865_v63 = vcombine.high %v1488_v7, %v1492_v32  ;;  %v1501_v36 = vld [vmem:[#allocation5 + $0x1428] sm:$0xff]  ;;  %v16884_v44 = vpack.c.b16 %v2079_v8, %v2079_v8  ;;  %v13883_v14 = vcombine.high %v1505_v24, %v1509_v26  ;;  %v1520_v7 = vld [vmem:[#allocation5 + $0x14c0] sm:$0xff]  ;;  %v162_v34 = vunpack.c.l.bf16 %v16829_v10 }
 0x195   :  { %v13875_v40 = vcombine.high %v1497_v16, %v1501_v36  ;;  %v13874_v29 = vcombine.low %v1497_v16, %v1501_v36  ;;  %v13882_v55 = vcombine.low %v1505_v24, %v1509_v26  ;;  %v1524_v32 = vld [vmem:[#allocation5 + $0x14e0] sm:$0xff]  ;;  %v1521_v57 = vld [vmem:[#allocation5 + $0x14c8] sm:$0xff]  ;;  %v13888_v56 = vcombine.low %v1512_v13, %v1516_v52 }
 0x196   :  { %v1525_v60 = vld [vmem:[#allocation5 + $0x14e8] sm:$0xff]  ;;  %v13897_v62 = vcombine.high %v1520_v7, %v1524_v32  ;;  %v16907_v16 = vld [vmem:[#allocation5 + $0x1560] sm:$0xff]  ;;  %v210_v36 = vunpack.c.l.bf16 %v16843_v4  ;;  %v16923_v4 = vld [vmem:[#allocation2 + $0x170] sm:$0xff] }
 0x197   :  { %7442 = vmatpush1.bf16.msra.mxu0 %v13840_v0  ;;  %7770 = vmatpush1.bf16.msra.mxu1 %v13842_v20  ;;  %v2087_v0 = vsel %vm2052_vm1, %v2029_v25, %v2086_v17  ;;  %v13873_v20 = vcombine.high %v1496_v5, %v1500_v3  ;;  %v1533_v61 = vld [vmem:[#allocation5 + $0x1528] sm:$0xff]  ;;  %v16899_v25 = vld [vmem:[#allocation2 + $0x30] sm:$0xff]  ;;  %v16905_v3 = vld [vmem:[#allocation5 + $0x1540] sm:$0xff]  ;;  %v178_v17 = vunpack.c.l.bf16 %v16831_v31  ;;  %v13898_v8 = vcombine.low %v1521_v57, %v1525_v60 }
 0x198   :  { %7443 = vmatprep.subr.bf16.mxu0 %v13849_v47  ;;  %7771 = vmatprep.subr.bf16.mxu1 %v13851_v23  ;;  %v1504_v47 = vld [vmem:[#allocation5 + $0x1440] sm:$0xff]  ;;  %v2088_v41 = vsel %vm2054_vm2, %v2045_v28, %v2087_v0  ;;  %v16903_v5 = vld [vmem:[#allocation2 + $0xb0] sm:$0xff]  ;;  %v16919_v10 = vld [vmem:[#allocation5 + $0x1548] sm:$0xff] }
 0x199   :  { %v13881_v23 = vcombine.high %v1504_v47, %v1508_v43  ;;  %v13880_v9 = vcombine.low %v1504_v47, %v1508_v43  ;;  %v16913_v28 = vld [vmem:[#allocation2 + $0xf0] sm:$0xff]  ;;  %v1541_v31 = vld [vmem:[#allocation5 + $0x1568] sm:$0xff]  ;;  %v165_v47 = vunpack.c.h.bf16 %v16899_v25  ;;  %v197_v24 = vunpack.c.h.bf16 %v16903_v5 }
 0x19b   :  { %7444 = vmatpush1.bf16.msra.mxu0 %v13848_v18  ;;  %7772 = vmatpush1.bf16.msra.mxu1 %v13850_v19  ;;  %v1517_v18 = vld [vmem:[#allocation5 + $0x14a8] sm:$0xff]  ;;  %v16887_v19 = vpack.c.b16 %v2088_v41, %v2088_v41  ;;  %v16930_v41 = vld [vmem:[#allocation2 + $0x1b0] sm:$0xff] }
 0x19c   :  { %7445 = vmatprep.subr.bf16.mxu0 %v13857_v6  ;;  %7773 = vmatprep.subr.bf16.mxu1 %v13859_v38  ;;  %v13889_v6 = vcombine.high %v1512_v13, %v1516_v52  ;;  %v13891_v58 = vcombine.high %v1513_v46, %v1517_v18  ;;  %v16894_v38 = vld [vmem:[#allocation5 + $0x1520] sm:$0xff]  ;;  %v13890_v33 = vcombine.low %v1513_v46, %v1517_v18  ;;  %v258_v52 = vunpack.c.l.bf16 %v16860_v35 }
 0x19d   :  { %v13905_v0 = vcombine.high %v16892_v53, %v16894_v38  ;;  %v13913_v13 = vcombine.high %v16905_v3, %v16907_v16  ;;  %v274_v46 = vunpack.c.l.bf16 %v16862_v48  ;;  %v245_v18 = vunpack.c.h.bf16 %v16923_v4 }
 0x19e   :  { %v261_v48 = vunpack.c.h.bf16 %v16930_v41 }
 0x19f   :  { %7446 = vmatpush1.bf16.msra.mxu0 %v13856_v1  ;;  %7774 = vmatpush1.bf16.msra.mxu1 %v13858_v15  ;;  %v13899_v1 = vcombine.high %v1521_v57, %v1525_v60  ;;  %v16897_v15 = vld [vmem:[#allocation5 + $0x1508] sm:$0xff] }
 0x1a0   :  { %7447 = vmatprep.subr.bf16.mxu0 %v13865_v63  ;;  %7775 = vmatprep.subr.bf16.mxu1 %v13867_v27  ;;  %v16901_v63 = vld [vmem:[#allocation2 + $0x70] sm:$0xff]  ;;  %v194_v27 = vunpack.c.l.bf16 %v16833_v2  ;;  %v1549_v60 = vld [vmem:[#allocation5 + $0x15a8] sm:$0xff] }
 0x1a1   :  { %v16921_v2 = vld [vmem:[#allocation2 + $0x130] sm:$0xff]  ;;  %v181_v43 = vunpack.c.h.bf16 %v16901_v63 }
 0x1a2   :  { %v462_v26 = vadd.f32 %v210_v36, %v194_v27 }
 0x1a3   :  { %7448 = vmatpush1.bf16.msra.mxu0 %v13864_v30  ;;  %7776 = vmatpush1.bf16.msra.mxu1 %v13866_v54  ;;  %v13896_v30 = vcombine.low %v1520_v7, %v1524_v32  ;;  %v226_v54 = vunpack.c.l.bf16 %v16851_v12  ;;  %v13907_v12 = vcombine.high %v16897_v15, %v1533_v61  ;;  %v371_v32 = vadd.f32 %v181_v43, %v165_v47 }
 0x1a4   :  { %7458 = vmatprep.subr.bf16.mxu0 %v13873_v20  ;;  %7786 = vmatprep.subr.bf16.mxu1 %v13875_v40  ;;  %v242_v20 = vunpack.c.l.bf16 %v16853_v39  ;;  %v213_v40 = vunpack.c.h.bf16 %v16913_v28  ;;  %v350_v39 = vadd.f32 %v178_v17, %v162_v34  ;;  %v463_v35 = vrot.slane %v462_v26, 4  ;;  %v1556_v34 = vld [vmem:[#allocation5 + $0x15e0] sm:$0xff]  ;;  %v1553_v17 = vld [vmem:[#allocation5 + $0x15c8] sm:$0xff] }
 0x1a5   :  { %v372_v36 = vrot.slane %v371_v32, 4 }
 0x1a6   :  { %7450 = vmatmul.mubr.bf16.vlgmr.msra.gmra.mrb[0].mxu0 %v16884_v44  ;;  %7778 = vmatmul.mubr.bf16.vlgmr.msra.gmra.mrb[0].mxu1 %v16884_v44  ;;  %v574_v7 = vadd.f32 %v242_v20, %v226_v54  ;;  %v483_v57 = vadd.f32 %v213_v40, %v197_v24  ;;  %v464_v20 = vadd.f32 %v463_v35, %v462_v26  ;;  %v1560_v24 = vld [vmem:[#allocation5 + $0x1600] sm:$0xff] }
 0x1a7   :  { %7459 = vmatpush1.bf16.msra.mxu0 %v13872_v22  ;;  %7787 = vmatpush1.bf16.msra.mxu1 %v13874_v29  ;;  %v16932_v22 = vld [vmem:[#allocation2 + $0x1f0] sm:$0xff]  ;;  %v13904_v29 = vcombine.low %v16892_v53, %v16894_v38  ;;  %v351_v53 = vrot.slane %v350_v39, 4  ;;  %v1564_v40 = vld [vmem:[#allocation5 + $0x1620] sm:$0xff] }
 0x1a8   :  { %7460 = vmatprep.subr.bf16.mxu0 %v13881_v23  ;;  %7788 = vmatprep.subr.bf16.mxu1 %v13883_v14  ;;  %v13906_v23 = vcombine.low %v16897_v15, %v1533_v61  ;;  %v229_v14 = vunpack.c.h.bf16 %v16921_v2  ;;  %v277_v38 = vunpack.c.h.bf16 %v16932_v22  ;;  %v1552_v61 = vld [vmem:[#allocation5 + $0x15c0] sm:$0xff]  ;;  %v575_v27 = vrot.slane %v574_v7, 4 }
 0x1a9   :  { %7490 = vmatprep.mubr.bf16.mxu0 %v16887_v19  ;;  %7818 = vmatprep.mubr.bf16.mxu1 %v16887_v19  ;;  %v352_v54 = vadd.f32 %v351_v53, %v350_v39  ;;  %v465_v26 = vrot.slane %v464_v20, 2  ;;  %v1572_v53 = vld [vmem:[#allocation5 + $0x1660] sm:$0xff] }
 0x1ab   :  { %7461 = vmatpush1.bf16.msra.mxu0 %v13880_v9  ;;  %7789 = vmatpush1.bf16.msra.mxu1 %v13882_v55  ;;  %v1544_v9 = vld [vmem:[#allocation5 + $0x1580] sm:$0xff]  ;;  %v353_v39 = vrot.slane %v352_v54, 2 }
 0x1ac   :  { %7462 = vmatprep.subr.bf16.mxu0 %v13889_v6  ;;  %7790 = vmatprep.subr.bf16.mxu1 %v13891_v58  ;;  %v1548_v55 = vld [vmem:[#allocation5 + $0x15a0] sm:$0xff]  ;;  %v1545_v6 = vld [vmem:[#allocation5 + $0x1588] sm:$0xff]  ;;  %v13915_v58 = vcombine.high %v16919_v10, %v1541_v31 }
 0x1ad   :  { %v13921_v15 = vcombine.high %v1544_v9, %v1548_v55  ;;  %v13920_v47 = vcombine.low %v1544_v9, %v1548_v55 }
 0x1af   :  { %7463 = vmatpush1.bf16.msra.mxu0 %v13888_v56  ;;  %7791 = vmatpush1.bf16.msra.mxu1 %v13890_v33  ;;  %v13912_v56 = vcombine.low %v16905_v3, %v16907_v16  ;;  %v13914_v33 = vcombine.low %v16919_v10, %v1541_v31  ;;  %v707_v3 = vadd.f32 %v277_v38, %v261_v48 }
 0x1b0   :  { %7464 = vmatprep.subr.bf16.mxu0 %v13897_v62  ;;  %7792 = vmatprep.subr.bf16.mxu1 %v13899_v1  ;;  %v686_v62 = vadd.f32 %v274_v46, %v258_v52  ;;  %v595_v1 = vadd.f32 %v245_v18, %v229_v14  ;;  %v13922_v16 = vcombine.low %v1545_v6, %v1549_v60  ;;  %v1565_v46 = vld [vmem:[#allocation5 + $0x1628] sm:$0xff] }
 0x1b1   :  { %v13929_v10 = vcombine.high %v1552_v61, %v1556_v34  ;;  %v708_v14 = vrot.slane %v707_v3, 4  ;;  %v13928_v18 = vcombine.low %v1552_v61, %v1556_v34  ;;  %v354_v48 = vadd.f32 %v353_v39, %v352_v54 }
 0x1b2   :  { %v687_v31 = vrot.slane %v686_v62, 4  ;;  %v596_v43 = vrot.slane %v595_v1, 4  ;;  %v466_v38 = vadd.f32 %v465_v26, %v464_v20 }
 0x1b3   :  { %7465 = vmatpush1.bf16.msra.mxu0 %v13896_v30  ;;  %7793 = vmatpush1.bf16.msra.mxu1 %v13898_v8  ;;  %v484_v30 = vrot.slane %v483_v57, 4  ;;  %v13923_v8 = vcombine.high %v1545_v6, %v1549_v60  ;;  %v1568_v60 = vld [vmem:[#allocation5 + $0x1640] sm:$0xff]  ;;  %v355_v54 = vrot.slane %v354_v48, 1 }
 0x1b4   :  { %7466 = vmatprep.subr.bf16.mxu0 %v13905_v0  ;;  %7794 = vmatprep.subr.bf16.mxu1 %v13907_v12  ;;  %v1557_v0 = vld [vmem:[#allocation5 + $0x15e8] sm:$0xff]  ;;  %v688_v55 = vadd.f32 %v687_v31, %v686_v62  ;;  %v597_v6 = vadd.f32 %v596_v43, %v595_v1  ;;  %v13945_v62 = vcombine.high %v1568_v60, %v1572_v53  ;;  %v467_v20 = vrot.slane %v466_v38, 1 }
 0x1b5   :  { %v1561_v12 = vld [vmem:[#allocation5 + $0x1608] sm:$0xff]  ;;  %v13931_v52 = vcombine.high %v1553_v17, %v1557_v0  ;;  %v13930_v9 = vcombine.low %v1553_v17, %v1557_v0  ;;  %v1576_v0 = vld [vmem:[#allocation5 + $0x1680] sm:$0xff]  ;;  %v356_v26 = vadd.f32 %v355_v54, %v354_v48 }
 0x1b6   :  { %v13938_v61 = vcombine.low %v1561_v12, %v1565_v46  ;;  %v689_v1 = vrot.slane %v688_v55, 2  ;;  %v598_v34 = vrot.slane %v597_v6, 2 }
 0x1b7   :  { %7467 = vmatpush1.bf16.msra.mxu0 %v13904_v29  ;;  %7795 = vmatpush1.bf16.msra.mxu1 %v13906_v23  ;;  %v576_v29 = vadd.f32 %v575_v27, %v574_v7  ;;  %v373_v23 = vadd.f32 %v372_v36, %v371_v32  ;;  %v709_v27 = vadd.f32 %v708_v14, %v707_v3  ;;  %v738_v48 = vmul.f32 0.0625, %v356_v26 }
 0x1b8   :  { %7468 = vmatprep.subr.bf16.mxu0 %v13913_v13  ;;  %7796 = vmatprep.subr.bf16.mxu1 %v13915_v58  ;;  %v485_v13 = vadd.f32 %v484_v30, %v483_v57  ;;  %v13937_v58 = vcombine.high %v1560_v24, %v1564_v40  ;;  %v13939_v57 = vcombine.high %v1561_v12, %v1565_v46 }
 0x1b9   :  { %v577_v35 = vrot.slane %v576_v29, 2  ;;  %v374_v7 = vrot.slane %v373_v23, 2  ;;  %v710_v31 = vrot.slane %v709_v27, 2  ;;  %v13944_v3 = vcombine.low %v1568_v60, %v1572_v53 }
 0x1ba   :  { %v486_v32 = vrot.slane %v485_v13, 2  ;;  %v468_v14 = vadd.f32 %v467_v20, %v466_v38 }
 0x1bb   :  { %7469 = vmatpush1.bf16.msra.mxu0 %v13912_v56  ;;  %7797 = vmatpush1.bf16.msra.mxu1 %v13914_v33  ;;  %v13936_v56 = vcombine.low %v1560_v24, %v1564_v40  ;;  %v1569_v33 = vld [vmem:[#allocation5 + $0x1648] sm:$0xff]  ;;  %v578_v17 = vadd.f32 %v577_v35, %v576_v29  ;;  %v375_v36 = vadd.f32 %v374_v7, %v373_v23  ;;  %v1584_v29 = vld [vmem:[#allocation5 + $0x16c0] sm:$0xff] }
 0x1bc   :  { %7470 = vmatprep.subr.bf16.mxu0 %v13921_v15  ;;  %7798 = vmatprep.subr.bf16.mxu1 %v13923_v8  ;;  %v1573_v15 = vld [vmem:[#allocation5 + $0x1668] sm:$0xff]  ;;  %v487_v30 = vadd.f32 %v486_v32, %v485_v13  ;;  %v690_v24 = vadd.f32 %v689_v1, %v688_v55  ;;  %v599_v40 = vadd.f32 %v598_v34, %v597_v6  ;;  %v1588_v23 = vld [vmem:[#allocation5 + $0x16e0] sm:$0xff]  ;;  %v754_v38 = vmul.f32 0.0625, %v468_v14 }
 0x1bd   :  { %v13947_v8 = vcombine.high %v1569_v33, %v1573_v15  ;;  %v13946_v43 = vcombine.low %v1569_v33, %v1573_v15  ;;  %v579_v13 = vrot.slane %v578_v17, 1  ;;  %v711_v35 = vadd.f32 %v710_v31, %v709_v27  ;;  %v1592_v33 = vld [vmem:[#allocation5 + $0x1700] sm:$0xff] }
 0x1be   :  { %v488_v46 = vrot.slane %v487_v30, 1  ;;  %v13961_v55 = vcombine.high %v1584_v29, %v1588_v23  ;;  %v691_v6 = vrot.slane %v690_v24, 1  ;;  %v600_v53 = vrot.slane %v599_v40, 1  ;;  %v1596_v15 = vld [vmem:[#allocation5 + $0x1720] sm:$0xff] }
 0x1bf   :  { %7471 = vmatpush1.bf16.msra.mxu0 %v13920_v47  ;;  %7799 = vmatpush1.bf16.msra.mxu1 %v13922_v16  ;;  %v1580_v47 = vld [vmem:[#allocation5 + $0x16a0] sm:$0xff]  ;;  %v1577_v16 = vld [vmem:[#allocation5 + $0x1688] sm:$0xff]  ;;  %v580_v7 = vadd.f32 %v579_v13, %v578_v17  ;;  %v712_v1 = vrot.slane %v711_v35, 1  ;;  %v13960_v27 = vcombine.low %v1584_v29, %v1588_v23  ;;  %v818_v31 = vpack.c.bf16 %v754_v38, %v754_v38 }
 0x1c0   :  { %7472 = vmatprep.subr.bf16.mxu0 %v13929_v10  ;;  %7800 = vmatprep.subr.bf16.mxu1 %v13931_v52  ;;  %v1581_v10 = vld [vmem:[#allocation5 + $0x16a8] sm:$0xff]  ;;  %v13953_v12 = vcombine.high %v1576_v0, %v1580_v47  ;;  %v376_v52 = vrot.slane %v375_v36, 1  ;;  %v1600_v17 = vld [vmem:[#allocation5 + $0x1740] sm:$0xff] }
 0x1c1   :  { %v13955_v39 = vcombine.high %v1577_v16, %v1581_v10  ;;  %v13954_v60 = vcombine.low %v1577_v16, %v1581_v10  ;;  %v802_v10 = vpack.c.bf16 %v738_v48, %v738_v48  ;;  %v713_v13 = vadd.f32 %v712_v1, %v711_v35  ;;  %v1608_v14 = vld [vmem:[#allocation5 + $0x1780] sm:$0xff]  ;;  %v1617_v1 = vld [vmem:[#allocation5 + $0x17c8] sm:$0xff] }
 0x1c2   :  { %v377_v32 = vadd.f32 %v376_v52, %v375_v36  ;;  %v1604_v36 = vld [vmem:[#allocation5 + $0x1760] sm:$0xff] }
 0x1c3   :  { %7473 = vmatpush1.bf16.msra.mxu0 %v13928_v18  ;;  %7801 = vmatpush1.bf16.msra.mxu1 %v13930_v9  ;;  %v13952_v18 = vcombine.low %v1576_v0, %v1580_v47  ;;  %v1585_v9 = vld [vmem:[#allocation5 + $0x16c8] sm:$0xff]  ;;  %v601_v0 = vadd.f32 %v600_v53, %v599_v40  ;;  %v13969_v47 = vcombine.high %v1592_v33, %v1596_v15  ;;  %v1616_v38 = vld [vmem:[#allocation5 + $0x17c0] sm:$0xff] }
 0x1c4   :  { %7474 = vmatprep.subr.bf16.mxu0 %v13937_v58  ;;  %7802 = vmatprep.subr.bf16.mxu1 %v13939_v57  ;;  %v1589_v58 = vld [vmem:[#allocation5 + $0x16e8] sm:$0xff]  ;;  %v489_v57 = vadd.f32 %v488_v46, %v487_v30  ;;  %v770_v30 = vmul.f32 0.0625, %v580_v7  ;;  %v741_v54 = vmul.f32 0.0625, %v377_v32  ;;  %v13976_v35 = vcombine.low %v1600_v17, %v1604_v36 }
 0x1c5   :  { %v13962_v34 = vcombine.low %v1585_v9, %v1589_v58  ;;  %v773_v23 = vmul.f32 0.0625, %v601_v0 }
 0x1c6   :  { %v757_v20 = vmul.f32 0.0625, %v489_v57  ;;  %v834_v52 = vpack.c.bf16 %v770_v30, %v770_v30  ;;  %v805_v46 = vpack.c.bf16 %v741_v54, %v741_v54 }
 0x1c7   :  { %7475 = vmatpush1.bf16.msra.mxu0 %v13936_v56  ;;  %7803 = vmatpush1.bf16.msra.mxu1 %v13938_v61  ;;  %v13963_v56 = vcombine.high %v1585_v9, %v1589_v58  ;;  %v1593_v61 = vld [vmem:[#allocation5 + $0x1708] sm:$0xff]  ;;  %v1996_v9 = vunpack.c.l.b16 %v802_v10  ;;  %v2012_v58 = vunpack.c.l.b16 %v818_v31  ;;  %v837_v32 = vpack.c.bf16 %v773_v23, %v773_v23  ;;  %v1628_v10 = vld [vmem:[#allocation5 + $0x1820] sm:$0xff] }
 0x1c8   :  { %7476 = vmatprep.subr.bf16.mxu0 %v13945_v62  ;;  %7804 = vmatprep.subr.bf16.mxu1 %v13947_v8  ;;  %v1597_v62 = vld [vmem:[#allocation5 + $0x1728] sm:$0xff]  ;;  %v692_v8 = vadd.f32 %v691_v6, %v690_v24  ;;  %v13977_v24 = vcombine.high %v1600_v17, %v1604_v36  ;;  %v789_v6 = vmul.f32 0.0625, %v713_v13 }
 0x1c9   :  { %v13971_v16 = vcombine.high %v1593_v61, %v1597_v62  ;;  %v13970_v29 = vcombine.low %v1593_v61, %v1597_v62  ;;  %v1620_v61 = vld [vmem:[#allocation5 + $0x17e0] sm:$0xff]  ;;  %v2083_v62 = vsel %vm2050_vm0, %v2012_v58, %v1996_v9  ;;  %v2031_v17 = vunpack.c.l.b16 %v837_v32  ;;  %v1625_v31 = vld [vmem:[#allocation5 + $0x1808] sm:$0xff] }
 0x1ca   :  { %v786_v40 = vmul.f32 0.0625, %v692_v8  ;;  %v13993_v36 = vcombine.high %v1616_v38, %v1620_v61  ;;  %v1645_v32 = vld [vmem:[#allocation5 + $0x18a8] sm:$0xff] }
 0x1cb   :  { %7477 = vmatpush1.bf16.msra.mxu0 %v13944_v3  ;;  %7805 = vmatpush1.bf16.msra.mxu1 %v13946_v43  ;;  %v13968_v3 = vcombine.low %v1592_v33, %v1596_v15  ;;  %v1601_v43 = vld [vmem:[#allocation5 + $0x1748] sm:$0xff]  ;;  %v1999_v33 = vunpack.c.l.b16 %v805_v46  ;;  %v1636_v46 = vld [vmem:[#allocation5 + $0x1860] sm:$0xff] }
 0x1cc   :  { %7478 = vmatprep.subr.bf16.mxu0 %v13953_v12  ;;  %7806 = vmatprep.subr.bf16.mxu1 %v13955_v39  ;;  %v1605_v12 = vld [vmem:[#allocation5 + $0x1768] sm:$0xff]  ;;  %v821_v39 = vpack.c.bf16 %v757_v20, %v757_v20  ;;  %v850_v7 = vpack.c.bf16 %v786_v40, %v786_v40 }
 0x1cd   :  { %v13979_v26 = vcombine.high %v1601_v43, %v1605_v12  ;;  %v13978_v53 = vcombine.low %v1601_v43, %v1605_v12  ;;  %v13992_v12 = vcombine.low %v1616_v38, %v1620_v61  ;;  %v1652_v38 = vld [vmem:[#allocation5 + $0x18e0] sm:$0xff]  ;;  %v1649_v61 = vld [vmem:[#allocation5 + $0x18c8] sm:$0xff] }
 0x1ce   :  { %v2015_v15 = vunpack.c.l.b16 %v821_v39 }
 0x1cf   :  { %7479 = vmatpush1.bf16.msra.mxu0 %v13952_v18  ;;  %7807 = vmatpush1.bf16.msra.mxu1 %v13954_v60  ;;  %v1612_v18 = vld [vmem:[#allocation5 + $0x17a0] sm:$0xff]  ;;  %v1609_v60 = vld [vmem:[#allocation5 + $0x1788] sm:$0xff] }
 0x1d0   :  { %7480 = vmatprep.subr.bf16.mxu0 %v13961_v55  ;;  %7808 = vmatprep.subr.bf16.mxu1 %v13963_v56  ;;  %v1613_v55 = vld [vmem:[#allocation5 + $0x17a8] sm:$0xff]  ;;  %v13985_v57 = vcombine.high %v1608_v14, %v1612_v18  ;;  %v2028_v56 = vunpack.c.l.b16 %v834_v52  ;;  %v13984_v8 = vcombine.low %v1608_v14, %v1612_v18  ;;  %v2092_v54 = vsel %vm2050_vm0, %v2015_v15, %v1999_v33  ;;  %v1632_v52 = vld [vmem:[#allocation5 + $0x1840] sm:$0xff] }
 0x1d1   :  { %v13987_v48 = vcombine.high %v1609_v60, %v1613_v55  ;;  %v13986_v0 = vcombine.low %v1609_v60, %v1613_v55  ;;  %v1637_v14 = vld [vmem:[#allocation5 + $0x1868] sm:$0xff]  ;;  %v14009_v60 = vcombine.high %v1632_v52, %v1636_v46  ;;  %v1648_v15 = vld [vmem:[#allocation5 + $0x18c0] sm:$0xff] }
 0x1d2   :  { %v2084_v30 = vsel %vm2052_vm1, %v2028_v56, %v2083_v62  ;;  %v1653_v62 = vld [vmem:[#allocation5 + $0x18e8] sm:$0xff] }
 0x1d3   :  { %7481 = vmatpush1.bf16.msra.mxu0 %v13960_v27  ;;  %7809 = vmatpush1.bf16.msra.mxu1 %v13962_v34  ;;  %v1621_v27 = vld [vmem:[#allocation5 + $0x17e8] sm:$0xff]  ;;  %v853_v34 = vpack.c.bf16 %v789_v6, %v789_v6  ;;  %v1640_v6 = vld [vmem:[#allocation5 + $0x1880] sm:$0xff] }
 0x1d4   :  { %7482 = vmatprep.subr.bf16.mxu0 %v13969_v47  ;;  %7810 = vmatprep.subr.bf16.mxu1 %v13971_v16  ;;  %v2044_v47 = vunpack.c.l.b16 %v850_v7  ;;  %v13995_v20 = vcombine.high %v1617_v1, %v1621_v27  ;;  %v1624_v16 = vld [vmem:[#allocation5 + $0x1800] sm:$0xff]  ;;  %v1641_v7 = vld [vmem:[#allocation5 + $0x1888] sm:$0xff] }
 0x1d5   :  { %v2047_v43 = vunpack.c.l.b16 %v853_v34  ;;  %v14001_v40 = vcombine.high %v1624_v16, %v1628_v10  ;;  %v14000_v9 = vcombine.low %v1624_v16, %v1628_v10  ;;  %v14025_v34 = vcombine.high %v1648_v15, %v1652_v38  ;;  %v16969_v16 = vld [vmem:[#allocation2 + $0x78] sm:$0xff] }
 0x1d6   :  { %v2085_v13 = vsel %vm2054_vm2, %v2044_v47, %v2084_v30  ;;  %v1660_v47 = vld [vmem:[#allocation5 + $0x1920] sm:$0xff]  ;;  %v180_v30 = vunpack.c.l.bf16 %v16901_v63  ;;  %v16971_v10 = vld [vmem:[#allocation2 + $0xb8] sm:$0xff]  ;;  %v228_v63 = vunpack.c.l.bf16 %v16921_v2 }
 0x1d7   :  { %7483 = vmatpush1.bf16.msra.mxu0 %v13968_v3  ;;  %7811 = vmatpush1.bf16.msra.mxu1 %v13970_v29  ;;  %v1629_v3 = vld [vmem:[#allocation5 + $0x1828] sm:$0xff]  ;;  %v2093_v29 = vsel %vm2052_vm1, %v2031_v17, %v2092_v54  ;;  %v16954_v39 = vpack.c.b16 %v2085_v13, %v2085_v13  ;;  %v16963_v17 = vld [vmem:[#allocation2 + $0x38] sm:$0xff]  ;;  %v196_v54 = vunpack.c.l.bf16 %v16903_v5  ;;  %v14026_v13 = vcombine.low %v1649_v61, %v1653_v62 }
 0x1d8   :  { %7484 = vmatprep.subr.bf16.mxu0 %v13977_v24  ;;  %7812 = vmatprep.subr.bf16.mxu1 %v13979_v26  ;;  %v13994_v24 = vcombine.low %v1617_v1, %v1621_v27  ;;  %v14003_v23 = vcombine.high %v1625_v31, %v1629_v3  ;;  %v1633_v26 = vld [vmem:[#allocation5 + $0x1848] sm:$0xff]  ;;  %v2094_v18 = vsel %vm2054_vm2, %v2047_v43, %v2093_v29  ;;  %v244_v5 = vunpack.c.l.bf16 %v16923_v4 }
 0x1d9   :  { %v14002_v58 = vcombine.low %v1625_v31, %v1629_v3  ;;  %v14011_v55 = vcombine.high %v1633_v26, %v1637_v14  ;;  %v14010_v56 = vcombine.low %v1633_v26, %v1637_v14  ;;  %v14018_v27 = vcombine.low %v1641_v7, %v1645_v32  ;;  %v16973_v31 = vld [vmem:[#allocation2 + $0xf8] sm:$0xff]  ;;  %v1657_v43 = vld [vmem:[#allocation5 + $0x1908] sm:$0xff] }
 0x1da   :  { %v14024_v3 = vcombine.low %v1648_v15, %v1652_v38  ;;  %v215_v26 = vunpack.c.h.bf16 %v16973_v31 }
 0x1db   :  { %7485 = vmatpush1.bf16.msra.mxu0 %v13976_v35  ;;  %7813 = vmatpush1.bf16.msra.mxu1 %v13978_v53  ;;  %v1644_v35 = vld [vmem:[#allocation5 + $0x18a0] sm:$0xff]  ;;  %v16957_v53 = vpack.c.b16 %v2094_v18, %v2094_v18 }
 0x1dc   :  { %7486 = vmatprep.subr.bf16.mxu0 %v13985_v57  ;;  %7814 = vmatprep.subr.bf16.mxu1 %v13987_v48  ;;  %v14008_v57 = vcombine.low %v1632_v52, %v1636_v46  ;;  %v14017_v33 = vcombine.high %v1640_v6, %v1644_v35  ;;  %v14019_v48 = vcombine.high %v1641_v7, %v1645_v32  ;;  %v183_v52 = vunpack.c.h.bf16 %v16969_v16  ;;  %v16993_v7 = vld [vmem:[#allocation2 + $0x1b8] sm:$0xff] }
 0x1dd   :  { %v14016_v1 = vcombine.low %v1640_v6, %v1644_v35  ;;  %v199_v46 = vunpack.c.h.bf16 %v16971_v10  ;;  %v260_v6 = vunpack.c.l.bf16 %v16930_v41  ;;  %v276_v35 = vunpack.c.l.bf16 %v16932_v22  ;;  %v16995_v32 = vld [vmem:[#allocation2 + $0x1f8] sm:$0xff]  ;;  %v1673_v22 = vld [vmem:[#allocation5 + $0x1988] sm:$0xff] }
 0x1df   :  { %7487 = vmatpush1.bf16.msra.mxu0 %v13984_v8  ;;  %7815 = vmatpush1.bf16.msra.mxu1 %v13986_v0  ;;  %v14027_v8 = vcombine.high %v1649_v61, %v1653_v62  ;;  %v1656_v0 = vld [vmem:[#allocation5 + $0x1900] sm:$0xff] }
 0x1e0   :  { %7488 = vmatprep.subr.bf16.mxu0 %v13993_v36  ;;  %7816 = vmatprep.subr.bf16.mxu1 %v13995_v20  ;;  %v164_v36 = vunpack.c.l.bf16 %v16899_v25  ;;  %v212_v20 = vunpack.c.l.bf16 %v16913_v28  ;;  %v14033_v29 = vcombine.high %v1656_v0, %v1660_v47  ;;  %v16977_v25 = vld [vmem:[#allocation5 + $0x1960] sm:$0xff]  ;;  %v16981_v28 = vld [vmem:[#allocation2 + $0x138] sm:$0xff] }
 0x1e1   :  { %v1672_v61 = vld [vmem:[#allocation5 + $0x1980] sm:$0xff] }
 0x1e2   :  { %v364_v18 = vadd.f32 %v180_v30, %v164_v36  ;;  %v476_v2 = vadd.f32 %v212_v20, %v196_v54  ;;  %v1676_v62 = vld [vmem:[#allocation5 + $0x19a0] sm:$0xff]  ;;  %v700_v36 = vadd.f32 %v276_v35, %v260_v6 }
 0x1e3   :  { %7489 = vmatpush1.bf16.msra.mxu0 %v13992_v12  ;;  %7817 = vmatpush1.bf16.msra.mxu1 %v13994_v24  ;;  %v1661_v12 = vld [vmem:[#allocation5 + $0x1928] sm:$0xff]  ;;  %v16975_v24 = vld [vmem:[#allocation5 + $0x1940] sm:$0xff]  ;;  %v14049_v54 = vcombine.high %v1672_v61, %v1676_v62 }
 0x1e4   :  { %7499 = vmatprep.subr.bf16.mxu0 %v14001_v40  ;;  %7827 = vmatprep.subr.bf16.mxu1 %v14003_v23  ;;  %v16983_v40 = vld [vmem:[#allocation2 + $0x178] sm:$0xff]  ;;  %v167_v23 = vunpack.c.h.bf16 %v16963_v17  ;;  %v14035_v14 = vcombine.high %v1657_v43, %v1661_v12  ;;  %v14034_v4 = vcombine.low %v1657_v43, %v1661_v12  ;;  %v365_v41 = vrot.slane %v364_v18, 4  ;;  %v1680_v20 = vld [vmem:[#allocation5 + $0x19c0] sm:$0xff] }
 0x1e5   :  { %v1688_v6 = vld [vmem:[#allocation5 + $0x1a00] sm:$0xff] }
 0x1e6   :  { %7491 = vmatmul.mubr.bf16.vlgmr.msra.gmra.mrb[0].mxu0 %v16954_v39  ;;  %7819 = vmatmul.mubr.bf16.vlgmr.msra.gmra.mrb[0].mxu1 %v16954_v39  ;;  %v385_v15 = vadd.f32 %v183_v52, %v167_v23  ;;  %v14048_v23 = vcombine.low %v1672_v61, %v1676_v62  ;;  %v1681_v52 = vld [vmem:[#allocation5 + $0x19c8] sm:$0xff]  ;;  %v1692_v35 = vld [vmem:[#allocation5 + $0x1a20] sm:$0xff] }
 0x1e7   :  { %7500 = vmatpush1.bf16.msra.mxu0 %v14000_v9  ;;  %7828 = vmatpush1.bf16.msra.mxu1 %v14002_v58  ;;  %v14032_v9 = vcombine.low %v1656_v0, %v1660_v47  ;;  %v14041_v58 = vcombine.high %v16975_v24, %v16977_v25  ;;  %v14040_v0 = vcombine.low %v16975_v24, %v16977_v25 }
 0x1e8   :  { %7501 = vmatprep.subr.bf16.mxu0 %v14009_v60  ;;  %7829 = vmatprep.subr.bf16.mxu1 %v14011_v55  ;;  %v1665_v60 = vld [vmem:[#allocation5 + $0x1948] sm:$0xff]  ;;  %v386_v12 = vrot.slane %v385_v15, 4 }
 0x1e9   :  { %7531 = vmatprep.mubr.bf16.mxu0 %v16957_v53  ;;  %7859 = vmatprep.mubr.bf16.mxu1 %v16957_v53  ;;  %v1669_v55 = vld [vmem:[#allocation5 + $0x1968] sm:$0xff] }
 0x1ea   :  { %v14043_v38 = vcombine.high %v1665_v60, %v1669_v55  ;;  %v14042_v47 = vcombine.low %v1665_v60, %v1669_v55 }
 0x1eb   :  { %7502 = vmatpush1.bf16.msra.mxu0 %v14008_v57  ;;  %7830 = vmatpush1.bf16.msra.mxu1 %v14010_v56  ;;  %v231_v57 = vunpack.c.h.bf16 %v16981_v28  ;;  %v247_v56 = vunpack.c.h.bf16 %v16983_v40 }
 0x1ec   :  { %7503 = vmatprep.subr.bf16.mxu0 %v14017_v33  ;;  %7831 = vmatprep.subr.bf16.mxu1 %v14019_v48  ;;  %v588_v33 = vadd.f32 %v244_v5, %v228_v63  ;;  %v497_v48 = vadd.f32 %v215_v26, %v199_v46  ;;  %v366_v63 = vadd.f32 %v365_v41, %v364_v18  ;;  %v1685_v46 = vld [vmem:[#allocation5 + $0x19e8] sm:$0xff] }
 0x1ed   :  { %v609_v30 = vadd.f32 %v247_v56, %v231_v57  ;;  %v14059_v55 = vcombine.high %v1681_v52, %v1685_v46  ;;  %v1689_v57 = vld [vmem:[#allocation5 + $0x1a08] sm:$0xff]  ;;  %v14058_v62 = vcombine.low %v1681_v52, %v1685_v46 }
 0x1ee   :  { %v589_v43 = vrot.slane %v588_v33, 4  ;;  %v367_v18 = vrot.slane %v366_v63, 2  ;;  %v1693_v56 = vld [vmem:[#allocation5 + $0x1a28] sm:$0xff] }
 0x1ef   :  { %7504 = vmatpush1.bf16.msra.mxu0 %v14016_v1  ;;  %7832 = vmatpush1.bf16.msra.mxu1 %v14018_v27  ;;  %v477_v1 = vrot.slane %v476_v2, 4  ;;  %v1677_v27 = vld [vmem:[#allocation5 + $0x19a8] sm:$0xff] }
 0x1f0   :  { %7505 = vmatprep.subr.bf16.mxu0 %v14025_v34  ;;  %7833 = vmatprep.subr.bf16.mxu1 %v14027_v8  ;;  %v263_v34 = vunpack.c.h.bf16 %v16993_v7  ;;  %v279_v8 = vunpack.c.h.bf16 %v16995_v32  ;;  %v14050_v24 = vcombine.low %v1673_v22, %v1677_v27 }
 0x1f1   :  { %v478_v5 = vadd.f32 %v477_v1, %v476_v2 }
 0x1f2   :  { %v721_v26 = vadd.f32 %v279_v8, %v263_v34  ;;  %v14067_v8 = vcombine.high %v1689_v57, %v1693_v56 }
 0x1f3   :  { %7506 = vmatpush1.bf16.msra.mxu0 %v14024_v3  ;;  %7834 = vmatpush1.bf16.msra.mxu1 %v14026_v13  ;;  %v1684_v3 = vld [vmem:[#allocation5 + $0x19e0] sm:$0xff]  ;;  %v498_v13 = vrot.slane %v497_v48, 4  ;;  %v479_v2 = vrot.slane %v478_v5, 2 }
 0x1f4   :  { %7507 = vmatprep.subr.bf16.mxu0 %v14033_v29  ;;  %7835 = vmatprep.subr.bf16.mxu1 %v14035_v14  ;;  %v14051_v29 = vcombine.high %v1673_v22, %v1677_v27  ;;  %v14057_v25 = vcombine.high %v1680_v20, %v1684_v3  ;;  %v701_v14 = vrot.slane %v700_v36, 4  ;;  %v14056_v61 = vcombine.low %v1680_v20, %v1684_v3 }
 0x1f5   :  { %v499_v60 = vadd.f32 %v498_v13, %v497_v48  ;;  %v14065_v22 = vcombine.high %v1688_v6, %v1692_v35  ;;  %v14066_v20 = vcombine.low %v1689_v57, %v1693_v56 }
 0x1f6   :  { %v702_v41 = vadd.f32 %v701_v14, %v700_v36  ;;  %v1705_v14 = vld [vmem:[#allocation5 + $0x1a88] sm:$0xff] }
 0x1f7   :  { %7508 = vmatpush1.bf16.msra.mxu0 %v14032_v9  ;;  %7836 = vmatpush1.bf16.msra.mxu1 %v14034_v4  ;;  %v610_v9 = vrot.slane %v609_v30, 4  ;;  %v590_v4 = vadd.f32 %v589_v43, %v588_v33  ;;  %v1696_v33 = vld [vmem:[#allocation5 + $0x1a40] sm:$0xff]  ;;  %v500_v34 = vrot.slane %v499_v60, 2  ;;  %v1697_v43 = vld [vmem:[#allocation5 + $0x1a48] sm:$0xff] }
 0x1f8   :  { %7509 = vmatprep.subr.bf16.mxu0 %v14041_v58  ;;  %7837 = vmatprep.subr.bf16.mxu1 %v14043_v38  ;;  %v387_v58 = vadd.f32 %v386_v12, %v385_v15  ;;  %v722_v38 = vrot.slane %v721_v26, 4  ;;  %v1700_v15 = vld [vmem:[#allocation5 + $0x1a60] sm:$0xff]  ;;  %v1701_v12 = vld [vmem:[#allocation5 + $0x1a68] sm:$0xff] }
 0x1f9   :  { %v611_v1 = vadd.f32 %v610_v9, %v609_v30  ;;  %v591_v48 = vrot.slane %v590_v4, 2  ;;  %v14073_v36 = vcombine.high %v1696_v33, %v1700_v15  ;;  %v703_v30 = vrot.slane %v702_v41, 2  ;;  %v1709_v9 = vld [vmem:[#allocation5 + $0x1aa8] sm:$0xff] }
 0x1fa   :  { %v388_v27 = vrot.slane %v387_v58, 2  ;;  %v723_v13 = vadd.f32 %v722_v38, %v721_v26  ;;  %v501_v52 = vadd.f32 %v500_v34, %v499_v60  ;;  %v14075_v46 = vcombine.high %v1697_v43, %v1701_v12 }
 0x1fb   :  { %7510 = vmatpush1.bf16.msra.mxu0 %v14040_v0  ;;  %7838 = vmatpush1.bf16.msra.mxu1 %v14042_v47  ;;  %v368_v0 = vadd.f32 %v367_v18, %v366_v63  ;;  %v480_v47 = vadd.f32 %v479_v2, %v478_v5  ;;  %v612_v3 = vrot.slane %v611_v1, 2  ;;  %v14072_v26 = vcombine.low %v1696_v33, %v1700_v15 }
 0x1fc   :  { %7511 = vmatprep.subr.bf16.mxu0 %v14049_v54  ;;  %7839 = vmatprep.subr.bf16.mxu1 %v14051_v29  ;;  %v14064_v54 = vcombine.low %v1688_v6, %v1692_v35  ;;  %v592_v29 = vadd.f32 %v591_v48, %v590_v4  ;;  %v14074_v6 = vcombine.low %v1697_v43, %v1701_v12  ;;  %v1712_v4 = vld [vmem:[#allocation5 + $0x1ac0] sm:$0xff]  ;;  %v502_v56 = vrot.slane %v501_v52, 1  ;;  %v1713_v48 = vld [vmem:[#allocation5 + $0x1ac8] sm:$0xff] }
 0x1fd   :  { %v369_v63 = vrot.slane %v368_v0, 1  ;;  %v481_v5 = vrot.slane %v480_v47, 1  ;;  %v704_v35 = vadd.f32 %v703_v30, %v702_v41  ;;  %v613_v18 = vadd.f32 %v612_v3, %v611_v1  ;;  %v1721_v30 = vld [vmem:[#allocation5 + $0x1b08] sm:$0xff] }
 0x1fe   :  { %v593_v60 = vrot.slane %v592_v29, 1  ;;  %v14083_v38 = vcombine.high %v1705_v14, %v1709_v9  ;;  %v14082_v33 = vcombine.low %v1705_v14, %v1709_v9  ;;  %v503_v43 = vadd.f32 %v502_v56, %v501_v52  ;;  %v1725_v3 = vld [vmem:[#allocation5 + $0x1b28] sm:$0xff] }
 0x1ff   :  { %7512 = vmatpush1.bf16.msra.mxu0 %v14048_v23  ;;  %7840 = vmatpush1.bf16.msra.mxu1 %v14050_v24  ;;  %v389_v23 = vadd.f32 %v388_v27, %v387_v58  ;;  %v1704_v24 = vld [vmem:[#allocation5 + $0x1a80] sm:$0xff]  ;;  %v1717_v27 = vld [vmem:[#allocation5 + $0x1ae8] sm:$0xff]  ;;  %v705_v1 = vrot.slane %v704_v35, 1  ;;  %v614_v15 = vrot.slane %v613_v18, 1 }
 0x200   :  { %7513 = vmatprep.subr.bf16.mxu0 %v14057_v25  ;;  %7841 = vmatprep.subr.bf16.mxu1 %v14059_v55  ;;  %v1708_v25 = vld [vmem:[#allocation5 + $0x1aa0] sm:$0xff]  ;;  %v724_v55 = vrot.slane %v723_v13, 2  ;;  %v14091_v12 = vcombine.high %v1713_v48, %v1717_v27  ;;  %v759_v9 = vmul.f32 0.0625, %v503_v43 }
 0x201   :  { %v14081_v2 = vcombine.high %v1704_v24, %v1708_v25  ;;  %v1716_v58 = vld [vmem:[#allocation5 + $0x1ae0] sm:$0xff]  ;;  %v390_v57 = vrot.slane %v389_v23, 1 }
 0x202   :  { %v725_v34 = vadd.f32 %v724_v55, %v723_v13  ;;  %v14089_v41 = vcombine.high %v1712_v4, %v1716_v58  ;;  %v14088_v13 = vcombine.low %v1712_v4, %v1716_v58  ;;  %v14099_v55 = vcombine.high %v1721_v30, %v1725_v3 }
 0x203   :  { %7514 = vmatpush1.bf16.msra.mxu0 %v14056_v61  ;;  %7842 = vmatpush1.bf16.msra.mxu1 %v14058_v62  ;;  %v370_v61 = vadd.f32 %v369_v63, %v368_v0  ;;  %v482_v62 = vadd.f32 %v481_v5, %v480_v47  ;;  %v615_v63 = vadd.f32 %v614_v15, %v613_v18  ;;  %v1741_v15 = vld [vmem:[#allocation5 + $0x1ba8] sm:$0xff] }
 0x204   :  { %7515 = vmatprep.subr.bf16.mxu0 %v14065_v22  ;;  %7843 = vmatprep.subr.bf16.mxu1 %v14067_v8  ;;  %v14080_v22 = vcombine.low %v1704_v24, %v1708_v25  ;;  %v594_v8 = vadd.f32 %v593_v60, %v592_v29  ;;  %v14090_v24 = vcombine.low %v1713_v48, %v1717_v27  ;;  %v1728_v29 = vld [vmem:[#allocation5 + $0x1b40] sm:$0xff]  ;;  %v1729_v60 = vld [vmem:[#allocation5 + $0x1b48] sm:$0xff] }
 0x205   :  { %v740_v0 = vmul.f32 0.0625, %v370_v61  ;;  %v756_v47 = vmul.f32 0.0625, %v482_v62  ;;  %v706_v25 = vadd.f32 %v705_v1, %v704_v35  ;;  %v14098_v4 = vcombine.low %v1721_v30, %v1725_v3  ;;  %v1736_v48 = vld [vmem:[#allocation5 + $0x1b80] sm:$0xff]  ;;  %v1737_v1 = vld [vmem:[#allocation5 + $0x1b88] sm:$0xff] }
 0x206   :  { %v772_v52 = vmul.f32 0.0625, %v594_v8  ;;  %v775_v58 = vmul.f32 0.0625, %v615_v63  ;;  %v823_v62 = vpack.c.bf16 %v759_v9, %v759_v9  ;;  %v1740_v27 = vld [vmem:[#allocation5 + $0x1ba0] sm:$0xff]  ;;  %v14115_v30 = vcombine.high %v1737_v1, %v1741_v15 }
 0x207   :  { %7516 = vmatpush1.bf16.msra.mxu0 %v14064_v54  ;;  %7844 = vmatpush1.bf16.msra.mxu1 %v14066_v20  ;;  %v391_v54 = vadd.f32 %v390_v57, %v389_v23  ;;  %v1720_v20 = vld [vmem:[#allocation5 + $0x1b00] sm:$0xff]  ;;  %v1733_v57 = vld [vmem:[#allocation5 + $0x1b68] sm:$0xff]  ;;  %v788_v18 = vmul.f32 0.0625, %v706_v25 }
 0x208   :  { %7517 = vmatprep.subr.bf16.mxu0 %v14073_v36  ;;  %7845 = vmatprep.subr.bf16.mxu1 %v14075_v46  ;;  %v1724_v36 = vld [vmem:[#allocation5 + $0x1b20] sm:$0xff]  ;;  %v726_v46 = vrot.slane %v725_v34, 1  ;;  %v1749_v25 = vld [vmem:[#allocation5 + $0x1be8] sm:$0xff] }
 0x209   :  { %v14097_v5 = vcombine.high %v1720_v20, %v1724_v36  ;;  %v1732_v23 = vld [vmem:[#allocation5 + $0x1b60] sm:$0xff]  ;;  %v743_v14 = vmul.f32 0.0625, %v391_v54  ;;  %v14106_v54 = vcombine.low %v1729_v60, %v1733_v57  ;;  %v852_v43 = vpack.c.bf16 %v788_v18, %v788_v18 }
 0x20a   :  { %v727_v56 = vadd.f32 %v726_v46, %v725_v34  ;;  %v14105_v35 = vcombine.high %v1728_v29, %v1732_v23  ;;  %v14104_v34 = vcombine.low %v1728_v29, %v1732_v23  ;;  %v1744_v3 = vld [vmem:[#allocation5 + $0x1bc0] sm:$0xff]  ;;  %v14114_v29 = vcombine.low %v1737_v1, %v1741_v15 }
 0x20b   :  { %7518 = vmatpush1.bf16.msra.mxu0 %v14072_v26  ;;  %7846 = vmatpush1.bf16.msra.mxu1 %v14074_v6  ;;  %v804_v26 = vpack.c.bf16 %v740_v0, %v740_v0  ;;  %v820_v6 = vpack.c.bf16 %v756_v47, %v756_v47  ;;  %v807_v61 = vpack.c.bf16 %v743_v14, %v743_v14  ;;  %v2017_v47 = vunpack.c.l.b16 %v823_v62  ;;  %v1748_v46 = vld [vmem:[#allocation5 + $0x1be0] sm:$0xff] }
 0x20c   :  { %7519 = vmatprep.subr.bf16.mxu0 %v14081_v2  ;;  %7847 = vmatprep.subr.bf16.mxu1 %v14083_v38  ;;  %v14096_v2 = vcombine.low %v1720_v20, %v1724_v36  ;;  %v836_v38 = vpack.c.bf16 %v772_v52, %v772_v52  ;;  %v791_v8 = vmul.f32 0.0625, %v727_v56  ;;  %v14113_v20 = vcombine.high %v1736_v48, %v1740_v27  ;;  %v1760_v62 = vld [vmem:[#allocation5 + $0x1c40] sm:$0xff] }
 0x20d   :  { %v2001_v0 = vunpack.c.l.b16 %v807_v61  ;;  %v2046_v23 = vunpack.c.l.b16 %v852_v43  ;;  %v14121_v14 = vcombine.high %v1744_v3, %v1748_v46  ;;  %v1772_v43 = vld [vmem:[#allocation5 + $0x1ca0] sm:$0xff] }
 0x20e   :  { %v2030_v36 = vunpack.c.l.b16 %v836_v38  ;;  %v855_v63 = vpack.c.bf16 %v791_v8, %v791_v8 }
 0x20f   :  { %7520 = vmatpush1.bf16.msra.mxu0 %v14080_v22  ;;  %7848 = vmatpush1.bf16.msra.mxu1 %v14082_v33  ;;  %v14107_v22 = vcombine.high %v1729_v60, %v1733_v57  ;;  %v1998_v33 = vunpack.c.l.b16 %v804_v26  ;;  %v1753_v60 = vld [vmem:[#allocation5 + $0x1c08] sm:$0xff] }
 0x210   :  { %7521 = vmatprep.subr.bf16.mxu0 %v14089_v41  ;;  %7849 = vmatprep.subr.bf16.mxu1 %v14091_v12  ;;  %v2014_v41 = vunpack.c.l.b16 %v820_v6  ;;  %v839_v12 = vpack.c.bf16 %v775_v58, %v775_v58  ;;  %v1752_v6 = vld [vmem:[#allocation5 + $0x1c00] sm:$0xff]  ;;  %v1757_v57 = vld [vmem:[#allocation5 + $0x1c28] sm:$0xff]  ;;  %v2049_v56 = vunpack.c.l.b16 %v855_v63 }
 0x211   :  { %v14131_v61 = vcombine.high %v1753_v60, %v1757_v57  ;;  %v14130_v15 = vcombine.low %v1753_v60, %v1757_v57  ;;  %v1789_v60 = vld [vmem:[#allocation5 + $0x1d28] sm:$0xff] }
 0x212   :  { %v2033_v52 = vunpack.c.l.b16 %v839_v12 }
 0x213   :  { %7522 = vmatpush1.bf16.msra.mxu0 %v14088_v13  ;;  %7850 = vmatpush1.bf16.msra.mxu1 %v14090_v24  ;;  %v2089_v13 = vsel %vm2050_vm0, %v2014_v41, %v1998_v33  ;;  %v1745_v24 = vld [vmem:[#allocation5 + $0x1bc8] sm:$0xff] }
 0x214   :  { %7523 = vmatprep.subr.bf16.mxu0 %v14097_v5  ;;  %7851 = vmatprep.subr.bf16.mxu1 %v14099_v55  ;;  %v14112_v5 = vcombine.low %v1736_v48, %v1740_v27  ;;  %v2090_v9 = vsel %vm2052_vm1, %v2030_v36, %v2089_v13  ;;  %v2098_v55 = vsel %vm2050_vm0, %v2017_v47, %v2001_v0  ;;  %v1761_v27 = vld [vmem:[#allocation5 + $0x1c48] sm:$0xff]  ;;  %v1780_v13 = vld [vmem:[#allocation5 + $0x1ce0] sm:$0xff] }
 0x215   :  { %v14123_v26 = vcombine.high %v1745_v24, %v1749_v25  ;;  %v2099_v18 = vsel %vm2052_vm1, %v2033_v52, %v2098_v55  ;;  %v14122_v58 = vcombine.low %v1745_v24, %v1749_v25  ;;  %v1765_v33 = vld [vmem:[#allocation5 + $0x1c68] sm:$0xff]  ;;  %v1784_v52 = vld [vmem:[#allocation5 + $0x1d00] sm:$0xff]  ;;  %v182_v55 = vunpack.c.l.bf16 %v16969_v16 }
 0x216   :  { %v2100_v41 = vsel %vm2054_vm2, %v2049_v56, %v2099_v18  ;;  %v1773_v36 = vld [vmem:[#allocation5 + $0x1ca8] sm:$0xff]  ;;  %v14138_v47 = vcombine.low %v1761_v27, %v1765_v33  ;;  %v246_v18 = vunpack.c.l.bf16 %v16983_v40  ;;  %v1796_v16 = vld [vmem:[#allocation5 + $0x1d60] sm:$0xff] }
 0x217   :  { %7524 = vmatpush1.bf16.msra.mxu0 %v14096_v2  ;;  %7852 = vmatpush1.bf16.msra.mxu1 %v14098_v4  ;;  %v1756_v2 = vld [vmem:[#allocation5 + $0x1c20] sm:$0xff]  ;;  %v14120_v4 = vcombine.low %v1744_v3, %v1748_v46  ;;  %v17011_v12 = vpack.c.b16 %v2100_v41, %v2100_v41  ;;  %v1777_v24 = vld [vmem:[#allocation5 + $0x1cc8] sm:$0xff] }
 0x218   :  { %7525 = vmatprep.subr.bf16.mxu0 %v14105_v35  ;;  %7853 = vmatprep.subr.bf16.mxu1 %v14107_v22  ;;  %v2091_v35 = vsel %vm2054_vm2, %v2046_v23, %v2090_v9  ;;  %v14129_v38 = vcombine.high %v1752_v6, %v1756_v2  ;;  %v1764_v22 = vld [vmem:[#allocation5 + $0x1c60] sm:$0xff]  ;;  %v14128_v1 = vcombine.low %v1752_v6, %v1756_v2  ;;  %v1781_v25 = vld [vmem:[#allocation5 + $0x1ce8] sm:$0xff]  ;;  %v166_v9 = vunpack.c.l.bf16 %v16963_v17 }
 0x219   :  { %v17008_v48 = vpack.c.b16 %v2091_v35, %v2091_v35  ;;  %v14137_v8 = vcombine.high %v1760_v62, %v1764_v22  ;;  %v14136_v0 = vcombine.low %v1760_v62, %v1764_v22  ;;  %v1776_v3 = vld [vmem:[#allocation5 + $0x1cc0] sm:$0xff]  ;;  %v14155_v23 = vcombine.high %v1777_v24, %v1781_v25  ;;  %v1785_v2 = vld [vmem:[#allocation5 + $0x1d08] sm:$0xff] }
 0x21a   :  { %v214_v6 = vunpack.c.l.bf16 %v16973_v31  ;;  %v14152_v57 = vcombine.low %v1776_v3, %v1780_v13  ;;  %v14154_v56 = vcombine.low %v1777_v24, %v1781_v25  ;;  %v230_v35 = vunpack.c.l.bf16 %v16981_v28  ;;  %v1797_v31 = vld [vmem:[#allocation5 + $0x1d68] sm:$0xff] }
 0x21b   :  { %7526 = vmatpush1.bf16.msra.mxu0 %v14104_v34  ;;  %7854 = vmatpush1.bf16.msra.mxu1 %v14106_v54  ;;  %v14139_v34 = vcombine.high %v1761_v27, %v1765_v33  ;;  %v1768_v54 = vld [vmem:[#allocation5 + $0x1c80] sm:$0xff]  ;;  %v14163_v17 = vcombine.high %v1785_v2, %v1789_v60  ;;  %v262_v22 = vunpack.c.l.bf16 %v16993_v7  ;;  %v278_v27 = vunpack.c.l.bf16 %v16995_v32  ;;  %v1809_v24 = vld [vmem:[#allocation5 + $0x1dc8] sm:$0xff] }
 0x21c   :  { %7527 = vmatprep.subr.bf16.mxu0 %v14113_v20  ;;  %7855 = vmatprep.subr.bf16.mxu1 %v14115_v30  ;;  %v1769_v20 = vld [vmem:[#allocation5 + $0x1c88] sm:$0xff]  ;;  %v14145_v30 = vcombine.high %v1768_v54, %v1772_v43  ;;  %v14144_v63 = vcombine.low %v1768_v54, %v1772_v43  ;;  %v14162_v33 = vcombine.low %v1785_v2, %v1789_v60 }
 0x21d   :  { %v14147_v46 = vcombine.high %v1769_v20, %v1773_v36  ;;  %v602_v41 = vadd.f32 %v246_v18, %v230_v35  ;;  %v1801_v54 = vld [vmem:[#allocation5 + $0x1d88] sm:$0xff] }
 0x21e   :  { %v1805_v43 = vld [vmem:[#allocation5 + $0x1da8] sm:$0xff] }
 0x21f   :  { %7528 = vmatpush1.bf16.msra.mxu0 %v14112_v5  ;;  %7856 = vmatpush1.bf16.msra.mxu1 %v14114_v29  ;;  %v14146_v5 = vcombine.low %v1769_v20, %v1773_v36  ;;  %v14153_v29 = vcombine.high %v1776_v3, %v1780_v13  ;;  %v714_v36 = vadd.f32 %v278_v27, %v262_v22  ;;  %v1812_v3 = vld [vmem:[#allocation5 + $0x1de0] sm:$0xff]  ;;  %v1813_v25 = vld [vmem:[#allocation5 + $0x1de8] sm:$0xff] }
 0x220   :  { %7529 = vmatprep.subr.bf16.mxu0 %v14121_v14  ;;  %7857 = vmatprep.subr.bf16.mxu1 %v14123_v26  ;;  %v1788_v14 = vld [vmem:[#allocation5 + $0x1d20] sm:$0xff]  ;;  %v198_v26 = vunpack.c.l.bf16 %v16971_v10  ;;  %v1817_v2 = vld [vmem:[#allocation5 + $0x1e08] sm:$0xff] }
 0x221   :  { %v14160_v62 = vcombine.low %v1784_v52, %v1788_v14  ;;  %v1821_v60 = vld [vmem:[#allocation5 + $0x1e28] sm:$0xff] }
 0x222   :  { %v490_v10 = vadd.f32 %v214_v6, %v198_v26  ;;  %v14194_v27 = vcombine.low %v1817_v2, %v1821_v60 }
 0x223   :  { %7530 = vmatpush1.bf16.msra.mxu0 %v14120_v4  ;;  %7858 = vmatpush1.bf16.msra.mxu1 %v14122_v58  ;;  %v14161_v4 = vcombine.high %v1784_v52, %v1788_v14  ;;  %v1792_v58 = vld [vmem:[#allocation5 + $0x1d40] sm:$0xff]  ;;  %v14187_v14 = vcombine.high %v1809_v24, %v1813_v25 }
 0x224   :  { %7540 = vmatprep.subr.bf16.mxu0 %v14129_v38  ;;  %7868 = vmatprep.subr.bf16.mxu1 %v14131_v61  ;;  %v378_v38 = vadd.f32 %v182_v55, %v166_v9  ;;  %v1793_v61 = vld [vmem:[#allocation5 + $0x1d48] sm:$0xff]  ;;  %v14169_v28 = vcombine.high %v1792_v58, %v1796_v16  ;;  %v14168_v20 = vcombine.low %v1792_v58, %v1796_v16  ;;  %v1816_v9 = vld [vmem:[#allocation5 + $0x1e00] sm:$0xff] }
 0x225   :  { %v14171_v40 = vcombine.high %v1793_v61, %v1797_v31  ;;  %v14170_v7 = vcombine.low %v1793_v61, %v1797_v31  ;;  %v1820_v55 = vld [vmem:[#allocation5 + $0x1e20] sm:$0xff]  ;;  %v1825_v61 = vld [vmem:[#allocation5 + $0x1e48] sm:$0xff] }
 0x226   :  { %7532 = vmatmul.mubr.bf16.vlgmr.msra.gmra.mrb[0].mxu0 %v17008_v48  ;;  %7860 = vmatmul.mubr.bf16.vlgmr.msra.gmra.mrb[0].mxu1 %v17008_v48  ;;  %v14193_v35 = vcombine.high %v1816_v9, %v1820_v55  ;;  %v1824_v58 = vld [vmem:[#allocation5 + $0x1e40] sm:$0xff]  ;;  %v1829_v31 = vld [vmem:[#allocation5 + $0x1e68] sm:$0xff] }
 0x227   :  { %7541 = vmatpush1.bf16.msra.mxu0 %v14128_v1  ;;  %7869 = vmatpush1.bf16.msra.mxu1 %v14130_v15  ;;  %v1800_v1 = vld [vmem:[#allocation5 + $0x1d80] sm:$0xff] }
 0x228   :  { %7542 = vmatprep.subr.bf16.mxu0 %v14137_v8  ;;  %7870 = vmatprep.subr.bf16.mxu1 %v14139_v34  ;;  %v1804_v15 = vld [vmem:[#allocation5 + $0x1da0] sm:$0xff]  ;;  %v379_v8 = vrot.slane %v378_v38, 4  ;;  %v491_v34 = vrot.slane %v490_v10, 4 }
 0x229   :  { %7572 = vmatprep.mubr.bf16.mxu0 %v17011_v12  ;;  %7900 = vmatprep.mubr.bf16.mxu1 %v17011_v12  ;;  %v14177_v32 = vcombine.high %v1800_v1, %v1804_v15  ;;  %v1828_v16 = vld [vmem:[#allocation5 + $0x1e60] sm:$0xff] }
 0x22a   :  { %v492_v13 = vadd.f32 %v491_v34, %v490_v10  ;;  %v1833_v34 = vld [vmem:[#allocation5 + $0x1e88] sm:$0xff] }
 0x22b   :  { %7543 = vmatpush1.bf16.msra.mxu0 %v14136_v0  ;;  %7871 = vmatpush1.bf16.msra.mxu1 %v14138_v47  ;;  %v603_v0 = vrot.slane %v602_v41, 4  ;;  %v14179_v47 = vcombine.high %v1801_v54, %v1805_v43 }
 0x22c   :  { %7544 = vmatprep.subr.bf16.mxu0 %v14145_v30  ;;  %7872 = vmatprep.subr.bf16.mxu1 %v14147_v46  ;;  %v1808_v30 = vld [vmem:[#allocation5 + $0x1dc0] sm:$0xff]  ;;  %v380_v46 = vadd.f32 %v379_v8, %v378_v38  ;;  %v493_v6 = vrot.slane %v492_v13, 2 }
 0x22d   :  { %v604_v52 = vadd.f32 %v603_v0, %v602_v41  ;;  %v14203_v41 = vcombine.high %v1825_v61, %v1829_v31 }
 0x22e   :  { %v381_v26 = vrot.slane %v380_v46, 2  ;;  %v494_v10 = vadd.f32 %v493_v6, %v492_v13  ;;  %v1841_v13 = vld [vmem:[#allocation5 + $0x1ec8] sm:$0xff] }
 0x22f   :  { %7545 = vmatpush1.bf16.msra.mxu0 %v14144_v63  ;;  %7873 = vmatpush1.bf16.msra.mxu1 %v14146_v5  ;;  %v14176_v63 = vcombine.low %v1800_v1, %v1804_v15  ;;  %v715_v5 = vrot.slane %v714_v36, 4  ;;  %v605_v18 = vrot.slane %v604_v52, 2  ;;  %v1836_v1 = vld [vmem:[#allocation5 + $0x1ea0] sm:$0xff]  ;;  %v1849_v6 = vld [vmem:[#allocation5 + $0x1f08] sm:$0xff] }
 0x230   :  { %7546 = vmatprep.subr.bf16.mxu0 %v14153_v29  ;;  %7874 = vmatprep.subr.bf16.mxu1 %v14155_v23  ;;  %v14178_v29 = vcombine.low %v1801_v54, %v1805_v43  ;;  %v14185_v23 = vcombine.high %v1808_v30, %v1812_v3  ;;  %v382_v38 = vadd.f32 %v381_v26, %v380_v46  ;;  %v495_v8 = vrot.slane %v494_v10, 1  ;;  %v1837_v54 = vld [vmem:[#allocation5 + $0x1ea8] sm:$0xff] }
 0x231   :  { %v14200_v43 = vcombine.low %v1824_v58, %v1828_v16  ;;  %v14211_v0 = vcombine.high %v1833_v34, %v1837_v54 }
 0x232   :  { %v383_v15 = vrot.slane %v382_v38, 1  ;;  %v496_v46 = vadd.f32 %v495_v8, %v494_v10  ;;  %v1857_v10 = vld [vmem:[#allocation5 + $0x1f48] sm:$0xff] }
 0x233   :  { %7547 = vmatpush1.bf16.msra.mxu0 %v14152_v57  ;;  %7875 = vmatpush1.bf16.msra.mxu1 %v14154_v56  ;;  %v14184_v57 = vcombine.low %v1808_v30, %v1812_v3  ;;  %v716_v56 = vadd.f32 %v715_v5, %v714_v36  ;;  %v14202_v36 = vcombine.low %v1825_v61, %v1829_v31  ;;  %v1844_v30 = vld [vmem:[#allocation5 + $0x1ee0] sm:$0xff]  ;;  %v1861_v61 = vld [vmem:[#allocation5 + $0x1f68] sm:$0xff] }
 0x234   :  { %7548 = vmatprep.subr.bf16.mxu0 %v14161_v4  ;;  %7876 = vmatprep.subr.bf16.mxu1 %v14163_v17  ;;  %v14186_v4 = vcombine.low %v1809_v24, %v1813_v25  ;;  %v14195_v17 = vcombine.high %v1817_v2, %v1821_v60  ;;  %v384_v3 = vadd.f32 %v383_v15, %v382_v38  ;;  %v1845_v24 = vld [vmem:[#allocation5 + $0x1ee8] sm:$0xff]  ;;  %v758_v26 = vmul.f32 0.0625, %v496_v46 }
 0x235   :  { %v717_v22 = vrot.slane %v716_v56, 2  ;;  %v14210_v5 = vcombine.low %v1833_v34, %v1837_v54  ;;  %v1853_v2 = vld [vmem:[#allocation5 + $0x1f28] sm:$0xff] }
 0x236   :  { %v822_v38 = vpack.c.bf16 %v758_v26, %v758_v26  ;;  %v1865_v8 = vld [vmem:[#allocation5 + $0x1f88] sm:$0xff] }
 0x237   :  { %7549 = vmatpush1.bf16.msra.mxu0 %v14160_v62  ;;  %7877 = vmatpush1.bf16.msra.mxu1 %v14162_v33  ;;  %v14192_v62 = vcombine.low %v1816_v9, %v1820_v55  ;;  %v14201_v33 = vcombine.high %v1824_v58, %v1828_v16  ;;  %v1852_v9 = vld [vmem:[#allocation5 + $0x1f20] sm:$0xff]  ;;  %v742_v55 = vmul.f32 0.0625, %v384_v3  ;;  %v1869_v34 = vld [vmem:[#allocation5 + $0x1fa8] sm:$0xff] }
 0x238   :  { %7550 = vmatprep.subr.bf16.mxu0 %v14169_v28  ;;  %7878 = vmatprep.subr.bf16.mxu1 %v14171_v40  ;;  %v606_v28 = vadd.f32 %v605_v18, %v604_v52  ;;  %v1832_v40 = vld [vmem:[#allocation5 + $0x1e80] sm:$0xff]  ;;  %v14219_v52 = vcombine.high %v1841_v13, %v1845_v24  ;;  %v14227_v18 = vcombine.high %v1849_v6, %v1853_v2  ;;  %v2016_v15 = vunpack.c.l.b16 %v822_v38  ;;  %v1873_v3 = vld [vmem:[#allocation5 + $0x1fc8] sm:$0xff] }
 0x239   :  { %v14208_v25 = vcombine.low %v1832_v40, %v1836_v1  ;;  %v1860_v58 = vld [vmem:[#allocation5 + $0x1f60] sm:$0xff]  ;;  %v806_v16 = vpack.c.bf16 %v742_v55, %v742_v55  ;;  %v1877_v46 = vld [vmem:[#allocation5 + $0x1fe8] sm:$0xff] }
 0x23b   :  { %7551 = vmatpush1.bf16.msra.mxu0 %v14168_v20  ;;  %7879 = vmatpush1.bf16.msra.mxu1 %v14170_v7  ;;  %v718_v20 = vadd.f32 %v717_v22, %v716_v56  ;;  %v14209_v7 = vcombine.high %v1832_v40, %v1836_v1  ;;  %v14218_v56 = vcombine.low %v1841_v13, %v1845_v24  ;;  %v1868_v40 = vld [vmem:[#allocation5 + $0x1fa0] sm:$0xff]  ;;  %v2000_v1 = vunpack.c.l.b16 %v806_v16 }
 0x23c   :  { %7552 = vmatprep.subr.bf16.mxu0 %v14177_v32  ;;  %7880 = vmatprep.subr.bf16.mxu1 %v14179_v47  ;;  %v607_v32 = vrot.slane %v606_v28, 1  ;;  %v1840_v47 = vld [vmem:[#allocation5 + $0x1ec0] sm:$0xff]  ;;  %v14226_v22 = vcombine.low %v1849_v6, %v1853_v2  ;;  %v14250_v6 = vcombine.low %v1873_v3, %v1877_v46 }
 0x23d   :  { %v14216_v60 = vcombine.low %v1840_v47, %v1844_v30 }
 0x23f   :  { %7553 = vmatpush1.bf16.msra.mxu0 %v14176_v63  ;;  %7881 = vmatpush1.bf16.msra.mxu1 %v14178_v29  ;;  %v719_v63 = vrot.slane %v718_v20, 1  ;;  %v14217_v29 = vcombine.high %v1840_v47, %v1844_v30  ;;  %v1876_v47 = vld [vmem:[#allocation5 + $0x1fe0] sm:$0xff]  ;;  %v2095_v30 = vsel %vm2050_vm0, %v2016_v15, %v2000_v1  ;;  %v883_v1 = vld [vmem:[#allocation5 + $0xd8] sm:$0xff] }
 0x240   :  { %7554 = vmatprep.subr.bf16.mxu0 %v14185_v23  ;;  %7882 = vmatprep.subr.bf16.mxu1 %v14187_v14  ;;  %v608_v23 = vadd.f32 %v607_v32, %v606_v28  ;;  %v1848_v14 = vld [vmem:[#allocation5 + $0x1f00] sm:$0xff]  ;;  %v14235_v28 = vcombine.high %v1857_v10, %v1861_v61  ;;  %v14243_v32 = vcombine.high %v1865_v8, %v1869_v34  ;;  %v887_v15 = vld [vmem:[#allocation5 + $0xf8] sm:$0xff] }
 0x241   :  { %v14224_v31 = vcombine.low %v1848_v14, %v1852_v9 }
 0x243   :  { %7555 = vmatpush1.bf16.msra.mxu0 %v14184_v57  ;;  %7883 = vmatpush1.bf16.msra.mxu1 %v14186_v4  ;;  %v720_v57 = vadd.f32 %v719_v63, %v718_v20  ;;  %v14225_v4 = vcombine.high %v1848_v14, %v1852_v9  ;;  %v14234_v20 = vcombine.low %v1857_v10, %v1861_v61  ;;  %v859_v14 = vld [vmem:[#allocation5 + $0x18] sm:$0xff]  ;;  %v874_v10 = vld [vmem:[#allocation5 + $0x90] sm:$0xff] }
 0x244   :  { %7556 = vmatprep.subr.bf16.mxu0 %v14193_v35  ;;  %7884 = vmatprep.subr.bf16.mxu1 %v14195_v17  ;;  %v774_v35 = vmul.f32 0.0625, %v608_v23  ;;  %v1856_v17 = vld [vmem:[#allocation5 + $0x1f40] sm:$0xff]  ;;  %v858_v23 = vld [vmem:[#allocation5 + $0x10] sm:$0xff]  ;;  %v863_v9 = vld [vmem:[#allocation5 + $0x38] sm:$0xff] }
 0x245   :  { %v14232_v54 = vcombine.low %v1856_v17, %v1860_v58  ;;  %v878_v61 = vld [vmem:[#allocation5 + $0xb0] sm:$0xff] }
 0x247   :  { %7557 = vmatpush1.bf16.msra.mxu0 %v14192_v62  ;;  %7885 = vmatpush1.bf16.msra.mxu1 %v14194_v27  ;;  %v790_v62 = vmul.f32 0.0625, %v720_v57  ;;  %v14233_v27 = vcombine.high %v1856_v17, %v1860_v58  ;;  %v866_v57 = vld [vmem:[#allocation5 + $0x50] sm:$0xff]  ;;  %v13238_v58 = vcombine.low %v859_v14, %v863_v9 }
 0x248   :  { %7558 = vmatprep.subr.bf16.mxu0 %v14201_v33  ;;  %7886 = vmatprep.subr.bf16.mxu1 %v14203_v41  ;;  %v838_v33 = vpack.c.bf16 %v774_v35, %v774_v35  ;;  %v1864_v41 = vld [vmem:[#allocation5 + $0x1f80] sm:$0xff]  ;;  %v867_v35 = vld [vmem:[#allocation5 + $0x58] sm:$0xff] }
 0x249   :  { %v14240_v13 = vcombine.low %v1864_v41, %v1868_v40 }
 0x24b   :  { %7559 = vmatpush1.bf16.msra.mxu0 %v14200_v43  ;;  %7887 = vmatpush1.bf16.msra.mxu1 %v14202_v36  ;;  %v854_v43 = vpack.c.bf16 %v790_v62, %v790_v62  ;;  %v14241_v36 = vcombine.high %v1864_v41, %v1868_v40  ;;  %v879_v62 = vld [vmem:[#allocation5 + $0xb8] sm:$0xff]  ;;  %v882_v41 = vld [vmem:[#allocation5 + $0xd0] sm:$0xff] }
 0x24c   :  { %7560 = vmatprep.subr.bf16.mxu0 %v14209_v7  ;;  %7888 = vmatprep.subr.bf16.mxu1 %v14211_v0  ;;  %v2032_v7 = vunpack.c.l.b16 %v838_v33  ;;  %v1872_v0 = vld [vmem:[#allocation5 + $0x1fc0] sm:$0xff]  ;;  %v13253_v33 = vcombine.high %v874_v10, %v878_v61  ;;  %v886_v40 = vld [vmem:[#allocation5 + $0xf0] sm:$0xff] }
 0x24d   :  { %v2048_v24 = vunpack.c.l.b16 %v854_v43  ;;  %v14249_v63 = vcombine.high %v1872_v0, %v1876_v47  ;;  %v14248_v55 = vcombine.low %v1872_v0, %v1876_v47  ;;  %v13263_v43 = vcombine.high %v883_v1, %v887_v15 }
 0x24e   :  { %v13260_v0 = vcombine.low %v882_v41, %v886_v40  ;;  %v13262_v47 = vcombine.low %v883_v1, %v887_v15  ;;  %v935_v1 = vld [vmem:[#allocation5 + $0x278] sm:$0xff] }
 0x24f   :  { %7561 = vmatpush1.bf16.msra.mxu0 %v14208_v25  ;;  %7889 = vmatpush1.bf16.msra.mxu1 %v14210_v5  ;;  %v14242_v25 = vcombine.low %v1865_v8, %v1869_v34  ;;  %v2096_v5 = vsel %vm2052_vm1, %v2032_v7, %v2095_v30  ;;  %v13252_v8 = vcombine.low %v874_v10, %v878_v61  ;;  %v891_v7 = vld [vmem:[#allocation5 + $0x118] sm:$0xff]  ;;  %v926_v10 = vld [vmem:[#allocation5 + $0x230] sm:$0xff] }
 0x250   :  { %7562 = vmatprep.subr.bf16.mxu0 %v14217_v29  ;;  %7890 = vmatprep.subr.bf16.mxu1 %v14219_v52  ;;  %v14251_v29 = vcombine.high %v1873_v3, %v1877_v46  ;;  %v862_v52 = vld [vmem:[#allocation5 + $0x30] sm:$0xff]  ;;  %v2097_v26 = vsel %vm2054_vm2, %v2048_v24, %v2096_v5  ;;  %v903_v24 = vld [vmem:[#allocation5 + $0x178] sm:$0xff] }
 0x251   :  { %v13237_v2 = vcombine.high %v858_v23, %v862_v52  ;;  %v13236_v17 = vcombine.low %v858_v23, %v862_v52  ;;  %v898_v3 = vld [vmem:[#allocation5 + $0x150] sm:$0xff]  ;;  %v923_v61 = vld [vmem:[#allocation5 + $0x218] sm:$0xff] }
 0x252   :  { %v902_v46 = vld [vmem:[#allocation5 + $0x170] sm:$0xff] }
 0x253   :  { %7563 = vmatpush1.bf16.msra.mxu0 %v14216_v60  ;;  %7891 = vmatpush1.bf16.msra.mxu1 %v14218_v56  ;;  %v13239_v60 = vcombine.high %v859_v14, %v863_v9  ;;  %v870_v56 = vld [vmem:[#allocation5 + $0x70] sm:$0xff]  ;;  %v13277_v5 = vcombine.high %v898_v3, %v902_v46  ;;  %v907_v14 = vld [vmem:[#allocation5 + $0x198] sm:$0xff] }
 0x254   :  { %7564 = vmatprep.subr.bf16.mxu0 %v14225_v4  ;;  %7892 = vmatprep.subr.bf16.mxu1 %v14227_v18  ;;  %v17028_v4 = vpack.c.b16 %v2097_v26, %v2097_v26  ;;  %v871_v18 = vld [vmem:[#allocation5 + $0x78] sm:$0xff]  ;;  %v13245_v16 = vcombine.high %v866_v57, %v870_v56  ;;  %v906_v23 = vld [vmem:[#allocation5 + $0x190] sm:$0xff] }
 0x255   :  { %v13247_v38 = vcombine.high %v867_v35, %v871_v18  ;;  %v910_v52 = vld [vmem:[#allocation5 + $0x1b0] sm:$0xff]  ;;  %v911_v9 = vld [vmem:[#allocation5 + $0x1b8] sm:$0xff] }
 0x257   :  { %7565 = vmatpush1.bf16.msra.mxu0 %v14224_v31  ;;  %7893 = vmatpush1.bf16.msra.mxu1 %v14226_v22  ;;  %v875_v31 = vld [vmem:[#allocation5 + $0x98] sm:$0xff]  ;;  %v13244_v22 = vcombine.low %v866_v57, %v870_v56  ;;  %v918_v57 = vld [vmem:[#allocation5 + $0x1f0] sm:$0xff] }
 0x258   :  { %7566 = vmatprep.subr.bf16.mxu0 %v14233_v27  ;;  %7894 = vmatprep.subr.bf16.mxu1 %v14235_v28  ;;  %v13246_v27 = vcombine.low %v867_v35, %v871_v18  ;;  %v13255_v28 = vcombine.high %v875_v31, %v879_v62  ;;  %v13254_v34 = vcombine.low %v875_v31, %v879_v62  ;;  %v915_v56 = vld [vmem:[#allocation5 + $0x1d8] sm:$0xff] }
 0x259   :  { %v919_v35 = vld [vmem:[#allocation5 + $0x1f8] sm:$0xff]  ;;  %v13284_v18 = vcombine.low %v906_v23, %v910_v52 }
 0x25a   :  { %v927_v31 = vld [vmem:[#allocation5 + $0x238] sm:$0xff] }
 0x25b   :  { %7567 = vmatpush1.bf16.msra.mxu0 %v14232_v54  ;;  %7895 = vmatpush1.bf16.msra.mxu1 %v14234_v20  ;;  %v13261_v54 = vcombine.high %v882_v41, %v886_v40  ;;  %v890_v20 = vld [vmem:[#allocation5 + $0x110] sm:$0xff]  ;;  %v931_v40 = vld [vmem:[#allocation5 + $0x258] sm:$0xff] }
 0x25c   :  { %7568 = vmatprep.subr.bf16.mxu0 %v14241_v36  ;;  %7896 = vmatprep.subr.bf16.mxu1 %v14243_v32  ;;  %v894_v36 = vld [vmem:[#allocation5 + $0x130] sm:$0xff]  ;;  %v895_v32 = vld [vmem:[#allocation5 + $0x138] sm:$0xff] }
 0x25d   :  { %v13269_v30 = vcombine.high %v890_v20, %v894_v36  ;;  %v934_v41 = vld [vmem:[#allocation5 + $0x270] sm:$0xff] }
 0x25f   :  { %7569 = vmatpush1.bf16.msra.mxu0 %v14240_v13  ;;  %7897 = vmatpush1.bf16.msra.mxu1 %v14242_v25  ;;  %v899_v13 = vld [vmem:[#allocation5 + $0x158] sm:$0xff]  ;;  %v13268_v25 = vcombine.low %v890_v20, %v894_v36  ;;  %v942_v20 = vld [vmem:[#allocation5 + $0x2b0] sm:$0xff] }
 0x260   :  { %7570 = vmatprep.subr.bf16.mxu0 %v14249_v63  ;;  %7898 = vmatprep.subr.bf16.mxu1 %v14251_v29  ;;  %v13270_v63 = vcombine.low %v891_v7, %v895_v32  ;;  %v13279_v29 = vcombine.high %v899_v13, %v903_v24  ;;  %v13278_v26 = vcombine.low %v899_v13, %v903_v24  ;;  %v939_v36 = vld [vmem:[#allocation5 + $0x298] sm:$0xff] }
 0x261   :  { %v951_v13 = vld [vmem:[#allocation5 + $0x2f8] sm:$0xff] }
 0x263   :  { %7571 = vmatpush1.bf16.msra.mxu0 %v14248_v55  ;;  %7899 = vmatpush1.bf16.msra.mxu1 %v14250_v6  ;;  %v13276_v55 = vcombine.low %v898_v3, %v902_v46  ;;  %v13285_v6 = vcombine.high %v906_v23, %v910_v52  ;;  %v950_v3 = vld [vmem:[#allocation5 + $0x2f0] sm:$0xff]  ;;  %v947_v46 = vld [vmem:[#allocation5 + $0x2d8] sm:$0xff] }
 0x264   :  { %7909 = vmatprep.subr.bf16.mxu0 %v13237_v2  ;;  %8237 = vmatprep.subr.bf16.mxu1 %v13239_v60  ;;  %v13287_v2 = vcombine.high %v907_v14, %v911_v9  ;;  %v914_v60 = vld [vmem:[#allocation5 + $0x1d0] sm:$0xff]  ;;  %v955_v52 = vld [vmem:[#allocation5 + $0x318] sm:$0xff] }
 0x265   :  { %v13292_v62 = vcombine.low %v914_v60, %v918_v57  ;;  %v958_v23 = vld [vmem:[#allocation5 + $0x330] sm:$0xff] }
 0x266   :  { %7573 = vmatmul.mubr.bf16.vlgmr.msra.gmra.mrb[0].mxu0 %v17028_v4  ;;  %7901 = vmatmul.mubr.bf16.vlgmr.msra.gmra.mrb[0].mxu1 %v17028_v4 }
 0x267   :  { %7910 = vmatpush1.bf16.msra.mxu0 %v13236_v17  ;;  %8238 = vmatpush1.bf16.msra.mxu1 %v13238_v58  ;;  %v13286_v17 = vcombine.low %v907_v14, %v911_v9  ;;  %v13293_v58 = vcombine.high %v914_v60, %v918_v57  ;;  %v959_v14 = vld [vmem:[#allocation5 + $0x338] sm:$0xff]  ;;  %v966_v60 = vld [vmem:[#allocation5 + $0x370] sm:$0xff] }
 0x268   :  { %7911 = vmatprep.subr.bf16.mxu0 %v13245_v16  ;;  %8239 = vmatprep.subr.bf16.mxu1 %v13247_v38  ;;  %v13295_v16 = vcombine.high %v915_v56, %v919_v35  ;;  %v922_v38 = vld [vmem:[#allocation5 + $0x210] sm:$0xff]  ;;  %v963_v57 = vld [vmem:[#allocation5 + $0x358] sm:$0xff] }
 0x269   :  { %7941 = vmatprep.mubr.bf16.mxu0 %v16507_v11  ;;  %8269 = vmatprep.mubr.bf16.mxu1 %v16507_v11  ;;  %v13271_v11 = vcombine.high %v891_v7, %v895_v32  ;;  %v13300_v15 = vcombine.low %v922_v38, %v926_v10  ;;  %v943_v7 = vld [vmem:[#allocation5 + $0x2b8] sm:$0xff] }
 0x26b   :  { %7912 = vmatpush1.bf16.msra.mxu0 %v13244_v22  ;;  %8240 = vmatpush1.bf16.msra.mxu1 %v13246_v27  ;;  %v13294_v22 = vcombine.low %v915_v56, %v919_v35  ;;  %v13301_v27 = vcombine.high %v922_v38, %v926_v10  ;;  %v967_v56 = vld [vmem:[#allocation5 + $0x378] sm:$0xff]  ;;  %v974_v38 = vld [vmem:[#allocation5 + $0x3b0] sm:$0xff] }
 0x26c   :  { %7913 = vmatprep.subr.bf16.mxu0 %v13253_v33  ;;  %8241 = vmatprep.subr.bf16.mxu1 %v13255_v28  ;;  %v13303_v33 = vcombine.high %v923_v61, %v927_v31  ;;  %v930_v28 = vld [vmem:[#allocation5 + $0x250] sm:$0xff]  ;;  %v971_v10 = vld [vmem:[#allocation5 + $0x398] sm:$0xff] }
 0x26d   :  { %v13308_v32 = vcombine.low %v930_v28, %v934_v41 }
 0x26f   :  { %7914 = vmatpush1.bf16.msra.mxu0 %v13252_v8  ;;  %8242 = vmatpush1.bf16.msra.mxu1 %v13254_v34  ;;  %v13302_v8 = vcombine.low %v923_v61, %v927_v31  ;;  %v13309_v34 = vcombine.high %v930_v28, %v934_v41  ;;  %v975_v61 = vld [vmem:[#allocation5 + $0x3b8] sm:$0xff]  ;;  %v982_v28 = vld [vmem:[#allocation5 + $0x3f0] sm:$0xff] }
 0x270   :  { %7915 = vmatprep.subr.bf16.mxu0 %v13261_v54  ;;  %8243 = vmatprep.subr.bf16.mxu1 %v13263_v43  ;;  %v13311_v54 = vcombine.high %v931_v40, %v935_v1  ;;  %v938_v43 = vld [vmem:[#allocation5 + $0x290] sm:$0xff]  ;;  %v979_v41 = vld [vmem:[#allocation5 + $0x3d8] sm:$0xff] }
 0x271   :  { %v13316_v24 = vcombine.low %v938_v43, %v942_v20 }
 0x273   :  { %7916 = vmatpush1.bf16.msra.mxu0 %v13260_v0  ;;  %8244 = vmatpush1.bf16.msra.mxu1 %v13262_v47  ;;  %v13310_v0 = vcombine.low %v931_v40, %v935_v1  ;;  %v13317_v47 = vcombine.high %v938_v43, %v942_v20  ;;  %v983_v40 = vld [vmem:[#allocation5 + $0x3f8] sm:$0xff]  ;;  %v990_v43 = vld [vmem:[#allocation5 + $0x430] sm:$0xff] }
 0x274   :  { %7917 = vmatprep.subr.bf16.mxu0 %v13269_v30  ;;  %8245 = vmatprep.subr.bf16.mxu1 %v13271_v11  ;;  %v13319_v30 = vcombine.high %v939_v36, %v943_v7  ;;  %v946_v11 = vld [vmem:[#allocation5 + $0x2d0] sm:$0xff]  ;;  %v987_v20 = vld [vmem:[#allocation5 + $0x418] sm:$0xff] }
 0x275   :  { %v13324_v9 = vcombine.low %v946_v11, %v950_v3 }
 0x277   :  { %7918 = vmatpush1.bf16.msra.mxu0 %v13268_v25  ;;  %8246 = vmatpush1.bf16.msra.mxu1 %v13270_v63  ;;  %v13318_v25 = vcombine.low %v939_v36, %v943_v7  ;;  %v13325_v63 = vcombine.high %v946_v11, %v950_v3  ;;  %v991_v36 = vld [vmem:[#allocation5 + $0x438] sm:$0xff]  ;;  %v998_v11 = vld [vmem:[#allocation5 + $0x470] sm:$0xff] }
 0x278   :  { %7919 = vmatprep.subr.bf16.mxu0 %v13277_v5  ;;  %8247 = vmatprep.subr.bf16.mxu1 %v13279_v29  ;;  %v13327_v5 = vcombine.high %v947_v46, %v951_v13  ;;  %v954_v29 = vld [vmem:[#allocation5 + $0x310] sm:$0xff]  ;;  %v995_v3 = vld [vmem:[#allocation5 + $0x458] sm:$0xff] }
 0x279   :  { %v13332_v35 = vcombine.low %v954_v29, %v958_v23 }
 0x27b   :  { %7920 = vmatpush1.bf16.msra.mxu0 %v13276_v55  ;;  %8248 = vmatpush1.bf16.msra.mxu1 %v13278_v26  ;;  %v13326_v55 = vcombine.low %v947_v46, %v951_v13  ;;  %v13333_v26 = vcombine.high %v954_v29, %v958_v23  ;;  %v999_v46 = vld [vmem:[#allocation5 + $0x478] sm:$0xff]  ;;  %v1006_v29 = vld [vmem:[#allocation5 + $0x4b0] sm:$0xff] }
 0x27c   :  { %7921 = vmatprep.subr.bf16.mxu0 %v13285_v6  ;;  %8249 = vmatprep.subr.bf16.mxu1 %v13287_v2  ;;  %v13335_v6 = vcombine.high %v955_v52, %v959_v14  ;;  %v962_v2 = vld [vmem:[#allocation5 + $0x350] sm:$0xff]  ;;  %v1003_v23 = vld [vmem:[#allocation5 + $0x498] sm:$0xff] }
 0x27d   :  { %v13340_v31 = vcombine.low %v962_v2, %v966_v60 }
 0x27f   :  { %7922 = vmatpush1.bf16.msra.mxu0 %v13284_v18  ;;  %8250 = vmatpush1.bf16.msra.mxu1 %v13286_v17  ;;  %v13334_v18 = vcombine.low %v955_v52, %v959_v14  ;;  %v13341_v17 = vcombine.high %v962_v2, %v966_v60  ;;  %v1007_v52 = vld [vmem:[#allocation5 + $0x4b8] sm:$0xff]  ;;  %v1014_v2 = vld [vmem:[#allocation5 + $0x4f0] sm:$0xff] }
 0x280   :  { %7923 = vmatprep.subr.bf16.mxu0 %v13293_v58  ;;  %8251 = vmatprep.subr.bf16.mxu1 %v13295_v16  ;;  %v13343_v58 = vcombine.high %v963_v57, %v967_v56  ;;  %v970_v16 = vld [vmem:[#allocation5 + $0x390] sm:$0xff]  ;;  %v1011_v60 = vld [vmem:[#allocation5 + $0x4d8] sm:$0xff] }
 0x281   :  { %v13348_v1 = vcombine.low %v970_v16, %v974_v38 }
 0x283   :  { %7924 = vmatpush1.bf16.msra.mxu0 %v13292_v62  ;;  %8252 = vmatpush1.bf16.msra.mxu1 %v13294_v22  ;;  %v13342_v62 = vcombine.low %v963_v57, %v967_v56  ;;  %v13349_v22 = vcombine.high %v970_v16, %v974_v38  ;;  %v1015_v57 = vld [vmem:[#allocation5 + $0x4f8] sm:$0xff] }
 0x284   :  { %7925 = vmatprep.subr.bf16.mxu0 %v13301_v27  ;;  %8253 = vmatprep.subr.bf16.mxu1 %v13303_v33  ;;  %v13351_v27 = vcombine.high %v971_v10, %v975_v61  ;;  %v978_v33 = vld [vmem:[#allocation5 + $0x3d0] sm:$0xff]  ;;  %v1019_v16 = vld [vmem:[#allocation5 + $0x518] sm:$0xff] }
 0x285   :  { %v13356_v7 = vcombine.low %v978_v33, %v982_v28  ;;  %v1023_v38 = vld [vmem:[#allocation5 + $0x538] sm:$0xff] }
 0x287   :  { %7926 = vmatpush1.bf16.msra.mxu0 %v13300_v15  ;;  %8254 = vmatpush1.bf16.msra.mxu1 %v13302_v8  ;;  %v13350_v15 = vcombine.low %v971_v10, %v975_v61  ;;  %v13357_v8 = vcombine.high %v978_v33, %v982_v28  ;;  %v13390_v61 = vcombine.low %v1011_v60, %v1015_v57  ;;  %v1031_v33 = vld [vmem:[#allocation5 + $0x578] sm:$0xff] }
 0x288   :  { %7927 = vmatprep.subr.bf16.mxu0 %v13309_v34  ;;  %8255 = vmatprep.subr.bf16.mxu1 %v13311_v54  ;;  %v13359_v34 = vcombine.high %v979_v41, %v983_v40  ;;  %v986_v54 = vld [vmem:[#allocation5 + $0x410] sm:$0xff] }
 0x289   :  { %v13364_v13 = vcombine.low %v986_v54, %v990_v43 }
 0x28b   :  { %7928 = vmatpush1.bf16.msra.mxu0 %v13308_v32  ;;  %8256 = vmatpush1.bf16.msra.mxu1 %v13310_v0  ;;  %v13358_v32 = vcombine.low %v979_v41, %v983_v40  ;;  %v13365_v0 = vcombine.high %v986_v54, %v990_v43  ;;  %v13398_v41 = vcombine.low %v1019_v16, %v1023_v38  ;;  %v1039_v54 = vld [vmem:[#allocation5 + $0x5b8] sm:$0xff] }
 0x28c   :  { %7929 = vmatprep.subr.bf16.mxu0 %v13317_v47  ;;  %8257 = vmatprep.subr.bf16.mxu1 %v13319_v30  ;;  %v13367_v47 = vcombine.high %v987_v20, %v991_v36  ;;  %v994_v30 = vld [vmem:[#allocation5 + $0x450] sm:$0xff] }
 0x28d   :  { %v13372_v14 = vcombine.low %v994_v30, %v998_v11 }
 0x28f   :  { %7930 = vmatpush1.bf16.msra.mxu0 %v13316_v24  ;;  %8258 = vmatpush1.bf16.msra.mxu1 %v13318_v25  ;;  %v13366_v24 = vcombine.low %v987_v20, %v991_v36  ;;  %v13373_v25 = vcombine.high %v994_v30, %v998_v11  ;;  %v1047_v30 = vld [vmem:[#allocation5 + $0x5f8] sm:$0xff] }
 0x290   :  { %7931 = vmatprep.subr.bf16.mxu0 %v13325_v63  ;;  %8259 = vmatprep.subr.bf16.mxu1 %v13327_v5  ;;  %v13375_v63 = vcombine.high %v995_v3, %v999_v46  ;;  %v1002_v5 = vld [vmem:[#allocation5 + $0x490] sm:$0xff] }
 0x291   :  { %v13380_v56 = vcombine.low %v1002_v5, %v1006_v29 }
 0x293   :  { %7932 = vmatpush1.bf16.msra.mxu0 %v13324_v9  ;;  %8260 = vmatpush1.bf16.msra.mxu1 %v13326_v55  ;;  %v13374_v9 = vcombine.low %v995_v3, %v999_v46  ;;  %v13381_v55 = vcombine.high %v1002_v5, %v1006_v29  ;;  %v1055_v5 = vld [vmem:[#allocation5 + $0x638] sm:$0xff] }
 0x294   :  { %7933 = vmatprep.subr.bf16.mxu0 %v13333_v26  ;;  %8261 = vmatprep.subr.bf16.mxu1 %v13335_v6  ;;  %v13383_v26 = vcombine.high %v1003_v23, %v1007_v52  ;;  %v1010_v6 = vld [vmem:[#allocation5 + $0x4d0] sm:$0xff] }
 0x295   :  { %v13388_v10 = vcombine.low %v1010_v6, %v1014_v2 }
 0x297   :  { %7934 = vmatpush1.bf16.msra.mxu0 %v13332_v35  ;;  %8262 = vmatpush1.bf16.msra.mxu1 %v13334_v18  ;;  %v13389_v35 = vcombine.high %v1010_v6, %v1014_v2  ;;  %v13391_v18 = vcombine.high %v1011_v60, %v1015_v57  ;;  %v1063_v6 = vld [vmem:[#allocation5 + $0x678] sm:$0xff] }
 0x298   :  { %7935 = vmatprep.subr.bf16.mxu0 %v13341_v17  ;;  %8263 = vmatprep.subr.bf16.mxu1 %v13343_v58  ;;  %v1018_v17 = vld [vmem:[#allocation5 + $0x510] sm:$0xff] }
 0x299   :  { %v1022_v58 = vld [vmem:[#allocation5 + $0x530] sm:$0xff] }
 0x29a   :  { %v13396_v28 = vcombine.low %v1018_v17, %v1022_v58 }
 0x29b   :  { %7936 = vmatpush1.bf16.msra.mxu0 %v13340_v31  ;;  %8264 = vmatpush1.bf16.msra.mxu1 %v13342_v62  ;;  %v13397_v31 = vcombine.high %v1018_v17, %v1022_v58  ;;  %v1026_v62 = vld [vmem:[#allocation5 + $0x550] sm:$0xff]  ;;  %v1071_v17 = vld [vmem:[#allocation5 + $0x6b8] sm:$0xff] }
 0x29c   :  { %7937 = vmatprep.subr.bf16.mxu0 %v13349_v22  ;;  %8265 = vmatprep.subr.bf16.mxu1 %v13351_v27  ;;  %v1030_v22 = vld [vmem:[#allocation5 + $0x570] sm:$0xff]  ;;  %v1027_v27 = vld [vmem:[#allocation5 + $0x558] sm:$0xff] }
 0x29d   :  { %v13405_v40 = vcombine.high %v1026_v62, %v1030_v22  ;;  %v13404_v43 = vcombine.low %v1026_v62, %v1030_v22  ;;  %v13406_v20 = vcombine.low %v1027_v27, %v1031_v33  ;;  %v1079_v62 = vld [vmem:[#allocation5 + $0x6f8] sm:$0xff] }
 0x29f   :  { %7938 = vmatpush1.bf16.msra.mxu0 %v13348_v1  ;;  %8266 = vmatpush1.bf16.msra.mxu1 %v13350_v15  ;;  %v13407_v1 = vcombine.high %v1027_v27, %v1031_v33  ;;  %v1034_v15 = vld [vmem:[#allocation5 + $0x590] sm:$0xff] }
 0x2a0   :  { %7939 = vmatprep.subr.bf16.mxu0 %v13357_v8  ;;  %8267 = vmatprep.subr.bf16.mxu1 %v13359_v34  ;;  %v1038_v8 = vld [vmem:[#allocation5 + $0x5b0] sm:$0xff]  ;;  %v1035_v34 = vld [vmem:[#allocation5 + $0x598] sm:$0xff] }
 0x2a1   :  { %v13413_v36 = vcombine.high %v1034_v15, %v1038_v8  ;;  %v13412_v11 = vcombine.low %v1034_v15, %v1038_v8  ;;  %v13414_v3 = vcombine.low %v1035_v34, %v1039_v54  ;;  %v1087_v15 = vld [vmem:[#allocation5 + $0x738] sm:$0xff] }
 0x2a3   :  { %7940 = vmatpush1.bf16.msra.mxu0 %v13356_v7  ;;  %8268 = vmatpush1.bf16.msra.mxu1 %v13358_v32  ;;  %v13415_v7 = vcombine.high %v1035_v34, %v1039_v54  ;;  %v1042_v32 = vld [vmem:[#allocation5 + $0x5d0] sm:$0xff] }
 0x2a4   :  { %7950 = vmatprep.subr.bf16.mxu0 %v13365_v0  ;;  %8278 = vmatprep.subr.bf16.mxu1 %v13367_v47  ;;  %v1046_v0 = vld [vmem:[#allocation5 + $0x5f0] sm:$0xff]  ;;  %v1043_v47 = vld [vmem:[#allocation5 + $0x5d8] sm:$0xff] }
 0x2a5   :  { %v13421_v46 = vcombine.high %v1042_v32, %v1046_v0  ;;  %v13420_v29 = vcombine.low %v1042_v32, %v1046_v0  ;;  %v1095_v32 = vld [vmem:[#allocation5 + $0x778] sm:$0xff] }
 0x2a6   :  { %7942 = vmatmul.mubr.bf16.vlgmr.msra.gmra.mrb[4].mxu0 %v16532_v49  ;;  %8270 = vmatmul.mubr.bf16.vlgmr.msra.gmra.mrb[4].mxu1 %v16532_v49  ;;  %v13382_v49 = vcombine.low %v1003_v23, %v1007_v52  ;;  %v13422_v23 = vcombine.low %v1043_v47, %v1047_v30 }
 0x2a7   :  { %7951 = vmatpush1.bf16.msra.mxu0 %v13364_v13  ;;  %8279 = vmatpush1.bf16.msra.mxu1 %v13366_v24  ;;  %v13423_v13 = vcombine.high %v1043_v47, %v1047_v30  ;;  %v1050_v24 = vld [vmem:[#allocation5 + $0x610] sm:$0xff] }
 0x2a8   :  { %7952 = vmatprep.subr.bf16.mxu0 %v13373_v25  ;;  %8280 = vmatprep.subr.bf16.mxu1 %v13375_v63  ;;  %v1054_v25 = vld [vmem:[#allocation5 + $0x630] sm:$0xff]  ;;  %v1051_v63 = vld [vmem:[#allocation5 + $0x618] sm:$0xff] }
 0x2a9   :  { %7982 = vmatprep.mubr.bf16.mxu0 %v16593_v50  ;;  %8310 = vmatprep.mubr.bf16.mxu1 %v16593_v50  ;;  %v13399_v50 = vcombine.high %v1019_v16, %v1023_v38  ;;  %v13429_v52 = vcombine.high %v1050_v24, %v1054_v25  ;;  %v13428_v2 = vcombine.low %v1050_v24, %v1054_v25  ;;  %v1103_v24 = vld [vmem:[#allocation5 + $0x7b8] sm:$0xff] }
 0x2aa   :  { %v13430_v60 = vcombine.low %v1051_v63, %v1055_v5 }
 0x2ab   :  { %7953 = vmatpush1.bf16.msra.mxu0 %v13372_v14  ;;  %8281 = vmatpush1.bf16.msra.mxu1 %v13374_v9  ;;  %v13431_v14 = vcombine.high %v1051_v63, %v1055_v5  ;;  %v1058_v9 = vld [vmem:[#allocation5 + $0x650] sm:$0xff] }
 0x2ac   :  { %7954 = vmatprep.subr.bf16.mxu0 %v13381_v55  ;;  %8282 = vmatprep.subr.bf16.mxu1 %v13383_v26  ;;  %v1062_v55 = vld [vmem:[#allocation5 + $0x670] sm:$0xff]  ;;  %v1059_v26 = vld [vmem:[#allocation5 + $0x658] sm:$0xff] }
 0x2ad   :  { %v13437_v57 = vcombine.high %v1058_v9, %v1062_v55  ;;  %v13436_v58 = vcombine.low %v1058_v9, %v1062_v55  ;;  %v13438_v16 = vcombine.low %v1059_v26, %v1063_v6  ;;  %v1111_v9 = vld [vmem:[#allocation5 + $0x7f8] sm:$0xff] }
 0x2af   :  { %7955 = vmatpush1.bf16.msra.mxu0 %v13380_v56  ;;  %8283 = vmatpush1.bf16.msra.mxu1 %v13382_v49  ;;  %v13439_v56 = vcombine.high %v1059_v26, %v1063_v6  ;;  %v1066_v49 = vld [vmem:[#allocation5 + $0x690] sm:$0xff] }
 0x2b0   :  { %7956 = vmatprep.subr.bf16.mxu0 %v13389_v35  ;;  %8284 = vmatprep.subr.bf16.mxu1 %v13391_v18  ;;  %v1070_v35 = vld [vmem:[#allocation5 + $0x6b0] sm:$0xff]  ;;  %v1067_v18 = vld [vmem:[#allocation5 + $0x698] sm:$0xff] }
 0x2b1   :  { %v13445_v38 = vcombine.high %v1066_v49, %v1070_v35  ;;  %v13444_v22 = vcombine.low %v1066_v49, %v1070_v35  ;;  %v13446_v27 = vcombine.low %v1067_v18, %v1071_v17  ;;  %v1119_v49 = vld [vmem:[#allocation5 + $0x838] sm:$0xff] }
 0x2b3   :  { %7957 = vmatpush1.bf16.msra.mxu0 %v13388_v10  ;;  %8285 = vmatpush1.bf16.msra.mxu1 %v13390_v61  ;;  %v13447_v10 = vcombine.high %v1067_v18, %v1071_v17  ;;  %v1074_v61 = vld [vmem:[#allocation5 + $0x6d0] sm:$0xff] }
 0x2b4   :  { %7958 = vmatprep.subr.bf16.mxu0 %v13397_v31  ;;  %8286 = vmatprep.subr.bf16.mxu1 %v13399_v50  ;;  %v1078_v31 = vld [vmem:[#allocation5 + $0x6f0] sm:$0xff]  ;;  %v1075_v50 = vld [vmem:[#allocation5 + $0x6d8] sm:$0xff] }
 0x2b5   :  { %v13453_v33 = vcombine.high %v1074_v61, %v1078_v31  ;;  %v13452_v8 = vcombine.low %v1074_v61, %v1078_v31  ;;  %v13454_v34 = vcombine.low %v1075_v50, %v1079_v62  ;;  %v1127_v61 = vld [vmem:[#allocation5 + $0x878] sm:$0xff] }
 0x2b7   :  { %7959 = vmatpush1.bf16.msra.mxu0 %v13396_v28  ;;  %8287 = vmatpush1.bf16.msra.mxu1 %v13398_v41  ;;  %v13455_v28 = vcombine.high %v1075_v50, %v1079_v62  ;;  %v1082_v41 = vld [vmem:[#allocation5 + $0x710] sm:$0xff] }
 0x2b8   :  { %7960 = vmatprep.subr.bf16.mxu0 %v13405_v40  ;;  %8288 = vmatprep.subr.bf16.mxu1 %v13407_v1  ;;  %v1086_v40 = vld [vmem:[#allocation5 + $0x730] sm:$0xff]  ;;  %v1083_v1 = vld [vmem:[#allocation5 + $0x718] sm:$0xff] }
 0x2b9   :  { %v13461_v54 = vcombine.high %v1082_v41, %v1086_v40  ;;  %v13460_v0 = vcombine.low %v1082_v41, %v1086_v40  ;;  %v13462_v47 = vcombine.low %v1083_v1, %v1087_v15  ;;  %v1135_v41 = vld [vmem:[#allocation5 + $0x8b8] sm:$0xff] }
 0x2bb   :  { %7961 = vmatpush1.bf16.msra.mxu0 %v13404_v43  ;;  %8289 = vmatpush1.bf16.msra.mxu1 %v13406_v20  ;;  %v13463_v43 = vcombine.high %v1083_v1, %v1087_v15  ;;  %v1090_v20 = vld [vmem:[#allocation5 + $0x750] sm:$0xff] }
 0x2bc   :  { %7962 = vmatprep.subr.bf16.mxu0 %v13413_v36  ;;  %8290 = vmatprep.subr.bf16.mxu1 %v13415_v7  ;;  %v1094_v36 = vld [vmem:[#allocation5 + $0x770] sm:$0xff]  ;;  %v1091_v7 = vld [vmem:[#allocation5 + $0x758] sm:$0xff] }
 0x2bd   :  { %v13469_v30 = vcombine.high %v1090_v20, %v1094_v36  ;;  %v13468_v25 = vcombine.low %v1090_v20, %v1094_v36  ;;  %v13470_v63 = vcombine.low %v1091_v7, %v1095_v32  ;;  %v1143_v20 = vld [vmem:[#allocation5 + $0x8f8] sm:$0xff] }
 0x2bf   :  { %7963 = vmatpush1.bf16.msra.mxu0 %v13412_v11  ;;  %8291 = vmatpush1.bf16.msra.mxu1 %v13414_v3  ;;  %v13471_v11 = vcombine.high %v1091_v7, %v1095_v32  ;;  %v1098_v3 = vld [vmem:[#allocation5 + $0x790] sm:$0xff] }
 0x2c0   :  { %7964 = vmatprep.subr.bf16.mxu0 %v13421_v46  ;;  %8292 = vmatprep.subr.bf16.mxu1 %v13423_v13  ;;  %v1102_v46 = vld [vmem:[#allocation5 + $0x7b0] sm:$0xff]  ;;  %v1099_v13 = vld [vmem:[#allocation5 + $0x798] sm:$0xff] }
 0x2c1   :  { %v13477_v5 = vcombine.high %v1098_v3, %v1102_v46  ;;  %v13476_v55 = vcombine.low %v1098_v3, %v1102_v46  ;;  %v13478_v26 = vcombine.low %v1099_v13, %v1103_v24 }
 0x2c3   :  { %7965 = vmatpush1.bf16.msra.mxu0 %v13420_v29  ;;  %8293 = vmatpush1.bf16.msra.mxu1 %v13422_v23  ;;  %v13479_v29 = vcombine.high %v1099_v13, %v1103_v24  ;;  %v1106_v23 = vld [vmem:[#allocation5 + $0x7d0] sm:$0xff] }
 0x2c4   :  { %7966 = vmatprep.subr.bf16.mxu0 %v13429_v52  ;;  %8294 = vmatprep.subr.bf16.mxu1 %v13431_v14  ;;  %v1110_v52 = vld [vmem:[#allocation5 + $0x7f0] sm:$0xff]  ;;  %v1107_v14 = vld [vmem:[#allocation5 + $0x7d8] sm:$0xff] }
 0x2c5   :  { %v13485_v6 = vcombine.high %v1106_v23, %v1110_v52  ;;  %v13484_v35 = vcombine.low %v1106_v23, %v1110_v52  ;;  %v13486_v18 = vcombine.low %v1107_v14, %v1111_v9  ;;  %v1154_v24 = vld [vmem:[#allocation5 + $0x950] sm:$0xff] }
 0x2c7   :  { %7967 = vmatpush1.bf16.msra.mxu0 %v13428_v2  ;;  %8295 = vmatpush1.bf16.msra.mxu1 %v13430_v60  ;;  %v13487_v2 = vcombine.high %v1107_v14, %v1111_v9  ;;  %v1114_v60 = vld [vmem:[#allocation5 + $0x810] sm:$0xff] }
 0x2c8   :  { %7968 = vmatprep.subr.bf16.mxu0 %v13437_v57  ;;  %8296 = vmatprep.subr.bf16.mxu1 %v13439_v56  ;;  %v1118_v57 = vld [vmem:[#allocation5 + $0x830] sm:$0xff]  ;;  %v1115_v56 = vld [vmem:[#allocation5 + $0x818] sm:$0xff] }
 0x2c9   :  { %v13493_v17 = vcombine.high %v1114_v60, %v1118_v57  ;;  %v13492_v31 = vcombine.low %v1114_v60, %v1118_v57  ;;  %v13494_v50 = vcombine.low %v1115_v56, %v1119_v49  ;;  %v1162_v9 = vld [vmem:[#allocation5 + $0x990] sm:$0xff] }
 0x2cb   :  { %7969 = vmatpush1.bf16.msra.mxu0 %v13436_v58  ;;  %8297 = vmatpush1.bf16.msra.mxu1 %v13438_v16  ;;  %v13495_v58 = vcombine.high %v1115_v56, %v1119_v49  ;;  %v1122_v16 = vld [vmem:[#allocation5 + $0x850] sm:$0xff] }
 0x2cc   :  { %7970 = vmatprep.subr.bf16.mxu0 %v13445_v38  ;;  %8298 = vmatprep.subr.bf16.mxu1 %v13447_v10  ;;  %v1126_v38 = vld [vmem:[#allocation5 + $0x870] sm:$0xff]  ;;  %v1123_v10 = vld [vmem:[#allocation5 + $0x858] sm:$0xff] }
 0x2cd   :  { %v13501_v62 = vcombine.high %v1122_v16, %v1126_v38  ;;  %v13500_v40 = vcombine.low %v1122_v16, %v1126_v38  ;;  %v13502_v1 = vcombine.low %v1123_v10, %v1127_v61  ;;  %v1170_v49 = vld [vmem:[#allocation5 + $0x9d0] sm:$0xff] }
 0x2cf   :  { %7971 = vmatpush1.bf16.msra.mxu0 %v13444_v22  ;;  %8299 = vmatpush1.bf16.msra.mxu1 %v13446_v27  ;;  %v13503_v22 = vcombine.high %v1123_v10, %v1127_v61  ;;  %v1130_v27 = vld [vmem:[#allocation5 + $0x890] sm:$0xff] }
 0x2d0   :  { %7972 = vmatprep.subr.bf16.mxu0 %v13453_v33  ;;  %8300 = vmatprep.subr.bf16.mxu1 %v13455_v28  ;;  %v1134_v33 = vld [vmem:[#allocation5 + $0x8b0] sm:$0xff]  ;;  %v1131_v28 = vld [vmem:[#allocation5 + $0x898] sm:$0xff] }
 0x2d1   :  { %v13509_v15 = vcombine.high %v1130_v27, %v1134_v33  ;;  %v13508_v36 = vcombine.low %v1130_v27, %v1134_v33  ;;  %v1178_v61 = vld [vmem:[#allocation5 + $0xa10] sm:$0xff] }
 0x2d3   :  { %7973 = vmatpush1.bf16.msra.mxu0 %v13452_v8  ;;  %8301 = vmatpush1.bf16.msra.mxu1 %v13454_v34  ;;  %v13511_v8 = vcombine.high %v1131_v28, %v1135_v41  ;;  %v1138_v34 = vld [vmem:[#allocation5 + $0x8d0] sm:$0xff] }
 0x2d4   :  { %7974 = vmatprep.subr.bf16.mxu0 %v13461_v54  ;;  %8302 = vmatprep.subr.bf16.mxu1 %v13463_v43  ;;  %v1142_v54 = vld [vmem:[#allocation5 + $0x8f0] sm:$0xff]  ;;  %v1139_v43 = vld [vmem:[#allocation5 + $0x8d8] sm:$0xff] }
 0x2d5   :  { %v13517_v7 = vcombine.high %v1138_v34, %v1142_v54  ;;  %v13519_v32 = vcombine.high %v1139_v43, %v1143_v20  ;;  %v13516_v3 = vcombine.low %v1138_v34, %v1142_v54  ;;  %v13518_v46 = vcombine.low %v1139_v43, %v1143_v20  ;;  %v1194_v20 = vld [vmem:[#allocation5 + $0xa90] sm:$0xff] }
 0x2d7   :  { %7975 = vmatpush1.bf16.msra.mxu0 %v13460_v0  ;;  %8303 = vmatpush1.bf16.msra.mxu1 %v13462_v47  ;;  %v1146_v0 = vld [vmem:[#allocation5 + $0x910] sm:$0xff] }
 0x2d8   :  { %7976 = vmatprep.subr.bf16.mxu0 %v13469_v30  ;;  %8304 = vmatprep.subr.bf16.mxu1 %v13471_v11  ;;  %v1150_v47 = vld [vmem:[#allocation5 + $0x930] sm:$0xff]  ;;  %v1147_v30 = vld [vmem:[#allocation5 + $0x918] sm:$0xff] }
 0x2d9   :  { %v1151_v11 = vld [vmem:[#allocation5 + $0x938] sm:$0xff]  ;;  %v13525_v13 = vcombine.high %v1146_v0, %v1150_v47 }
 0x2da   :  { %v13526_v23 = vcombine.low %v1147_v30, %v1151_v11 }
 0x2db   :  { %7977 = vmatpush1.bf16.msra.mxu0 %v13468_v25  ;;  %8305 = vmatpush1.bf16.msra.mxu1 %v13470_v63  ;;  %v1158_v25 = vld [vmem:[#allocation5 + $0x970] sm:$0xff]  ;;  %v1155_v63 = vld [vmem:[#allocation5 + $0x958] sm:$0xff] }
 0x2dc   :  { %7978 = vmatprep.subr.bf16.mxu0 %v13477_v5  ;;  %8306 = vmatprep.subr.bf16.mxu1 %v13479_v29  ;;  %v1159_v5 = vld [vmem:[#allocation5 + $0x978] sm:$0xff]  ;;  %v13524_v29 = vcombine.low %v1146_v0, %v1150_v47  ;;  %v13533_v52 = vcombine.high %v1154_v24, %v1158_v25 }
 0x2dd   :  { %v13535_v14 = vcombine.high %v1155_v63, %v1159_v5  ;;  %v13534_v60 = vcombine.low %v1155_v63, %v1159_v5  ;;  %v1210_v5 = vld [vmem:[#allocation5 + $0xb10] sm:$0xff] }
 0x2df   :  { %7979 = vmatpush1.bf16.msra.mxu0 %v13476_v55  ;;  %8307 = vmatpush1.bf16.msra.mxu1 %v13478_v26  ;;  %v1166_v55 = vld [vmem:[#allocation5 + $0x9b0] sm:$0xff]  ;;  %v1163_v26 = vld [vmem:[#allocation5 + $0x998] sm:$0xff] }
 0x2e0   :  { %7980 = vmatprep.subr.bf16.mxu0 %v13485_v6  ;;  %8308 = vmatprep.subr.bf16.mxu1 %v13487_v2  ;;  %v1167_v6 = vld [vmem:[#allocation5 + $0x9b8] sm:$0xff]  ;;  %v13532_v2 = vcombine.low %v1154_v24, %v1158_v25  ;;  %v13541_v57 = vcombine.high %v1162_v9, %v1166_v55 }
 0x2e1   :  { %v13543_v56 = vcombine.high %v1163_v26, %v1167_v6  ;;  %v13542_v16 = vcombine.low %v1163_v26, %v1167_v6  ;;  %v1218_v6 = vld [vmem:[#allocation5 + $0xb50] sm:$0xff] }
 0x2e3   :  { %7981 = vmatpush1.bf16.msra.mxu0 %v13484_v35  ;;  %8309 = vmatpush1.bf16.msra.mxu1 %v13486_v18  ;;  %v1174_v35 = vld [vmem:[#allocation5 + $0x9f0] sm:$0xff]  ;;  %v1171_v18 = vld [vmem:[#allocation5 + $0x9d8] sm:$0xff] }
 0x2e4   :  { %7991 = vmatprep.subr.bf16.mxu0 %v13493_v17  ;;  %8319 = vmatprep.subr.bf16.mxu1 %v13495_v58  ;;  %v1175_v17 = vld [vmem:[#allocation5 + $0x9f8] sm:$0xff]  ;;  %v13540_v58 = vcombine.low %v1162_v9, %v1166_v55  ;;  %v13549_v38 = vcombine.high %v1170_v49, %v1174_v35 }
 0x2e5   :  { %v13551_v10 = vcombine.high %v1171_v18, %v1175_v17  ;;  %v13550_v27 = vcombine.low %v1171_v18, %v1175_v17  ;;  %v1226_v17 = vld [vmem:[#allocation5 + $0xb90] sm:$0xff] }
 0x2e6   :  { %7983 = vmatmul.mubr.bf16.vlgmr.msra.gmra.mrb[4].mxu0 %v16664_v21  ;;  %8311 = vmatmul.mubr.bf16.vlgmr.msra.gmra.mrb[4].mxu1 %v16664_v21  ;;  %v13510_v21 = vcombine.low %v1131_v28, %v1135_v41  ;;  %v1186_v41 = vld [vmem:[#allocation5 + $0xa50] sm:$0xff] }
 0x2e7   :  { %7992 = vmatpush1.bf16.msra.mxu0 %v13492_v31  ;;  %8320 = vmatpush1.bf16.msra.mxu1 %v13494_v50  ;;  %v1182_v31 = vld [vmem:[#allocation5 + $0xa30] sm:$0xff]  ;;  %v1179_v50 = vld [vmem:[#allocation5 + $0xa18] sm:$0xff] }
 0x2e8   :  { %7993 = vmatprep.subr.bf16.mxu0 %v13501_v62  ;;  %8321 = vmatprep.subr.bf16.mxu1 %v13503_v22  ;;  %v1183_v62 = vld [vmem:[#allocation5 + $0xa38] sm:$0xff]  ;;  %v13548_v22 = vcombine.low %v1170_v49, %v1174_v35  ;;  %v13557_v33 = vcombine.high %v1178_v61, %v1182_v31 }
 0x2e9   :  { %8023 = vmatprep.mubr.bf16.mxu0 %v16670_v37  ;;  %8351 = vmatprep.mubr.bf16.mxu1 %v16670_v37  ;;  %v13527_v37 = vcombine.high %v1147_v30, %v1151_v11  ;;  %v13559_v28 = vcombine.high %v1179_v50, %v1183_v62  ;;  %v13558_v34 = vcombine.low %v1179_v50, %v1183_v62  ;;  %v1202_v11 = vld [vmem:[#allocation5 + $0xad0] sm:$0xff] }
 0x2ea   :  { %v1234_v62 = vld [vmem:[#allocation5 + $0xbd0] sm:$0xff] }
 0x2eb   :  { %7994 = vmatpush1.bf16.msra.mxu0 %v13500_v40  ;;  %8322 = vmatpush1.bf16.msra.mxu1 %v13502_v1  ;;  %v1190_v40 = vld [vmem:[#allocation5 + $0xa70] sm:$0xff]  ;;  %v1187_v1 = vld [vmem:[#allocation5 + $0xa58] sm:$0xff] }
 0x2ec   :  { %7995 = vmatprep.subr.bf16.mxu0 %v13509_v15  ;;  %8323 = vmatprep.subr.bf16.mxu1 %v13511_v8  ;;  %v1191_v15 = vld [vmem:[#allocation5 + $0xa78] sm:$0xff]  ;;  %v13556_v8 = vcombine.low %v1178_v61, %v1182_v31  ;;  %v13565_v54 = vcombine.high %v1186_v41, %v1190_v40 }
 0x2ed   :  { %v13567_v43 = vcombine.high %v1187_v1, %v1191_v15  ;;  %v13566_v0 = vcombine.low %v1187_v1, %v1191_v15  ;;  %v1242_v15 = vld [vmem:[#allocation5 + $0xc10] sm:$0xff] }
 0x2ef   :  { %7996 = vmatpush1.bf16.msra.mxu0 %v13508_v36  ;;  %8324 = vmatpush1.bf16.msra.mxu1 %v13510_v21  ;;  %v1198_v36 = vld [vmem:[#allocation5 + $0xab0] sm:$0xff]  ;;  %v1195_v21 = vld [vmem:[#allocation5 + $0xa98] sm:$0xff] }
 0x2f0   :  { %7997 = vmatprep.subr.bf16.mxu0 %v13517_v7  ;;  %8325 = vmatprep.subr.bf16.mxu1 %v13519_v32  ;;  %v1199_v7 = vld [vmem:[#allocation5 + $0xab8] sm:$0xff]  ;;  %v13564_v32 = vcombine.low %v1186_v41, %v1190_v40  ;;  %v13573_v47 = vcombine.high %v1194_v20, %v1198_v36 }
 0x2f1   :  { %v13575_v30 = vcombine.high %v1195_v21, %v1199_v7  ;;  %v13574_v24 = vcombine.low %v1195_v21, %v1199_v7  ;;  %v1250_v7 = vld [vmem:[#allocation5 + $0xc50] sm:$0xff] }
 0x2f3   :  { %7998 = vmatpush1.bf16.msra.mxu0 %v13516_v3  ;;  %8326 = vmatpush1.bf16.msra.mxu1 %v13518_v46  ;;  %v1206_v3 = vld [vmem:[#allocation5 + $0xaf0] sm:$0xff]  ;;  %v1203_v46 = vld [vmem:[#allocation5 + $0xad8] sm:$0xff] }
 0x2f4   :  { %7999 = vmatprep.subr.bf16.mxu0 %v13525_v13  ;;  %8327 = vmatprep.subr.bf16.mxu1 %v13527_v37  ;;  %v1207_v13 = vld [vmem:[#allocation5 + $0xaf8] sm:$0xff]  ;;  %v13572_v37 = vcombine.low %v1194_v20, %v1198_v36  ;;  %v13581_v25 = vcombine.high %v1202_v11, %v1206_v3 }
 0x2f5   :  { %v13583_v63 = vcombine.high %v1203_v46, %v1207_v13  ;;  %v13582_v9 = vcombine.low %v1203_v46, %v1207_v13  ;;  %v1258_v13 = vld [vmem:[#allocation5 + $0xc90] sm:$0xff] }
 0x2f7   :  { %8000 = vmatpush1.bf16.msra.mxu0 %v13524_v29  ;;  %8328 = vmatpush1.bf16.msra.mxu1 %v13526_v23  ;;  %v1214_v29 = vld [vmem:[#allocation5 + $0xb30] sm:$0xff]  ;;  %v1211_v23 = vld [vmem:[#allocation5 + $0xb18] sm:$0xff] }
 0x2f8   :  { %8001 = vmatprep.subr.bf16.mxu0 %v13533_v52  ;;  %8329 = vmatprep.subr.bf16.mxu1 %v13535_v14  ;;  %v1215_v52 = vld [vmem:[#allocation5 + $0xb38] sm:$0xff]  ;;  %v13580_v14 = vcombine.low %v1202_v11, %v1206_v3  ;;  %v13589_v55 = vcombine.high %v1210_v5, %v1214_v29 }
 0x2f9   :  { %v13591_v26 = vcombine.high %v1211_v23, %v1215_v52  ;;  %v13590_v49 = vcombine.low %v1211_v23, %v1215_v52  ;;  %v1266_v52 = vld [vmem:[#allocation5 + $0xcd0] sm:$0xff] }
 0x2fb   :  { %8002 = vmatpush1.bf16.msra.mxu0 %v13532_v2  ;;  %8330 = vmatpush1.bf16.msra.mxu1 %v13534_v60  ;;  %v1222_v2 = vld [vmem:[#allocation5 + $0xb70] sm:$0xff]  ;;  %v1219_v60 = vld [vmem:[#allocation5 + $0xb58] sm:$0xff] }
 0x2fc   :  { %8003 = vmatprep.subr.bf16.mxu0 %v13541_v57  ;;  %8331 = vmatprep.subr.bf16.mxu1 %v13543_v56  ;;  %v1223_v57 = vld [vmem:[#allocation5 + $0xb78] sm:$0xff]  ;;  %v13588_v56 = vcombine.low %v1210_v5, %v1214_v29  ;;  %v13597_v35 = vcombine.high %v1218_v6, %v1222_v2 }
 0x2fd   :  { %v13599_v18 = vcombine.high %v1219_v60, %v1223_v57  ;;  %v13598_v61 = vcombine.low %v1219_v60, %v1223_v57  ;;  %v1274_v57 = vld [vmem:[#allocation5 + $0xd10] sm:$0xff] }
 0x2ff   :  { %8004 = vmatpush1.bf16.msra.mxu0 %v13540_v58  ;;  %8332 = vmatpush1.bf16.msra.mxu1 %v13542_v16  ;;  %v1230_v58 = vld [vmem:[#allocation5 + $0xbb0] sm:$0xff]  ;;  %v1227_v16 = vld [vmem:[#allocation5 + $0xb98] sm:$0xff] }
 0x300   :  { %8005 = vmatprep.subr.bf16.mxu0 %v13549_v38  ;;  %8333 = vmatprep.subr.bf16.mxu1 %v13551_v10  ;;  %v1231_v38 = vld [vmem:[#allocation5 + $0xbb8] sm:$0xff]  ;;  %v13596_v10 = vcombine.low %v1218_v6, %v1222_v2  ;;  %v13605_v31 = vcombine.high %v1226_v17, %v1230_v58 }
 0x301   :  { %v13607_v50 = vcombine.high %v1227_v16, %v1231_v38  ;;  %v13606_v41 = vcombine.low %v1227_v16, %v1231_v38  ;;  %v1282_v38 = vld [vmem:[#allocation5 + $0xd50] sm:$0xff] }
 0x303   :  { %8006 = vmatpush1.bf16.msra.mxu0 %v13548_v22  ;;  %8334 = vmatpush1.bf16.msra.mxu1 %v13550_v27  ;;  %v1238_v22 = vld [vmem:[#allocation5 + $0xbf0] sm:$0xff]  ;;  %v1235_v27 = vld [vmem:[#allocation5 + $0xbd8] sm:$0xff] }
 0x304   :  { %8007 = vmatprep.subr.bf16.mxu0 %v13557_v33  ;;  %8335 = vmatprep.subr.bf16.mxu1 %v13559_v28  ;;  %v1239_v33 = vld [vmem:[#allocation5 + $0xbf8] sm:$0xff]  ;;  %v13604_v28 = vcombine.low %v1226_v17, %v1230_v58  ;;  %v13613_v40 = vcombine.high %v1234_v62, %v1238_v22 }
 0x305   :  { %v13615_v1 = vcombine.high %v1235_v27, %v1239_v33  ;;  %v13614_v20 = vcombine.low %v1235_v27, %v1239_v33 }
 0x307   :  { %8008 = vmatpush1.bf16.msra.mxu0 %v13556_v8  ;;  %8336 = vmatpush1.bf16.msra.mxu1 %v13558_v34  ;;  %v1246_v8 = vld [vmem:[#allocation5 + $0xc30] sm:$0xff]  ;;  %v1243_v34 = vld [vmem:[#allocation5 + $0xc18] sm:$0xff] }
 0x308   :  { %8009 = vmatprep.subr.bf16.mxu0 %v13565_v54  ;;  %8337 = vmatprep.subr.bf16.mxu1 %v13567_v43  ;;  %v1247_v54 = vld [vmem:[#allocation5 + $0xc38] sm:$0xff]  ;;  %v13612_v43 = vcombine.low %v1234_v62, %v1238_v22  ;;  %v13621_v36 = vcombine.high %v1242_v15, %v1246_v8  ;;  %v1880_v22 = vld [vmem:[#allocation7] sm:$0xff] }
 0x309   :  { %v13623_v21 = vcombine.high %v1243_v34, %v1247_v54  ;;  %v13622_v11 = vcombine.low %v1243_v34, %v1247_v54  ;;  %v1291_v54 = vld [vmem:[#allocation5 + $0xd98] sm:$0xff] }
 0x30b   :  { %8010 = vmatpush1.bf16.msra.mxu0 %v13564_v32  ;;  %8338 = vmatpush1.bf16.msra.mxu1 %v13566_v0  ;;  %v1254_v32 = vld [vmem:[#allocation5 + $0xc70] sm:$0xff]  ;;  %v1251_v0 = vld [vmem:[#allocation5 + $0xc58] sm:$0xff] }
 0x30c   :  { %8011 = vmatprep.subr.bf16.mxu0 %v13573_v47  ;;  %8339 = vmatprep.subr.bf16.mxu1 %v13575_v30  ;;  %v1255_v47 = vld [vmem:[#allocation5 + $0xc78] sm:$0xff]  ;;  %v13620_v30 = vcombine.low %v1242_v15, %v1246_v8  ;;  %v13629_v3 = vcombine.high %v1250_v7, %v1254_v32  ;;  %v1290_v15 = vld [vmem:[#allocation5 + $0xd90] sm:$0xff] }
 0x30d   :  { %v13631_v46 = vcombine.high %v1251_v0, %v1255_v47  ;;  %v13630_v5 = vcombine.low %v1251_v0, %v1255_v47  ;;  %v1294_v8 = vld [vmem:[#allocation5 + $0xdb0] sm:$0xff] }
 0x30e   :  { %v13669_v0 = vcombine.high %v1290_v15, %v1294_v8 }
 0x30f   :  { %8012 = vmatpush1.bf16.msra.mxu0 %v13572_v37  ;;  %8340 = vmatpush1.bf16.msra.mxu1 %v13574_v24  ;;  %v1262_v37 = vld [vmem:[#allocation5 + $0xcb0] sm:$0xff]  ;;  %v1259_v24 = vld [vmem:[#allocation5 + $0xc98] sm:$0xff] }
 0x310   :  { %8013 = vmatprep.subr.bf16.mxu0 %v13581_v25  ;;  %8341 = vmatprep.subr.bf16.mxu1 %v13583_v63  ;;  %v1263_v25 = vld [vmem:[#allocation5 + $0xcb8] sm:$0xff]  ;;  %v13628_v63 = vcombine.low %v1250_v7, %v1254_v32  ;;  %v13637_v29 = vcombine.high %v1258_v13, %v1262_v37  ;;  %v13636_v6 = vcombine.low %v1258_v13, %v1262_v37 }
 0x311   :  { %v13639_v23 = vcombine.high %v1259_v24, %v1263_v25 }
 0x313   :  { %8014 = vmatpush1.bf16.msra.mxu0 %v13580_v14  ;;  %8342 = vmatpush1.bf16.msra.mxu1 %v13582_v9  ;;  %v1270_v14 = vld [vmem:[#allocation5 + $0xcf0] sm:$0xff]  ;;  %v1267_v9 = vld [vmem:[#allocation5 + $0xcd8] sm:$0xff] }
 0x314   :  { %8015 = vmatprep.subr.bf16.mxu0 %v13589_v55  ;;  %8343 = vmatprep.subr.bf16.mxu1 %v13591_v26  ;;  %v1271_v55 = vld [vmem:[#allocation5 + $0xcf8] sm:$0xff]  ;;  %v1882_v26 = vlaneseq  ;;  %v13645_v2 = vcombine.high %v1266_v52, %v1270_v14  ;;  %v13644_v17 = vcombine.low %v1266_v52, %v1270_v14  ;;  %v13668_v52 = vcombine.low %v1290_v15, %v1294_v8  ;;  %v1322_v15 = vld [vmem:[#allocation5 + $0xe90] sm:$0xff] }
 0x315   :  { %v13647_v60 = vcombine.high %v1267_v9, %v1271_v55  ;;  %v13646_v58 = vcombine.low %v1267_v9, %v1271_v55  ;;  %v1326_v8 = vld [vmem:[#allocation5 + $0xeb0] sm:$0xff] }
 0x317   :  { %8016 = vmatpush1.bf16.msra.mxu0 %v13588_v56  ;;  %8344 = vmatpush1.bf16.msra.mxu1 %v13590_v49  ;;  %v1278_v56 = vld [vmem:[#allocation5 + $0xd30] sm:$0xff]  ;;  %v1275_v49 = vld [vmem:[#allocation5 + $0xd18] sm:$0xff] }
 0x318   :  { %8017 = vmatprep.subr.bf16.mxu0 %v13597_v35  ;;  %8345 = vmatprep.subr.bf16.mxu1 %v13599_v18  ;;  %v1279_v35 = vld [vmem:[#allocation5 + $0xd38] sm:$0xff]  ;;  %v17046_v18 = vshrl.u32 %v1882_v26, 7  ;;  %v13652_v62 = vcombine.low %v1274_v57, %v1278_v56 }
 0x319   :  { %v13655_v16 = vcombine.high %v1275_v49, %v1279_v35 }
 0x31a   :  { %v1892_v27 = vsub.s32 2, %v17046_v18  ;;  %v1888_v33 = vsub.s32 1, %v17046_v18 }
 0x31b   :  { %8018 = vmatpush1.bf16.msra.mxu0 %v13596_v10  ;;  %8346 = vmatpush1.bf16.msra.mxu1 %v13598_v61  ;;  %v1286_v10 = vld [vmem:[#allocation5 + $0xd70] sm:$0xff]  ;;  %v1884_v61 = vsub.s32 0, %v17046_v18 }
 0x31c   :  { %8019 = vmatprep.subr.bf16.mxu0 %v13605_v31  ;;  %8347 = vmatprep.subr.bf16.mxu1 %v13607_v50  ;;  %v1283_v31 = vld [vmem:[#allocation5 + $0xd58] sm:$0xff] }
 0x31d   :  { %v1287_v50 = vld [vmem:[#allocation5 + $0xd78] sm:$0xff]  ;;  %v1885_v34 = vrot.slane %v1880_v22, %v1884_v61 }
 0x31e   :  { %v13662_v32 = vcombine.low %v1283_v31, %v1287_v50 }
 0x31f   :  { %8020 = vmatpush1.bf16.msra.mxu0 %v13604_v28  ;;  %8348 = vmatpush1.bf16.msra.mxu1 %v13606_v41  ;;  %v13654_v28 = vcombine.low %v1275_v49, %v1279_v35  ;;  %v1896_v41 = vsub.s32 3, %v17046_v18  ;;  %v1307_v35 = vld [vmem:[#allocation5 + $0xe18] sm:$0xff] }
 0x320   :  { %8021 = vmatprep.subr.bf16.mxu0 %v13613_v40  ;;  %8349 = vmatprep.subr.bf16.mxu1 %v13615_v1  ;;  %v13661_v40 = vcombine.high %v1282_v38, %v1286_v10  ;;  %v13663_v1 = vcombine.high %v1283_v31, %v1287_v50  ;;  %v1318_v31 = vld [vmem:[#allocation5 + $0xe70] sm:$0xff]  ;;  %v1315_v50 = vld [vmem:[#allocation5 + $0xe58] sm:$0xff] }
 0x321   :  { %v1897_v7 = vrot.slane %v1880_v22, %v1896_v41 }
 0x323   :  { %8022 = vmatpush1.bf16.msra.mxu0 %v13612_v43  ;;  %8350 = vmatpush1.bf16.msra.mxu1 %v13614_v20  ;;  %v1295_v43 = vld [vmem:[#allocation5 + $0xdb8] sm:$0xff]  ;;  %v1893_v20 = vrot.slane %v1880_v22, %v1892_v27 }
 0x324   :  { %8032 = vmatprep.subr.bf16.mxu0 %v13621_v36  ;;  %8360 = vmatprep.subr.bf16.mxu1 %v13623_v21  ;;  %v1889_v36 = vrot.slane %v1880_v22, %v1888_v33  ;;  %v13660_v21 = vcombine.low %v1282_v38, %v1286_v10  ;;  %v13670_v26 = vcombine.low %v1291_v54, %v1295_v43  ;;  %v1314_v10 = vld [vmem:[#allocation5 + $0xe50] sm:$0xff] }
 0x326   :  { %8024 = vmatmul.mubr.bf16.vlgmr.msra.gmra.mrb[4].mxu0 %v16744_v59  ;;  %8352 = vmatmul.mubr.bf16.vlgmr.msra.gmra.mrb[4].mxu1 %v16744_v59  ;;  %v13638_v59 = vcombine.low %v1259_v24, %v1263_v25  ;;  %v1299_v24 = vld [vmem:[#allocation5 + $0xdd8] sm:$0xff] }
 0x327   :  { %8033 = vmatpush1.bf16.msra.mxu0 %v13620_v30  ;;  %8361 = vmatpush1.bf16.msra.mxu1 %v13622_v11  ;;  %v13671_v30 = vcombine.high %v1291_v54, %v1295_v43  ;;  %v1298_v11 = vld [vmem:[#allocation5 + $0xdd0] sm:$0xff]  ;;  %v1303_v25 = vld [vmem:[#allocation5 + $0xdf8] sm:$0xff]  ;;  %v13692_v43 = vcombine.low %v1314_v10, %v1318_v31 }
 0x328   :  { %8034 = vmatprep.subr.bf16.mxu0 %v13629_v3  ;;  %8362 = vmatprep.subr.bf16.mxu1 %v13631_v46  ;;  %v1302_v3 = vld [vmem:[#allocation5 + $0xdf0] sm:$0xff]  ;;  %v1327_v54 = vld [vmem:[#allocation5 + $0xeb8] sm:$0xff] }
 0x329   :  { %8064 = vmatprep.mubr.bf16.mxu0 %v16747_v42  ;;  %8392 = vmatprep.mubr.bf16.mxu1 %v16747_v42  ;;  %v13653_v42 = vcombine.high %v1274_v57, %v1278_v56  ;;  %v1306_v57 = vld [vmem:[#allocation5 + $0xe10] sm:$0xff] }
 0x32a   :  { %v1310_v56 = vld [vmem:[#allocation5 + $0xe30] sm:$0xff] }
 0x32b   :  { %8035 = vmatpush1.bf16.msra.mxu0 %v13628_v63  ;;  %8363 = vmatpush1.bf16.msra.mxu1 %v13630_v5  ;;  %v13684_v22 = vcombine.low %v1306_v57, %v1310_v56 }
 0x32c   :  { %8036 = vmatprep.subr.bf16.mxu0 %v13637_v29  ;;  %8364 = vmatprep.subr.bf16.mxu1 %v13639_v23 }
 0x32f   :  { %8037 = vmatpush1.bf16.msra.mxu0 %v13636_v6  ;;  %8365 = vmatpush1.bf16.msra.mxu1 %v13638_v59  ;;  %v13677_v6 = vcombine.high %v1298_v11, %v1302_v3 }
 0x330   :  { %8038 = vmatprep.subr.bf16.mxu0 %v13645_v2  ;;  %8366 = vmatprep.subr.bf16.mxu1 %v13647_v60  ;;  %v13679_v60 = vcombine.high %v1299_v24, %v1303_v25 }
 0x333   :  { %8039 = vmatpush1.bf16.msra.mxu0 %v13644_v17  ;;  %8367 = vmatpush1.bf16.msra.mxu1 %v13646_v58  ;;  %v1311_v17 = vld [vmem:[#allocation5 + $0xe38] sm:$0xff]  ;;  %v13676_v58 = vcombine.low %v1298_v11, %v1302_v3 }
 0x334   :  { %8040 = vmatprep.subr.bf16.mxu0 %v13653_v42  ;;  %8368 = vmatprep.subr.bf16.mxu1 %v13655_v16  ;;  %v13678_v42 = vcombine.low %v1299_v24, %v1303_v25  ;;  %v13685_v16 = vcombine.high %v1306_v57, %v1310_v56  ;;  %v13687_v38 = vcombine.high %v1307_v35, %v1311_v17  ;;  %v1339_v24 = vld [vmem:[#allocation5 + $0xf18] sm:$0xff]  ;;  %v1358_v57 = vld [vmem:[#allocation5 + $0xfb0] sm:$0xff] }
 0x335   :  { %v1343_v25 = vld [vmem:[#allocation5 + $0xf38] sm:$0xff] }
 0x336   :  { %v1355_v56 = vld [vmem:[#allocation5 + $0xf98] sm:$0xff] }
 0x337   :  { %8041 = vmatpush1.bf16.msra.mxu0 %v13652_v62  ;;  %8369 = vmatpush1.bf16.msra.mxu1 %v13654_v28  ;;  %v1319_v62 = vld [vmem:[#allocation5 + $0xe78] sm:$0xff]  ;;  %v13686_v28 = vcombine.low %v1307_v35, %v1311_v17 }
 0x338   :  { %8042 = vmatprep.subr.bf16.mxu0 %v13661_v40  ;;  %8370 = vmatprep.subr.bf16.mxu1 %v13663_v1  ;;  %v13693_v40 = vcombine.high %v1314_v10, %v1318_v31  ;;  %v13695_v1 = vcombine.high %v1315_v50, %v1319_v62  ;;  %v1363_v10 = vld [vmem:[#allocation5 + $0xfd8] sm:$0xff] }
 0x339   :  { %v7574_v47 = vpop.f32.mrb[0].mxu0  ;;  %v7902_v13 = vpop.f32.mrb[0].mxu1  ;;  %v1367_v31 = vld [vmem:[#allocation5 + $0xff8] sm:$0xff] }
 0x33a   :  { %v14832_v46 = vadd.f32 %v7574_v47, %v1885_v34  ;;  %v7576_v37 = vpop.f32.mrb[1].mxu0  ;;  %v14834_v63 = vadd.f32 %v7902_v13, %v1893_v20  ;;  %v7904_v29 = vpop.f32.mrb[1].mxu1  ;;  %v1323_v34 = vld [vmem:[#allocation5 + $0xe98] sm:$0xff]  ;;  %v13694_v20 = vcombine.low %v1315_v50, %v1319_v62  ;;  %v1338_v13 = vld [vmem:[#allocation5 + $0xf10] sm:$0xff] }
 0x33b   :  { %v14833_v5 = vadd.f32 %v7576_v37, %v1889_v36  ;;  %v7578_v23 = vpop.f32.mrb[2].mxu0  ;;  %8043 = vmatpush1.bf16.msra.mxu0 %v13660_v21  ;;  %v14835_v14 = vadd.f32 %v7904_v29, %v1897_v7  ;;  %v7906_v9 = vpop.f32.mrb[2].mxu1  ;;  %8371 = vmatpush1.bf16.msra.mxu1 %v13662_v32  ;;  %v13701_v36 = vcombine.high %v1322_v15, %v1326_v8  ;;  %v1330_v7 = vld [vmem:[#allocation5 + $0xed0] sm:$0xff]  ;;  %v1335_v47 = vld [vmem:[#allocation5 + $0xef8] sm:$0xff] }
 0x33c   :  { %v7579_v55 = vpop.f32.mrb[3].mxu0  ;;  %8044 = vmatprep.subr.bf16.mxu0 %v13669_v0  ;;  %v7907_v2 = vpop.f32.mrb[3].mxu1  ;;  %8372 = vmatprep.subr.bf16.mxu1 %v13671_v30  ;;  %v13703_v21 = vcombine.high %v1323_v34, %v1327_v54  ;;  %v1334_v32 = vld [vmem:[#allocation5 + $0xef0] sm:$0xff]  ;;  %v1331_v0 = vld [vmem:[#allocation5 + $0xed8] sm:$0xff]  ;;  %v13700_v30 = vcombine.low %v1322_v15, %v1326_v8  ;;  %v13702_v11 = vcombine.low %v1323_v34, %v1327_v54 }
 0x33d   :  { %v8573_v59 = vcombine.low %v14832_v46, %v14833_v5  ;;  %v8574_v49 = vcombine.low %v14834_v63, %v14835_v14  ;;  %v13709_v3 = vcombine.high %v1330_v7, %v1334_v32  ;;  %v13711_v46 = vcombine.high %v1331_v0, %v1335_v47  ;;  %v1342_v37 = vld [vmem:[#allocation5 + $0xf30] sm:$0xff]  ;;  %v1347_v9 = vld [vmem:[#allocation5 + $0xf58] sm:$0xff] }
 0x33e   :  { %v13708_v63 = vcombine.low %v1330_v7, %v1334_v32  ;;  %v13710_v5 = vcombine.low %v1331_v0, %v1335_v47  ;;  %v13717_v29 = vcombine.high %v1338_v13, %v1342_v37  ;;  %v13719_v23 = vcombine.high %v1339_v24, %v1343_v25  ;;  %v1350_v14 = vld [vmem:[#allocation5 + $0xf70] sm:$0xff]  ;;  %v1351_v55 = vld [vmem:[#allocation5 + $0xf78] sm:$0xff] }
 0x33f   :  { %8581 = vst [vmem:[#allocation11] sm:$0xff] %v8573_v59  ;;  %8045 = vmatpush1.bf16.msra.mxu0 %v13668_v52  ;;  %8582 = vst [vmem:[#allocation11 + $0x8] sm:$0xff] %v8574_v49  ;;  %8373 = vmatpush1.bf16.msra.mxu1 %v13670_v26  ;;  %v1346_v52 = vld [vmem:[#allocation5 + $0xf50] sm:$0xff]  ;;  %v13716_v26 = vcombine.low %v1338_v13, %v1342_v37  ;;  %v13727_v2 = vcombine.high %v1347_v9, %v1351_v55  ;;  %v1359_v49 = vld [vmem:[#allocation5 + $0xfb8] sm:$0xff] }
 0x340   :  { %8046 = vmatprep.subr.bf16.mxu0 %v13677_v6  ;;  %8374 = vmatprep.subr.bf16.mxu1 %v13679_v60  ;;  %v13718_v6 = vcombine.low %v1339_v24, %v1343_v25  ;;  %v13725_v59 = vcombine.high %v1346_v52, %v1350_v14  ;;  %v1354_v60 = vld [vmem:[#allocation5 + $0xf90] sm:$0xff]  ;;  %v13724_v35 = vcombine.low %v1346_v52, %v1350_v14  ;;  %v1371_v15 = vld [vmem:[#allocation5 + $0x1018] sm:$0xff] }
 0x341   :  { %v13726_v17 = vcombine.low %v1347_v9, %v1351_v55  ;;  %v13732_v50 = vcombine.low %v1354_v60, %v1358_v57  ;;  %v13734_v62 = vcombine.low %v1355_v56, %v1359_v49  ;;  %v1375_v8 = vld [vmem:[#allocation5 + $0x1038] sm:$0xff]  ;;  %v13742_v54 = vcombine.low %v1363_v10, %v1367_v31 }
 0x342   :  { %v1379_v7 = vld [vmem:[#allocation5 + $0x1058] sm:$0xff]  ;;  %v13750_v47 = vcombine.low %v1371_v15, %v1375_v8 }
 0x343   :  { %8047 = vmatpush1.bf16.msra.mxu0 %v13676_v58  ;;  %8375 = vmatpush1.bf16.msra.mxu1 %v13678_v42  ;;  %v13733_v58 = vcombine.high %v1354_v60, %v1358_v57  ;;  %v13735_v42 = vcombine.high %v1355_v56, %v1359_v49  ;;  %v1383_v32 = vld [vmem:[#allocation5 + $0x1078] sm:$0xff] }
 0x344   :  { %8048 = vmatprep.subr.bf16.mxu0 %v13685_v16  ;;  %8376 = vmatprep.subr.bf16.mxu1 %v13687_v38  ;;  %v1362_v16 = vld [vmem:[#allocation5 + $0xfd0] sm:$0xff]  ;;  %v1387_v13 = vld [vmem:[#allocation5 + $0x1098] sm:$0xff]  ;;  %v13758_v25 = vcombine.low %v1379_v7, %v1383_v32 }
 0x345   :  { %v1366_v38 = vld [vmem:[#allocation5 + $0xff0] sm:$0xff]  ;;  %v1391_v37 = vld [vmem:[#allocation5 + $0x10b8] sm:$0xff] }
 0x346   :  { %v13740_v34 = vcombine.low %v1362_v16, %v1366_v38  ;;  %v1395_v52 = vld [vmem:[#allocation5 + $0x10d8] sm:$0xff] }
 0x347   :  { %8049 = vmatpush1.bf16.msra.mxu0 %v13684_v22  ;;  %8377 = vmatpush1.bf16.msra.mxu1 %v13686_v28  ;;  %v13741_v22 = vcombine.high %v1362_v16, %v1366_v38  ;;  %v13743_v28 = vcombine.high %v1363_v10, %v1367_v31  ;;  %v1399_v14 = vld [vmem:[#allocation5 + $0x10f8] sm:$0xff] }
 0x348   :  { %8050 = vmatprep.subr.bf16.mxu0 %v13693_v40  ;;  %8378 = vmatprep.subr.bf16.mxu1 %v13695_v1  ;;  %v1370_v40 = vld [vmem:[#allocation5 + $0x1010] sm:$0xff]  ;;  %v1407_v60 = vld [vmem:[#allocation5 + $0x1138] sm:$0xff]  ;;  %v13774_v56 = vcombine.low %v1395_v52, %v1399_v14 }
 0x349   :  { %v1374_v1 = vld [vmem:[#allocation5 + $0x1030] sm:$0xff] }
 0x34a   :  { %v13748_v0 = vcombine.low %v1370_v40, %v1374_v1 }
 0x34b   :  { %8051 = vmatpush1.bf16.msra.mxu0 %v13692_v43  ;;  %8379 = vmatpush1.bf16.msra.mxu1 %v13694_v20  ;;  %v13749_v43 = vcombine.high %v1370_v40, %v1374_v1  ;;  %v13751_v20 = vcombine.high %v1371_v15, %v1375_v8 }
 0x34c   :  { %8052 = vmatprep.subr.bf16.mxu0 %v13701_v36  ;;  %8380 = vmatprep.subr.bf16.mxu1 %v13703_v21  ;;  %v1378_v36 = vld [vmem:[#allocation5 + $0x1050] sm:$0xff] }
 0x34d   :  { %v1382_v21 = vld [vmem:[#allocation5 + $0x1070] sm:$0xff] }
 0x34e   :  { %v13756_v24 = vcombine.low %v1378_v36, %v1382_v21 }
 0x34f   :  { %8053 = vmatpush1.bf16.msra.mxu0 %v13700_v30  ;;  %8381 = vmatpush1.bf16.msra.mxu1 %v13702_v11  ;;  %v13757_v30 = vcombine.high %v1378_v36, %v1382_v21  ;;  %v13759_v11 = vcombine.high %v1379_v7, %v1383_v32 }
 0x350   :  { %8054 = vmatprep.subr.bf16.mxu0 %v13709_v3  ;;  %8382 = vmatprep.subr.bf16.mxu1 %v13711_v46  ;;  %v1386_v3 = vld [vmem:[#allocation5 + $0x1090] sm:$0xff] }
 0x351   :  { %v1390_v46 = vld [vmem:[#allocation5 + $0x10b0] sm:$0xff] }
 0x352   :  { %v13764_v9 = vcombine.low %v1386_v3, %v1390_v46 }
 0x353   :  { %8055 = vmatpush1.bf16.msra.mxu0 %v13708_v63  ;;  %8383 = vmatpush1.bf16.msra.mxu1 %v13710_v5  ;;  %v13765_v63 = vcombine.high %v1386_v3, %v1390_v46  ;;  %v13767_v5 = vcombine.high %v1387_v13, %v1391_v37 }
 0x354   :  { %8056 = vmatprep.subr.bf16.mxu0 %v13717_v29  ;;  %8384 = vmatprep.subr.bf16.mxu1 %v13719_v23  ;;  %v1394_v29 = vld [vmem:[#allocation5 + $0x10d0] sm:$0xff] }
 0x355   :  { %v1398_v23 = vld [vmem:[#allocation5 + $0x10f0] sm:$0xff] }
 0x356   :  { %v13773_v55 = vcombine.high %v1394_v29, %v1398_v23  ;;  %v13772_v57 = vcombine.low %v1394_v29, %v1398_v23 }
 0x357   :  { %8057 = vmatpush1.bf16.msra.mxu0 %v13716_v26  ;;  %8385 = vmatpush1.bf16.msra.mxu1 %v13718_v6  ;;  %v13775_v26 = vcombine.high %v1395_v52, %v1399_v14  ;;  %v1402_v6 = vld [vmem:[#allocation5 + $0x1110] sm:$0xff] }
 0x358   :  { %8058 = vmatprep.subr.bf16.mxu0 %v13725_v59  ;;  %8386 = vmatprep.subr.bf16.mxu1 %v13727_v2  ;;  %v1406_v59 = vld [vmem:[#allocation5 + $0x1130] sm:$0xff]  ;;  %v1403_v2 = vld [vmem:[#allocation5 + $0x1118] sm:$0xff] }
 0x359   :  { %v13781_v49 = vcombine.high %v1402_v6, %v1406_v59  ;;  %v13780_v16 = vcombine.low %v1402_v6, %v1406_v59  ;;  %v13782_v38 = vcombine.low %v1403_v2, %v1407_v60 }
 0x35b   :  { %8059 = vmatpush1.bf16.msra.mxu0 %v13724_v35  ;;  %8387 = vmatpush1.bf16.msra.mxu1 %v13726_v17  ;;  %v1410_v35 = vld [vmem:[#allocation5 + $0x1150] sm:$0xff] }
 0x35c   :  { %8060 = vmatprep.subr.bf16.mxu0 %v13733_v58  ;;  %8388 = vmatprep.subr.bf16.mxu1 %v13735_v42  ;;  %v1414_v17 = vld [vmem:[#allocation5 + $0x1170] sm:$0xff]  ;;  %v1411_v58 = vld [vmem:[#allocation5 + $0x1158] sm:$0xff] }
 0x35d   :  { %v1415_v42 = vld [vmem:[#allocation5 + $0x1178] sm:$0xff]  ;;  %v13789_v10 = vcombine.high %v1410_v35, %v1414_v17  ;;  %v13788_v40 = vcombine.low %v1410_v35, %v1414_v17 }
 0x35e   :  { %v13791_v31 = vcombine.high %v1411_v58, %v1415_v42  ;;  %v13790_v1 = vcombine.low %v1411_v58, %v1415_v42 }
 0x35f   :  { %8061 = vmatpush1.bf16.msra.mxu0 %v13732_v50  ;;  %8389 = vmatpush1.bf16.msra.mxu1 %v13734_v62  ;;  %v1418_v50 = vld [vmem:[#allocation5 + $0x1190] sm:$0xff] }
 0x360   :  { %8062 = vmatprep.subr.bf16.mxu0 %v13741_v22  ;;  %8390 = vmatprep.subr.bf16.mxu1 %v13743_v28  ;;  %v1422_v62 = vld [vmem:[#allocation5 + $0x11b0] sm:$0xff]  ;;  %v1419_v22 = vld [vmem:[#allocation5 + $0x1198] sm:$0xff] }
 0x361   :  { %v1423_v28 = vld [vmem:[#allocation5 + $0x11b8] sm:$0xff]  ;;  %v13797_v15 = vcombine.high %v1418_v50, %v1422_v62  ;;  %v13796_v36 = vcombine.low %v1418_v50, %v1422_v62 }
 0x362   :  { %v13799_v8 = vcombine.high %v1419_v22, %v1423_v28  ;;  %v13798_v21 = vcombine.low %v1419_v22, %v1423_v28 }
 0x363   :  { %8063 = vmatpush1.bf16.msra.mxu0 %v13740_v34  ;;  %8391 = vmatpush1.bf16.msra.mxu1 %v13742_v54  ;;  %v1426_v34 = vld [vmem:[#allocation5 + $0x11d0] sm:$0xff] }
 0x364   :  { %8073 = vmatprep.subr.bf16.mxu0 %v13749_v43  ;;  %8401 = vmatprep.subr.bf16.mxu1 %v13751_v20  ;;  %v1430_v54 = vld [vmem:[#allocation5 + $0x11f0] sm:$0xff]  ;;  %v1427_v43 = vld [vmem:[#allocation5 + $0x11d8] sm:$0xff] }
 0x365   :  { %v1431_v20 = vld [vmem:[#allocation5 + $0x11f8] sm:$0xff]  ;;  %v13805_v7 = vcombine.high %v1426_v34, %v1430_v54  ;;  %v13804_v3 = vcombine.low %v1426_v34, %v1430_v54 }
 0x366   :  { %8065 = vmatmul.mubr.bf16.vlgmr.msra.gmra.mrb[4].mxu0 %v16814_v51  ;;  %8393 = vmatmul.mubr.bf16.vlgmr.msra.gmra.mrb[4].mxu1 %v16814_v51  ;;  %v13766_v51 = vcombine.low %v1387_v13, %v1391_v37  ;;  %v13807_v32 = vcombine.high %v1427_v43, %v1431_v20  ;;  %v13806_v46 = vcombine.low %v1427_v43, %v1431_v20 }
 0x367   :  { %8074 = vmatpush1.bf16.msra.mxu0 %v13748_v0  ;;  %8402 = vmatpush1.bf16.msra.mxu1 %v13750_v47  ;;  %v1434_v0 = vld [vmem:[#allocation5 + $0x1210] sm:$0xff] }
 0x368   :  { %8075 = vmatprep.subr.bf16.mxu0 %v13757_v30  ;;  %8403 = vmatprep.subr.bf16.mxu1 %v13759_v11  ;;  %v1438_v47 = vld [vmem:[#allocation5 + $0x1230] sm:$0xff]  ;;  %v1435_v30 = vld [vmem:[#allocation5 + $0x1218] sm:$0xff] }
 0x369   :  { %8105 = vmatprep.mubr.bf16.mxu0 %v16817_v45  ;;  %8433 = vmatprep.mubr.bf16.mxu1 %v16817_v45  ;;  %v13783_v45 = vcombine.high %v1403_v2, %v1407_v60  ;;  %v1439_v11 = vld [vmem:[#allocation5 + $0x1238] sm:$0xff]  ;;  %v13813_v13 = vcombine.high %v1434_v0, %v1438_v47  ;;  %v13812_v29 = vcombine.low %v1434_v0, %v1438_v47 }
 0x36a   :  { %v13815_v37 = vcombine.high %v1435_v30, %v1439_v11  ;;  %v13814_v23 = vcombine.low %v1435_v30, %v1439_v11 }
 0x36b   :  { %8076 = vmatpush1.bf16.msra.mxu0 %v13756_v24  ;;  %8404 = vmatpush1.bf16.msra.mxu1 %v13758_v25  ;;  %v1442_v24 = vld [vmem:[#allocation5 + $0x1250] sm:$0xff] }
 0x36c   :  { %8077 = vmatprep.subr.bf16.mxu0 %v13765_v63  ;;  %8405 = vmatprep.subr.bf16.mxu1 %v13767_v5  ;;  %v1446_v25 = vld [vmem:[#allocation5 + $0x1270] sm:$0xff]  ;;  %v1443_v63 = vld [vmem:[#allocation5 + $0x1258] sm:$0xff] }
 0x36d   :  { %v1447_v5 = vld [vmem:[#allocation5 + $0x1278] sm:$0xff]  ;;  %v13821_v52 = vcombine.high %v1442_v24, %v1446_v25  ;;  %v13820_v6 = vcombine.low %v1442_v24, %v1446_v25 }
 0x36e   :  { %v13823_v14 = vcombine.high %v1443_v63, %v1447_v5  ;;  %v13822_v59 = vcombine.low %v1443_v63, %v1447_v5 }
 0x36f   :  { %8078 = vmatpush1.bf16.msra.mxu0 %v13764_v9  ;;  %8406 = vmatpush1.bf16.msra.mxu1 %v13766_v51  ;;  %v1450_v9 = vld [vmem:[#allocation5 + $0x1290] sm:$0xff] }
 0x370   :  { %8079 = vmatprep.subr.bf16.mxu0 %v13773_v55  ;;  %8407 = vmatprep.subr.bf16.mxu1 %v13775_v26  ;;  %v1454_v51 = vld [vmem:[#allocation5 + $0x12b0] sm:$0xff]  ;;  %v1451_v55 = vld [vmem:[#allocation5 + $0x1298] sm:$0xff] }
 0x371   :  { %v1455_v26 = vld [vmem:[#allocation5 + $0x12b8] sm:$0xff]  ;;  %v13829_v2 = vcombine.high %v1450_v9, %v1454_v51  ;;  %v13828_v35 = vcombine.low %v1450_v9, %v1454_v51 }
 0x372   :  { %v13831_v60 = vcombine.high %v1451_v55, %v1455_v26  ;;  %v13830_v17 = vcombine.low %v1451_v55, %v1455_v26 }
 0x373   :  { %8080 = vmatpush1.bf16.msra.mxu0 %v13772_v57  ;;  %8408 = vmatpush1.bf16.msra.mxu1 %v13774_v56  ;;  %v1458_v57 = vld [vmem:[#allocation5 + $0x12d0] sm:$0xff] }
 0x374   :  { %8081 = vmatprep.subr.bf16.mxu0 %v13781_v49  ;;  %8409 = vmatprep.subr.bf16.mxu1 %v13783_v45  ;;  %v1462_v56 = vld [vmem:[#allocation5 + $0x12f0] sm:$0xff]  ;;  %v1459_v49 = vld [vmem:[#allocation5 + $0x12d8] sm:$0xff] }
 0x375   :  { %v1463_v45 = vld [vmem:[#allocation5 + $0x12f8] sm:$0xff]  ;;  %v13837_v58 = vcombine.high %v1458_v57, %v1462_v56  ;;  %v13836_v50 = vcombine.low %v1458_v57, %v1462_v56 }
 0x376   :  { %v13839_v42 = vcombine.high %v1459_v49, %v1463_v45  ;;  %v13838_v62 = vcombine.low %v1459_v49, %v1463_v45 }
 0x377   :  { %8082 = vmatpush1.bf16.msra.mxu0 %v13780_v16  ;;  %8410 = vmatpush1.bf16.msra.mxu1 %v13782_v38  ;;  %v1466_v16 = vld [vmem:[#allocation5 + $0x1310] sm:$0xff] }
 0x378   :  { %8083 = vmatprep.subr.bf16.mxu0 %v13789_v10  ;;  %8411 = vmatprep.subr.bf16.mxu1 %v13791_v31  ;;  %v1470_v38 = vld [vmem:[#allocation5 + $0x1330] sm:$0xff]  ;;  %v1467_v10 = vld [vmem:[#allocation5 + $0x1318] sm:$0xff] }
 0x379   :  { %v1471_v31 = vld [vmem:[#allocation5 + $0x1338] sm:$0xff]  ;;  %v13845_v22 = vcombine.high %v1466_v16, %v1470_v38  ;;  %v13844_v34 = vcombine.low %v1466_v16, %v1470_v38 }
 0x37a   :  { %v13847_v28 = vcombine.high %v1467_v10, %v1471_v31  ;;  %v13846_v54 = vcombine.low %v1467_v10, %v1471_v31 }
 0x37b   :  { %8084 = vmatpush1.bf16.msra.mxu0 %v13788_v40  ;;  %8412 = vmatpush1.bf16.msra.mxu1 %v13790_v1  ;;  %v1474_v40 = vld [vmem:[#allocation5 + $0x1350] sm:$0xff] }
 0x37c   :  { %8085 = vmatprep.subr.bf16.mxu0 %v13797_v15  ;;  %8413 = vmatprep.subr.bf16.mxu1 %v13799_v8  ;;  %v1478_v1 = vld [vmem:[#allocation5 + $0x1370] sm:$0xff]  ;;  %v1475_v15 = vld [vmem:[#allocation5 + $0x1358] sm:$0xff] }
 0x37d   :  { %v1479_v8 = vld [vmem:[#allocation5 + $0x1378] sm:$0xff]  ;;  %v13853_v43 = vcombine.high %v1474_v40, %v1478_v1  ;;  %v13852_v0 = vcombine.low %v1474_v40, %v1478_v1 }
 0x37e   :  { %v13855_v20 = vcombine.high %v1475_v15, %v1479_v8  ;;  %v13854_v47 = vcombine.low %v1475_v15, %v1479_v8  ;;  %v1530_v8 = vld [vmem:[#allocation5 + $0x1510] sm:$0xff] }
 0x37f   :  { %8086 = vmatpush1.bf16.msra.mxu0 %v13796_v36  ;;  %8414 = vmatpush1.bf16.msra.mxu1 %v13798_v21  ;;  %v1482_v36 = vld [vmem:[#allocation5 + $0x1390] sm:$0xff] }
 0x380   :  { %8087 = vmatprep.subr.bf16.mxu0 %v13805_v7  ;;  %8415 = vmatprep.subr.bf16.mxu1 %v13807_v32  ;;  %v1486_v21 = vld [vmem:[#allocation5 + $0x13b0] sm:$0xff]  ;;  %v1483_v7 = vld [vmem:[#allocation5 + $0x1398] sm:$0xff] }
 0x381   :  { %v1487_v32 = vld [vmem:[#allocation5 + $0x13b8] sm:$0xff]  ;;  %v13861_v30 = vcombine.high %v1482_v36, %v1486_v21  ;;  %v13860_v24 = vcombine.low %v1482_v36, %v1486_v21 }
 0x382   :  { %v13863_v11 = vcombine.high %v1483_v7, %v1487_v32  ;;  %v13862_v25 = vcombine.low %v1483_v7, %v1487_v32  ;;  %v1538_v7 = vld [vmem:[#allocation5 + $0x1550] sm:$0xff] }
 0x383   :  { %8088 = vmatpush1.bf16.msra.mxu0 %v13804_v3  ;;  %8416 = vmatpush1.bf16.msra.mxu1 %v13806_v46  ;;  %v1490_v3 = vld [vmem:[#allocation5 + $0x13d0] sm:$0xff] }
 0x384   :  { %8089 = vmatprep.subr.bf16.mxu0 %v13813_v13  ;;  %8417 = vmatprep.subr.bf16.mxu1 %v13815_v37  ;;  %v1494_v46 = vld [vmem:[#allocation5 + $0x13f0] sm:$0xff]  ;;  %v1491_v13 = vld [vmem:[#allocation5 + $0x13d8] sm:$0xff] }
 0x385   :  { %v1495_v37 = vld [vmem:[#allocation5 + $0x13f8] sm:$0xff]  ;;  %v13869_v63 = vcombine.high %v1490_v3, %v1494_v46  ;;  %v13868_v9 = vcombine.low %v1490_v3, %v1494_v46  ;;  %v1542_v32 = vld [vmem:[#allocation5 + $0x1570] sm:$0xff] }
 0x386   :  { %v13871_v5 = vcombine.high %v1491_v13, %v1495_v37  ;;  %v13870_v51 = vcombine.low %v1491_v13, %v1495_v37  ;;  %v13917_v3 = vcombine.high %v1538_v7, %v1542_v32  ;;  %v1546_v13 = vld [vmem:[#allocation5 + $0x1590] sm:$0xff] }
 0x387   :  { %8090 = vmatpush1.bf16.msra.mxu0 %v13812_v29  ;;  %8418 = vmatpush1.bf16.msra.mxu1 %v13814_v23  ;;  %v1498_v29 = vld [vmem:[#allocation5 + $0x1410] sm:$0xff] }
 0x388   :  { %8091 = vmatprep.subr.bf16.mxu0 %v13821_v52  ;;  %8419 = vmatprep.subr.bf16.mxu1 %v13823_v14  ;;  %v1502_v23 = vld [vmem:[#allocation5 + $0x1430] sm:$0xff]  ;;  %v1499_v52 = vld [vmem:[#allocation5 + $0x1418] sm:$0xff] }
 0x389   :  { %v1503_v14 = vld [vmem:[#allocation5 + $0x1438] sm:$0xff]  ;;  %v13877_v55 = vcombine.high %v1498_v29, %v1502_v23  ;;  %v13876_v57 = vcombine.low %v1498_v29, %v1502_v23  ;;  %v1550_v37 = vld [vmem:[#allocation5 + $0x15b0] sm:$0xff] }
 0x38a   :  { %v13879_v26 = vcombine.high %v1499_v52, %v1503_v14  ;;  %v13878_v56 = vcombine.low %v1499_v52, %v1503_v14  ;;  %v13925_v29 = vcombine.high %v1546_v13, %v1550_v37  ;;  %v1554_v52 = vld [vmem:[#allocation5 + $0x15d0] sm:$0xff] }
 0x38b   :  { %8092 = vmatpush1.bf16.msra.mxu0 %v13820_v6  ;;  %8420 = vmatpush1.bf16.msra.mxu1 %v13822_v59  ;;  %v1506_v6 = vld [vmem:[#allocation5 + $0x1450] sm:$0xff] }
 0x38c   :  { %8093 = vmatprep.subr.bf16.mxu0 %v13829_v2  ;;  %8421 = vmatprep.subr.bf16.mxu1 %v13831_v60  ;;  %v1510_v59 = vld [vmem:[#allocation5 + $0x1470] sm:$0xff]  ;;  %v1507_v2 = vld [vmem:[#allocation5 + $0x1458] sm:$0xff] }
 0x38d   :  { %v1511_v60 = vld [vmem:[#allocation5 + $0x1478] sm:$0xff]  ;;  %v13885_v49 = vcombine.high %v1506_v6, %v1510_v59  ;;  %v13884_v16 = vcombine.low %v1506_v6, %v1510_v59  ;;  %v1558_v14 = vld [vmem:[#allocation5 + $0x15f0] sm:$0xff] }
 0x38e   :  { %v13887_v45 = vcombine.high %v1507_v2, %v1511_v60  ;;  %v13886_v38 = vcombine.low %v1507_v2, %v1511_v60  ;;  %v13933_v6 = vcombine.high %v1554_v52, %v1558_v14  ;;  %v1562_v2 = vld [vmem:[#allocation5 + $0x1610] sm:$0xff] }
 0x38f   :  { %8094 = vmatpush1.bf16.msra.mxu0 %v13828_v35  ;;  %8422 = vmatpush1.bf16.msra.mxu1 %v13830_v17  ;;  %v1514_v35 = vld [vmem:[#allocation5 + $0x1490] sm:$0xff] }
 0x390   :  { %8095 = vmatprep.subr.bf16.mxu0 %v13837_v58  ;;  %8423 = vmatprep.subr.bf16.mxu1 %v13839_v42  ;;  %v1518_v17 = vld [vmem:[#allocation5 + $0x14b0] sm:$0xff]  ;;  %v1515_v58 = vld [vmem:[#allocation5 + $0x1498] sm:$0xff] }
 0x391   :  { %v1519_v42 = vld [vmem:[#allocation5 + $0x14b8] sm:$0xff]  ;;  %v13893_v10 = vcombine.high %v1514_v35, %v1518_v17  ;;  %v13892_v40 = vcombine.low %v1514_v35, %v1518_v17  ;;  %v1566_v60 = vld [vmem:[#allocation5 + $0x1630] sm:$0xff] }
 0x392   :  { %v13895_v31 = vcombine.high %v1515_v58, %v1519_v42  ;;  %v13941_v35 = vcombine.high %v1562_v2, %v1566_v60 }
 0x393   :  { %8096 = vmatpush1.bf16.msra.mxu0 %v13836_v50  ;;  %8424 = vmatpush1.bf16.msra.mxu1 %v13838_v62  ;;  %v1522_v50 = vld [vmem:[#allocation5 + $0x14d0] sm:$0xff] }
 0x394   :  { %8097 = vmatprep.subr.bf16.mxu0 %v13845_v22  ;;  %8425 = vmatprep.subr.bf16.mxu1 %v13847_v28  ;;  %v1526_v62 = vld [vmem:[#allocation5 + $0x14f0] sm:$0xff]  ;;  %v1523_v22 = vld [vmem:[#allocation5 + $0x14d8] sm:$0xff] }
 0x395   :  { %v1527_v28 = vld [vmem:[#allocation5 + $0x14f8] sm:$0xff]  ;;  %v13901_v1 = vcombine.high %v1522_v50, %v1526_v62 }
 0x396   :  { %v13903_v15 = vcombine.high %v1523_v22, %v1527_v28  ;;  %v13902_v36 = vcombine.low %v1523_v22, %v1527_v28  ;;  %v1578_v22 = vld [vmem:[#allocation5 + $0x1690] sm:$0xff] }
 0x397   :  { %8098 = vmatpush1.bf16.msra.mxu0 %v13844_v34  ;;  %8426 = vmatpush1.bf16.msra.mxu1 %v13846_v54  ;;  %v1534_v34 = vld [vmem:[#allocation5 + $0x1530] sm:$0xff]  ;;  %v1531_v54 = vld [vmem:[#allocation5 + $0x1518] sm:$0xff] }
 0x398   :  { %8099 = vmatprep.subr.bf16.mxu0 %v13853_v43  ;;  %8427 = vmatprep.subr.bf16.mxu1 %v13855_v20  ;;  %v1535_v43 = vld [vmem:[#allocation5 + $0x1538] sm:$0xff]  ;;  %v13900_v20 = vcombine.low %v1522_v50, %v1526_v62  ;;  %v13909_v21 = vcombine.high %v1530_v8, %v1534_v34  ;;  %v1582_v28 = vld [vmem:[#allocation5 + $0x16b0] sm:$0xff] }
 0x39b   :  { %8100 = vmatpush1.bf16.msra.mxu0 %v13852_v0  ;;  %8428 = vmatpush1.bf16.msra.mxu1 %v13854_v47  ;;  %v1539_v0 = vld [vmem:[#allocation5 + $0x1558] sm:$0xff] }
 0x39c   :  { %8101 = vmatprep.subr.bf16.mxu0 %v13861_v30  ;;  %8429 = vmatprep.subr.bf16.mxu1 %v13863_v11  ;;  %v1543_v47 = vld [vmem:[#allocation5 + $0x1578] sm:$0xff]  ;;  %v13908_v30 = vcombine.low %v1530_v8, %v1534_v34  ;;  %v13910_v11 = vcombine.low %v1531_v54, %v1535_v43  ;;  %v13957_v8 = vcombine.high %v1578_v22, %v1582_v28 }
 0x39d   :  { %v13919_v46 = vcombine.high %v1539_v0, %v1543_v47 }
 0x39f   :  { %8102 = vmatpush1.bf16.msra.mxu0 %v13860_v24  ;;  %8430 = vmatpush1.bf16.msra.mxu1 %v13862_v25  ;;  %v1547_v24 = vld [vmem:[#allocation5 + $0x1598] sm:$0xff] }
 0x3a0   :  { %8103 = vmatprep.subr.bf16.mxu0 %v13869_v63  ;;  %8431 = vmatprep.subr.bf16.mxu1 %v13871_v5  ;;  %v1551_v25 = vld [vmem:[#allocation5 + $0x15b8] sm:$0xff]  ;;  %v13916_v63 = vcombine.low %v1538_v7, %v1542_v32  ;;  %v13918_v5 = vcombine.low %v1539_v0, %v1543_v47  ;;  %v1594_v0 = vld [vmem:[#allocation5 + $0x1710] sm:$0xff] }
 0x3a1   :  { %v13927_v23 = vcombine.high %v1547_v24, %v1551_v25  ;;  %v1598_v47 = vld [vmem:[#allocation5 + $0x1730] sm:$0xff] }
 0x3a3   :  { %8104 = vmatpush1.bf16.msra.mxu0 %v13868_v9  ;;  %8432 = vmatpush1.bf16.msra.mxu1 %v13870_v51  ;;  %v1555_v9 = vld [vmem:[#allocation5 + $0x15d8] sm:$0xff] }
 0x3a4   :  { %8114 = vmatprep.subr.bf16.mxu0 %v13877_v55  ;;  %8442 = vmatprep.subr.bf16.mxu1 %v13879_v26  ;;  %v1559_v51 = vld [vmem:[#allocation5 + $0x15f8] sm:$0xff]  ;;  %v13924_v55 = vcombine.low %v1546_v13, %v1550_v37  ;;  %v13926_v26 = vcombine.low %v1547_v24, %v1551_v25  ;;  %v13973_v13 = vcombine.high %v1594_v0, %v1598_v47  ;;  %v1602_v24 = vld [vmem:[#allocation5 + $0x1750] sm:$0xff] }
 0x3a5   :  { %v13935_v59 = vcombine.high %v1555_v9, %v1559_v51  ;;  %v1606_v25 = vld [vmem:[#allocation5 + $0x1770] sm:$0xff] }
 0x3a6   :  { %8106 = vmatmul.mubr.bf16.vlgmr.msra.gmra.mrb[4].mxu0 %v16884_v44  ;;  %8434 = vmatmul.mubr.bf16.vlgmr.msra.gmra.mrb[4].mxu1 %v16884_v44  ;;  %v13894_v44 = vcombine.low %v1515_v58, %v1519_v42  ;;  %v1570_v58 = vld [vmem:[#allocation5 + $0x1650] sm:$0xff] }
 0x3a7   :  { %8115 = vmatpush1.bf16.msra.mxu0 %v13876_v57  ;;  %8443 = vmatpush1.bf16.msra.mxu1 %v13878_v56  ;;  %v1563_v57 = vld [vmem:[#allocation5 + $0x1618] sm:$0xff]  ;;  %v1574_v42 = vld [vmem:[#allocation5 + $0x1670] sm:$0xff] }
 0x3a8   :  { %8116 = vmatprep.subr.bf16.mxu0 %v13885_v49  ;;  %8444 = vmatprep.subr.bf16.mxu1 %v13887_v45  ;;  %v1567_v56 = vld [vmem:[#allocation5 + $0x1638] sm:$0xff]  ;;  %v13932_v49 = vcombine.low %v1554_v52, %v1558_v14  ;;  %v13934_v45 = vcombine.low %v1555_v9, %v1559_v51  ;;  %v13949_v50 = vcombine.high %v1570_v58, %v1574_v42  ;;  %v1610_v9 = vld [vmem:[#allocation5 + $0x1790] sm:$0xff] }
 0x3a9   :  { %8146 = vmatprep.mubr.bf16.mxu0 %v16887_v19  ;;  %8474 = vmatprep.mubr.bf16.mxu1 %v16887_v19  ;;  %v13911_v19 = vcombine.high %v1531_v54, %v1535_v43  ;;  %v13943_v17 = vcombine.high %v1563_v57, %v1567_v56  ;;  %v1586_v54 = vld [vmem:[#allocation5 + $0x16d0] sm:$0xff]  ;;  %v13981_v52 = vcombine.high %v1602_v24, %v1606_v25 }
 0x3aa   :  { %v1590_v43 = vld [vmem:[#allocation5 + $0x16f0] sm:$0xff] }
 0x3ab   :  { %8117 = vmatpush1.bf16.msra.mxu0 %v13884_v16  ;;  %8445 = vmatpush1.bf16.msra.mxu1 %v13886_v38  ;;  %v1571_v16 = vld [vmem:[#allocation5 + $0x1658] sm:$0xff]  ;;  %v13965_v7 = vcombine.high %v1586_v54, %v1590_v43  ;;  %v1614_v51 = vld [vmem:[#allocation5 + $0x17b0] sm:$0xff] }
 0x3ac   :  { %8118 = vmatprep.subr.bf16.mxu0 %v13893_v10  ;;  %8446 = vmatprep.subr.bf16.mxu1 %v13895_v31  ;;  %v1575_v38 = vld [vmem:[#allocation5 + $0x1678] sm:$0xff]  ;;  %v13940_v10 = vcombine.low %v1562_v2, %v1566_v60  ;;  %v13942_v31 = vcombine.low %v1563_v57, %v1567_v56  ;;  %v13989_v2 = vcombine.high %v1610_v9, %v1614_v51  ;;  %v1618_v57 = vld [vmem:[#allocation5 + $0x17d0] sm:$0xff] }
 0x3ad   :  { %v13951_v62 = vcombine.high %v1571_v16, %v1575_v38  ;;  %v1622_v56 = vld [vmem:[#allocation5 + $0x17f0] sm:$0xff] }
 0x3af   :  { %8119 = vmatpush1.bf16.msra.mxu0 %v13892_v40  ;;  %8447 = vmatpush1.bf16.msra.mxu1 %v13894_v44  ;;  %v1579_v40 = vld [vmem:[#allocation5 + $0x1698] sm:$0xff] }
 0x3b0   :  { %8120 = vmatprep.subr.bf16.mxu0 %v13901_v1  ;;  %8448 = vmatprep.subr.bf16.mxu1 %v13903_v15  ;;  %v1583_v44 = vld [vmem:[#allocation5 + $0x16b8] sm:$0xff]  ;;  %v13948_v1 = vcombine.low %v1570_v58, %v1574_v42  ;;  %v13950_v15 = vcombine.low %v1571_v16, %v1575_v38  ;;  %v13997_v58 = vcombine.high %v1618_v57, %v1622_v56  ;;  %v1626_v16 = vld [vmem:[#allocation5 + $0x1810] sm:$0xff] }
 0x3b1   :  { %v13959_v34 = vcombine.high %v1579_v40, %v1583_v44  ;;  %v1630_v38 = vld [vmem:[#allocation5 + $0x1830] sm:$0xff] }
 0x3b3   :  { %8121 = vmatpush1.bf16.msra.mxu0 %v13900_v20  ;;  %8449 = vmatpush1.bf16.msra.mxu1 %v13902_v36  ;;  %v1587_v20 = vld [vmem:[#allocation5 + $0x16d8] sm:$0xff] }
 0x3b4   :  { %8122 = vmatprep.subr.bf16.mxu0 %v13909_v21  ;;  %8450 = vmatprep.subr.bf16.mxu1 %v13911_v19  ;;  %v1591_v36 = vld [vmem:[#allocation5 + $0x16f8] sm:$0xff]  ;;  %v13956_v21 = vcombine.low %v1578_v22, %v1582_v28  ;;  %v13958_v19 = vcombine.low %v1579_v40, %v1583_v44  ;;  %v14005_v22 = vcombine.high %v1626_v16, %v1630_v38  ;;  %v1634_v40 = vld [vmem:[#allocation5 + $0x1850] sm:$0xff] }
 0x3b5   :  { %v13967_v32 = vcombine.high %v1587_v20, %v1591_v36  ;;  %v1638_v44 = vld [vmem:[#allocation5 + $0x1870] sm:$0xff] }
 0x3b7   :  { %8123 = vmatpush1.bf16.msra.mxu0 %v13908_v30  ;;  %8451 = vmatpush1.bf16.msra.mxu1 %v13910_v11  ;;  %v1595_v30 = vld [vmem:[#allocation5 + $0x1718] sm:$0xff] }
 0x3b8   :  { %8124 = vmatprep.subr.bf16.mxu0 %v13917_v3  ;;  %8452 = vmatprep.subr.bf16.mxu1 %v13919_v46  ;;  %v1599_v11 = vld [vmem:[#allocation5 + $0x1738] sm:$0xff]  ;;  %v13964_v3 = vcombine.low %v1586_v54, %v1590_v43  ;;  %v13966_v46 = vcombine.low %v1587_v20, %v1591_v36  ;;  %v14013_v54 = vcombine.high %v1634_v40, %v1638_v44  ;;  %v1642_v20 = vld [vmem:[#allocation5 + $0x1890] sm:$0xff] }
 0x3b9   :  { %v13975_v37 = vcombine.high %v1595_v30, %v1599_v11  ;;  %v1646_v36 = vld [vmem:[#allocation5 + $0x18b0] sm:$0xff] }
 0x3bb   :  { %8125 = vmatpush1.bf16.msra.mxu0 %v13916_v63  ;;  %8453 = vmatpush1.bf16.msra.mxu1 %v13918_v5  ;;  %v1603_v63 = vld [vmem:[#allocation5 + $0x1758] sm:$0xff] }
 0x3bc   :  { %8126 = vmatprep.subr.bf16.mxu0 %v13925_v29  ;;  %8454 = vmatprep.subr.bf16.mxu1 %v13927_v23  ;;  %v1607_v5 = vld [vmem:[#allocation5 + $0x1778] sm:$0xff]  ;;  %v13972_v29 = vcombine.low %v1594_v0, %v1598_v47  ;;  %v13974_v23 = vcombine.low %v1595_v30, %v1599_v11  ;;  %v14021_v0 = vcombine.high %v1642_v20, %v1646_v36  ;;  %v1650_v30 = vld [vmem:[#allocation5 + $0x18d0] sm:$0xff] }
 0x3bd   :  { %v13983_v14 = vcombine.high %v1603_v63, %v1607_v5  ;;  %v1654_v11 = vld [vmem:[#allocation5 + $0x18f0] sm:$0xff] }
 0x3bf   :  { %8127 = vmatpush1.bf16.msra.mxu0 %v13924_v55  ;;  %8455 = vmatpush1.bf16.msra.mxu1 %v13926_v26  ;;  %v1611_v55 = vld [vmem:[#allocation5 + $0x1798] sm:$0xff] }
 0x3c0   :  { %8128 = vmatprep.subr.bf16.mxu0 %v13933_v6  ;;  %8456 = vmatprep.subr.bf16.mxu1 %v13935_v59  ;;  %v1615_v26 = vld [vmem:[#allocation5 + $0x17b8] sm:$0xff]  ;;  %v13980_v6 = vcombine.low %v1602_v24, %v1606_v25  ;;  %v13982_v59 = vcombine.low %v1603_v63, %v1607_v5  ;;  %v1658_v25 = vld [vmem:[#allocation5 + $0x1910] sm:$0xff] }
 0x3c1   :  { %v13991_v60 = vcombine.high %v1611_v55, %v1615_v26  ;;  %v1662_v63 = vld [vmem:[#allocation5 + $0x1930] sm:$0xff]  ;;  %v1659_v5 = vld [vmem:[#allocation5 + $0x1918] sm:$0xff] }
 0x3c3   :  { %8129 = vmatpush1.bf16.msra.mxu0 %v13932_v49  ;;  %8457 = vmatpush1.bf16.msra.mxu1 %v13934_v45  ;;  %v1619_v49 = vld [vmem:[#allocation5 + $0x17d8] sm:$0xff] }
 0x3c4   :  { %8130 = vmatprep.subr.bf16.mxu0 %v13941_v35  ;;  %8458 = vmatprep.subr.bf16.mxu1 %v13943_v17  ;;  %v1623_v45 = vld [vmem:[#allocation5 + $0x17f8] sm:$0xff]  ;;  %v13988_v35 = vcombine.low %v1610_v9, %v1614_v51  ;;  %v13990_v17 = vcombine.low %v1611_v55, %v1615_v26  ;;  %v1666_v9 = vld [vmem:[#allocation5 + $0x1950] sm:$0xff] }
 0x3c5   :  { %v13999_v42 = vcombine.high %v1619_v49, %v1623_v45  ;;  %v1670_v51 = vld [vmem:[#allocation5 + $0x1970] sm:$0xff]  ;;  %v1667_v55 = vld [vmem:[#allocation5 + $0x1958] sm:$0xff] }
 0x3c6   :  { %v1671_v26 = vld [vmem:[#allocation5 + $0x1978] sm:$0xff] }
 0x3c7   :  { %8131 = vmatpush1.bf16.msra.mxu0 %v13940_v10  ;;  %8459 = vmatpush1.bf16.msra.mxu1 %v13942_v31  ;;  %v1627_v10 = vld [vmem:[#allocation5 + $0x1818] sm:$0xff] }
 0x3c8   :  { %8132 = vmatprep.subr.bf16.mxu0 %v13949_v50  ;;  %8460 = vmatprep.subr.bf16.mxu1 %v13951_v62  ;;  %v1631_v31 = vld [vmem:[#allocation5 + $0x1838] sm:$0xff]  ;;  %v13996_v50 = vcombine.low %v1618_v57, %v1622_v56  ;;  %v13998_v62 = vcombine.low %v1619_v49, %v1623_v45  ;;  %v1674_v57 = vld [vmem:[#allocation5 + $0x1990] sm:$0xff] }
 0x3c9   :  { %v14007_v28 = vcombine.high %v1627_v10, %v1631_v31  ;;  %v1678_v56 = vld [vmem:[#allocation5 + $0x19b0] sm:$0xff]  ;;  %v1675_v49 = vld [vmem:[#allocation5 + $0x1998] sm:$0xff] }
 0x3ca   :  { %v1679_v45 = vld [vmem:[#allocation5 + $0x19b8] sm:$0xff] }
 0x3cb   :  { %8133 = vmatpush1.bf16.msra.mxu0 %v13948_v1  ;;  %8461 = vmatpush1.bf16.msra.mxu1 %v13950_v15  ;;  %v1635_v1 = vld [vmem:[#allocation5 + $0x1858] sm:$0xff] }
 0x3cc   :  { %8134 = vmatprep.subr.bf16.mxu0 %v13957_v8  ;;  %8462 = vmatprep.subr.bf16.mxu1 %v13959_v34  ;;  %v1639_v15 = vld [vmem:[#allocation5 + $0x1878] sm:$0xff]  ;;  %v14004_v8 = vcombine.low %v1626_v16, %v1630_v38  ;;  %v14006_v34 = vcombine.low %v1627_v10, %v1631_v31  ;;  %v1682_v16 = vld [vmem:[#allocation5 + $0x19d0] sm:$0xff] }
 0x3cd   :  { %v14015_v43 = vcombine.high %v1635_v1, %v1639_v15  ;;  %v1686_v38 = vld [vmem:[#allocation5 + $0x19f0] sm:$0xff]  ;;  %v1683_v10 = vld [vmem:[#allocation5 + $0x19d8] sm:$0xff] }
 0x3ce   :  { %v1687_v31 = vld [vmem:[#allocation5 + $0x19f8] sm:$0xff] }
 0x3cf   :  { %8135 = vmatpush1.bf16.msra.mxu0 %v13956_v21  ;;  %8463 = vmatpush1.bf16.msra.mxu1 %v13958_v19  ;;  %v1643_v21 = vld [vmem:[#allocation5 + $0x1898] sm:$0xff] }
 0x3d0   :  { %8136 = vmatprep.subr.bf16.mxu0 %v13965_v7  ;;  %8464 = vmatprep.subr.bf16.mxu1 %v13967_v32  ;;  %v1647_v19 = vld [vmem:[#allocation5 + $0x18b8] sm:$0xff]  ;;  %v14012_v7 = vcombine.low %v1634_v40, %v1638_v44  ;;  %v14014_v32 = vcombine.low %v1635_v1, %v1639_v15  ;;  %v1690_v40 = vld [vmem:[#allocation5 + $0x1a10] sm:$0xff] }
 0x3d1   :  { %v14023_v47 = vcombine.high %v1643_v21, %v1647_v19  ;;  %v1694_v44 = vld [vmem:[#allocation5 + $0x1a30] sm:$0xff]  ;;  %v1691_v1 = vld [vmem:[#allocation5 + $0x1a18] sm:$0xff] }
 0x3d2   :  { %v1695_v15 = vld [vmem:[#allocation5 + $0x1a38] sm:$0xff] }
 0x3d3   :  { %8137 = vmatpush1.bf16.msra.mxu0 %v13964_v3  ;;  %8465 = vmatpush1.bf16.msra.mxu1 %v13966_v46  ;;  %v1651_v3 = vld [vmem:[#allocation5 + $0x18d8] sm:$0xff] }
 0x3d4   :  { %8138 = vmatprep.subr.bf16.mxu0 %v13973_v13  ;;  %8466 = vmatprep.subr.bf16.mxu1 %v13975_v37  ;;  %v1655_v46 = vld [vmem:[#allocation5 + $0x18f8] sm:$0xff]  ;;  %v14020_v13 = vcombine.low %v1642_v20, %v1646_v36  ;;  %v14029_v37 = vcombine.high %v1650_v30, %v1654_v11  ;;  %v1698_v20 = vld [vmem:[#allocation5 + $0x1a50] sm:$0xff] }
 0x3d5   :  { %v14031_v24 = vcombine.high %v1651_v3, %v1655_v46  ;;  %v1702_v36 = vld [vmem:[#allocation5 + $0x1a70] sm:$0xff] }
 0x3d7   :  { %8139 = vmatpush1.bf16.msra.mxu0 %v13972_v29  ;;  %8467 = vmatpush1.bf16.msra.mxu1 %v13974_v23  ;;  %v1663_v29 = vld [vmem:[#allocation5 + $0x1938] sm:$0xff]  ;;  %v14028_v23 = vcombine.low %v1650_v30, %v1654_v11  ;;  %v1706_v30 = vld [vmem:[#allocation5 + $0x1a90] sm:$0xff] }
 0x3d8   :  { %8140 = vmatprep.subr.bf16.mxu0 %v13981_v52  ;;  %8468 = vmatprep.subr.bf16.mxu1 %v13983_v14  ;;  %v14030_v52 = vcombine.low %v1651_v3, %v1655_v46  ;;  %v14037_v14 = vcombine.high %v1658_v25, %v1662_v63  ;;  %v1710_v11 = vld [vmem:[#allocation5 + $0x1ab0] sm:$0xff]  ;;  %v1707_v3 = vld [vmem:[#allocation5 + $0x1a98] sm:$0xff] }
 0x3d9   :  { %v1711_v46 = vld [vmem:[#allocation5 + $0x1ab8] sm:$0xff] }
 0x3db   :  { %8141 = vmatpush1.bf16.msra.mxu0 %v13980_v6  ;;  %8469 = vmatpush1.bf16.msra.mxu1 %v13982_v59  ;;  %v14036_v6 = vcombine.low %v1658_v25, %v1662_v63  ;;  %v14038_v59 = vcombine.low %v1659_v5, %v1663_v29  ;;  %v1714_v25 = vld [vmem:[#allocation5 + $0x1ad0] sm:$0xff] }
 0x3dc   :  { %8142 = vmatprep.subr.bf16.mxu0 %v13989_v2  ;;  %8470 = vmatprep.subr.bf16.mxu1 %v13991_v60  ;;  %v14045_v2 = vcombine.high %v1666_v9, %v1670_v51  ;;  %v14047_v60 = vcombine.high %v1667_v55, %v1671_v26  ;;  %v1718_v63 = vld [vmem:[#allocation5 + $0x1af0] sm:$0xff] }
 0x3df   :  { %8143 = vmatpush1.bf16.msra.mxu0 %v13988_v35  ;;  %8471 = vmatpush1.bf16.msra.mxu1 %v13990_v17  ;;  %v14044_v35 = vcombine.low %v1666_v9, %v1670_v51  ;;  %v14046_v17 = vcombine.low %v1667_v55, %v1671_v26  ;;  %v1722_v9 = vld [vmem:[#allocation5 + $0x1b10] sm:$0xff]  ;;  %v1723_v55 = vld [vmem:[#allocation5 + $0x1b18] sm:$0xff] }
 0x3e0   :  { %8144 = vmatprep.subr.bf16.mxu0 %v13997_v58  ;;  %8472 = vmatprep.subr.bf16.mxu1 %v13999_v42  ;;  %v14053_v58 = vcombine.high %v1674_v57, %v1678_v56  ;;  %v14055_v42 = vcombine.high %v1675_v49, %v1679_v45  ;;  %v1726_v51 = vld [vmem:[#allocation5 + $0x1b30] sm:$0xff]  ;;  %v1727_v26 = vld [vmem:[#allocation5 + $0x1b38] sm:$0xff] }
 0x3e3   :  { %8145 = vmatpush1.bf16.msra.mxu0 %v13996_v50  ;;  %8473 = vmatpush1.bf16.msra.mxu1 %v13998_v62  ;;  %v14052_v50 = vcombine.low %v1674_v57, %v1678_v56  ;;  %v14054_v62 = vcombine.low %v1675_v49, %v1679_v45  ;;  %v1730_v57 = vld [vmem:[#allocation5 + $0x1b50] sm:$0xff]  ;;  %v1731_v49 = vld [vmem:[#allocation5 + $0x1b58] sm:$0xff] }
 0x3e4   :  { %8155 = vmatprep.subr.bf16.mxu0 %v14005_v22  ;;  %8483 = vmatprep.subr.bf16.mxu1 %v14007_v28  ;;  %v14061_v22 = vcombine.high %v1682_v16, %v1686_v38  ;;  %v14063_v28 = vcombine.high %v1683_v10, %v1687_v31  ;;  %v1734_v56 = vld [vmem:[#allocation5 + $0x1b70] sm:$0xff]  ;;  %v1735_v45 = vld [vmem:[#allocation5 + $0x1b78] sm:$0xff] }
 0x3e6   :  { %8147 = vmatmul.mubr.bf16.vlgmr.msra.gmra.mrb[4].mxu0 %v16954_v39  ;;  %8475 = vmatmul.mubr.bf16.vlgmr.msra.gmra.mrb[4].mxu1 %v16954_v39  ;;  %v14022_v39 = vcombine.low %v1643_v21, %v1647_v19  ;;  %v1699_v21 = vld [vmem:[#allocation5 + $0x1a58] sm:$0xff] }
 0x3e7   :  { %8156 = vmatpush1.bf16.msra.mxu0 %v14004_v8  ;;  %8484 = vmatpush1.bf16.msra.mxu1 %v14006_v34  ;;  %v14060_v8 = vcombine.low %v1682_v16, %v1686_v38  ;;  %v14062_v34 = vcombine.low %v1683_v10, %v1687_v31  ;;  %v1703_v19 = vld [vmem:[#allocation5 + $0x1a78] sm:$0xff]  ;;  %v1738_v16 = vld [vmem:[#allocation5 + $0x1b90] sm:$0xff] }
 0x3e8   :  { %8157 = vmatprep.subr.bf16.mxu0 %v14013_v54  ;;  %8485 = vmatprep.subr.bf16.mxu1 %v14015_v43  ;;  %v14069_v54 = vcombine.high %v1690_v40, %v1694_v44  ;;  %v14071_v43 = vcombine.high %v1691_v1, %v1695_v15  ;;  %v1742_v38 = vld [vmem:[#allocation5 + $0x1bb0] sm:$0xff]  ;;  %v1739_v10 = vld [vmem:[#allocation5 + $0x1b98] sm:$0xff] }
 0x3e9   :  { %8187 = vmatprep.mubr.bf16.mxu0 %v16957_v53  ;;  %8515 = vmatprep.mubr.bf16.mxu1 %v16957_v53  ;;  %v14039_v53 = vcombine.high %v1659_v5, %v1663_v29  ;;  %v1715_v5 = vld [vmem:[#allocation5 + $0x1ad8] sm:$0xff] }
 0x3ea   :  { %v1719_v29 = vld [vmem:[#allocation5 + $0x1af8] sm:$0xff] }
 0x3eb   :  { %8158 = vmatpush1.bf16.msra.mxu0 %v14012_v7  ;;  %8486 = vmatpush1.bf16.msra.mxu1 %v14014_v32  ;;  %v14068_v7 = vcombine.low %v1690_v40, %v1694_v44  ;;  %v14070_v32 = vcombine.low %v1691_v1, %v1695_v15  ;;  %v1743_v31 = vld [vmem:[#allocation5 + $0x1bb8] sm:$0xff]  ;;  %v1746_v40 = vld [vmem:[#allocation5 + $0x1bd0] sm:$0xff] }
 0x3ec   :  { %8159 = vmatprep.subr.bf16.mxu0 %v14021_v0  ;;  %8487 = vmatprep.subr.bf16.mxu1 %v14023_v47  ;;  %v14077_v0 = vcombine.high %v1698_v20, %v1702_v36  ;;  %v14079_v47 = vcombine.high %v1699_v21, %v1703_v19  ;;  %v1750_v44 = vld [vmem:[#allocation5 + $0x1bf0] sm:$0xff]  ;;  %v1747_v1 = vld [vmem:[#allocation5 + $0x1bd8] sm:$0xff] }
 0x3ed   :  { %v1751_v15 = vld [vmem:[#allocation5 + $0x1bf8] sm:$0xff] }
 0x3ef   :  { %8160 = vmatpush1.bf16.msra.mxu0 %v14020_v13  ;;  %8488 = vmatpush1.bf16.msra.mxu1 %v14022_v39  ;;  %v14076_v13 = vcombine.low %v1698_v20, %v1702_v36  ;;  %v14078_v39 = vcombine.low %v1699_v21, %v1703_v19  ;;  %v1754_v20 = vld [vmem:[#allocation5 + $0x1c10] sm:$0xff]  ;;  %v1755_v21 = vld [vmem:[#allocation5 + $0x1c18] sm:$0xff] }
 0x3f0   :  { %8161 = vmatprep.subr.bf16.mxu0 %v14029_v37  ;;  %8489 = vmatprep.subr.bf16.mxu1 %v14031_v24  ;;  %v14085_v37 = vcombine.high %v1706_v30, %v1710_v11  ;;  %v14087_v24 = vcombine.high %v1707_v3, %v1711_v46  ;;  %v1758_v36 = vld [vmem:[#allocation5 + $0x1c30] sm:$0xff]  ;;  %v1759_v19 = vld [vmem:[#allocation5 + $0x1c38] sm:$0xff] }
 0x3f3   :  { %8162 = vmatpush1.bf16.msra.mxu0 %v14028_v23  ;;  %8490 = vmatpush1.bf16.msra.mxu1 %v14030_v52  ;;  %v14084_v23 = vcombine.low %v1706_v30, %v1710_v11  ;;  %v14086_v52 = vcombine.low %v1707_v3, %v1711_v46  ;;  %v1762_v30 = vld [vmem:[#allocation5 + $0x1c50] sm:$0xff]  ;;  %v1763_v3 = vld [vmem:[#allocation5 + $0x1c58] sm:$0xff] }
 0x3f4   :  { %8163 = vmatprep.subr.bf16.mxu0 %v14037_v14  ;;  %8491 = vmatprep.subr.bf16.mxu1 %v14039_v53  ;;  %v14093_v14 = vcombine.high %v1714_v25, %v1718_v63  ;;  %v14095_v53 = vcombine.high %v1715_v5, %v1719_v29  ;;  %v1766_v11 = vld [vmem:[#allocation5 + $0x1c70] sm:$0xff]  ;;  %v1767_v46 = vld [vmem:[#allocation5 + $0x1c78] sm:$0xff] }
 0x3f7   :  { %8164 = vmatpush1.bf16.msra.mxu0 %v14036_v6  ;;  %8492 = vmatpush1.bf16.msra.mxu1 %v14038_v59  ;;  %v14092_v6 = vcombine.low %v1714_v25, %v1718_v63  ;;  %v14094_v59 = vcombine.low %v1715_v5, %v1719_v29  ;;  %v1770_v25 = vld [vmem:[#allocation5 + $0x1c90] sm:$0xff]  ;;  %v1771_v5 = vld [vmem:[#allocation5 + $0x1c98] sm:$0xff] }
 0x3f8   :  { %8165 = vmatprep.subr.bf16.mxu0 %v14045_v2  ;;  %8493 = vmatprep.subr.bf16.mxu1 %v14047_v60  ;;  %v14101_v2 = vcombine.high %v1722_v9, %v1726_v51  ;;  %v14103_v60 = vcombine.high %v1723_v55, %v1727_v26  ;;  %v1774_v63 = vld [vmem:[#allocation5 + $0x1cb0] sm:$0xff]  ;;  %v1775_v29 = vld [vmem:[#allocation5 + $0x1cb8] sm:$0xff] }
 0x3fb   :  { %8166 = vmatpush1.bf16.msra.mxu0 %v14044_v35  ;;  %8494 = vmatpush1.bf16.msra.mxu1 %v14046_v17  ;;  %v14100_v35 = vcombine.low %v1722_v9, %v1726_v51  ;;  %v14102_v17 = vcombine.low %v1723_v55, %v1727_v26  ;;  %v1778_v9 = vld [vmem:[#allocation5 + $0x1cd0] sm:$0xff]  ;;  %v1779_v55 = vld [vmem:[#allocation5 + $0x1cd8] sm:$0xff] }
 0x3fc   :  { %8167 = vmatprep.subr.bf16.mxu0 %v14053_v58  ;;  %8495 = vmatprep.subr.bf16.mxu1 %v14055_v42  ;;  %v14109_v58 = vcombine.high %v1730_v57, %v1734_v56  ;;  %v14111_v42 = vcombine.high %v1731_v49, %v1735_v45  ;;  %v1782_v51 = vld [vmem:[#allocation5 + $0x1cf0] sm:$0xff]  ;;  %v1783_v26 = vld [vmem:[#allocation5 + $0x1cf8] sm:$0xff] }
 0x3ff   :  { %8168 = vmatpush1.bf16.msra.mxu0 %v14052_v50  ;;  %8496 = vmatpush1.bf16.msra.mxu1 %v14054_v62  ;;  %v14108_v50 = vcombine.low %v1730_v57, %v1734_v56  ;;  %v14110_v62 = vcombine.low %v1731_v49, %v1735_v45  ;;  %v1790_v57 = vld [vmem:[#allocation5 + $0x1d30] sm:$0xff]  ;;  %v1787_v56 = vld [vmem:[#allocation5 + $0x1d18] sm:$0xff]  ;;  %v14156_v45 = vcombine.low %v1778_v9, %v1782_v51 }
 0x400   :  { %8169 = vmatprep.subr.bf16.mxu0 %v14061_v22  ;;  %8497 = vmatprep.subr.bf16.mxu1 %v14063_v28  ;;  %v14117_v22 = vcombine.high %v1738_v16, %v1742_v38  ;;  %v14119_v28 = vcombine.high %v1739_v10, %v1743_v31  ;;  %v1791_v49 = vld [vmem:[#allocation5 + $0x1d38] sm:$0xff] }
 0x403   :  { %8170 = vmatpush1.bf16.msra.mxu0 %v14060_v8  ;;  %8498 = vmatpush1.bf16.msra.mxu1 %v14062_v34  ;;  %v14116_v8 = vcombine.low %v1738_v16, %v1742_v38  ;;  %v14118_v34 = vcombine.low %v1739_v10, %v1743_v31  ;;  %v1795_v16 = vld [vmem:[#allocation5 + $0x1d58] sm:$0xff]  ;;  %v14166_v31 = vcombine.low %v1787_v56, %v1791_v49 }
 0x404   :  { %8171 = vmatprep.subr.bf16.mxu0 %v14069_v54  ;;  %8499 = vmatprep.subr.bf16.mxu1 %v14071_v43  ;;  %v14125_v54 = vcombine.high %v1746_v40, %v1750_v44  ;;  %v14127_v43 = vcombine.high %v1747_v1, %v1751_v15  ;;  %v1799_v38 = vld [vmem:[#allocation5 + $0x1d78] sm:$0xff] }
 0x407   :  { %8172 = vmatpush1.bf16.msra.mxu0 %v14068_v7  ;;  %8500 = vmatpush1.bf16.msra.mxu1 %v14070_v32  ;;  %v14124_v7 = vcombine.low %v1746_v40, %v1750_v44  ;;  %v14126_v32 = vcombine.low %v1747_v1, %v1751_v15  ;;  %v1803_v40 = vld [vmem:[#allocation5 + $0x1d98] sm:$0xff]  ;;  %v14174_v15 = vcombine.low %v1795_v16, %v1799_v38 }
 0x408   :  { %8173 = vmatprep.subr.bf16.mxu0 %v14077_v0  ;;  %8501 = vmatprep.subr.bf16.mxu1 %v14079_v47  ;;  %v14133_v0 = vcombine.high %v1754_v20, %v1758_v36  ;;  %v14135_v47 = vcombine.high %v1755_v21, %v1759_v19  ;;  %v1807_v44 = vld [vmem:[#allocation5 + $0x1db8] sm:$0xff] }
 0x40b   :  { %8174 = vmatpush1.bf16.msra.mxu0 %v14076_v13  ;;  %8502 = vmatpush1.bf16.msra.mxu1 %v14078_v39  ;;  %v14132_v13 = vcombine.low %v1754_v20, %v1758_v36  ;;  %v14134_v39 = vcombine.low %v1755_v21, %v1759_v19  ;;  %v1811_v20 = vld [vmem:[#allocation5 + $0x1dd8] sm:$0xff]  ;;  %v14182_v19 = vcombine.low %v1803_v40, %v1807_v44 }
 0x40c   :  { %8175 = vmatprep.subr.bf16.mxu0 %v14085_v37  ;;  %8503 = vmatprep.subr.bf16.mxu1 %v14087_v24  ;;  %v14141_v37 = vcombine.high %v1762_v30, %v1766_v11  ;;  %v14143_v24 = vcombine.high %v1763_v3, %v1767_v46  ;;  %v1815_v36 = vld [vmem:[#allocation5 + $0x1df8] sm:$0xff] }
 0x40f   :  { %8176 = vmatpush1.bf16.msra.mxu0 %v14084_v23  ;;  %8504 = vmatpush1.bf16.msra.mxu1 %v14086_v52  ;;  %v14140_v23 = vcombine.low %v1762_v30, %v1766_v11  ;;  %v14142_v52 = vcombine.low %v1763_v3, %v1767_v46  ;;  %v1819_v30 = vld [vmem:[#allocation5 + $0x1e18] sm:$0xff]  ;;  %v14190_v46 = vcombine.low %v1811_v20, %v1815_v36 }
 0x410   :  { %8177 = vmatprep.subr.bf16.mxu0 %v14093_v14  ;;  %8505 = vmatprep.subr.bf16.mxu1 %v14095_v53  ;;  %v14149_v14 = vcombine.high %v1770_v25, %v1774_v63  ;;  %v14151_v53 = vcombine.high %v1771_v5, %v1775_v29  ;;  %v1823_v11 = vld [vmem:[#allocation5 + $0x1e38] sm:$0xff] }
 0x413   :  { %8178 = vmatpush1.bf16.msra.mxu0 %v14092_v6  ;;  %8506 = vmatpush1.bf16.msra.mxu1 %v14094_v59  ;;  %v14148_v6 = vcombine.low %v1770_v25, %v1774_v63  ;;  %v14157_v59 = vcombine.high %v1778_v9, %v1782_v51  ;;  %v1827_v25 = vld [vmem:[#allocation5 + $0x1e58] sm:$0xff] }
 0x414   :  { %8179 = vmatprep.subr.bf16.mxu0 %v14101_v2  ;;  %8507 = vmatprep.subr.bf16.mxu1 %v14103_v60  ;;  %v14159_v2 = vcombine.high %v1779_v55, %v1783_v26  ;;  %v1786_v60 = vld [vmem:[#allocation5 + $0x1d10] sm:$0xff]  ;;  %v1831_v63 = vld [vmem:[#allocation5 + $0x1e78] sm:$0xff] }
 0x415   :  { %v14164_v10 = vcombine.low %v1786_v60, %v1790_v57  ;;  %v1835_v9 = vld [vmem:[#allocation5 + $0x1e98] sm:$0xff] }
 0x416   :  { %v1839_v51 = vld [vmem:[#allocation5 + $0x1eb8] sm:$0xff] }
 0x417   :  { %8180 = vmatpush1.bf16.msra.mxu0 %v14100_v35  ;;  %8508 = vmatpush1.bf16.msra.mxu1 %v14102_v17  ;;  %v14158_v35 = vcombine.low %v1779_v55, %v1783_v26  ;;  %v14165_v17 = vcombine.high %v1786_v60, %v1790_v57  ;;  %v14206_v26 = vcombine.low %v1827_v25, %v1831_v63  ;;  %v1843_v60 = vld [vmem:[#allocation5 + $0x1ed8] sm:$0xff] }
 0x418   :  { %8181 = vmatprep.subr.bf16.mxu0 %v14109_v58  ;;  %8509 = vmatprep.subr.bf16.mxu1 %v14111_v42  ;;  %v1794_v58 = vld [vmem:[#allocation5 + $0x1d50] sm:$0xff]  ;;  %v1847_v57 = vld [vmem:[#allocation5 + $0x1ef8] sm:$0xff] }
 0x419   :  { %v1798_v42 = vld [vmem:[#allocation5 + $0x1d70] sm:$0xff] }
 0x41a   :  { %v14172_v1 = vcombine.low %v1794_v58, %v1798_v42 }
 0x41b   :  { %8182 = vmatpush1.bf16.msra.mxu0 %v14108_v50  ;;  %8510 = vmatpush1.bf16.msra.mxu1 %v14110_v62  ;;  %v14173_v50 = vcombine.high %v1794_v58, %v1798_v42  ;;  %v14175_v62 = vcombine.high %v1795_v16, %v1799_v38  ;;  %v1851_v58 = vld [vmem:[#allocation5 + $0x1f18] sm:$0xff]  ;;  %v14222_v38 = vcombine.low %v1843_v60, %v1847_v57 }
 0x41c   :  { %8183 = vmatprep.subr.bf16.mxu0 %v14117_v22  ;;  %8511 = vmatprep.subr.bf16.mxu1 %v14119_v28  ;;  %v1802_v22 = vld [vmem:[#allocation5 + $0x1d90] sm:$0xff]  ;;  %v1855_v42 = vld [vmem:[#allocation5 + $0x1f38] sm:$0xff] }
 0x41d   :  { %v1806_v28 = vld [vmem:[#allocation5 + $0x1db0] sm:$0xff] }
 0x41e   :  { %v14180_v21 = vcombine.low %v1802_v22, %v1806_v28 }
 0x41f   :  { %8184 = vmatpush1.bf16.msra.mxu0 %v14116_v8  ;;  %8512 = vmatpush1.bf16.msra.mxu1 %v14118_v34  ;;  %v14181_v8 = vcombine.high %v1802_v22, %v1806_v28  ;;  %v14183_v34 = vcombine.high %v1803_v40, %v1807_v44  ;;  %v1859_v22 = vld [vmem:[#allocation5 + $0x1f58] sm:$0xff]  ;;  %v14230_v44 = vcombine.low %v1851_v58, %v1855_v42 }
 0x420   :  { %8185 = vmatprep.subr.bf16.mxu0 %v14125_v54  ;;  %8513 = vmatprep.subr.bf16.mxu1 %v14127_v43  ;;  %v1810_v54 = vld [vmem:[#allocation5 + $0x1dd0] sm:$0xff]  ;;  %v1863_v28 = vld [vmem:[#allocation5 + $0x1f78] sm:$0xff] }
 0x421   :  { %v1814_v43 = vld [vmem:[#allocation5 + $0x1df0] sm:$0xff] }
 0x422   :  { %v14188_v3 = vcombine.low %v1810_v54, %v1814_v43 }
 0x423   :  { %8186 = vmatpush1.bf16.msra.mxu0 %v14124_v7  ;;  %8514 = vmatpush1.bf16.msra.mxu1 %v14126_v32  ;;  %v14189_v7 = vcombine.high %v1810_v54, %v1814_v43  ;;  %v14191_v32 = vcombine.high %v1811_v20, %v1815_v36  ;;  %v1867_v54 = vld [vmem:[#allocation5 + $0x1f98] sm:$0xff]  ;;  %v14238_v36 = vcombine.low %v1859_v22, %v1863_v28 }
 0x424   :  { %8196 = vmatprep.subr.bf16.mxu0 %v14133_v0  ;;  %8524 = vmatprep.subr.bf16.mxu1 %v14135_v47  ;;  %v1818_v0 = vld [vmem:[#allocation5 + $0x1e10] sm:$0xff]  ;;  %v1871_v43 = vld [vmem:[#allocation5 + $0x1fb8] sm:$0xff] }
 0x425   :  { %v1822_v47 = vld [vmem:[#allocation5 + $0x1e30] sm:$0xff] }
 0x426   :  { %8188 = vmatmul.mubr.bf16.vlgmr.msra.gmra.mrb[4].mxu0 %v17008_v48  ;;  %8516 = vmatmul.mubr.bf16.vlgmr.msra.gmra.mrb[4].mxu1 %v17008_v48  ;;  %v14150_v48 = vcombine.low %v1771_v5, %v1775_v29  ;;  %v14196_v5 = vcombine.low %v1818_v0, %v1822_v47  ;;  %v14198_v29 = vcombine.low %v1819_v30, %v1823_v11 }
 0x427   :  { %8197 = vmatpush1.bf16.msra.mxu0 %v14132_v13  ;;  %8525 = vmatpush1.bf16.msra.mxu1 %v14134_v39  ;;  %v14197_v13 = vcombine.high %v1818_v0, %v1822_v47  ;;  %v14199_v39 = vcombine.high %v1819_v30, %v1823_v11  ;;  %v1875_v0 = vld [vmem:[#allocation5 + $0x1fd8] sm:$0xff]  ;;  %v14246_v11 = vcombine.low %v1867_v54, %v1871_v43 }
 0x428   :  { %8198 = vmatprep.subr.bf16.mxu0 %v14141_v37  ;;  %8526 = vmatprep.subr.bf16.mxu1 %v14143_v24  ;;  %v1826_v37 = vld [vmem:[#allocation5 + $0x1e50] sm:$0xff]  ;;  %v1879_v47 = vld [vmem:[#allocation5 + $0x1ff8] sm:$0xff] }
 0x429   :  { %8228 = vmatprep.mubr.bf16.mxu0 %v17011_v12  ;;  %8556 = vmatprep.mubr.bf16.mxu1 %v17011_v12  ;;  %v14167_v12 = vcombine.high %v1787_v56, %v1791_v49  ;;  %v1830_v24 = vld [vmem:[#allocation5 + $0x1e70] sm:$0xff]  ;;  %v14214_v49 = vcombine.low %v1835_v9, %v1839_v51 }
 0x42a   :  { %v14204_v55 = vcombine.low %v1826_v37, %v1830_v24 }
 0x42b   :  { %8199 = vmatpush1.bf16.msra.mxu0 %v14140_v23  ;;  %8527 = vmatpush1.bf16.msra.mxu1 %v14142_v52  ;;  %v14205_v23 = vcombine.high %v1826_v37, %v1830_v24  ;;  %v14207_v52 = vcombine.high %v1827_v25, %v1831_v63  ;;  %v15223_v37 = vld [vmem:[#allocation8 + $0x4] ss:$16 sps:$4 sm:$0xff]   ;;  %v15226_v24 = vld [vmem:[#allocation8 + $0xc] ss:$16 sps:$4 sm:$0xff]   ;;  %v15221_v25 = vld [vmem:[#allocation8] ss:$16 sps:$4 sm:$0xff]  }
 0x42c   :  { %8200 = vmatprep.subr.bf16.mxu0 %v14149_v14  ;;  %8528 = vmatprep.subr.bf16.mxu1 %v14151_v53  ;;  %v1834_v14 = vld [vmem:[#allocation5 + $0x1e90] sm:$0xff] }
 0x42d   :  { %v1838_v53 = vld [vmem:[#allocation5 + $0x1eb0] sm:$0xff] }
 0x42e   :  { %v14212_v56 = vcombine.low %v1834_v14, %v1838_v53  ;;  %v15224_v63 = vld [vmem:[#allocation8 + $0x8] ss:$16 sps:$4 sm:$0xff]  }
 0x42f   :  { %8201 = vmatpush1.bf16.msra.mxu0 %v14148_v6  ;;  %8529 = vmatpush1.bf16.msra.mxu1 %v14150_v48  ;;  %v14213_v6 = vcombine.high %v1834_v14, %v1838_v53  ;;  %v14215_v48 = vcombine.high %v1835_v9, %v1839_v51  ;;  %v15227_v53 = vld [vmem:[#allocation8 + $0x20] ss:$16 sps:$4 sm:$0xff]   ;;  %v15230_v9 = vld [vmem:[#allocation8 + $0x28] ss:$16 sps:$4 sm:$0xff]   ;;  %v15235_v51 = vld [vmem:[#allocation8 + $0x44] ss:$16 sps:$4 sm:$0xff]  }
 0x430   :  { %8202 = vmatprep.subr.bf16.mxu0 %v14157_v59  ;;  %8530 = vmatprep.subr.bf16.mxu1 %v14159_v2  ;;  %v1842_v59 = vld [vmem:[#allocation5 + $0x1ed0] sm:$0xff] }
 0x431   :  { %v1846_v2 = vld [vmem:[#allocation5 + $0x1ef0] sm:$0xff] }
 0x432   :  { %v14220_v16 = vcombine.low %v1842_v59, %v1846_v2 }
 0x433   :  { %8203 = vmatpush1.bf16.msra.mxu0 %v14156_v45  ;;  %8531 = vmatpush1.bf16.msra.mxu1 %v14158_v35  ;;  %v14221_v45 = vcombine.high %v1842_v59, %v1846_v2  ;;  %v14223_v35 = vcombine.high %v1843_v60, %v1847_v57  ;;  %v15244_v59 = vld [vmem:[#allocation8 + $0x6c] ss:$16 sps:$4 sm:$0xff]   ;;  %v15242_v2 = vld [vmem:[#allocation8 + $0x68] ss:$16 sps:$4 sm:$0xff]   ;;  %v15247_v60 = vld [vmem:[#allocation8 + $0x84] ss:$16 sps:$4 sm:$0xff]  }
 0x434   :  { %8204 = vmatprep.subr.bf16.mxu0 %v14165_v17  ;;  %8532 = vmatprep.subr.bf16.mxu1 %v14167_v12  ;;  %v1850_v17 = vld [vmem:[#allocation5 + $0x1f10] sm:$0xff] }
 0x435   :  { %v1854_v12 = vld [vmem:[#allocation5 + $0x1f30] sm:$0xff] }
 0x436   :  { %v14228_v40 = vcombine.low %v1850_v17, %v1854_v12  ;;  %v15250_v57 = vld [vmem:[#allocation8 + $0x8c] ss:$16 sps:$4 sm:$0xff]  }
 0x437   :  { %8205 = vmatpush1.bf16.msra.mxu0 %v14164_v10  ;;  %8533 = vmatpush1.bf16.msra.mxu1 %v14166_v31  ;;  %v14229_v10 = vcombine.high %v1850_v17, %v1854_v12  ;;  %v14231_v31 = vcombine.high %v1851_v58, %v1855_v42  ;;  %v15251_v17 = vld [vmem:[#allocation8 + $0xa0] ss:$16 sps:$4 sm:$0xff]   ;;  %v15254_v12 = vld [vmem:[#allocation8 + $0xa8] ss:$16 sps:$4 sm:$0xff]   ;;  %v15259_v58 = vld [vmem:[#allocation8 + $0xc4] ss:$16 sps:$4 sm:$0xff]  }
 0x438   :  { %8206 = vmatprep.subr.bf16.mxu0 %v14173_v50  ;;  %8534 = vmatprep.subr.bf16.mxu1 %v14175_v62  ;;  %v1858_v50 = vld [vmem:[#allocation5 + $0x1f50] sm:$0xff] }
 0x439   :  { %v1862_v62 = vld [vmem:[#allocation5 + $0x1f70] sm:$0xff] }
 0x43a   :  { %v14236_v20 = vcombine.low %v1858_v50, %v1862_v62  ;;  %v15262_v42 = vld [vmem:[#allocation8 + $0xcc] ss:$16 sps:$4 sm:$0xff]  }
 0x43b   :  { %8207 = vmatpush1.bf16.msra.mxu0 %v14172_v1  ;;  %8535 = vmatpush1.bf16.msra.mxu1 %v14174_v15  ;;  %v14237_v1 = vcombine.high %v1858_v50, %v1862_v62  ;;  %v14239_v15 = vcombine.high %v1859_v22, %v1863_v28  ;;  %v15263_v50 = vld [vmem:[#allocation8 + $0xe0] ss:$16 sps:$4 sm:$0xff]   ;;  %v15266_v62 = vld [vmem:[#allocation8 + $0xe8] ss:$16 sps:$4 sm:$0xff]   ;;  %v15271_v22 = vld [vmem:[#allocation8 + $0x104] ss:$16 sps:$4 sm:$0xff]  }
 0x43c   :  { %8208 = vmatprep.subr.bf16.mxu0 %v14181_v8  ;;  %8536 = vmatprep.subr.bf16.mxu1 %v14183_v34  ;;  %v1866_v8 = vld [vmem:[#allocation5 + $0x1f90] sm:$0xff] }
 0x43d   :  { %v1870_v34 = vld [vmem:[#allocation5 + $0x1fb0] sm:$0xff] }
 0x43e   :  { %v14244_v30 = vcombine.low %v1866_v8, %v1870_v34  ;;  %v15274_v28 = vld [vmem:[#allocation8 + $0x10c] ss:$16 sps:$4 sm:$0xff]  }
 0x43f   :  { %8209 = vmatpush1.bf16.msra.mxu0 %v14180_v21  ;;  %8537 = vmatpush1.bf16.msra.mxu1 %v14182_v19  ;;  %v14245_v21 = vcombine.high %v1866_v8, %v1870_v34  ;;  %v14247_v19 = vcombine.high %v1867_v54, %v1871_v43  ;;  %v15275_v8 = vld [vmem:[#allocation8 + $0x120] ss:$16 sps:$4 sm:$0xff]   ;;  %v15278_v34 = vld [vmem:[#allocation8 + $0x128] ss:$16 sps:$4 sm:$0xff]   ;;  %v15283_v54 = vld [vmem:[#allocation8 + $0x144] ss:$16 sps:$4 sm:$0xff]  }
 0x440   :  { %8210 = vmatprep.subr.bf16.mxu0 %v14189_v7  ;;  %8538 = vmatprep.subr.bf16.mxu1 %v14191_v32  ;;  %v1874_v7 = vld [vmem:[#allocation5 + $0x1fd0] sm:$0xff] }
 0x441   :  { %v1878_v32 = vld [vmem:[#allocation5 + $0x1ff0] sm:$0xff] }
 0x442   :  { %v15286_v43 = vld [vmem:[#allocation8 + $0x14c] ss:$16 sps:$4 sm:$0xff]  }
 0x443   :  { %8211 = vmatpush1.bf16.msra.mxu0 %v14188_v3  ;;  %8539 = vmatpush1.bf16.msra.mxu1 %v14190_v46  ;;  %v14253_v3 = vcombine.high %v1874_v7, %v1878_v32  ;;  %v14255_v46 = vcombine.high %v1875_v0, %v1879_v47 }
 0x444   :  { %8212 = vmatprep.subr.bf16.mxu0 %v14197_v13  ;;  %8540 = vmatprep.subr.bf16.mxu1 %v14199_v39  ;;  %v14252_v13 = vcombine.low %v1874_v7, %v1878_v32  ;;  %v14254_v39 = vcombine.low %v1875_v0, %v1879_v47  ;;  %v15287_v7 = vld [vmem:[#allocation8 + $0x160] ss:$16 sps:$4 sm:$0xff]   ;;  %v15290_v32 = vld [vmem:[#allocation8 + $0x168] ss:$16 sps:$4 sm:$0xff]   ;;  %v15295_v0 = vld [vmem:[#allocation8 + $0x184] ss:$16 sps:$4 sm:$0xff]  }
 0x445   :  { %v15298_v47 = vld [vmem:[#allocation8 + $0x18c] ss:$16 sps:$4 sm:$0xff]  }
 0x447   :  { %8213 = vmatpush1.bf16.msra.mxu0 %v14196_v5  ;;  %8541 = vmatpush1.bf16.msra.mxu1 %v14198_v29  ;;  %v15229_v5 = vld [vmem:[#allocation8 + $0x24] ss:$16 sps:$4 sm:$0xff]   ;;  %v15232_v29 = vld [vmem:[#allocation8 + $0x2c] ss:$16 sps:$4 sm:$0xff]  }
 0x448   :  { %8214 = vmatprep.subr.bf16.mxu0 %v14205_v23  ;;  %8542 = vmatprep.subr.bf16.mxu1 %v14207_v52  ;;  %v17076_v23 = vld [vmem:[#allocation2] sm:$0xff] }
 0x449   :  { %v17078_v52 = vld [vmem:[#allocation2 + $0x40] sm:$0xff] }
 0x44a   :  { %v14257_v14 = vcombine.high %v17076_v23, %v17078_v52 }
 0x44b   :  { %8215 = vmatpush1.bf16.msra.mxu0 %v14204_v55  ;;  %8543 = vmatpush1.bf16.msra.mxu1 %v14206_v26  ;;  %v15238_v55 = vld [vmem:[#allocation8 + $0x4c] ss:$16 sps:$4 sm:$0xff]   ;;  %v15233_v26 = vld [vmem:[#allocation8 + $0x40] ss:$16 sps:$4 sm:$0xff]  }
 0x44c   :  { %8216 = vmatprep.subr.bf16.mxu0 %v14213_v6  ;;  %8544 = vmatprep.subr.bf16.mxu1 %v14215_v48  ;;  %v15236_v6 = vld [vmem:[#allocation8 + $0x48] ss:$16 sps:$4 sm:$0xff]   ;;  %v15241_v48 = vld [vmem:[#allocation8 + $0x64] ss:$16 sps:$4 sm:$0xff]  }
 0x44f   :  { %8217 = vmatpush1.bf16.msra.mxu0 %v14212_v56  ;;  %8545 = vmatpush1.bf16.msra.mxu1 %v14214_v49  ;;  %v15245_v56 = vld [vmem:[#allocation8 + $0x80] ss:$16 sps:$4 sm:$0xff]   ;;  %v15248_v49 = vld [vmem:[#allocation8 + $0x88] ss:$16 sps:$4 sm:$0xff]  }
 0x450   :  { %8218 = vmatprep.subr.bf16.mxu0 %v14221_v45  ;;  %8546 = vmatprep.subr.bf16.mxu1 %v14223_v35  ;;  %v15253_v45 = vld [vmem:[#allocation8 + $0xa4] ss:$16 sps:$4 sm:$0xff]   ;;  %v15256_v35 = vld [vmem:[#allocation8 + $0xac] ss:$16 sps:$4 sm:$0xff]  }
 0x453   :  { %8219 = vmatpush1.bf16.msra.mxu0 %v14220_v16  ;;  %8547 = vmatpush1.bf16.msra.mxu1 %v14222_v38  ;;  %v15257_v16 = vld [vmem:[#allocation8 + $0xc0] ss:$16 sps:$4 sm:$0xff]   ;;  %v15260_v38 = vld [vmem:[#allocation8 + $0xc8] ss:$16 sps:$4 sm:$0xff]  }
 0x454   :  { %8220 = vmatprep.subr.bf16.mxu0 %v14229_v10  ;;  %8548 = vmatprep.subr.bf16.mxu1 %v14231_v31  ;;  %v15265_v10 = vld [vmem:[#allocation8 + $0xe4] ss:$16 sps:$4 sm:$0xff]   ;;  %v15268_v31 = vld [vmem:[#allocation8 + $0xec] ss:$16 sps:$4 sm:$0xff]  }
 0x457   :  { %8221 = vmatpush1.bf16.msra.mxu0 %v14228_v40  ;;  %8549 = vmatpush1.bf16.msra.mxu1 %v14230_v44  ;;  %v15269_v40 = vld [vmem:[#allocation8 + $0x100] ss:$16 sps:$4 sm:$0xff]   ;;  %v15272_v44 = vld [vmem:[#allocation8 + $0x108] ss:$16 sps:$4 sm:$0xff]  }
 0x458   :  { %8222 = vmatprep.subr.bf16.mxu0 %v14237_v1  ;;  %8550 = vmatprep.subr.bf16.mxu1 %v14239_v15  ;;  %v15277_v1 = vld [vmem:[#allocation8 + $0x124] ss:$16 sps:$4 sm:$0xff]   ;;  %v15280_v15 = vld [vmem:[#allocation8 + $0x12c] ss:$16 sps:$4 sm:$0xff]  }
 0x45b   :  { %8223 = vmatpush1.bf16.msra.mxu0 %v14236_v20  ;;  %8551 = vmatpush1.bf16.msra.mxu1 %v14238_v36  ;;  %v15281_v20 = vld [vmem:[#allocation8 + $0x140] ss:$16 sps:$4 sm:$0xff]   ;;  %v15284_v36 = vld [vmem:[#allocation8 + $0x148] ss:$16 sps:$4 sm:$0xff]  }
 0x45c   :  { %8224 = vmatprep.subr.bf16.mxu0 %v14245_v21  ;;  %8552 = vmatprep.subr.bf16.mxu1 %v14247_v19  ;;  %v15289_v21 = vld [vmem:[#allocation8 + $0x164] ss:$16 sps:$4 sm:$0xff]   ;;  %v15292_v19 = vld [vmem:[#allocation8 + $0x16c] ss:$16 sps:$4 sm:$0xff]  }
 0x45f   :  { %8225 = vmatpush1.bf16.msra.mxu0 %v14244_v30  ;;  %8553 = vmatpush1.bf16.msra.mxu1 %v14246_v11  ;;  %v15293_v30 = vld [vmem:[#allocation8 + $0x180] ss:$16 sps:$4 sm:$0xff]   ;;  %v15296_v11 = vld [vmem:[#allocation8 + $0x188] ss:$16 sps:$4 sm:$0xff]  }
 0x460   :  { %8226 = vmatprep.subr.bf16.mxu0 %v14253_v3  ;;  %8554 = vmatprep.subr.bf16.mxu1 %v14255_v46  ;;  %v15301_v3 = vld [vmem:[#allocation8 + $0x1a4] ss:$16 sps:$4 sm:$0xff]   ;;  %v15304_v46 = vld [vmem:[#allocation8 + $0x1ac] ss:$16 sps:$4 sm:$0xff]  }
 0x463   :  { %8227 = vmatpush1.bf16.msra.mxu0 %v14252_v13  ;;  %8555 = vmatpush1.bf16.msra.mxu1 %v14254_v39  ;;  %v15299_v13 = vld [vmem:[#allocation8 + $0x1a0] ss:$16 sps:$4 sm:$0xff]   ;;  %v15302_v39 = vld [vmem:[#allocation8 + $0x1a8] ss:$16 sps:$4 sm:$0xff]  }
 0x464   :  { %11999 = vmatprep.subr.bf16.mxu0 %v15223_v37  ;;  %12583 = vmatprep.subr.bf16.mxu1 %v15226_v24  ;;  %v15307_v37 = vld [vmem:[#allocation8 + $0x1c4] ss:$16 sps:$4 sm:$0xff]   ;;  %v15310_v24 = vld [vmem:[#allocation8 + $0x1cc] ss:$16 sps:$4 sm:$0xff]  }
 0x466   :  { %8229 = vmatmul.mubr.bf16.vlgmr.msra.gmra.mrb[4].mxu0 %v17028_v4  ;;  %8557 = vmatmul.mubr.bf16.vlgmr.msra.gmra.mrb[4].mxu1 %v17028_v4  ;;  %v15239_v4 = vld [vmem:[#allocation8 + $0x60] ss:$16 sps:$4 sm:$0xff]  }
 0x467   :  { %12000 = vmatpush1.bf16.msra.mxu0 %v15221_v25  ;;  %12584 = vmatpush1.bf16.msra.mxu1 %v15224_v63  ;;  %v15305_v25 = vld [vmem:[#allocation8 + $0x1c0] ss:$16 sps:$4 sm:$0xff]   ;;  %v15308_v63 = vld [vmem:[#allocation8 + $0x1c8] ss:$16 sps:$4 sm:$0xff]  }
 0x468   :  { %12001 = vmatprep.subr.bf16.mxu0 %v15229_v5  ;;  %12585 = vmatprep.subr.bf16.mxu1 %v15232_v29  ;;  %v15313_v5 = vld [vmem:[#allocation8 + $0x1e4] ss:$16 sps:$4 sm:$0xff]   ;;  %v15316_v29 = vld [vmem:[#allocation8 + $0x1ec] ss:$16 sps:$4 sm:$0xff]  }
 0x469   :  { %12031 = vmatprep.mubr.bf16.mxu0 %v14257_v14  ;;  %12615 = vmatprep.mubr.bf16.mxu1 %v14257_v14  ;;  %v15311_v14 = vld [vmem:[#allocation8 + $0x1e0] ss:$16 sps:$4 sm:$0xff]  }
 0x46b   :  { %12002 = vmatpush1.bf16.msra.mxu0 %v15227_v53  ;;  %12586 = vmatpush1.bf16.msra.mxu1 %v15230_v9  ;;  %v15314_v53 = vld [vmem:[#allocation8 + $0x1e8] ss:$16 sps:$4 sm:$0xff]   ;;  %v15319_v9 = vld [vmem:[#allocation8 + $0x204] ss:$16 sps:$4 sm:$0xff]  }
 0x46c   :  { %12003 = vmatprep.subr.bf16.mxu0 %v15235_v51  ;;  %12587 = vmatprep.subr.bf16.mxu1 %v15238_v55  ;;  %v15322_v51 = vld [vmem:[#allocation8 + $0x20c] ss:$16 sps:$4 sm:$0xff]   ;;  %v14256_v55 = vcombine.low %v17076_v23, %v17078_v52 }
 0x46d   :  { %v15334_v23 = vld [vmem:[#allocation8 + $0x24c] ss:$16 sps:$4 sm:$0xff]  }
 0x46f   :  { %12004 = vmatpush1.bf16.msra.mxu0 %v15233_v26  ;;  %12588 = vmatpush1.bf16.msra.mxu1 %v15236_v6  ;;  %v15317_v26 = vld [vmem:[#allocation8 + $0x200] ss:$16 sps:$4 sm:$0xff]   ;;  %v15320_v6 = vld [vmem:[#allocation8 + $0x208] ss:$16 sps:$4 sm:$0xff]  }
 0x470   :  { %12005 = vmatprep.subr.bf16.mxu0 %v15241_v48  ;;  %12589 = vmatprep.subr.bf16.mxu1 %v15244_v59  ;;  %v15325_v48 = vld [vmem:[#allocation8 + $0x224] ss:$16 sps:$4 sm:$0xff]   ;;  %v15328_v59 = vld [vmem:[#allocation8 + $0x22c] ss:$16 sps:$4 sm:$0xff]  }
 0x473   :  { %12006 = vmatpush1.bf16.msra.mxu0 %v15239_v4  ;;  %12590 = vmatpush1.bf16.msra.mxu1 %v15242_v2  ;;  %v15991_v4 = vld [vmem:[#allocation2 + $0x80] sm:$0xff] }
 0x474   :  { %12007 = vmatprep.subr.bf16.mxu0 %v15247_v60  ;;  %12591 = vmatprep.subr.bf16.mxu1 %v15250_v57  ;;  %v15992_v2 = vld [vmem:[#allocation2 + $0xc0] sm:$0xff]  ;;  %v15323_v57 = vld [vmem:[#allocation8 + $0x220] ss:$16 sps:$4 sm:$0xff]  }
 0x475   :  { %v14273_v60 = vcombine.high %v15991_v4, %v15992_v2  ;;  %v14272_v52 = vcombine.low %v15991_v4, %v15992_v2  ;;  %v15389_v4 = vld [vmem:[#allocation8 + $0x380] ss:$16 sps:$4 sm:$0xff]   ;;  %v15392_v2 = vld [vmem:[#allocation8 + $0x388] ss:$16 sps:$4 sm:$0xff]  }
 0x477   :  { %12008 = vmatpush1.bf16.msra.mxu0 %v15245_v56  ;;  %12592 = vmatpush1.bf16.msra.mxu1 %v15248_v49  ;;  %v15326_v56 = vld [vmem:[#allocation8 + $0x228] ss:$16 sps:$4 sm:$0xff]   ;;  %v15331_v49 = vld [vmem:[#allocation8 + $0x244] ss:$16 sps:$4 sm:$0xff]  }
 0x478   :  { %12009 = vmatprep.subr.bf16.mxu0 %v15253_v45  ;;  %12593 = vmatprep.subr.bf16.mxu1 %v15256_v35  ;;  %v15329_v45 = vld [vmem:[#allocation8 + $0x240] ss:$16 sps:$4 sm:$0xff]   ;;  %v15332_v35 = vld [vmem:[#allocation8 + $0x248] ss:$16 sps:$4 sm:$0xff]  }
 0x47b   :  { %12010 = vmatpush1.bf16.msra.mxu0 %v15251_v17  ;;  %12594 = vmatpush1.bf16.msra.mxu1 %v15254_v12  ;;  %v15337_v17 = vld [vmem:[#allocation8 + $0x264] ss:$16 sps:$4 sm:$0xff]   ;;  %v15340_v12 = vld [vmem:[#allocation8 + $0x26c] ss:$16 sps:$4 sm:$0xff]  }
 0x47c   :  { %12011 = vmatprep.subr.bf16.mxu0 %v15259_v58  ;;  %12595 = vmatprep.subr.bf16.mxu1 %v15262_v42  ;;  %v15993_v58 = vld [vmem:[#allocation2 + $0x100] sm:$0xff] }
 0x47d   :  { %v15994_v42 = vld [vmem:[#allocation2 + $0x140] sm:$0xff] }
 0x47f   :  { %12012 = vmatpush1.bf16.msra.mxu0 %v15257_v16  ;;  %12596 = vmatpush1.bf16.msra.mxu1 %v15260_v38  ;;  %v14289_v16 = vcombine.high %v15993_v58, %v15994_v42  ;;  %v15335_v38 = vld [vmem:[#allocation8 + $0x260] ss:$16 sps:$4 sm:$0xff]  }
 0x480   :  { %12013 = vmatprep.subr.bf16.mxu0 %v15265_v10  ;;  %12597 = vmatprep.subr.bf16.mxu1 %v15268_v31  ;;  %v15338_v10 = vld [vmem:[#allocation8 + $0x268] ss:$16 sps:$4 sm:$0xff]   ;;  %v15343_v31 = vld [vmem:[#allocation8 + $0x284] ss:$16 sps:$4 sm:$0xff]  }
 0x483   :  { %12014 = vmatpush1.bf16.msra.mxu0 %v15263_v50  ;;  %12598 = vmatpush1.bf16.msra.mxu1 %v15266_v62  ;;  %v15346_v50 = vld [vmem:[#allocation8 + $0x28c] ss:$16 sps:$4 sm:$0xff]   ;;  %v14288_v62 = vcombine.low %v15993_v58, %v15994_v42  ;;  %v15407_v58 = vld [vmem:[#allocation8 + $0x3e0] ss:$16 sps:$4 sm:$0xff]   ;;  %v15410_v42 = vld [vmem:[#allocation8 + $0x3e8] ss:$16 sps:$4 sm:$0xff]  }
 0x484   :  { %12015 = vmatprep.subr.bf16.mxu0 %v15271_v22  ;;  %12599 = vmatprep.subr.bf16.mxu1 %v15274_v28  ;;  %v15341_v22 = vld [vmem:[#allocation8 + $0x280] ss:$16 sps:$4 sm:$0xff]   ;;  %v15344_v28 = vld [vmem:[#allocation8 + $0x288] ss:$16 sps:$4 sm:$0xff]  }
 0x487   :  { %12016 = vmatpush1.bf16.msra.mxu0 %v15269_v40  ;;  %12600 = vmatpush1.bf16.msra.mxu1 %v15272_v44  ;;  %v15349_v40 = vld [vmem:[#allocation8 + $0x2a4] ss:$16 sps:$4 sm:$0xff]   ;;  %v15352_v44 = vld [vmem:[#allocation8 + $0x2ac] ss:$16 sps:$4 sm:$0xff]  }
 0x488   :  { %12017 = vmatprep.subr.bf16.mxu0 %v15277_v1  ;;  %12601 = vmatprep.subr.bf16.mxu1 %v15280_v15  ;;  %v15995_v1 = vld [vmem:[#allocation2 + $0x180] sm:$0xff] }
 0x489   :  { %v15996_v15 = vld [vmem:[#allocation2 + $0x1c0] sm:$0xff] }
 0x48b   :  { %12018 = vmatpush1.bf16.msra.mxu0 %v15275_v8  ;;  %12602 = vmatpush1.bf16.msra.mxu1 %v15278_v34  ;;  %v14305_v8 = vcombine.high %v15995_v1, %v15996_v15  ;;  %v15347_v34 = vld [vmem:[#allocation8 + $0x2a0] ss:$16 sps:$4 sm:$0xff]  }
 0x48c   :  { %12019 = vmatprep.subr.bf16.mxu0 %v15283_v54  ;;  %12603 = vmatprep.subr.bf16.mxu1 %v15286_v43  ;;  %v15350_v54 = vld [vmem:[#allocation8 + $0x2a8] ss:$16 sps:$4 sm:$0xff]   ;;  %v15355_v43 = vld [vmem:[#allocation8 + $0x2c4] ss:$16 sps:$4 sm:$0xff]  }
 0x48f   :  { %12020 = vmatpush1.bf16.msra.mxu0 %v15281_v20  ;;  %12604 = vmatpush1.bf16.msra.mxu1 %v15284_v36  ;;  %v15358_v20 = vld [vmem:[#allocation8 + $0x2cc] ss:$16 sps:$4 sm:$0xff]   ;;  %v14304_v36 = vcombine.low %v15995_v1, %v15996_v15  ;;  %v15419_v1 = vld [vmem:[#allocation8 + $0x420] ss:$16 sps:$4 sm:$0xff]   ;;  %v15422_v15 = vld [vmem:[#allocation8 + $0x428] ss:$16 sps:$4 sm:$0xff]  }
 0x490   :  { %12021 = vmatprep.subr.bf16.mxu0 %v15289_v21  ;;  %12605 = vmatprep.subr.bf16.mxu1 %v15292_v19  ;;  %v15353_v21 = vld [vmem:[#allocation8 + $0x2c0] ss:$16 sps:$4 sm:$0xff]   ;;  %v15356_v19 = vld [vmem:[#allocation8 + $0x2c8] ss:$16 sps:$4 sm:$0xff]  }
 0x493   :  { %12022 = vmatpush1.bf16.msra.mxu0 %v15287_v7  ;;  %12606 = vmatpush1.bf16.msra.mxu1 %v15290_v32  ;;  %v15361_v7 = vld [vmem:[#allocation8 + $0x2e4] ss:$16 sps:$4 sm:$0xff]   ;;  %v15364_v32 = vld [vmem:[#allocation8 + $0x2ec] ss:$16 sps:$4 sm:$0xff]  }
 0x494   :  { %12023 = vmatprep.subr.bf16.mxu0 %v15295_v0  ;;  %12607 = vmatprep.subr.bf16.mxu1 %v15298_v47  ;;  %v17086_v0 = vld [vmem:[#allocation2 + $0x8] sm:$0xff] }
 0x495   :  { %v17088_v47 = vld [vmem:[#allocation2 + $0x48] sm:$0xff] }
 0x497   :  { %12024 = vmatpush1.bf16.msra.mxu0 %v15293_v30  ;;  %12608 = vmatpush1.bf16.msra.mxu1 %v15296_v11  ;;  %v14259_v30 = vcombine.high %v17086_v0, %v17088_v47  ;;  %v15359_v11 = vld [vmem:[#allocation8 + $0x2e0] ss:$16 sps:$4 sm:$0xff]  }
 0x498   :  { %12025 = vmatprep.subr.bf16.mxu0 %v15301_v3  ;;  %12609 = vmatprep.subr.bf16.mxu1 %v15304_v46  ;;  %v15362_v3 = vld [vmem:[#allocation8 + $0x2e8] ss:$16 sps:$4 sm:$0xff]   ;;  %v15367_v46 = vld [vmem:[#allocation8 + $0x304] ss:$16 sps:$4 sm:$0xff]  }
 0x49b   :  { %12026 = vmatpush1.bf16.msra.mxu0 %v15299_v13  ;;  %12610 = vmatpush1.bf16.msra.mxu1 %v15302_v39  ;;  %v15370_v13 = vld [vmem:[#allocation8 + $0x30c] ss:$16 sps:$4 sm:$0xff]   ;;  %v15365_v39 = vld [vmem:[#allocation8 + $0x300] ss:$16 sps:$4 sm:$0xff]  }
 0x49c   :  { %12027 = vmatprep.subr.bf16.mxu0 %v15307_v37  ;;  %12611 = vmatprep.subr.bf16.mxu1 %v15310_v24  ;;  %v15368_v37 = vld [vmem:[#allocation8 + $0x308] ss:$16 sps:$4 sm:$0xff]   ;;  %v15373_v24 = vld [vmem:[#allocation8 + $0x324] ss:$16 sps:$4 sm:$0xff]  }
 0x49f   :  { %12028 = vmatpush1.bf16.msra.mxu0 %v15305_v25  ;;  %12612 = vmatpush1.bf16.msra.mxu1 %v15308_v63  ;;  %v15376_v25 = vld [vmem:[#allocation8 + $0x32c] ss:$16 sps:$4 sm:$0xff]   ;;  %v15371_v63 = vld [vmem:[#allocation8 + $0x320] ss:$16 sps:$4 sm:$0xff]  }
 0x4a0   :  { %12029 = vmatprep.subr.bf16.mxu0 %v15313_v5  ;;  %12613 = vmatprep.subr.bf16.mxu1 %v15316_v29  ;;  %v15374_v5 = vld [vmem:[#allocation8 + $0x328] ss:$16 sps:$4 sm:$0xff]   ;;  %v15379_v29 = vld [vmem:[#allocation8 + $0x344] ss:$16 sps:$4 sm:$0xff]  }
 0x4a3   :  { %12030 = vmatpush1.bf16.msra.mxu0 %v15311_v14  ;;  %12614 = vmatpush1.bf16.msra.mxu1 %v15314_v53  ;;  %v15382_v14 = vld [vmem:[#allocation8 + $0x34c] ss:$16 sps:$4 sm:$0xff]   ;;  %v15377_v53 = vld [vmem:[#allocation8 + $0x340] ss:$16 sps:$4 sm:$0xff]  }
 0x4a4   :  { %12072 = vmatprep.subr.bf16.mxu0 %v15319_v9  ;;  %12656 = vmatprep.subr.bf16.mxu1 %v15322_v51  ;;  %v15380_v9 = vld [vmem:[#allocation8 + $0x348] ss:$16 sps:$4 sm:$0xff]   ;;  %v15385_v51 = vld [vmem:[#allocation8 + $0x364] ss:$16 sps:$4 sm:$0xff]  }
 0x4a6   :  { %12032 = vmatmul.mubr.bf16.vlgmr.msra.gmra.mrb[8].mxu0 %v14256_v55  ;;  %12616 = vmatmul.mubr.bf16.vlgmr.msra.gmra.mrb[8].mxu1 %v14256_v55  ;;  %v15388_v55 = vld [vmem:[#allocation8 + $0x36c] ss:$16 sps:$4 sm:$0xff]  }
 0x4a7   :  { %12073 = vmatpush1.bf16.msra.mxu0 %v15317_v26  ;;  %12657 = vmatpush1.bf16.msra.mxu1 %v15320_v6  ;;  %v15383_v26 = vld [vmem:[#allocation8 + $0x360] ss:$16 sps:$4 sm:$0xff]   ;;  %v15386_v6 = vld [vmem:[#allocation8 + $0x368] ss:$16 sps:$4 sm:$0xff]  }
 0x4a8   :  { %12074 = vmatprep.subr.bf16.mxu0 %v15325_v48  ;;  %12658 = vmatprep.subr.bf16.mxu1 %v15328_v59  ;;  %v15391_v48 = vld [vmem:[#allocation8 + $0x384] ss:$16 sps:$4 sm:$0xff]   ;;  %v15394_v59 = vld [vmem:[#allocation8 + $0x38c] ss:$16 sps:$4 sm:$0xff]  }
 0x4a9   :  { %12041 = vmatprep.mubr.bf16.mxu0 %v14273_v60  ;;  %12625 = vmatprep.mubr.bf16.mxu1 %v14273_v60  ;;  %v15397_v60 = vld [vmem:[#allocation8 + $0x3a4] ss:$16 sps:$4 sm:$0xff]  }
 0x4ab   :  { %12075 = vmatpush1.bf16.msra.mxu0 %v15323_v57  ;;  %12659 = vmatpush1.bf16.msra.mxu1 %v15326_v56  ;;  %v15400_v57 = vld [vmem:[#allocation8 + $0x3ac] ss:$16 sps:$4 sm:$0xff]   ;;  %v15395_v56 = vld [vmem:[#allocation8 + $0x3a0] ss:$16 sps:$4 sm:$0xff]  }
 0x4ac   :  { %12076 = vmatprep.subr.bf16.mxu0 %v15331_v49  ;;  %12660 = vmatprep.subr.bf16.mxu1 %v15334_v23  ;;  %v15398_v49 = vld [vmem:[#allocation8 + $0x3a8] ss:$16 sps:$4 sm:$0xff]   ;;  %v15403_v23 = vld [vmem:[#allocation8 + $0x3c4] ss:$16 sps:$4 sm:$0xff]  }
 0x4ae   :  { %12042 = vmatmul.mubr.bf16.gmra.mrb[12].mxu0 %v14272_v52  ;;  %12626 = vmatmul.mubr.bf16.gmra.mrb[12].mxu1 %v14272_v52  ;;  %v15406_v52 = vld [vmem:[#allocation8 + $0x3cc] ss:$16 sps:$4 sm:$0xff]  }
 0x4af   :  { %12077 = vmatpush1.bf16.msra.mxu0 %v15329_v45  ;;  %12661 = vmatpush1.bf16.msra.mxu1 %v15332_v35  ;;  %v15401_v45 = vld [vmem:[#allocation8 + $0x3c0] ss:$16 sps:$4 sm:$0xff]   ;;  %v15404_v35 = vld [vmem:[#allocation8 + $0x3c8] ss:$16 sps:$4 sm:$0xff]  }
 0x4b0   :  { %12078 = vmatprep.subr.bf16.mxu0 %v15337_v17  ;;  %12662 = vmatprep.subr.bf16.mxu1 %v15340_v12  ;;  %v15409_v17 = vld [vmem:[#allocation8 + $0x3e4] ss:$16 sps:$4 sm:$0xff]   ;;  %v15412_v12 = vld [vmem:[#allocation8 + $0x3ec] ss:$16 sps:$4 sm:$0xff]  }
 0x4b1   :  { %12051 = vmatprep.mubr.bf16.mxu0 %v14289_v16  ;;  %12635 = vmatprep.mubr.bf16.mxu1 %v14289_v16  ;;  %v15415_v16 = vld [vmem:[#allocation8 + $0x404] ss:$16 sps:$4 sm:$0xff]  }
 0x4b3   :  { %12079 = vmatpush1.bf16.msra.mxu0 %v15335_v38  ;;  %12663 = vmatpush1.bf16.msra.mxu1 %v15338_v10  ;;  %v15418_v38 = vld [vmem:[#allocation8 + $0x40c] ss:$16 sps:$4 sm:$0xff]   ;;  %v14258_v10 = vcombine.low %v17086_v0, %v17088_v47  ;;  %v15431_v0 = vld [vmem:[#allocation8 + $0x460] ss:$16 sps:$4 sm:$0xff]   ;;  %v15434_v47 = vld [vmem:[#allocation8 + $0x468] ss:$16 sps:$4 sm:$0xff]  }
 0x4b4   :  { %12080 = vmatprep.subr.bf16.mxu0 %v15343_v31  ;;  %12664 = vmatprep.subr.bf16.mxu1 %v15346_v50  ;;  %v15413_v31 = vld [vmem:[#allocation8 + $0x400] ss:$16 sps:$4 sm:$0xff]   ;;  %v15416_v50 = vld [vmem:[#allocation8 + $0x408] ss:$16 sps:$4 sm:$0xff]  }
 0x4b6   :  { %12052 = vmatmul.mubr.bf16.gmra.mrb[16].mxu0 %v14288_v62  ;;  %12636 = vmatmul.mubr.bf16.gmra.mrb[16].mxu1 %v14288_v62  ;;  %v15421_v62 = vld [vmem:[#allocation8 + $0x424] ss:$16 sps:$4 sm:$0xff]  }
 0x4b7   :  { %12081 = vmatpush1.bf16.msra.mxu0 %v15341_v22  ;;  %12665 = vmatpush1.bf16.msra.mxu1 %v15344_v28  ;;  %v15424_v22 = vld [vmem:[#allocation8 + $0x42c] ss:$16 sps:$4 sm:$0xff]   ;;  %v15999_v28 = vld [vmem:[#allocation2 + $0x88] sm:$0xff] }
 0x4b8   :  { %12082 = vmatprep.subr.bf16.mxu0 %v15349_v40  ;;  %12666 = vmatprep.subr.bf16.mxu1 %v15352_v44  ;;  %v16000_v40 = vld [vmem:[#allocation2 + $0xc8] sm:$0xff] }
 0x4b9   :  { %12061 = vmatprep.mubr.bf16.mxu0 %v14305_v8  ;;  %12645 = vmatprep.mubr.bf16.mxu1 %v14305_v8  ;;  %v14275_v44 = vcombine.high %v15999_v28, %v16000_v40  ;;  %v15427_v8 = vld [vmem:[#allocation8 + $0x444] ss:$16 sps:$4 sm:$0xff]  }
 0x4bb   :  { %12083 = vmatpush1.bf16.msra.mxu0 %v15347_v34  ;;  %12667 = vmatpush1.bf16.msra.mxu1 %v15350_v54  ;;  %v15430_v34 = vld [vmem:[#allocation8 + $0x44c] ss:$16 sps:$4 sm:$0xff]   ;;  %v14274_v54 = vcombine.low %v15999_v28, %v16000_v40  ;;  %v15485_v28 = vld [vmem:[#allocation8 + $0x580] ss:$16 sps:$4 sm:$0xff]   ;;  %v15488_v40 = vld [vmem:[#allocation8 + $0x588] ss:$16 sps:$4 sm:$0xff]  }
 0x4bc   :  { %12084 = vmatprep.subr.bf16.mxu0 %v15355_v43  ;;  %12668 = vmatprep.subr.bf16.mxu1 %v15358_v20  ;;  %v15425_v43 = vld [vmem:[#allocation8 + $0x440] ss:$16 sps:$4 sm:$0xff]   ;;  %v15428_v20 = vld [vmem:[#allocation8 + $0x448] ss:$16 sps:$4 sm:$0xff]  }
 0x4be   :  { %12062 = vmatmul.mubr.bf16.gmra.mrb[20].mxu0 %v14304_v36  ;;  %12646 = vmatmul.mubr.bf16.gmra.mrb[20].mxu1 %v14304_v36  ;;  %v15433_v36 = vld [vmem:[#allocation8 + $0x464] ss:$16 sps:$4 sm:$0xff]  }
 0x4bf   :  { %12085 = vmatpush1.bf16.msra.mxu0 %v15353_v21  ;;  %12669 = vmatpush1.bf16.msra.mxu1 %v15356_v19  ;;  %v15436_v21 = vld [vmem:[#allocation8 + $0x46c] ss:$16 sps:$4 sm:$0xff]   ;;  %v16001_v19 = vld [vmem:[#allocation2 + $0x108] sm:$0xff] }
 0x4c0   :  { %12086 = vmatprep.subr.bf16.mxu0 %v15361_v7  ;;  %12670 = vmatprep.subr.bf16.mxu1 %v15364_v32  ;;  %v16002_v7 = vld [vmem:[#allocation2 + $0x148] sm:$0xff] }
 0x4c1   :  { %12104 = vmatprep.mubr.bf16.mxu0 %v14259_v30  ;;  %12688 = vmatprep.mubr.bf16.mxu1 %v14259_v30  ;;  %v14291_v32 = vcombine.high %v16001_v19, %v16002_v7  ;;  %v15439_v30 = vld [vmem:[#allocation8 + $0x484] ss:$16 sps:$4 sm:$0xff]  }
 0x4c3   :  { %12087 = vmatpush1.bf16.msra.mxu0 %v15359_v11  ;;  %12671 = vmatpush1.bf16.msra.mxu1 %v15362_v3  ;;  %v15442_v11 = vld [vmem:[#allocation8 + $0x48c] ss:$16 sps:$4 sm:$0xff]   ;;  %v14290_v3 = vcombine.low %v16001_v19, %v16002_v7  ;;  %v15503_v19 = vld [vmem:[#allocation8 + $0x5e0] ss:$16 sps:$4 sm:$0xff]   ;;  %v15506_v7 = vld [vmem:[#allocation8 + $0x5e8] ss:$16 sps:$4 sm:$0xff]  }
 0x4c4   :  { %12088 = vmatprep.subr.bf16.mxu0 %v15367_v46  ;;  %12672 = vmatprep.subr.bf16.mxu1 %v15370_v13  ;;  %v15437_v46 = vld [vmem:[#allocation8 + $0x480] ss:$16 sps:$4 sm:$0xff]   ;;  %v15440_v13 = vld [vmem:[#allocation8 + $0x488] ss:$16 sps:$4 sm:$0xff]  }
 0x4c7   :  { %12089 = vmatpush1.bf16.msra.mxu0 %v15365_v39  ;;  %12673 = vmatpush1.bf16.msra.mxu1 %v15368_v37  ;;  %v15445_v39 = vld [vmem:[#allocation8 + $0x4a4] ss:$16 sps:$4 sm:$0xff]   ;;  %v15448_v37 = vld [vmem:[#allocation8 + $0x4ac] ss:$16 sps:$4 sm:$0xff]  }
 0x4c8   :  { %12090 = vmatprep.subr.bf16.mxu0 %v15373_v24  ;;  %12674 = vmatprep.subr.bf16.mxu1 %v15376_v25  ;;  %v16003_v24 = vld [vmem:[#allocation2 + $0x188] sm:$0xff] }
 0x4c9   :  { %v16004_v25 = vld [vmem:[#allocation2 + $0x1c8] sm:$0xff] }
 0x4cb   :  { %12091 = vmatpush1.bf16.msra.mxu0 %v15371_v63  ;;  %12675 = vmatpush1.bf16.msra.mxu1 %v15374_v5  ;;  %v14307_v63 = vcombine.high %v16003_v24, %v16004_v25  ;;  %v15443_v5 = vld [vmem:[#allocation8 + $0x4a0] ss:$16 sps:$4 sm:$0xff]  }
 0x4cc   :  { %12092 = vmatprep.subr.bf16.mxu0 %v15379_v29  ;;  %12676 = vmatprep.subr.bf16.mxu1 %v15382_v14  ;;  %v15446_v29 = vld [vmem:[#allocation8 + $0x4a8] ss:$16 sps:$4 sm:$0xff]   ;;  %v15451_v14 = vld [vmem:[#allocation8 + $0x4c4] ss:$16 sps:$4 sm:$0xff]  }
 0x4cf   :  { %12093 = vmatpush1.bf16.msra.mxu0 %v15377_v53  ;;  %12677 = vmatpush1.bf16.msra.mxu1 %v15380_v9  ;;  %v15454_v53 = vld [vmem:[#allocation8 + $0x4cc] ss:$16 sps:$4 sm:$0xff]   ;;  %v14306_v9 = vcombine.low %v16003_v24, %v16004_v25  ;;  %v15515_v24 = vld [vmem:[#allocation8 + $0x620] ss:$16 sps:$4 sm:$0xff]   ;;  %v15518_v25 = vld [vmem:[#allocation8 + $0x628] ss:$16 sps:$4 sm:$0xff]  }
 0x4d0   :  { %12094 = vmatprep.subr.bf16.mxu0 %v15385_v51  ;;  %12678 = vmatprep.subr.bf16.mxu1 %v15388_v55  ;;  %v15449_v51 = vld [vmem:[#allocation8 + $0x4c0] ss:$16 sps:$4 sm:$0xff]   ;;  %v15452_v55 = vld [vmem:[#allocation8 + $0x4c8] ss:$16 sps:$4 sm:$0xff]  }
 0x4d3   :  { %12095 = vmatpush1.bf16.msra.mxu0 %v15383_v26  ;;  %12679 = vmatpush1.bf16.msra.mxu1 %v15386_v6  ;;  %v15457_v26 = vld [vmem:[#allocation8 + $0x4e4] ss:$16 sps:$4 sm:$0xff]   ;;  %v15460_v6 = vld [vmem:[#allocation8 + $0x4ec] ss:$16 sps:$4 sm:$0xff]  }
 0x4d4   :  { %12096 = vmatprep.subr.bf16.mxu0 %v15391_v48  ;;  %12680 = vmatprep.subr.bf16.mxu1 %v15394_v59  ;;  %v17094_v48 = vld [vmem:[#allocation2 + $0x10] sm:$0xff] }
 0x4d5   :  { %v17096_v59 = vld [vmem:[#allocation2 + $0x50] sm:$0xff] }
 0x4d7   :  { %12097 = vmatpush1.bf16.msra.mxu0 %v15389_v4  ;;  %12681 = vmatpush1.bf16.msra.mxu1 %v15392_v2  ;;  %v14261_v4 = vcombine.high %v17094_v48, %v17096_v59  ;;  %v15455_v2 = vld [vmem:[#allocation8 + $0x4e0] ss:$16 sps:$4 sm:$0xff]  }
 0x4d8   :  { %12098 = vmatprep.subr.bf16.mxu0 %v15397_v60  ;;  %12682 = vmatprep.subr.bf16.mxu1 %v15400_v57  ;;  %v15458_v60 = vld [vmem:[#allocation8 + $0x4e8] ss:$16 sps:$4 sm:$0xff]   ;;  %v15463_v57 = vld [vmem:[#allocation8 + $0x504] ss:$16 sps:$4 sm:$0xff]  }
 0x4db   :  { %12099 = vmatpush1.bf16.msra.mxu0 %v15395_v56  ;;  %12683 = vmatpush1.bf16.msra.mxu1 %v15398_v49  ;;  %v15466_v56 = vld [vmem:[#allocation8 + $0x50c] ss:$16 sps:$4 sm:$0xff]   ;;  %v15461_v49 = vld [vmem:[#allocation8 + $0x500] ss:$16 sps:$4 sm:$0xff]  }
 0x4dc   :  { %12100 = vmatprep.subr.bf16.mxu0 %v15403_v23  ;;  %12684 = vmatprep.subr.bf16.mxu1 %v15406_v52  ;;  %v15464_v23 = vld [vmem:[#allocation8 + $0x508] ss:$16 sps:$4 sm:$0xff]   ;;  %v15469_v52 = vld [vmem:[#allocation8 + $0x524] ss:$16 sps:$4 sm:$0xff]  }
 0x4df   :  { %12101 = vmatpush1.bf16.msra.mxu0 %v15401_v45  ;;  %12685 = vmatpush1.bf16.msra.mxu1 %v15404_v35  ;;  %v15472_v45 = vld [vmem:[#allocation8 + $0x52c] ss:$16 sps:$4 sm:$0xff]   ;;  %v15467_v35 = vld [vmem:[#allocation8 + $0x520] ss:$16 sps:$4 sm:$0xff]  }
 0x4e0   :  { %12102 = vmatprep.subr.bf16.mxu0 %v15409_v17  ;;  %12686 = vmatprep.subr.bf16.mxu1 %v15412_v12  ;;  %v15470_v17 = vld [vmem:[#allocation8 + $0x528] ss:$16 sps:$4 sm:$0xff]   ;;  %v15475_v12 = vld [vmem:[#allocation8 + $0x544] ss:$16 sps:$4 sm:$0xff]  }
 0x4e3   :  { %12103 = vmatpush1.bf16.msra.mxu0 %v15407_v58  ;;  %12687 = vmatpush1.bf16.msra.mxu1 %v15410_v42  ;;  %v15478_v58 = vld [vmem:[#allocation8 + $0x54c] ss:$16 sps:$4 sm:$0xff]   ;;  %v15473_v42 = vld [vmem:[#allocation8 + $0x540] ss:$16 sps:$4 sm:$0xff]  }
 0x4e4   :  { %12145 = vmatprep.subr.bf16.mxu0 %v15415_v16  ;;  %12729 = vmatprep.subr.bf16.mxu1 %v15418_v38  ;;  %v15476_v16 = vld [vmem:[#allocation8 + $0x548] ss:$16 sps:$4 sm:$0xff]   ;;  %v15481_v38 = vld [vmem:[#allocation8 + $0x564] ss:$16 sps:$4 sm:$0xff]  }
 0x4e6   :  { %12105 = vmatmul.mubr.bf16.vlgmr.msra.gmra.mrb[8].mxu0 %v14258_v10  ;;  %12689 = vmatmul.mubr.bf16.vlgmr.msra.gmra.mrb[8].mxu1 %v14258_v10  ;;  %v15484_v10 = vld [vmem:[#allocation8 + $0x56c] ss:$16 sps:$4 sm:$0xff]  }
 0x4e7   :  { %12146 = vmatpush1.bf16.msra.mxu0 %v15413_v31  ;;  %12730 = vmatpush1.bf16.msra.mxu1 %v15416_v50  ;;  %v15479_v31 = vld [vmem:[#allocation8 + $0x560] ss:$16 sps:$4 sm:$0xff]   ;;  %v15482_v50 = vld [vmem:[#allocation8 + $0x568] ss:$16 sps:$4 sm:$0xff]  }
 0x4e8   :  { %12147 = vmatprep.subr.bf16.mxu0 %v15421_v62  ;;  %12731 = vmatprep.subr.bf16.mxu1 %v15424_v22  ;;  %v15487_v62 = vld [vmem:[#allocation8 + $0x584] ss:$16 sps:$4 sm:$0xff]   ;;  %v15490_v22 = vld [vmem:[#allocation8 + $0x58c] ss:$16 sps:$4 sm:$0xff]  }
 0x4e9   :  { %12114 = vmatprep.mubr.bf16.mxu0 %v14275_v44  ;;  %12698 = vmatprep.mubr.bf16.mxu1 %v14275_v44  ;;  %v15493_v44 = vld [vmem:[#allocation8 + $0x5a4] ss:$16 sps:$4 sm:$0xff]  }
 0x4eb   :  { %12148 = vmatpush1.bf16.msra.mxu0 %v15419_v1  ;;  %12732 = vmatpush1.bf16.msra.mxu1 %v15422_v15  ;;  %v15496_v1 = vld [vmem:[#allocation8 + $0x5ac] ss:$16 sps:$4 sm:$0xff]   ;;  %v15491_v15 = vld [vmem:[#allocation8 + $0x5a0] ss:$16 sps:$4 sm:$0xff]  }
 0x4ec   :  { %12149 = vmatprep.subr.bf16.mxu0 %v15427_v8  ;;  %12733 = vmatprep.subr.bf16.mxu1 %v15430_v34  ;;  %v15494_v8 = vld [vmem:[#allocation8 + $0x5a8] ss:$16 sps:$4 sm:$0xff]   ;;  %v15499_v34 = vld [vmem:[#allocation8 + $0x5c4] ss:$16 sps:$4 sm:$0xff]  }
 0x4ee   :  { %12115 = vmatmul.mubr.bf16.gmra.mrb[12].mxu0 %v14274_v54  ;;  %12699 = vmatmul.mubr.bf16.gmra.mrb[12].mxu1 %v14274_v54  ;;  %v15502_v54 = vld [vmem:[#allocation8 + $0x5cc] ss:$16 sps:$4 sm:$0xff]  }
 0x4ef   :  { %12150 = vmatpush1.bf16.msra.mxu0 %v15425_v43  ;;  %12734 = vmatpush1.bf16.msra.mxu1 %v15428_v20  ;;  %v15497_v43 = vld [vmem:[#allocation8 + $0x5c0] ss:$16 sps:$4 sm:$0xff]   ;;  %v15500_v20 = vld [vmem:[#allocation8 + $0x5c8] ss:$16 sps:$4 sm:$0xff]  }
 0x4f0   :  { %12151 = vmatprep.subr.bf16.mxu0 %v15433_v36  ;;  %12735 = vmatprep.subr.bf16.mxu1 %v15436_v21  ;;  %v15505_v36 = vld [vmem:[#allocation8 + $0x5e4] ss:$16 sps:$4 sm:$0xff]   ;;  %v15508_v21 = vld [vmem:[#allocation8 + $0x5ec] ss:$16 sps:$4 sm:$0xff]  }
 0x4f1   :  { %12124 = vmatprep.mubr.bf16.mxu0 %v14291_v32  ;;  %12708 = vmatprep.mubr.bf16.mxu1 %v14291_v32  ;;  %v15511_v32 = vld [vmem:[#allocation8 + $0x604] ss:$16 sps:$4 sm:$0xff]  }
 0x4f3   :  { %12152 = vmatpush1.bf16.msra.mxu0 %v15431_v0  ;;  %12736 = vmatpush1.bf16.msra.mxu1 %v15434_v47  ;;  %v15514_v0 = vld [vmem:[#allocation8 + $0x60c] ss:$16 sps:$4 sm:$0xff]   ;;  %v14260_v47 = vcombine.low %v17094_v48, %v17096_v59  ;;  %v15527_v48 = vld [vmem:[#allocation8 + $0x660] ss:$16 sps:$4 sm:$0xff]   ;;  %v15530_v59 = vld [vmem:[#allocation8 + $0x668] ss:$16 sps:$4 sm:$0xff]  }
 0x4f4   :  { %12153 = vmatprep.subr.bf16.mxu0 %v15439_v30  ;;  %12737 = vmatprep.subr.bf16.mxu1 %v15442_v11  ;;  %v15509_v30 = vld [vmem:[#allocation8 + $0x600] ss:$16 sps:$4 sm:$0xff]   ;;  %v15512_v11 = vld [vmem:[#allocation8 + $0x608] ss:$16 sps:$4 sm:$0xff]  }
 0x4f6   :  { %12125 = vmatmul.mubr.bf16.gmra.mrb[16].mxu0 %v14290_v3  ;;  %12709 = vmatmul.mubr.bf16.gmra.mrb[16].mxu1 %v14290_v3  ;;  %v15517_v3 = vld [vmem:[#allocation8 + $0x624] ss:$16 sps:$4 sm:$0xff]  }
 0x4f7   :  { %12154 = vmatpush1.bf16.msra.mxu0 %v15437_v46  ;;  %12738 = vmatpush1.bf16.msra.mxu1 %v15440_v13  ;;  %v15520_v46 = vld [vmem:[#allocation8 + $0x62c] ss:$16 sps:$4 sm:$0xff]  }
 0x4f8   :  { %12155 = vmatprep.subr.bf16.mxu0 %v15445_v39  ;;  %12739 = vmatprep.subr.bf16.mxu1 %v15448_v37  ;;  %v16007_v13 = vld [vmem:[#allocation2 + $0x90] sm:$0xff] }
 0x4f9   :  { %12134 = vmatprep.mubr.bf16.mxu0 %v14307_v63  ;;  %12718 = vmatprep.mubr.bf16.mxu1 %v14307_v63  ;;  %v16008_v39 = vld [vmem:[#allocation2 + $0xd0] sm:$0xff]  ;;  %v15523_v63 = vld [vmem:[#allocation8 + $0x644] ss:$16 sps:$4 sm:$0xff]  }
 0x4fa   :  { %v14277_v37 = vcombine.high %v16007_v13, %v16008_v39 }
 0x4fb   :  { %12156 = vmatpush1.bf16.msra.mxu0 %v15443_v5  ;;  %12740 = vmatpush1.bf16.msra.mxu1 %v15446_v29  ;;  %v15526_v5 = vld [vmem:[#allocation8 + $0x64c] ss:$16 sps:$4 sm:$0xff]   ;;  %v14276_v29 = vcombine.low %v16007_v13, %v16008_v39  ;;  %v17108_v13 = vld [vmem:[#allocation2 + $0x58] sm:$0xff] }
 0x4fc   :  { %12157 = vmatprep.subr.bf16.mxu0 %v15451_v14  ;;  %12741 = vmatprep.subr.bf16.mxu1 %v15454_v53  ;;  %v15521_v14 = vld [vmem:[#allocation8 + $0x640] ss:$16 sps:$4 sm:$0xff]   ;;  %v15524_v53 = vld [vmem:[#allocation8 + $0x648] ss:$16 sps:$4 sm:$0xff]  }
 0x4fe   :  { %12135 = vmatmul.mubr.bf16.gmra.mrb[20].mxu0 %v14306_v9  ;;  %12719 = vmatmul.mubr.bf16.gmra.mrb[20].mxu1 %v14306_v9  ;;  %v15529_v9 = vld [vmem:[#allocation8 + $0x664] ss:$16 sps:$4 sm:$0xff]  }
 0x4ff   :  { %12158 = vmatpush1.bf16.msra.mxu0 %v15449_v51  ;;  %12742 = vmatpush1.bf16.msra.mxu1 %v15452_v55  ;;  %v15532_v51 = vld [vmem:[#allocation8 + $0x66c] ss:$16 sps:$4 sm:$0xff]  }
 0x500   :  { %12159 = vmatprep.subr.bf16.mxu0 %v15457_v26  ;;  %12743 = vmatprep.subr.bf16.mxu1 %v15460_v6  ;;  %v16009_v55 = vld [vmem:[#allocation2 + $0x110] sm:$0xff] }
 0x501   :  { %12177 = vmatprep.mubr.bf16.mxu0 %v14261_v4  ;;  %12761 = vmatprep.mubr.bf16.mxu1 %v14261_v4  ;;  %v16010_v26 = vld [vmem:[#allocation2 + $0x150] sm:$0xff]  ;;  %v15535_v4 = vld [vmem:[#allocation8 + $0x684] ss:$16 sps:$4 sm:$0xff]  }
 0x502   :  { %v14293_v6 = vcombine.high %v16009_v55, %v16010_v26 }
 0x503   :  { %12160 = vmatpush1.bf16.msra.mxu0 %v15455_v2  ;;  %12744 = vmatpush1.bf16.msra.mxu1 %v15458_v60  ;;  %v15538_v2 = vld [vmem:[#allocation8 + $0x68c] ss:$16 sps:$4 sm:$0xff]   ;;  %v1900_v60 = vsub.s32 4, %v17046_v18 }
 0x504   :  { %12161 = vmatprep.subr.bf16.mxu0 %v15463_v57  ;;  %12745 = vmatprep.subr.bf16.mxu1 %v15466_v56  ;;  %v14292_v57 = vcombine.low %v16009_v55, %v16010_v26  ;;  %v15533_v56 = vld [vmem:[#allocation8 + $0x680] ss:$16 sps:$4 sm:$0xff]   ;;  %v15566_v55 = vld [vmem:[#allocation8 + $0x728] ss:$16 sps:$4 sm:$0xff]   ;;  %v15571_v26 = vld [vmem:[#allocation8 + $0x744] ss:$16 sps:$4 sm:$0xff]  }
 0x507   :  { %12162 = vmatpush1.bf16.msra.mxu0 %v15461_v49  ;;  %12746 = vmatpush1.bf16.msra.mxu1 %v15464_v23  ;;  %v1908_v49 = vsub.s32 6, %v17046_v18  ;;  %v1904_v23 = vsub.s32 5, %v17046_v18 }
 0x508   :  { %12163 = vmatprep.subr.bf16.mxu0 %v15469_v52  ;;  %12747 = vmatprep.subr.bf16.mxu1 %v15472_v45  ;;  %v15536_v52 = vld [vmem:[#allocation8 + $0x688] ss:$16 sps:$4 sm:$0xff]   ;;  %v1912_v45 = vsub.s32 7, %v17046_v18 }
 0x50b   :  { %12164 = vmatpush1.bf16.msra.mxu0 %v15467_v35  ;;  %12748 = vmatpush1.bf16.msra.mxu1 %v15470_v17  ;;  %v15541_v35 = vld [vmem:[#allocation8 + $0x6a4] ss:$16 sps:$4 sm:$0xff]   ;;  %v15544_v17 = vld [vmem:[#allocation8 + $0x6ac] ss:$16 sps:$4 sm:$0xff]  }
 0x50c   :  { %12165 = vmatprep.subr.bf16.mxu0 %v15475_v12  ;;  %12749 = vmatprep.subr.bf16.mxu1 %v15478_v58  ;;  %v16011_v12 = vld [vmem:[#allocation2 + $0x190] sm:$0xff] }
 0x50d   :  { %v16012_v58 = vld [vmem:[#allocation2 + $0x1d0] sm:$0xff] }
 0x50f   :  { %12166 = vmatpush1.bf16.msra.mxu0 %v15473_v42  ;;  %12750 = vmatpush1.bf16.msra.mxu1 %v15476_v16  ;;  %v14309_v42 = vcombine.high %v16011_v12, %v16012_v58  ;;  %v16013_v16 = vld [vmem:[#allocation7] sm:$0xff] }
 0x510   :  { %12167 = vmatprep.subr.bf16.mxu0 %v15481_v38  ;;  %12751 = vmatprep.subr.bf16.mxu1 %v15484_v10  ;;  %v1901_v38 = vrot.slane %v16013_v16, %v1900_v60  ;;  %v1909_v10 = vrot.slane %v16013_v16, %v1908_v49  ;;  %v15575_v60 = vld [vmem:[#allocation8 + $0x760] ss:$16 sps:$4 sm:$0xff]   ;;  %v15586_v49 = vld [vmem:[#allocation8 + $0x78c] ss:$16 sps:$4 sm:$0xff]  }
 0x513   :  { %12168 = vmatpush1.bf16.msra.mxu0 %v15479_v31  ;;  %12752 = vmatpush1.bf16.msra.mxu1 %v15482_v50  ;;  %v1905_v31 = vrot.slane %v16013_v16, %v1904_v23  ;;  %v15539_v50 = vld [vmem:[#allocation8 + $0x6a0] ss:$16 sps:$4 sm:$0xff]  }
 0x514   :  { %12169 = vmatprep.subr.bf16.mxu0 %v15487_v62  ;;  %12753 = vmatprep.subr.bf16.mxu1 %v15490_v22  ;;  %v1913_v62 = vrot.slane %v16013_v16, %v1912_v45  ;;  %v15542_v22 = vld [vmem:[#allocation8 + $0x6a8] ss:$16 sps:$4 sm:$0xff]   ;;  %v15581_v23 = vld [vmem:[#allocation8 + $0x780] ss:$16 sps:$4 sm:$0xff]   ;;  %v15589_v45 = vld [vmem:[#allocation8 + $0x7a4] ss:$16 sps:$4 sm:$0xff]  }
 0x515   :  { %v15593_v16 = vld [vmem:[#allocation8 + $0x7c0] ss:$16 sps:$4 sm:$0xff]  }
 0x517   :  { %12170 = vmatpush1.bf16.msra.mxu0 %v15485_v28  ;;  %12754 = vmatpush1.bf16.msra.mxu1 %v15488_v40  ;;  %v15547_v28 = vld [vmem:[#allocation8 + $0x6c4] ss:$16 sps:$4 sm:$0xff]  }
 0x518   :  { %12171 = vmatprep.subr.bf16.mxu0 %v15493_v44  ;;  %12755 = vmatprep.subr.bf16.mxu1 %v15496_v1  ;;  %v15550_v44 = vld [vmem:[#allocation8 + $0x6cc] ss:$16 sps:$4 sm:$0xff]  }
 0x51b   :  { %12172 = vmatpush1.bf16.msra.mxu0 %v15491_v15  ;;  %12756 = vmatpush1.bf16.msra.mxu1 %v15494_v8 }
 0x51c   :  { %12173 = vmatprep.subr.bf16.mxu0 %v15499_v34  ;;  %12757 = vmatprep.subr.bf16.mxu1 %v15502_v54  ;;  %v14308_v34 = vcombine.low %v16011_v12, %v16012_v58  ;;  %v15590_v12 = vld [vmem:[#allocation8 + $0x7a8] ss:$16 sps:$4 sm:$0xff]   ;;  %v15595_v58 = vld [vmem:[#allocation8 + $0x7c4] ss:$16 sps:$4 sm:$0xff]  }
 0x51f   :  { %12174 = vmatpush1.bf16.msra.mxu0 %v15497_v43  ;;  %12758 = vmatpush1.bf16.msra.mxu1 %v15500_v20 }
 0x520   :  { %12175 = vmatprep.subr.bf16.mxu0 %v15505_v36  ;;  %12759 = vmatprep.subr.bf16.mxu1 %v15508_v21  ;;  %v15545_v21 = vld [vmem:[#allocation8 + $0x6c0] ss:$16 sps:$4 sm:$0xff]  }
 0x523   :  { %12176 = vmatpush1.bf16.msra.mxu0 %v15503_v19  ;;  %12760 = vmatpush1.bf16.msra.mxu1 %v15506_v7 }
 0x524   :  { %12218 = vmatprep.subr.bf16.mxu0 %v15511_v32  ;;  %12802 = vmatprep.subr.bf16.mxu1 %v15514_v0  ;;  %v15548_v0 = vld [vmem:[#allocation8 + $0x6c8] ss:$16 sps:$4 sm:$0xff]  }
 0x526   :  { %12178 = vmatmul.mubr.bf16.vlgmr.msra.gmra.mrb[8].mxu0 %v14260_v47  ;;  %12762 = vmatmul.mubr.bf16.vlgmr.msra.gmra.mrb[8].mxu1 %v14260_v47  ;;  %v15553_v47 = vld [vmem:[#allocation8 + $0x6e4] ss:$16 sps:$4 sm:$0xff]  }
 0x527   :  { %12219 = vmatpush1.bf16.msra.mxu0 %v15509_v30  ;;  %12803 = vmatpush1.bf16.msra.mxu1 %v15512_v11 }
 0x528   :  { %12220 = vmatprep.subr.bf16.mxu0 %v15517_v3  ;;  %12804 = vmatprep.subr.bf16.mxu1 %v15520_v46  ;;  %v15556_v3 = vld [vmem:[#allocation8 + $0x6ec] ss:$16 sps:$4 sm:$0xff]   ;;  %v17106_v46 = vld [vmem:[#allocation2 + $0x18] sm:$0xff] }
 0x529   :  { %12187 = vmatprep.mubr.bf16.mxu0 %v14277_v37  ;;  %12771 = vmatprep.mubr.bf16.mxu1 %v14277_v37  ;;  %v14263_v39 = vcombine.high %v17106_v46, %v17108_v13 }
 0x52b   :  { %12221 = vmatpush1.bf16.msra.mxu0 %v15515_v24  ;;  %12805 = vmatpush1.bf16.msra.mxu1 %v15518_v25  ;;  %v15551_v24 = vld [vmem:[#allocation8 + $0x6e0] ss:$16 sps:$4 sm:$0xff]   ;;  %v15554_v25 = vld [vmem:[#allocation8 + $0x6e8] ss:$16 sps:$4 sm:$0xff]  }
 0x52c   :  { %12222 = vmatprep.subr.bf16.mxu0 %v15523_v63  ;;  %12806 = vmatprep.subr.bf16.mxu1 %v15526_v5  ;;  %v15559_v63 = vld [vmem:[#allocation8 + $0x704] ss:$16 sps:$4 sm:$0xff]   ;;  %v15562_v5 = vld [vmem:[#allocation8 + $0x70c] ss:$16 sps:$4 sm:$0xff]  }
 0x52e   :  { %12188 = vmatmul.mubr.bf16.gmra.mrb[12].mxu0 %v14276_v29  ;;  %12772 = vmatmul.mubr.bf16.gmra.mrb[12].mxu1 %v14276_v29  ;;  %v15557_v29 = vld [vmem:[#allocation8 + $0x700] ss:$16 sps:$4 sm:$0xff]  }
 0x52f   :  { %12223 = vmatpush1.bf16.msra.mxu0 %v15521_v14  ;;  %12807 = vmatpush1.bf16.msra.mxu1 %v15524_v53  ;;  %v15560_v14 = vld [vmem:[#allocation8 + $0x708] ss:$16 sps:$4 sm:$0xff]   ;;  %v15565_v53 = vld [vmem:[#allocation8 + $0x724] ss:$16 sps:$4 sm:$0xff]  }
 0x530   :  { %12224 = vmatprep.subr.bf16.mxu0 %v15529_v9  ;;  %12808 = vmatprep.subr.bf16.mxu1 %v15532_v51  ;;  %v15568_v9 = vld [vmem:[#allocation8 + $0x72c] ss:$16 sps:$4 sm:$0xff]   ;;  %v15563_v51 = vld [vmem:[#allocation8 + $0x720] ss:$16 sps:$4 sm:$0xff]  }
 0x531   :  { %12197 = vmatprep.mubr.bf16.mxu0 %v14293_v6  ;;  %12781 = vmatprep.mubr.bf16.mxu1 %v14293_v6  ;;  %v15574_v6 = vld [vmem:[#allocation8 + $0x74c] ss:$16 sps:$4 sm:$0xff]  }
 0x533   :  { %12225 = vmatpush1.bf16.msra.mxu0 %v15527_v48  ;;  %12809 = vmatpush1.bf16.msra.mxu1 %v15530_v59  ;;  %v15569_v48 = vld [vmem:[#allocation8 + $0x740] ss:$16 sps:$4 sm:$0xff]   ;;  %v15572_v59 = vld [vmem:[#allocation8 + $0x748] ss:$16 sps:$4 sm:$0xff]  }
 0x534   :  { %12226 = vmatprep.subr.bf16.mxu0 %v15535_v4  ;;  %12810 = vmatprep.subr.bf16.mxu1 %v15538_v2  ;;  %v15577_v4 = vld [vmem:[#allocation8 + $0x764] ss:$16 sps:$4 sm:$0xff]   ;;  %v15580_v2 = vld [vmem:[#allocation8 + $0x76c] ss:$16 sps:$4 sm:$0xff]  }
 0x536   :  { %12198 = vmatmul.mubr.bf16.gmra.mrb[16].mxu0 %v14292_v57  ;;  %12782 = vmatmul.mubr.bf16.gmra.mrb[16].mxu1 %v14292_v57  ;;  %v15578_v57 = vld [vmem:[#allocation8 + $0x768] ss:$16 sps:$4 sm:$0xff]  }
 0x537   :  { %12227 = vmatpush1.bf16.msra.mxu0 %v15533_v56  ;;  %12811 = vmatpush1.bf16.msra.mxu1 %v15536_v52  ;;  %v15583_v56 = vld [vmem:[#allocation8 + $0x784] ss:$16 sps:$4 sm:$0xff]   ;;  %v15584_v52 = vld [vmem:[#allocation8 + $0x788] ss:$16 sps:$4 sm:$0xff]  }
 0x538   :  { %12228 = vmatprep.subr.bf16.mxu0 %v15541_v35  ;;  %12812 = vmatprep.subr.bf16.mxu1 %v15544_v17  ;;  %v15592_v35 = vld [vmem:[#allocation8 + $0x7ac] ss:$16 sps:$4 sm:$0xff]   ;;  %v15587_v17 = vld [vmem:[#allocation8 + $0x7a0] ss:$16 sps:$4 sm:$0xff]  }
 0x539   :  { %v8230_v40 = vpop.f32.mrb[4].mxu0  ;;  %12207 = vmatprep.mubr.bf16.mxu0 %v14309_v42  ;;  %v8558_v15 = vpop.f32.mrb[4].mxu1  ;;  %12791 = vmatprep.mubr.bf16.mxu1 %v14309_v42  ;;  %v15598_v42 = vld [vmem:[#allocation8 + $0x7cc] ss:$16 sps:$4 sm:$0xff]  }
 0x53a   :  { %v14836_v1 = vadd.f32 %v8230_v40, %v1901_v38  ;;  %v8232_v8 = vpop.f32.mrb[5].mxu0  ;;  %v14838_v54 = vadd.f32 %v8558_v15, %v1909_v10  ;;  %v8560_v20 = vpop.f32.mrb[5].mxu1  ;;  %v15596_v38 = vld [vmem:[#allocation8 + $0x7c8] ss:$16 sps:$4 sm:$0xff]   ;;  %v15601_v10 = vld [vmem:[#allocation8 + $0x7e4] ss:$16 sps:$4 sm:$0xff]   ;;  %v14262_v40 = vcombine.low %v17106_v46, %v17108_v13 }
 0x53b   :  { %v14837_v43 = vadd.f32 %v8232_v8, %v1905_v31  ;;  %v8234_v36 = vpop.f32.mrb[6].mxu0  ;;  %12229 = vmatpush1.bf16.msra.mxu0 %v15539_v50  ;;  %v14839_v19 = vadd.f32 %v8560_v20, %v1913_v62  ;;  %v8562_v7 = vpop.f32.mrb[6].mxu1  ;;  %12813 = vmatpush1.bf16.msra.mxu1 %v15542_v22  ;;  %v15604_v31 = vld [vmem:[#allocation8 + $0x7ec] ss:$16 sps:$4 sm:$0xff]   ;;  %v15599_v50 = vld [vmem:[#allocation8 + $0x7e0] ss:$16 sps:$4 sm:$0xff]  }
 0x53c   :  { %v8235_v32 = vpop.f32.mrb[7].mxu0  ;;  %12230 = vmatprep.subr.bf16.mxu0 %v15547_v28  ;;  %v8563_v11 = vpop.f32.mrb[7].mxu1  ;;  %12814 = vmatprep.subr.bf16.mxu1 %v15550_v44  ;;  %v15602_v62 = vld [vmem:[#allocation8 + $0x7e8] ss:$16 sps:$4 sm:$0xff]   ;;  %v15607_v22 = vld [vmem:[#allocation8 + $0x804] ss:$16 sps:$4 sm:$0xff]  }
 0x53d   :  { %v8575_v30 = vcombine.low %v14836_v1, %v14837_v43  ;;  %v8576_v37 = vcombine.low %v14838_v54, %v14839_v19  ;;  %v15610_v28 = vld [vmem:[#allocation8 + $0x80c] ss:$16 sps:$4 sm:$0xff]   ;;  %v15605_v44 = vld [vmem:[#allocation8 + $0x800] ss:$16 sps:$4 sm:$0xff]   ;;  %v15608_v1 = vld [vmem:[#allocation8 + $0x808] ss:$16 sps:$4 sm:$0xff]  }
 0x53e   :  { %12208 = vmatmul.mubr.bf16.gmra.mrb[20].mxu0 %v14308_v34  ;;  %12792 = vmatmul.mubr.bf16.gmra.mrb[20].mxu1 %v14308_v34  ;;  %v15613_v15 = vld [vmem:[#allocation8 + $0x824] ss:$16 sps:$4 sm:$0xff]   ;;  %v15616_v8 = vld [vmem:[#allocation8 + $0x82c] ss:$16 sps:$4 sm:$0xff]   ;;  %v15611_v20 = vld [vmem:[#allocation8 + $0x820] ss:$16 sps:$4 sm:$0xff]  }
 0x53f   :  { %8583 = vst [vmem:[#allocation11 + $0x10] sm:$0xff] %v8575_v30  ;;  %12231 = vmatpush1.bf16.msra.mxu0 %v15545_v21  ;;  %8584 = vst [vmem:[#allocation11 + $0x18] sm:$0xff] %v8576_v37  ;;  %12815 = vmatpush1.bf16.msra.mxu1 %v15548_v0  ;;  %v16016_v34 = vld [vmem:[#allocation2 + $0x98] sm:$0xff]  ;;  %v15614_v36 = vld [vmem:[#allocation8 + $0x828] ss:$16 sps:$4 sm:$0xff]  }
 0x540   :  { %12232 = vmatprep.subr.bf16.mxu0 %v15553_v47  ;;  %12816 = vmatprep.subr.bf16.mxu1 %v15556_v3  ;;  %v16017_v54 = vld [vmem:[#allocation2 + $0xd8] sm:$0xff]  ;;  %v15622_v19 = vld [vmem:[#allocation8 + $0x84c] ss:$16 sps:$4 sm:$0xff]   ;;  %v15620_v0 = vld [vmem:[#allocation8 + $0x848] ss:$16 sps:$4 sm:$0xff]  }
 0x541   :  { %12250 = vmatprep.mubr.bf16.mxu0 %v14263_v39  ;;  %12834 = vmatprep.mubr.bf16.mxu1 %v14263_v39  ;;  %v14279_v43 = vcombine.high %v16016_v34, %v16017_v54  ;;  %v15619_v21 = vld [vmem:[#allocation8 + $0x844] ss:$16 sps:$4 sm:$0xff]   ;;  %v14278_v7 = vcombine.low %v16016_v34, %v16017_v54  ;;  %v15617_v32 = vld [vmem:[#allocation8 + $0x840] ss:$16 sps:$4 sm:$0xff]   ;;  %v15628_v30 = vld [vmem:[#allocation8 + $0x86c] ss:$16 sps:$4 sm:$0xff]  }
 0x542   :  { %v15625_v47 = vld [vmem:[#allocation8 + $0x864] ss:$16 sps:$4 sm:$0xff]   ;;  %v15623_v13 = vld [vmem:[#allocation8 + $0x860] ss:$16 sps:$4 sm:$0xff]   ;;  %v15626_v39 = vld [vmem:[#allocation8 + $0x868] ss:$16 sps:$4 sm:$0xff]  }
 0x543   :  { %12233 = vmatpush1.bf16.msra.mxu0 %v15551_v24  ;;  %12817 = vmatpush1.bf16.msra.mxu1 %v15554_v25  ;;  %v16018_v11 = vld [vmem:[#allocation2 + $0x118] sm:$0xff]  ;;  %v15634_v24 = vld [vmem:[#allocation8 + $0x88c] ss:$16 sps:$4 sm:$0xff]   ;;  %v15680_v54 = vld [vmem:[#allocation8 + $0x988] ss:$16 sps:$4 sm:$0xff]  }
 0x544   :  { %12234 = vmatprep.subr.bf16.mxu0 %v15559_v63  ;;  %12818 = vmatprep.subr.bf16.mxu1 %v15562_v5  ;;  %v16019_v3 = vld [vmem:[#allocation2 + $0x158] sm:$0xff]  ;;  %v15632_v5 = vld [vmem:[#allocation8 + $0x888] ss:$16 sps:$4 sm:$0xff]  }
 0x545   :  { %v14295_v46 = vcombine.high %v16018_v11, %v16019_v3  ;;  %v15631_v37 = vld [vmem:[#allocation8 + $0x884] ss:$16 sps:$4 sm:$0xff]   ;;  %v14294_v25 = vcombine.low %v16018_v11, %v16019_v3  ;;  %v15629_v63 = vld [vmem:[#allocation8 + $0x880] ss:$16 sps:$4 sm:$0xff]   ;;  %v15698_v3 = vld [vmem:[#allocation8 + $0x9e8] ss:$16 sps:$4 sm:$0xff]  }
 0x546   :  { %v15677_v34 = vld [vmem:[#allocation8 + $0x980] ss:$16 sps:$4 sm:$0xff]  }
 0x547   :  { %12235 = vmatpush1.bf16.msra.mxu0 %v15557_v29  ;;  %12819 = vmatpush1.bf16.msra.mxu1 %v15560_v14  ;;  %v15637_v29 = vld [vmem:[#allocation8 + $0x8a4] ss:$16 sps:$4 sm:$0xff]   ;;  %v15640_v14 = vld [vmem:[#allocation8 + $0x8ac] ss:$16 sps:$4 sm:$0xff]   ;;  %v15695_v11 = vld [vmem:[#allocation8 + $0x9e0] ss:$16 sps:$4 sm:$0xff]  }
 0x548   :  { %12236 = vmatprep.subr.bf16.mxu0 %v15565_v53  ;;  %12820 = vmatprep.subr.bf16.mxu1 %v15568_v9  ;;  %v16020_v53 = vld [vmem:[#allocation2 + $0x198] sm:$0xff] }
 0x549   :  { %v16021_v9 = vld [vmem:[#allocation2 + $0x1d8] sm:$0xff] }
 0x54b   :  { %12237 = vmatpush1.bf16.msra.mxu0 %v15563_v51  ;;  %12821 = vmatpush1.bf16.msra.mxu1 %v15566_v55  ;;  %v14311_v51 = vcombine.high %v16020_v53, %v16021_v9  ;;  %v15635_v55 = vld [vmem:[#allocation8 + $0x8a0] ss:$16 sps:$4 sm:$0xff]  }
 0x54c   :  { %12238 = vmatprep.subr.bf16.mxu0 %v15571_v26  ;;  %12822 = vmatprep.subr.bf16.mxu1 %v15574_v6  ;;  %v15638_v26 = vld [vmem:[#allocation8 + $0x8a8] ss:$16 sps:$4 sm:$0xff]   ;;  %v15643_v6 = vld [vmem:[#allocation8 + $0x8c4] ss:$16 sps:$4 sm:$0xff]  }
 0x54f   :  { %12239 = vmatpush1.bf16.msra.mxu0 %v15569_v48  ;;  %12823 = vmatpush1.bf16.msra.mxu1 %v15572_v59  ;;  %v15646_v48 = vld [vmem:[#allocation8 + $0x8cc] ss:$16 sps:$4 sm:$0xff]   ;;  %v14310_v59 = vcombine.low %v16020_v53, %v16021_v9  ;;  %v15707_v53 = vld [vmem:[#allocation8 + $0xa20] ss:$16 sps:$4 sm:$0xff]   ;;  %v15710_v9 = vld [vmem:[#allocation8 + $0xa28] ss:$16 sps:$4 sm:$0xff]  }
 0x550   :  { %12240 = vmatprep.subr.bf16.mxu0 %v15577_v4  ;;  %12824 = vmatprep.subr.bf16.mxu1 %v15580_v2  ;;  %v15641_v4 = vld [vmem:[#allocation8 + $0x8c0] ss:$16 sps:$4 sm:$0xff]   ;;  %v15644_v2 = vld [vmem:[#allocation8 + $0x8c8] ss:$16 sps:$4 sm:$0xff]  }
 0x553   :  { %12241 = vmatpush1.bf16.msra.mxu0 %v15575_v60  ;;  %12825 = vmatpush1.bf16.msra.mxu1 %v15578_v57  ;;  %v15649_v60 = vld [vmem:[#allocation8 + $0x8e4] ss:$16 sps:$4 sm:$0xff]   ;;  %v15652_v57 = vld [vmem:[#allocation8 + $0x8ec] ss:$16 sps:$4 sm:$0xff]  }
 0x554   :  { %12242 = vmatprep.subr.bf16.mxu0 %v15583_v56  ;;  %12826 = vmatprep.subr.bf16.mxu1 %v15586_v49  ;;  %v17114_v56 = vld [vmem:[#allocation2 + $0x20] sm:$0xff] }
 0x555   :  { %v17116_v49 = vld [vmem:[#allocation2 + $0x60] sm:$0xff] }
 0x557   :  { %12243 = vmatpush1.bf16.msra.mxu0 %v15581_v23  ;;  %12827 = vmatpush1.bf16.msra.mxu1 %v15584_v52  ;;  %v14265_v23 = vcombine.high %v17114_v56, %v17116_v49  ;;  %v15647_v52 = vld [vmem:[#allocation8 + $0x8e0] ss:$16 sps:$4 sm:$0xff]  }
 0x558   :  { %12244 = vmatprep.subr.bf16.mxu0 %v15589_v45  ;;  %12828 = vmatprep.subr.bf16.mxu1 %v15592_v35  ;;  %v15650_v45 = vld [vmem:[#allocation8 + $0x8e8] ss:$16 sps:$4 sm:$0xff]   ;;  %v15655_v35 = vld [vmem:[#allocation8 + $0x904] ss:$16 sps:$4 sm:$0xff]  }
 0x55b   :  { %12245 = vmatpush1.bf16.msra.mxu0 %v15587_v17  ;;  %12829 = vmatpush1.bf16.msra.mxu1 %v15590_v12  ;;  %v15658_v17 = vld [vmem:[#allocation8 + $0x90c] ss:$16 sps:$4 sm:$0xff]   ;;  %v15653_v12 = vld [vmem:[#allocation8 + $0x900] ss:$16 sps:$4 sm:$0xff]  }
 0x55c   :  { %12246 = vmatprep.subr.bf16.mxu0 %v15595_v58  ;;  %12830 = vmatprep.subr.bf16.mxu1 %v15598_v42  ;;  %v15656_v58 = vld [vmem:[#allocation8 + $0x908] ss:$16 sps:$4 sm:$0xff]   ;;  %v15661_v42 = vld [vmem:[#allocation8 + $0x924] ss:$16 sps:$4 sm:$0xff]  }
 0x55f   :  { %12247 = vmatpush1.bf16.msra.mxu0 %v15593_v16  ;;  %12831 = vmatpush1.bf16.msra.mxu1 %v15596_v38  ;;  %v15664_v16 = vld [vmem:[#allocation8 + $0x92c] ss:$16 sps:$4 sm:$0xff]   ;;  %v15659_v38 = vld [vmem:[#allocation8 + $0x920] ss:$16 sps:$4 sm:$0xff]  }
 0x560   :  { %12248 = vmatprep.subr.bf16.mxu0 %v15601_v10  ;;  %12832 = vmatprep.subr.bf16.mxu1 %v15604_v31  ;;  %v15662_v10 = vld [vmem:[#allocation8 + $0x928] ss:$16 sps:$4 sm:$0xff]   ;;  %v15667_v31 = vld [vmem:[#allocation8 + $0x944] ss:$16 sps:$4 sm:$0xff]  }
 0x563   :  { %12249 = vmatpush1.bf16.msra.mxu0 %v15599_v50  ;;  %12833 = vmatpush1.bf16.msra.mxu1 %v15602_v62  ;;  %v15670_v50 = vld [vmem:[#allocation8 + $0x94c] ss:$16 sps:$4 sm:$0xff]   ;;  %v15665_v62 = vld [vmem:[#allocation8 + $0x940] ss:$16 sps:$4 sm:$0xff]  }
 0x564   :  { %12291 = vmatprep.subr.bf16.mxu0 %v15607_v22  ;;  %12875 = vmatprep.subr.bf16.mxu1 %v15610_v28  ;;  %v15668_v22 = vld [vmem:[#allocation8 + $0x948] ss:$16 sps:$4 sm:$0xff]   ;;  %v15673_v28 = vld [vmem:[#allocation8 + $0x964] ss:$16 sps:$4 sm:$0xff]  }
 0x566   :  { %12251 = vmatmul.mubr.bf16.vlgmr.msra.gmra.mrb[8].mxu0 %v14262_v40  ;;  %12835 = vmatmul.mubr.bf16.vlgmr.msra.gmra.mrb[8].mxu1 %v14262_v40  ;;  %v15676_v40 = vld [vmem:[#allocation8 + $0x96c] ss:$16 sps:$4 sm:$0xff]  }
 0x567   :  { %12292 = vmatpush1.bf16.msra.mxu0 %v15605_v44  ;;  %12876 = vmatpush1.bf16.msra.mxu1 %v15608_v1  ;;  %v15671_v44 = vld [vmem:[#allocation8 + $0x960] ss:$16 sps:$4 sm:$0xff]   ;;  %v15674_v1 = vld [vmem:[#allocation8 + $0x968] ss:$16 sps:$4 sm:$0xff]  }
 0x568   :  { %12293 = vmatprep.subr.bf16.mxu0 %v15613_v15  ;;  %12877 = vmatprep.subr.bf16.mxu1 %v15616_v8  ;;  %v15679_v15 = vld [vmem:[#allocation8 + $0x984] ss:$16 sps:$4 sm:$0xff]   ;;  %v15682_v8 = vld [vmem:[#allocation8 + $0x98c] ss:$16 sps:$4 sm:$0xff]  }
 0x569   :  { %12260 = vmatprep.mubr.bf16.mxu0 %v14279_v43  ;;  %12844 = vmatprep.mubr.bf16.mxu1 %v14279_v43  ;;  %v15685_v43 = vld [vmem:[#allocation8 + $0x9a4] ss:$16 sps:$4 sm:$0xff]  }
 0x56b   :  { %12294 = vmatpush1.bf16.msra.mxu0 %v15611_v20  ;;  %12878 = vmatpush1.bf16.msra.mxu1 %v15614_v36  ;;  %v15688_v20 = vld [vmem:[#allocation8 + $0x9ac] ss:$16 sps:$4 sm:$0xff]   ;;  %v15683_v36 = vld [vmem:[#allocation8 + $0x9a0] ss:$16 sps:$4 sm:$0xff]  }
 0x56c   :  { %12295 = vmatprep.subr.bf16.mxu0 %v15619_v21  ;;  %12879 = vmatprep.subr.bf16.mxu1 %v15622_v19  ;;  %v15686_v21 = vld [vmem:[#allocation8 + $0x9a8] ss:$16 sps:$4 sm:$0xff]   ;;  %v15691_v19 = vld [vmem:[#allocation8 + $0x9c4] ss:$16 sps:$4 sm:$0xff]  }
 0x56e   :  { %12261 = vmatmul.mubr.bf16.gmra.mrb[12].mxu0 %v14278_v7  ;;  %12845 = vmatmul.mubr.bf16.gmra.mrb[12].mxu1 %v14278_v7  ;;  %v15694_v7 = vld [vmem:[#allocation8 + $0x9cc] ss:$16 sps:$4 sm:$0xff]  }
 0x56f   :  { %12296 = vmatpush1.bf16.msra.mxu0 %v15617_v32  ;;  %12880 = vmatpush1.bf16.msra.mxu1 %v15620_v0  ;;  %v15689_v32 = vld [vmem:[#allocation8 + $0x9c0] ss:$16 sps:$4 sm:$0xff]   ;;  %v15692_v0 = vld [vmem:[#allocation8 + $0x9c8] ss:$16 sps:$4 sm:$0xff]  }
 0x570   :  { %12297 = vmatprep.subr.bf16.mxu0 %v15625_v47  ;;  %12881 = vmatprep.subr.bf16.mxu1 %v15628_v30  ;;  %v15697_v47 = vld [vmem:[#allocation8 + $0x9e4] ss:$16 sps:$4 sm:$0xff]   ;;  %v15700_v30 = vld [vmem:[#allocation8 + $0x9ec] ss:$16 sps:$4 sm:$0xff]  }
 0x571   :  { %12270 = vmatprep.mubr.bf16.mxu0 %v14295_v46  ;;  %12854 = vmatprep.mubr.bf16.mxu1 %v14295_v46  ;;  %v15703_v46 = vld [vmem:[#allocation8 + $0xa04] ss:$16 sps:$4 sm:$0xff]  }
 0x573   :  { %12298 = vmatpush1.bf16.msra.mxu0 %v15623_v13  ;;  %12882 = vmatpush1.bf16.msra.mxu1 %v15626_v39  ;;  %v15706_v13 = vld [vmem:[#allocation8 + $0xa0c] ss:$16 sps:$4 sm:$0xff]   ;;  %v14264_v39 = vcombine.low %v17114_v56, %v17116_v49  ;;  %v15719_v56 = vld [vmem:[#allocation8 + $0xa60] ss:$16 sps:$4 sm:$0xff]   ;;  %v15722_v49 = vld [vmem:[#allocation8 + $0xa68] ss:$16 sps:$4 sm:$0xff]  }
 0x574   :  { %12299 = vmatprep.subr.bf16.mxu0 %v15631_v37  ;;  %12883 = vmatprep.subr.bf16.mxu1 %v15634_v24  ;;  %v15701_v37 = vld [vmem:[#allocation8 + $0xa00] ss:$16 sps:$4 sm:$0xff]   ;;  %v15704_v24 = vld [vmem:[#allocation8 + $0xa08] ss:$16 sps:$4 sm:$0xff]  }
 0x576   :  { %12271 = vmatmul.mubr.bf16.gmra.mrb[16].mxu0 %v14294_v25  ;;  %12855 = vmatmul.mubr.bf16.gmra.mrb[16].mxu1 %v14294_v25  ;;  %v15709_v25 = vld [vmem:[#allocation8 + $0xa24] ss:$16 sps:$4 sm:$0xff]  }
 0x577   :  { %12300 = vmatpush1.bf16.msra.mxu0 %v15629_v63  ;;  %12884 = vmatpush1.bf16.msra.mxu1 %v15632_v5  ;;  %v15712_v63 = vld [vmem:[#allocation8 + $0xa2c] ss:$16 sps:$4 sm:$0xff]  }
 0x578   :  { %12301 = vmatprep.subr.bf16.mxu0 %v15637_v29  ;;  %12885 = vmatprep.subr.bf16.mxu1 %v15640_v14  ;;  %v16024_v5 = vld [vmem:[#allocation2 + $0xa0] sm:$0xff] }
 0x579   :  { %12280 = vmatprep.mubr.bf16.mxu0 %v14311_v51  ;;  %12864 = vmatprep.mubr.bf16.mxu1 %v14311_v51  ;;  %v16025_v29 = vld [vmem:[#allocation2 + $0xe0] sm:$0xff]  ;;  %v15715_v51 = vld [vmem:[#allocation8 + $0xa44] ss:$16 sps:$4 sm:$0xff]  }
 0x57a   :  { %v14281_v14 = vcombine.high %v16024_v5, %v16025_v29 }
 0x57b   :  { %12302 = vmatpush1.bf16.msra.mxu0 %v15635_v55  ;;  %12886 = vmatpush1.bf16.msra.mxu1 %v15638_v26  ;;  %v15718_v55 = vld [vmem:[#allocation8 + $0xa4c] ss:$16 sps:$4 sm:$0xff]   ;;  %v14280_v26 = vcombine.low %v16024_v5, %v16025_v29  ;;  %v15773_v5 = vld [vmem:[#allocation8 + $0xb80] ss:$16 sps:$4 sm:$0xff]   ;;  %v15776_v29 = vld [vmem:[#allocation8 + $0xb88] ss:$16 sps:$4 sm:$0xff]  }
 0x57c   :  { %12303 = vmatprep.subr.bf16.mxu0 %v15643_v6  ;;  %12887 = vmatprep.subr.bf16.mxu1 %v15646_v48  ;;  %v15713_v6 = vld [vmem:[#allocation8 + $0xa40] ss:$16 sps:$4 sm:$0xff]   ;;  %v15716_v48 = vld [vmem:[#allocation8 + $0xa48] ss:$16 sps:$4 sm:$0xff]  }
 0x57e   :  { %12281 = vmatmul.mubr.bf16.gmra.mrb[20].mxu0 %v14310_v59  ;;  %12865 = vmatmul.mubr.bf16.gmra.mrb[20].mxu1 %v14310_v59  ;;  %v15721_v59 = vld [vmem:[#allocation8 + $0xa64] ss:$16 sps:$4 sm:$0xff]  }
 0x57f   :  { %12304 = vmatpush1.bf16.msra.mxu0 %v15641_v4  ;;  %12888 = vmatpush1.bf16.msra.mxu1 %v15644_v2  ;;  %v15724_v4 = vld [vmem:[#allocation8 + $0xa6c] ss:$16 sps:$4 sm:$0xff]  }
 0x580   :  { %12305 = vmatprep.subr.bf16.mxu0 %v15649_v60  ;;  %12889 = vmatprep.subr.bf16.mxu1 %v15652_v57  ;;  %v16026_v2 = vld [vmem:[#allocation2 + $0x120] sm:$0xff] }
 0x581   :  { %12323 = vmatprep.mubr.bf16.mxu0 %v14265_v23  ;;  %12907 = vmatprep.mubr.bf16.mxu1 %v14265_v23  ;;  %v16027_v60 = vld [vmem:[#allocation2 + $0x160] sm:$0xff]  ;;  %v15727_v23 = vld [vmem:[#allocation8 + $0xa84] ss:$16 sps:$4 sm:$0xff]  }
 0x582   :  { %v14297_v57 = vcombine.high %v16026_v2, %v16027_v60 }
 0x583   :  { %12306 = vmatpush1.bf16.msra.mxu0 %v15647_v52  ;;  %12890 = vmatpush1.bf16.msra.mxu1 %v15650_v45  ;;  %v15730_v52 = vld [vmem:[#allocation8 + $0xa8c] ss:$16 sps:$4 sm:$0xff]   ;;  %v14296_v45 = vcombine.low %v16026_v2, %v16027_v60  ;;  %v15791_v2 = vld [vmem:[#allocation8 + $0xbe0] ss:$16 sps:$4 sm:$0xff]   ;;  %v15794_v60 = vld [vmem:[#allocation8 + $0xbe8] ss:$16 sps:$4 sm:$0xff]  }
 0x584   :  { %12307 = vmatprep.subr.bf16.mxu0 %v15655_v35  ;;  %12891 = vmatprep.subr.bf16.mxu1 %v15658_v17  ;;  %v15725_v35 = vld [vmem:[#allocation8 + $0xa80] ss:$16 sps:$4 sm:$0xff]   ;;  %v15728_v17 = vld [vmem:[#allocation8 + $0xa88] ss:$16 sps:$4 sm:$0xff]  }
 0x587   :  { %12308 = vmatpush1.bf16.msra.mxu0 %v15653_v12  ;;  %12892 = vmatpush1.bf16.msra.mxu1 %v15656_v58  ;;  %v15733_v12 = vld [vmem:[#allocation8 + $0xaa4] ss:$16 sps:$4 sm:$0xff]   ;;  %v15736_v58 = vld [vmem:[#allocation8 + $0xaac] ss:$16 sps:$4 sm:$0xff]  }
 0x588   :  { %12309 = vmatprep.subr.bf16.mxu0 %v15661_v42  ;;  %12893 = vmatprep.subr.bf16.mxu1 %v15664_v16  ;;  %v16028_v42 = vld [vmem:[#allocation2 + $0x1a0] sm:$0xff] }
 0x589   :  { %v16029_v16 = vld [vmem:[#allocation2 + $0x1e0] sm:$0xff] }
 0x58b   :  { %12310 = vmatpush1.bf16.msra.mxu0 %v15659_v38  ;;  %12894 = vmatpush1.bf16.msra.mxu1 %v15662_v10  ;;  %v14313_v38 = vcombine.high %v16028_v42, %v16029_v16  ;;  %v15731_v10 = vld [vmem:[#allocation8 + $0xaa0] ss:$16 sps:$4 sm:$0xff]  }
 0x58c   :  { %12311 = vmatprep.subr.bf16.mxu0 %v15667_v31  ;;  %12895 = vmatprep.subr.bf16.mxu1 %v15670_v50  ;;  %v15734_v31 = vld [vmem:[#allocation8 + $0xaa8] ss:$16 sps:$4 sm:$0xff]   ;;  %v15739_v50 = vld [vmem:[#allocation8 + $0xac4] ss:$16 sps:$4 sm:$0xff]  }
 0x58f   :  { %12312 = vmatpush1.bf16.msra.mxu0 %v15665_v62  ;;  %12896 = vmatpush1.bf16.msra.mxu1 %v15668_v22  ;;  %v15742_v62 = vld [vmem:[#allocation8 + $0xacc] ss:$16 sps:$4 sm:$0xff]   ;;  %v14312_v22 = vcombine.low %v16028_v42, %v16029_v16  ;;  %v15803_v42 = vld [vmem:[#allocation8 + $0xc20] ss:$16 sps:$4 sm:$0xff]   ;;  %v15806_v16 = vld [vmem:[#allocation8 + $0xc28] ss:$16 sps:$4 sm:$0xff]  }
 0x590   :  { %12313 = vmatprep.subr.bf16.mxu0 %v15673_v28  ;;  %12897 = vmatprep.subr.bf16.mxu1 %v15676_v40  ;;  %v15737_v28 = vld [vmem:[#allocation8 + $0xac0] ss:$16 sps:$4 sm:$0xff]   ;;  %v15740_v40 = vld [vmem:[#allocation8 + $0xac8] ss:$16 sps:$4 sm:$0xff]  }
 0x593   :  { %12314 = vmatpush1.bf16.msra.mxu0 %v15671_v44  ;;  %12898 = vmatpush1.bf16.msra.mxu1 %v15674_v1  ;;  %v15745_v44 = vld [vmem:[#allocation8 + $0xae4] ss:$16 sps:$4 sm:$0xff]   ;;  %v15748_v1 = vld [vmem:[#allocation8 + $0xaec] ss:$16 sps:$4 sm:$0xff]  }
 0x594   :  { %12315 = vmatprep.subr.bf16.mxu0 %v15679_v15  ;;  %12899 = vmatprep.subr.bf16.mxu1 %v15682_v8  ;;  %v17122_v15 = vld [vmem:[#allocation2 + $0x28] sm:$0xff] }
 0x595   :  { %v17124_v8 = vld [vmem:[#allocation2 + $0x68] sm:$0xff] }
 0x597   :  { %12316 = vmatpush1.bf16.msra.mxu0 %v15677_v34  ;;  %12900 = vmatpush1.bf16.msra.mxu1 %v15680_v54  ;;  %v14267_v34 = vcombine.high %v17122_v15, %v17124_v8  ;;  %v15743_v54 = vld [vmem:[#allocation8 + $0xae0] ss:$16 sps:$4 sm:$0xff]  }
 0x598   :  { %12317 = vmatprep.subr.bf16.mxu0 %v15685_v43  ;;  %12901 = vmatprep.subr.bf16.mxu1 %v15688_v20  ;;  %v15746_v43 = vld [vmem:[#allocation8 + $0xae8] ss:$16 sps:$4 sm:$0xff]   ;;  %v15751_v20 = vld [vmem:[#allocation8 + $0xb04] ss:$16 sps:$4 sm:$0xff]  }
 0x59b   :  { %12318 = vmatpush1.bf16.msra.mxu0 %v15683_v36  ;;  %12902 = vmatpush1.bf16.msra.mxu1 %v15686_v21  ;;  %v15754_v36 = vld [vmem:[#allocation8 + $0xb0c] ss:$16 sps:$4 sm:$0xff]   ;;  %v15749_v21 = vld [vmem:[#allocation8 + $0xb00] ss:$16 sps:$4 sm:$0xff]  }
 0x59c   :  { %12319 = vmatprep.subr.bf16.mxu0 %v15691_v19  ;;  %12903 = vmatprep.subr.bf16.mxu1 %v15694_v7  ;;  %v15752_v19 = vld [vmem:[#allocation8 + $0xb08] ss:$16 sps:$4 sm:$0xff]   ;;  %v15757_v7 = vld [vmem:[#allocation8 + $0xb24] ss:$16 sps:$4 sm:$0xff]  }
 0x59f   :  { %12320 = vmatpush1.bf16.msra.mxu0 %v15689_v32  ;;  %12904 = vmatpush1.bf16.msra.mxu1 %v15692_v0  ;;  %v15760_v32 = vld [vmem:[#allocation8 + $0xb2c] ss:$16 sps:$4 sm:$0xff]   ;;  %v15755_v0 = vld [vmem:[#allocation8 + $0xb20] ss:$16 sps:$4 sm:$0xff]  }
 0x5a0   :  { %12321 = vmatprep.subr.bf16.mxu0 %v15697_v47  ;;  %12905 = vmatprep.subr.bf16.mxu1 %v15700_v30  ;;  %v15758_v47 = vld [vmem:[#allocation8 + $0xb28] ss:$16 sps:$4 sm:$0xff]   ;;  %v15763_v30 = vld [vmem:[#allocation8 + $0xb44] ss:$16 sps:$4 sm:$0xff]  }
 0x5a3   :  { %12322 = vmatpush1.bf16.msra.mxu0 %v15695_v11  ;;  %12906 = vmatpush1.bf16.msra.mxu1 %v15698_v3  ;;  %v15766_v11 = vld [vmem:[#allocation8 + $0xb4c] ss:$16 sps:$4 sm:$0xff]   ;;  %v15761_v3 = vld [vmem:[#allocation8 + $0xb40] ss:$16 sps:$4 sm:$0xff]  }
 0x5a4   :  { %12364 = vmatprep.subr.bf16.mxu0 %v15703_v46  ;;  %12948 = vmatprep.subr.bf16.mxu1 %v15706_v13  ;;  %v15764_v46 = vld [vmem:[#allocation8 + $0xb48] ss:$16 sps:$4 sm:$0xff]   ;;  %v15769_v13 = vld [vmem:[#allocation8 + $0xb64] ss:$16 sps:$4 sm:$0xff]  }
 0x5a6   :  { %12324 = vmatmul.mubr.bf16.vlgmr.msra.gmra.mrb[8].mxu0 %v14264_v39  ;;  %12908 = vmatmul.mubr.bf16.vlgmr.msra.gmra.mrb[8].mxu1 %v14264_v39  ;;  %v15772_v39 = vld [vmem:[#allocation8 + $0xb6c] ss:$16 sps:$4 sm:$0xff]  }
 0x5a7   :  { %12365 = vmatpush1.bf16.msra.mxu0 %v15701_v37  ;;  %12949 = vmatpush1.bf16.msra.mxu1 %v15704_v24  ;;  %v15767_v37 = vld [vmem:[#allocation8 + $0xb60] ss:$16 sps:$4 sm:$0xff]   ;;  %v15770_v24 = vld [vmem:[#allocation8 + $0xb68] ss:$16 sps:$4 sm:$0xff]  }
 0x5a8   :  { %12366 = vmatprep.subr.bf16.mxu0 %v15709_v25  ;;  %12950 = vmatprep.subr.bf16.mxu1 %v15712_v63  ;;  %v15775_v25 = vld [vmem:[#allocation8 + $0xb84] ss:$16 sps:$4 sm:$0xff]   ;;  %v15778_v63 = vld [vmem:[#allocation8 + $0xb8c] ss:$16 sps:$4 sm:$0xff]  }
 0x5a9   :  { %12333 = vmatprep.mubr.bf16.mxu0 %v14281_v14  ;;  %12917 = vmatprep.mubr.bf16.mxu1 %v14281_v14  ;;  %v15781_v14 = vld [vmem:[#allocation8 + $0xba4] ss:$16 sps:$4 sm:$0xff]  }
 0x5ab   :  { %12367 = vmatpush1.bf16.msra.mxu0 %v15707_v53  ;;  %12951 = vmatpush1.bf16.msra.mxu1 %v15710_v9  ;;  %v15784_v53 = vld [vmem:[#allocation8 + $0xbac] ss:$16 sps:$4 sm:$0xff]   ;;  %v15779_v9 = vld [vmem:[#allocation8 + $0xba0] ss:$16 sps:$4 sm:$0xff]  }
 0x5ac   :  { %12368 = vmatprep.subr.bf16.mxu0 %v15715_v51  ;;  %12952 = vmatprep.subr.bf16.mxu1 %v15718_v55  ;;  %v15782_v51 = vld [vmem:[#allocation8 + $0xba8] ss:$16 sps:$4 sm:$0xff]   ;;  %v15787_v55 = vld [vmem:[#allocation8 + $0xbc4] ss:$16 sps:$4 sm:$0xff]  }
 0x5ae   :  { %12334 = vmatmul.mubr.bf16.gmra.mrb[12].mxu0 %v14280_v26  ;;  %12918 = vmatmul.mubr.bf16.gmra.mrb[12].mxu1 %v14280_v26  ;;  %v15790_v26 = vld [vmem:[#allocation8 + $0xbcc] ss:$16 sps:$4 sm:$0xff]  }
 0x5af   :  { %12369 = vmatpush1.bf16.msra.mxu0 %v15713_v6  ;;  %12953 = vmatpush1.bf16.msra.mxu1 %v15716_v48  ;;  %v15785_v6 = vld [vmem:[#allocation8 + $0xbc0] ss:$16 sps:$4 sm:$0xff]   ;;  %v15788_v48 = vld [vmem:[#allocation8 + $0xbc8] ss:$16 sps:$4 sm:$0xff]  }
 0x5b0   :  { %12370 = vmatprep.subr.bf16.mxu0 %v15721_v59  ;;  %12954 = vmatprep.subr.bf16.mxu1 %v15724_v4  ;;  %v15793_v59 = vld [vmem:[#allocation8 + $0xbe4] ss:$16 sps:$4 sm:$0xff]   ;;  %v15796_v4 = vld [vmem:[#allocation8 + $0xbec] ss:$16 sps:$4 sm:$0xff]  }
 0x5b1   :  { %12343 = vmatprep.mubr.bf16.mxu0 %v14297_v57  ;;  %12927 = vmatprep.mubr.bf16.mxu1 %v14297_v57  ;;  %v15799_v57 = vld [vmem:[#allocation8 + $0xc04] ss:$16 sps:$4 sm:$0xff]  }
 0x5b3   :  { %12371 = vmatpush1.bf16.msra.mxu0 %v15719_v56  ;;  %12955 = vmatpush1.bf16.msra.mxu1 %v15722_v49  ;;  %v15802_v56 = vld [vmem:[#allocation8 + $0xc0c] ss:$16 sps:$4 sm:$0xff]   ;;  %v14266_v49 = vcombine.low %v17122_v15, %v17124_v8  ;;  %v15815_v15 = vld [vmem:[#allocation8 + $0xc60] ss:$16 sps:$4 sm:$0xff]   ;;  %v15818_v8 = vld [vmem:[#allocation8 + $0xc68] ss:$16 sps:$4 sm:$0xff]  }
 0x5b4   :  { %12372 = vmatprep.subr.bf16.mxu0 %v15727_v23  ;;  %12956 = vmatprep.subr.bf16.mxu1 %v15730_v52  ;;  %v15797_v23 = vld [vmem:[#allocation8 + $0xc00] ss:$16 sps:$4 sm:$0xff]   ;;  %v15800_v52 = vld [vmem:[#allocation8 + $0xc08] ss:$16 sps:$4 sm:$0xff]  }
 0x5b6   :  { %12344 = vmatmul.mubr.bf16.gmra.mrb[16].mxu0 %v14296_v45  ;;  %12928 = vmatmul.mubr.bf16.gmra.mrb[16].mxu1 %v14296_v45  ;;  %v15805_v45 = vld [vmem:[#allocation8 + $0xc24] ss:$16 sps:$4 sm:$0xff]  }
 0x5b7   :  { %12373 = vmatpush1.bf16.msra.mxu0 %v15725_v35  ;;  %12957 = vmatpush1.bf16.msra.mxu1 %v15728_v17  ;;  %v15808_v35 = vld [vmem:[#allocation8 + $0xc2c] ss:$16 sps:$4 sm:$0xff]   ;;  %v16032_v17 = vld [vmem:[#allocation2 + $0xa8] sm:$0xff] }
 0x5b8   :  { %12374 = vmatprep.subr.bf16.mxu0 %v15733_v12  ;;  %12958 = vmatprep.subr.bf16.mxu1 %v15736_v58  ;;  %v16033_v12 = vld [vmem:[#allocation2 + $0xe8] sm:$0xff] }
 0x5b9   :  { %12353 = vmatprep.mubr.bf16.mxu0 %v14313_v38  ;;  %12937 = vmatprep.mubr.bf16.mxu1 %v14313_v38  ;;  %v14283_v58 = vcombine.high %v16032_v17, %v16033_v12  ;;  %v15811_v38 = vld [vmem:[#allocation8 + $0xc44] ss:$16 sps:$4 sm:$0xff]  }
 0x5bb   :  { %12375 = vmatpush1.bf16.msra.mxu0 %v15731_v10  ;;  %12959 = vmatpush1.bf16.msra.mxu1 %v15734_v31  ;;  %v15814_v10 = vld [vmem:[#allocation8 + $0xc4c] ss:$16 sps:$4 sm:$0xff]   ;;  %v14282_v31 = vcombine.low %v16032_v17, %v16033_v12  ;;  %v15869_v17 = vld [vmem:[#allocation8 + $0xd80] ss:$16 sps:$4 sm:$0xff]   ;;  %v15872_v12 = vld [vmem:[#allocation8 + $0xd88] ss:$16 sps:$4 sm:$0xff]  }
 0x5bc   :  { %12376 = vmatprep.subr.bf16.mxu0 %v15739_v50  ;;  %12960 = vmatprep.subr.bf16.mxu1 %v15742_v62  ;;  %v15809_v50 = vld [vmem:[#allocation8 + $0xc40] ss:$16 sps:$4 sm:$0xff]   ;;  %v15812_v62 = vld [vmem:[#allocation8 + $0xc48] ss:$16 sps:$4 sm:$0xff]  }
 0x5be   :  { %12354 = vmatmul.mubr.bf16.gmra.mrb[20].mxu0 %v14312_v22  ;;  %12938 = vmatmul.mubr.bf16.gmra.mrb[20].mxu1 %v14312_v22  ;;  %v15817_v22 = vld [vmem:[#allocation8 + $0xc64] ss:$16 sps:$4 sm:$0xff]  }
 0x5bf   :  { %12377 = vmatpush1.bf16.msra.mxu0 %v15737_v28  ;;  %12961 = vmatpush1.bf16.msra.mxu1 %v15740_v40  ;;  %v15820_v28 = vld [vmem:[#allocation8 + $0xc6c] ss:$16 sps:$4 sm:$0xff]   ;;  %v16034_v40 = vld [vmem:[#allocation2 + $0x128] sm:$0xff] }
 0x5c0   :  { %12378 = vmatprep.subr.bf16.mxu0 %v15745_v44  ;;  %12962 = vmatprep.subr.bf16.mxu1 %v15748_v1  ;;  %v16035_v44 = vld [vmem:[#allocation2 + $0x168] sm:$0xff] }
 0x5c1   :  { %12396 = vmatprep.mubr.bf16.mxu0 %v14267_v34  ;;  %12980 = vmatprep.mubr.bf16.mxu1 %v14267_v34  ;;  %v14299_v1 = vcombine.high %v16034_v40, %v16035_v44  ;;  %v15823_v34 = vld [vmem:[#allocation8 + $0xc84] ss:$16 sps:$4 sm:$0xff]  }
 0x5c3   :  { %12379 = vmatpush1.bf16.msra.mxu0 %v15743_v54  ;;  %12963 = vmatpush1.bf16.msra.mxu1 %v15746_v43  ;;  %v15826_v54 = vld [vmem:[#allocation8 + $0xc8c] ss:$16 sps:$4 sm:$0xff]   ;;  %v14298_v43 = vcombine.low %v16034_v40, %v16035_v44  ;;  %v15887_v40 = vld [vmem:[#allocation8 + $0xde0] ss:$16 sps:$4 sm:$0xff]   ;;  %v15890_v44 = vld [vmem:[#allocation8 + $0xde8] ss:$16 sps:$4 sm:$0xff]  }
 0x5c4   :  { %12380 = vmatprep.subr.bf16.mxu0 %v15751_v20  ;;  %12964 = vmatprep.subr.bf16.mxu1 %v15754_v36  ;;  %v15821_v20 = vld [vmem:[#allocation8 + $0xc80] ss:$16 sps:$4 sm:$0xff]   ;;  %v15824_v36 = vld [vmem:[#allocation8 + $0xc88] ss:$16 sps:$4 sm:$0xff]  }
 0x5c7   :  { %12381 = vmatpush1.bf16.msra.mxu0 %v15749_v21  ;;  %12965 = vmatpush1.bf16.msra.mxu1 %v15752_v19  ;;  %v15829_v21 = vld [vmem:[#allocation8 + $0xca4] ss:$16 sps:$4 sm:$0xff]   ;;  %v15832_v19 = vld [vmem:[#allocation8 + $0xcac] ss:$16 sps:$4 sm:$0xff]  }
 0x5c8   :  { %12382 = vmatprep.subr.bf16.mxu0 %v15757_v7  ;;  %12966 = vmatprep.subr.bf16.mxu1 %v15760_v32  ;;  %v16036_v7 = vld [vmem:[#allocation2 + $0x1a8] sm:$0xff] }
 0x5c9   :  { %v16037_v32 = vld [vmem:[#allocation2 + $0x1e8] sm:$0xff] }
 0x5cb   :  { %12383 = vmatpush1.bf16.msra.mxu0 %v15755_v0  ;;  %12967 = vmatpush1.bf16.msra.mxu1 %v15758_v47  ;;  %v14315_v0 = vcombine.high %v16036_v7, %v16037_v32  ;;  %v15827_v47 = vld [vmem:[#allocation8 + $0xca0] ss:$16 sps:$4 sm:$0xff]  }
 0x5cc   :  { %12384 = vmatprep.subr.bf16.mxu0 %v15763_v30  ;;  %12968 = vmatprep.subr.bf16.mxu1 %v15766_v11  ;;  %v15830_v30 = vld [vmem:[#allocation8 + $0xca8] ss:$16 sps:$4 sm:$0xff]   ;;  %v15835_v11 = vld [vmem:[#allocation8 + $0xcc4] ss:$16 sps:$4 sm:$0xff]  }
 0x5cf   :  { %12385 = vmatpush1.bf16.msra.mxu0 %v15761_v3  ;;  %12969 = vmatpush1.bf16.msra.mxu1 %v15764_v46  ;;  %v15838_v3 = vld [vmem:[#allocation8 + $0xccc] ss:$16 sps:$4 sm:$0xff]   ;;  %v14314_v46 = vcombine.low %v16036_v7, %v16037_v32  ;;  %v15899_v7 = vld [vmem:[#allocation8 + $0xe20] ss:$16 sps:$4 sm:$0xff]   ;;  %v15902_v32 = vld [vmem:[#allocation8 + $0xe28] ss:$16 sps:$4 sm:$0xff]  }
 0x5d0   :  { %12386 = vmatprep.subr.bf16.mxu0 %v15769_v13  ;;  %12970 = vmatprep.subr.bf16.mxu1 %v15772_v39  ;;  %v15833_v13 = vld [vmem:[#allocation8 + $0xcc0] ss:$16 sps:$4 sm:$0xff]   ;;  %v15836_v39 = vld [vmem:[#allocation8 + $0xcc8] ss:$16 sps:$4 sm:$0xff]  }
 0x5d3   :  { %12387 = vmatpush1.bf16.msra.mxu0 %v15767_v37  ;;  %12971 = vmatpush1.bf16.msra.mxu1 %v15770_v24  ;;  %v15841_v37 = vld [vmem:[#allocation8 + $0xce4] ss:$16 sps:$4 sm:$0xff]   ;;  %v15844_v24 = vld [vmem:[#allocation8 + $0xcec] ss:$16 sps:$4 sm:$0xff]  }
 0x5d4   :  { %12388 = vmatprep.subr.bf16.mxu0 %v15775_v25  ;;  %12972 = vmatprep.subr.bf16.mxu1 %v15778_v63  ;;  %v17130_v25 = vld [vmem:[#allocation2 + $0x30] sm:$0xff] }
 0x5d5   :  { %v17132_v63 = vld [vmem:[#allocation2 + $0x70] sm:$0xff] }
 0x5d7   :  { %12389 = vmatpush1.bf16.msra.mxu0 %v15773_v5  ;;  %12973 = vmatpush1.bf16.msra.mxu1 %v15776_v29  ;;  %v14269_v5 = vcombine.high %v17130_v25, %v17132_v63  ;;  %v15839_v29 = vld [vmem:[#allocation8 + $0xce0] ss:$16 sps:$4 sm:$0xff]  }
 0x5d8   :  { %12390 = vmatprep.subr.bf16.mxu0 %v15781_v14  ;;  %12974 = vmatprep.subr.bf16.mxu1 %v15784_v53  ;;  %v15842_v14 = vld [vmem:[#allocation8 + $0xce8] ss:$16 sps:$4 sm:$0xff]   ;;  %v15847_v53 = vld [vmem:[#allocation8 + $0xd04] ss:$16 sps:$4 sm:$0xff]  }
 0x5db   :  { %12391 = vmatpush1.bf16.msra.mxu0 %v15779_v9  ;;  %12975 = vmatpush1.bf16.msra.mxu1 %v15782_v51  ;;  %v15850_v9 = vld [vmem:[#allocation8 + $0xd0c] ss:$16 sps:$4 sm:$0xff]   ;;  %v15845_v51 = vld [vmem:[#allocation8 + $0xd00] ss:$16 sps:$4 sm:$0xff]  }
 0x5dc   :  { %12392 = vmatprep.subr.bf16.mxu0 %v15787_v55  ;;  %12976 = vmatprep.subr.bf16.mxu1 %v15790_v26  ;;  %v15848_v55 = vld [vmem:[#allocation8 + $0xd08] ss:$16 sps:$4 sm:$0xff]   ;;  %v15853_v26 = vld [vmem:[#allocation8 + $0xd24] ss:$16 sps:$4 sm:$0xff]  }
 0x5df   :  { %12393 = vmatpush1.bf16.msra.mxu0 %v15785_v6  ;;  %12977 = vmatpush1.bf16.msra.mxu1 %v15788_v48  ;;  %v15856_v6 = vld [vmem:[#allocation8 + $0xd2c] ss:$16 sps:$4 sm:$0xff]   ;;  %v15851_v48 = vld [vmem:[#allocation8 + $0xd20] ss:$16 sps:$4 sm:$0xff]  }
 0x5e0   :  { %12394 = vmatprep.subr.bf16.mxu0 %v15793_v59  ;;  %12978 = vmatprep.subr.bf16.mxu1 %v15796_v4  ;;  %v15854_v59 = vld [vmem:[#allocation8 + $0xd28] ss:$16 sps:$4 sm:$0xff]   ;;  %v15859_v4 = vld [vmem:[#allocation8 + $0xd44] ss:$16 sps:$4 sm:$0xff]  }
 0x5e3   :  { %12395 = vmatpush1.bf16.msra.mxu0 %v15791_v2  ;;  %12979 = vmatpush1.bf16.msra.mxu1 %v15794_v60  ;;  %v15862_v2 = vld [vmem:[#allocation8 + $0xd4c] ss:$16 sps:$4 sm:$0xff]   ;;  %v15857_v60 = vld [vmem:[#allocation8 + $0xd40] ss:$16 sps:$4 sm:$0xff]  }
 0x5e4   :  { %12437 = vmatprep.subr.bf16.mxu0 %v15799_v57  ;;  %13021 = vmatprep.subr.bf16.mxu1 %v15802_v56  ;;  %v15860_v57 = vld [vmem:[#allocation8 + $0xd48] ss:$16 sps:$4 sm:$0xff]   ;;  %v15865_v56 = vld [vmem:[#allocation8 + $0xd64] ss:$16 sps:$4 sm:$0xff]  }
 0x5e6   :  { %12397 = vmatmul.mubr.bf16.vlgmr.msra.gmra.mrb[8].mxu0 %v14266_v49  ;;  %12981 = vmatmul.mubr.bf16.vlgmr.msra.gmra.mrb[8].mxu1 %v14266_v49  ;;  %v15868_v49 = vld [vmem:[#allocation8 + $0xd6c] ss:$16 sps:$4 sm:$0xff]  }
 0x5e7   :  { %12438 = vmatpush1.bf16.msra.mxu0 %v15797_v23  ;;  %13022 = vmatpush1.bf16.msra.mxu1 %v15800_v52  ;;  %v15863_v23 = vld [vmem:[#allocation8 + $0xd60] ss:$16 sps:$4 sm:$0xff]   ;;  %v15866_v52 = vld [vmem:[#allocation8 + $0xd68] ss:$16 sps:$4 sm:$0xff]  }
 0x5e8   :  { %12439 = vmatprep.subr.bf16.mxu0 %v15805_v45  ;;  %13023 = vmatprep.subr.bf16.mxu1 %v15808_v35  ;;  %v15871_v45 = vld [vmem:[#allocation8 + $0xd84] ss:$16 sps:$4 sm:$0xff]   ;;  %v15874_v35 = vld [vmem:[#allocation8 + $0xd8c] ss:$16 sps:$4 sm:$0xff]  }
 0x5e9   :  { %12406 = vmatprep.mubr.bf16.mxu0 %v14283_v58  ;;  %12990 = vmatprep.mubr.bf16.mxu1 %v14283_v58  ;;  %v15877_v58 = vld [vmem:[#allocation8 + $0xda4] ss:$16 sps:$4 sm:$0xff]  }
 0x5eb   :  { %12440 = vmatpush1.bf16.msra.mxu0 %v15803_v42  ;;  %13024 = vmatpush1.bf16.msra.mxu1 %v15806_v16  ;;  %v15880_v42 = vld [vmem:[#allocation8 + $0xdac] ss:$16 sps:$4 sm:$0xff]   ;;  %v15875_v16 = vld [vmem:[#allocation8 + $0xda0] ss:$16 sps:$4 sm:$0xff]  }
 0x5ec   :  { %12441 = vmatprep.subr.bf16.mxu0 %v15811_v38  ;;  %13025 = vmatprep.subr.bf16.mxu1 %v15814_v10  ;;  %v15878_v38 = vld [vmem:[#allocation8 + $0xda8] ss:$16 sps:$4 sm:$0xff]   ;;  %v15883_v10 = vld [vmem:[#allocation8 + $0xdc4] ss:$16 sps:$4 sm:$0xff]  }
 0x5ee   :  { %12407 = vmatmul.mubr.bf16.gmra.mrb[12].mxu0 %v14282_v31  ;;  %12991 = vmatmul.mubr.bf16.gmra.mrb[12].mxu1 %v14282_v31  ;;  %v15886_v31 = vld [vmem:[#allocation8 + $0xdcc] ss:$16 sps:$4 sm:$0xff]  }
 0x5ef   :  { %12442 = vmatpush1.bf16.msra.mxu0 %v15809_v50  ;;  %13026 = vmatpush1.bf16.msra.mxu1 %v15812_v62  ;;  %v15881_v50 = vld [vmem:[#allocation8 + $0xdc0] ss:$16 sps:$4 sm:$0xff]   ;;  %v15884_v62 = vld [vmem:[#allocation8 + $0xdc8] ss:$16 sps:$4 sm:$0xff]  }
 0x5f0   :  { %12443 = vmatprep.subr.bf16.mxu0 %v15817_v22  ;;  %13027 = vmatprep.subr.bf16.mxu1 %v15820_v28  ;;  %v15889_v22 = vld [vmem:[#allocation8 + $0xde4] ss:$16 sps:$4 sm:$0xff]   ;;  %v15892_v28 = vld [vmem:[#allocation8 + $0xdec] ss:$16 sps:$4 sm:$0xff]  }
 0x5f1   :  { %12416 = vmatprep.mubr.bf16.mxu0 %v14299_v1  ;;  %13000 = vmatprep.mubr.bf16.mxu1 %v14299_v1  ;;  %v15895_v1 = vld [vmem:[#allocation8 + $0xe04] ss:$16 sps:$4 sm:$0xff]  }
 0x5f3   :  { %12444 = vmatpush1.bf16.msra.mxu0 %v15815_v15  ;;  %13028 = vmatpush1.bf16.msra.mxu1 %v15818_v8  ;;  %v15898_v15 = vld [vmem:[#allocation8 + $0xe0c] ss:$16 sps:$4 sm:$0xff]   ;;  %v14268_v8 = vcombine.low %v17130_v25, %v17132_v63  ;;  %v15911_v25 = vld [vmem:[#allocation8 + $0xe60] ss:$16 sps:$4 sm:$0xff]   ;;  %v15914_v63 = vld [vmem:[#allocation8 + $0xe68] ss:$16 sps:$4 sm:$0xff]  }
 0x5f4   :  { %12445 = vmatprep.subr.bf16.mxu0 %v15823_v34  ;;  %13029 = vmatprep.subr.bf16.mxu1 %v15826_v54  ;;  %v15893_v34 = vld [vmem:[#allocation8 + $0xe00] ss:$16 sps:$4 sm:$0xff]   ;;  %v15896_v54 = vld [vmem:[#allocation8 + $0xe08] ss:$16 sps:$4 sm:$0xff]  }
 0x5f6   :  { %12417 = vmatmul.mubr.bf16.gmra.mrb[16].mxu0 %v14298_v43  ;;  %13001 = vmatmul.mubr.bf16.gmra.mrb[16].mxu1 %v14298_v43  ;;  %v15901_v43 = vld [vmem:[#allocation8 + $0xe24] ss:$16 sps:$4 sm:$0xff]  }
 0x5f7   :  { %12446 = vmatpush1.bf16.msra.mxu0 %v15821_v20  ;;  %13030 = vmatpush1.bf16.msra.mxu1 %v15824_v36  ;;  %v15904_v20 = vld [vmem:[#allocation8 + $0xe2c] ss:$16 sps:$4 sm:$0xff]  }
 0x5f8   :  { %12447 = vmatprep.subr.bf16.mxu0 %v15829_v21  ;;  %13031 = vmatprep.subr.bf16.mxu1 %v15832_v19  ;;  %v16040_v36 = vld [vmem:[#allocation2 + $0xb0] sm:$0xff] }
 0x5f9   :  { %12426 = vmatprep.mubr.bf16.mxu0 %v14315_v0  ;;  %13010 = vmatprep.mubr.bf16.mxu1 %v14315_v0  ;;  %v16041_v21 = vld [vmem:[#allocation2 + $0xf0] sm:$0xff]  ;;  %v15907_v0 = vld [vmem:[#allocation8 + $0xe44] ss:$16 sps:$4 sm:$0xff]  }
 0x5fa   :  { %v14285_v19 = vcombine.high %v16040_v36, %v16041_v21 }
 0x5fb   :  { %12448 = vmatpush1.bf16.msra.mxu0 %v15827_v47  ;;  %13032 = vmatpush1.bf16.msra.mxu1 %v15830_v30  ;;  %v15910_v47 = vld [vmem:[#allocation8 + $0xe4c] ss:$16 sps:$4 sm:$0xff]   ;;  %v14284_v30 = vcombine.low %v16040_v36, %v16041_v21  ;;  %v15965_v36 = vld [vmem:[#allocation8 + $0xf80] ss:$16 sps:$4 sm:$0xff]   ;;  %v15968_v21 = vld [vmem:[#allocation8 + $0xf88] ss:$16 sps:$4 sm:$0xff]  }
 0x5fc   :  { %12449 = vmatprep.subr.bf16.mxu0 %v15835_v11  ;;  %13033 = vmatprep.subr.bf16.mxu1 %v15838_v3  ;;  %v15905_v11 = vld [vmem:[#allocation8 + $0xe40] ss:$16 sps:$4 sm:$0xff]   ;;  %v15908_v3 = vld [vmem:[#allocation8 + $0xe48] ss:$16 sps:$4 sm:$0xff]  }
 0x5fe   :  { %12427 = vmatmul.mubr.bf16.gmra.mrb[20].mxu0 %v14314_v46  ;;  %13011 = vmatmul.mubr.bf16.gmra.mrb[20].mxu1 %v14314_v46  ;;  %v15913_v46 = vld [vmem:[#allocation8 + $0xe64] ss:$16 sps:$4 sm:$0xff]  }
 0x5ff   :  { %12450 = vmatpush1.bf16.msra.mxu0 %v15833_v13  ;;  %13034 = vmatpush1.bf16.msra.mxu1 %v15836_v39  ;;  %v15916_v13 = vld [vmem:[#allocation8 + $0xe6c] ss:$16 sps:$4 sm:$0xff]  }
 0x600   :  { %12451 = vmatprep.subr.bf16.mxu0 %v15841_v37  ;;  %13035 = vmatprep.subr.bf16.mxu1 %v15844_v24  ;;  %v16042_v39 = vld [vmem:[#allocation2 + $0x130] sm:$0xff] }
 0x601   :  { %12469 = vmatprep.mubr.bf16.mxu0 %v14269_v5  ;;  %13053 = vmatprep.mubr.bf16.mxu1 %v14269_v5  ;;  %v16043_v37 = vld [vmem:[#allocation2 + $0x170] sm:$0xff]  ;;  %v15919_v5 = vld [vmem:[#allocation8 + $0xe84] ss:$16 sps:$4 sm:$0xff]  }
 0x602   :  { %v14301_v24 = vcombine.high %v16042_v39, %v16043_v37 }
 0x603   :  { %12452 = vmatpush1.bf16.msra.mxu0 %v15839_v29  ;;  %13036 = vmatpush1.bf16.msra.mxu1 %v15842_v14  ;;  %v15922_v29 = vld [vmem:[#allocation8 + $0xe8c] ss:$16 sps:$4 sm:$0xff]   ;;  %v14300_v14 = vcombine.low %v16042_v39, %v16043_v37  ;;  %v15983_v39 = vld [vmem:[#allocation8 + $0xfe0] ss:$16 sps:$4 sm:$0xff]   ;;  %v15986_v37 = vld [vmem:[#allocation8 + $0xfe8] ss:$16 sps:$4 sm:$0xff]  }
 0x604   :  { %12453 = vmatprep.subr.bf16.mxu0 %v15847_v53  ;;  %13037 = vmatprep.subr.bf16.mxu1 %v15850_v9  ;;  %v15917_v53 = vld [vmem:[#allocation8 + $0xe80] ss:$16 sps:$4 sm:$0xff]   ;;  %v15920_v9 = vld [vmem:[#allocation8 + $0xe88] ss:$16 sps:$4 sm:$0xff]  }
 0x607   :  { %12454 = vmatpush1.bf16.msra.mxu0 %v15845_v51  ;;  %13038 = vmatpush1.bf16.msra.mxu1 %v15848_v55  ;;  %v15925_v51 = vld [vmem:[#allocation8 + $0xea4] ss:$16 sps:$4 sm:$0xff]   ;;  %v15928_v55 = vld [vmem:[#allocation8 + $0xeac] ss:$16 sps:$4 sm:$0xff]  }
 0x608   :  { %12455 = vmatprep.subr.bf16.mxu0 %v15853_v26  ;;  %13039 = vmatprep.subr.bf16.mxu1 %v15856_v6  ;;  %v16044_v26 = vld [vmem:[#allocation2 + $0x1b0] sm:$0xff] }
 0x609   :  { %v16045_v6 = vld [vmem:[#allocation2 + $0x1f0] sm:$0xff] }
 0x60b   :  { %12456 = vmatpush1.bf16.msra.mxu0 %v15851_v48  ;;  %13040 = vmatpush1.bf16.msra.mxu1 %v15854_v59  ;;  %v14317_v48 = vcombine.high %v16044_v26, %v16045_v6  ;;  %v15923_v59 = vld [vmem:[#allocation8 + $0xea0] ss:$16 sps:$4 sm:$0xff]  }
 0x60c   :  { %12457 = vmatprep.subr.bf16.mxu0 %v15859_v4  ;;  %13041 = vmatprep.subr.bf16.mxu1 %v15862_v2  ;;  %v15926_v4 = vld [vmem:[#allocation8 + $0xea8] ss:$16 sps:$4 sm:$0xff]   ;;  %v15931_v2 = vld [vmem:[#allocation8 + $0xec4] ss:$16 sps:$4 sm:$0xff]  }
 0x60f   :  { %12458 = vmatpush1.bf16.msra.mxu0 %v15857_v60  ;;  %13042 = vmatpush1.bf16.msra.mxu1 %v15860_v57  ;;  %v15934_v60 = vld [vmem:[#allocation8 + $0xecc] ss:$16 sps:$4 sm:$0xff]   ;;  %v14316_v57 = vcombine.low %v16044_v26, %v16045_v6  ;;  %v16053_v26 = vld [vmem:[#allocation2 + $0x1f8] sm:$0xff] }
 0x610   :  { %12459 = vmatprep.subr.bf16.mxu0 %v15865_v56  ;;  %13043 = vmatprep.subr.bf16.mxu1 %v15868_v49  ;;  %v15929_v56 = vld [vmem:[#allocation8 + $0xec0] ss:$16 sps:$4 sm:$0xff]   ;;  %v15932_v49 = vld [vmem:[#allocation8 + $0xec8] ss:$16 sps:$4 sm:$0xff]  }
 0x613   :  { %12460 = vmatpush1.bf16.msra.mxu0 %v15863_v23  ;;  %13044 = vmatpush1.bf16.msra.mxu1 %v15866_v52  ;;  %v15937_v23 = vld [vmem:[#allocation8 + $0xee4] ss:$16 sps:$4 sm:$0xff]   ;;  %v15940_v52 = vld [vmem:[#allocation8 + $0xeec] ss:$16 sps:$4 sm:$0xff]  }
 0x614   :  { %12461 = vmatprep.subr.bf16.mxu0 %v15871_v45  ;;  %13045 = vmatprep.subr.bf16.mxu1 %v15874_v35  ;;  %v17138_v45 = vld [vmem:[#allocation2 + $0x38] sm:$0xff] }
 0x615   :  { %v17140_v35 = vld [vmem:[#allocation2 + $0x78] sm:$0xff] }
 0x617   :  { %12462 = vmatpush1.bf16.msra.mxu0 %v15869_v17  ;;  %13046 = vmatpush1.bf16.msra.mxu1 %v15872_v12  ;;  %v14271_v17 = vcombine.high %v17138_v45, %v17140_v35  ;;  %v15935_v12 = vld [vmem:[#allocation8 + $0xee0] ss:$16 sps:$4 sm:$0xff]  }
 0x618   :  { %12463 = vmatprep.subr.bf16.mxu0 %v15877_v58  ;;  %13047 = vmatprep.subr.bf16.mxu1 %v15880_v42  ;;  %v15938_v58 = vld [vmem:[#allocation8 + $0xee8] ss:$16 sps:$4 sm:$0xff]   ;;  %v15943_v42 = vld [vmem:[#allocation8 + $0xf04] ss:$16 sps:$4 sm:$0xff]  }
 0x61b   :  { %12464 = vmatpush1.bf16.msra.mxu0 %v15875_v16  ;;  %13048 = vmatpush1.bf16.msra.mxu1 %v15878_v38  ;;  %v15946_v16 = vld [vmem:[#allocation8 + $0xf0c] ss:$16 sps:$4 sm:$0xff]   ;;  %v15941_v38 = vld [vmem:[#allocation8 + $0xf00] ss:$16 sps:$4 sm:$0xff]  }
 0x61c   :  { %12465 = vmatprep.subr.bf16.mxu0 %v15883_v10  ;;  %13049 = vmatprep.subr.bf16.mxu1 %v15886_v31  ;;  %v15944_v10 = vld [vmem:[#allocation8 + $0xf08] ss:$16 sps:$4 sm:$0xff]   ;;  %v15949_v31 = vld [vmem:[#allocation8 + $0xf24] ss:$16 sps:$4 sm:$0xff]  }
 0x61f   :  { %12466 = vmatpush1.bf16.msra.mxu0 %v15881_v50  ;;  %13050 = vmatpush1.bf16.msra.mxu1 %v15884_v62  ;;  %v15952_v50 = vld [vmem:[#allocation8 + $0xf2c] ss:$16 sps:$4 sm:$0xff]   ;;  %v15947_v62 = vld [vmem:[#allocation8 + $0xf20] ss:$16 sps:$4 sm:$0xff]  }
 0x620   :  { %12467 = vmatprep.subr.bf16.mxu0 %v15889_v22  ;;  %13051 = vmatprep.subr.bf16.mxu1 %v15892_v28  ;;  %v15950_v22 = vld [vmem:[#allocation8 + $0xf28] ss:$16 sps:$4 sm:$0xff]   ;;  %v15955_v28 = vld [vmem:[#allocation8 + $0xf44] ss:$16 sps:$4 sm:$0xff]  }
 0x623   :  { %12468 = vmatpush1.bf16.msra.mxu0 %v15887_v40  ;;  %13052 = vmatpush1.bf16.msra.mxu1 %v15890_v44  ;;  %v15958_v40 = vld [vmem:[#allocation8 + $0xf4c] ss:$16 sps:$4 sm:$0xff]   ;;  %v15953_v44 = vld [vmem:[#allocation8 + $0xf40] ss:$16 sps:$4 sm:$0xff]  }
 0x624   :  { %12510 = vmatprep.subr.bf16.mxu0 %v15895_v1  ;;  %13094 = vmatprep.subr.bf16.mxu1 %v15898_v15  ;;  %v15956_v1 = vld [vmem:[#allocation8 + $0xf48] ss:$16 sps:$4 sm:$0xff]   ;;  %v15961_v15 = vld [vmem:[#allocation8 + $0xf64] ss:$16 sps:$4 sm:$0xff]  }
 0x626   :  { %12470 = vmatmul.mubr.bf16.vlgmr.msra.gmra.mrb[8].mxu0 %v14268_v8  ;;  %13054 = vmatmul.mubr.bf16.vlgmr.msra.gmra.mrb[8].mxu1 %v14268_v8  ;;  %v15964_v8 = vld [vmem:[#allocation8 + $0xf6c] ss:$16 sps:$4 sm:$0xff]  }
 0x627   :  { %12511 = vmatpush1.bf16.msra.mxu0 %v15893_v34  ;;  %13095 = vmatpush1.bf16.msra.mxu1 %v15896_v54  ;;  %v15959_v34 = vld [vmem:[#allocation8 + $0xf60] ss:$16 sps:$4 sm:$0xff]   ;;  %v15962_v54 = vld [vmem:[#allocation8 + $0xf68] ss:$16 sps:$4 sm:$0xff]  }
 0x628   :  { %12512 = vmatprep.subr.bf16.mxu0 %v15901_v43  ;;  %13096 = vmatprep.subr.bf16.mxu1 %v15904_v20  ;;  %v15967_v43 = vld [vmem:[#allocation8 + $0xf84] ss:$16 sps:$4 sm:$0xff]   ;;  %v15970_v20 = vld [vmem:[#allocation8 + $0xf8c] ss:$16 sps:$4 sm:$0xff]  }
 0x629   :  { %12479 = vmatprep.mubr.bf16.mxu0 %v14285_v19  ;;  %13063 = vmatprep.mubr.bf16.mxu1 %v14285_v19  ;;  %v15973_v19 = vld [vmem:[#allocation8 + $0xfa4] ss:$16 sps:$4 sm:$0xff]  }
 0x62b   :  { %12513 = vmatpush1.bf16.msra.mxu0 %v15899_v7  ;;  %13097 = vmatpush1.bf16.msra.mxu1 %v15902_v32  ;;  %v15976_v7 = vld [vmem:[#allocation8 + $0xfac] ss:$16 sps:$4 sm:$0xff]   ;;  %v15971_v32 = vld [vmem:[#allocation8 + $0xfa0] ss:$16 sps:$4 sm:$0xff]  }
 0x62c   :  { %12514 = vmatprep.subr.bf16.mxu0 %v15907_v0  ;;  %13098 = vmatprep.subr.bf16.mxu1 %v15910_v47  ;;  %v15974_v0 = vld [vmem:[#allocation8 + $0xfa8] ss:$16 sps:$4 sm:$0xff]   ;;  %v15979_v47 = vld [vmem:[#allocation8 + $0xfc4] ss:$16 sps:$4 sm:$0xff]  }
 0x62e   :  { %12480 = vmatmul.mubr.bf16.gmra.mrb[12].mxu0 %v14284_v30  ;;  %13064 = vmatmul.mubr.bf16.gmra.mrb[12].mxu1 %v14284_v30  ;;  %v15982_v30 = vld [vmem:[#allocation8 + $0xfcc] ss:$16 sps:$4 sm:$0xff]  }
 0x62f   :  { %12515 = vmatpush1.bf16.msra.mxu0 %v15905_v11  ;;  %13099 = vmatpush1.bf16.msra.mxu1 %v15908_v3  ;;  %v15977_v11 = vld [vmem:[#allocation8 + $0xfc0] ss:$16 sps:$4 sm:$0xff]   ;;  %v15980_v3 = vld [vmem:[#allocation8 + $0xfc8] ss:$16 sps:$4 sm:$0xff]  }
 0x630   :  { %12516 = vmatprep.subr.bf16.mxu0 %v15913_v46  ;;  %13100 = vmatprep.subr.bf16.mxu1 %v15916_v13  ;;  %v15985_v46 = vld [vmem:[#allocation8 + $0xfe4] ss:$16 sps:$4 sm:$0xff]   ;;  %v15988_v13 = vld [vmem:[#allocation8 + $0xfec] ss:$16 sps:$4 sm:$0xff]  }
 0x631   :  { %12489 = vmatprep.mubr.bf16.mxu0 %v14301_v24  ;;  %13073 = vmatprep.mubr.bf16.mxu1 %v14301_v24  ;;  %v14270_v24 = vcombine.low %v17138_v45, %v17140_v35 }
 0x633   :  { %12517 = vmatpush1.bf16.msra.mxu0 %v15911_v25  ;;  %13101 = vmatpush1.bf16.msra.mxu1 %v15914_v63  ;;  %v16048_v25 = vld [vmem:[#allocation2 + $0xb8] sm:$0xff] }
 0x634   :  { %12518 = vmatprep.subr.bf16.mxu0 %v15919_v5  ;;  %13102 = vmatprep.subr.bf16.mxu1 %v15922_v29  ;;  %v16049_v63 = vld [vmem:[#allocation2 + $0xf8] sm:$0xff] }
 0x635   :  { %v14287_v5 = vcombine.high %v16048_v25, %v16049_v63  ;;  %v14286_v29 = vcombine.low %v16048_v25, %v16049_v63 }
 0x636   :  { %12490 = vmatmul.mubr.bf16.gmra.mrb[16].mxu0 %v14300_v14  ;;  %13074 = vmatmul.mubr.bf16.gmra.mrb[16].mxu1 %v14300_v14  ;;  %v16050_v14 = vld [vmem:[#allocation2 + $0x138] sm:$0xff] }
 0x637   :  { %12519 = vmatpush1.bf16.msra.mxu0 %v15917_v53  ;;  %13103 = vmatpush1.bf16.msra.mxu1 %v15920_v9  ;;  %v16051_v53 = vld [vmem:[#allocation2 + $0x178] sm:$0xff] }
 0x638   :  { %12520 = vmatprep.subr.bf16.mxu0 %v15925_v51  ;;  %13104 = vmatprep.subr.bf16.mxu1 %v15928_v55  ;;  %v14303_v9 = vcombine.high %v16050_v14, %v16051_v53  ;;  %v14302_v51 = vcombine.low %v16050_v14, %v16051_v53  ;;  %v16052_v55 = vld [vmem:[#allocation2 + $0x1b8] sm:$0xff] }
 0x639   :  { %12499 = vmatprep.mubr.bf16.mxu0 %v14317_v48  ;;  %13083 = vmatprep.mubr.bf16.mxu1 %v14317_v48  ;;  %v14319_v6 = vcombine.high %v16052_v55, %v16053_v26  ;;  %v14318_v48 = vcombine.low %v16052_v55, %v16053_v26 }
 0x63b   :  { %12521 = vmatpush1.bf16.msra.mxu0 %v15923_v59  ;;  %13105 = vmatpush1.bf16.msra.mxu1 %v15926_v4 }
 0x63c   :  { %12522 = vmatprep.subr.bf16.mxu0 %v15931_v2  ;;  %13106 = vmatprep.subr.bf16.mxu1 %v15934_v60 }
 0x63e   :  { %12500 = vmatmul.mubr.bf16.gmra.mrb[20].mxu0 %v14316_v57  ;;  %13084 = vmatmul.mubr.bf16.gmra.mrb[20].mxu1 %v14316_v57 }
 0x63f   :  { %12523 = vmatpush1.bf16.msra.mxu0 %v15929_v56  ;;  %13107 = vmatpush1.bf16.msra.mxu1 %v15932_v49 }
 0x640   :  { %12524 = vmatprep.subr.bf16.mxu0 %v15937_v23  ;;  %13108 = vmatprep.subr.bf16.mxu1 %v15940_v52 }
 0x641   :  { %12542 = vmatprep.mubr.bf16.mxu0 %v14271_v17  ;;  %13126 = vmatprep.mubr.bf16.mxu1 %v14271_v17 }
 0x643   :  { %12525 = vmatpush1.bf16.msra.mxu0 %v15935_v12  ;;  %13109 = vmatpush1.bf16.msra.mxu1 %v15938_v58 }
 0x644   :  { %12526 = vmatprep.subr.bf16.mxu0 %v15943_v42  ;;  %13110 = vmatprep.subr.bf16.mxu1 %v15946_v16 }
 0x647   :  { %12527 = vmatpush1.bf16.msra.mxu0 %v15941_v38  ;;  %13111 = vmatpush1.bf16.msra.mxu1 %v15944_v10 }
 0x648   :  { %12528 = vmatprep.subr.bf16.mxu0 %v15949_v31  ;;  %13112 = vmatprep.subr.bf16.mxu1 %v15952_v50 }
 0x64b   :  { %12529 = vmatpush1.bf16.msra.mxu0 %v15947_v62  ;;  %13113 = vmatpush1.bf16.msra.mxu1 %v15950_v22 }
 0x64c   :  { %12530 = vmatprep.subr.bf16.mxu0 %v15955_v28  ;;  %13114 = vmatprep.subr.bf16.mxu1 %v15958_v40 }
 0x64f   :  { %12531 = vmatpush1.bf16.msra.mxu0 %v15953_v44  ;;  %13115 = vmatpush1.bf16.msra.mxu1 %v15956_v1 }
 0x650   :  { %12532 = vmatprep.subr.bf16.mxu0 %v15961_v15  ;;  %13116 = vmatprep.subr.bf16.mxu1 %v15964_v8 }
 0x653   :  { %12533 = vmatpush1.bf16.msra.mxu0 %v15959_v34  ;;  %13117 = vmatpush1.bf16.msra.mxu1 %v15962_v54 }
 0x654   :  { %12534 = vmatprep.subr.bf16.mxu0 %v15967_v43  ;;  %13118 = vmatprep.subr.bf16.mxu1 %v15970_v20 }
 0x657   :  { %12535 = vmatpush1.bf16.msra.mxu0 %v15965_v36  ;;  %13119 = vmatpush1.bf16.msra.mxu1 %v15968_v21 }
 0x658   :  { %12536 = vmatprep.subr.bf16.mxu0 %v15973_v19  ;;  %13120 = vmatprep.subr.bf16.mxu1 %v15976_v7 }
 0x65b   :  { %12537 = vmatpush1.bf16.msra.mxu0 %v15971_v32  ;;  %13121 = vmatpush1.bf16.msra.mxu1 %v15974_v0 }
 0x65c   :  { %12538 = vmatprep.subr.bf16.mxu0 %v15979_v47  ;;  %13122 = vmatprep.subr.bf16.mxu1 %v15982_v30 }
 0x65f   :  { %12539 = vmatpush1.bf16.msra.mxu0 %v15977_v11  ;;  %13123 = vmatpush1.bf16.msra.mxu1 %v15980_v3 }
 0x660   :  { %12540 = vmatprep.subr.bf16.mxu0 %v15985_v46  ;;  %13124 = vmatprep.subr.bf16.mxu1 %v15988_v13 }
 0x663   :  { %12541 = vmatpush1.bf16.msra.mxu0 %v15983_v39  ;;  %13125 = vmatpush1.bf16.msra.mxu1 %v15986_v37 }
 0x666   :  { %12543 = vmatmul.mubr.bf16.vlgmr.msra.gmra.mrb[8].mxu0 %v14270_v24  ;;  %13127 = vmatmul.mubr.bf16.vlgmr.msra.gmra.mrb[8].mxu1 %v14270_v24 }
 0x667   :  { %12552 = vmatprep.mubr.bf16.mxu0 %v14287_v5  ;;  %13136 = vmatprep.mubr.bf16.mxu1 %v14287_v5 }
 0x66e   :  { %12553 = vmatmul.mubr.bf16.gmra.mrb[12].mxu0 %v14286_v29  ;;  %13137 = vmatmul.mubr.bf16.gmra.mrb[12].mxu1 %v14286_v29 }
 0x66f   :  { %12562 = vmatprep.mubr.bf16.mxu0 %v14303_v9  ;;  %13146 = vmatprep.mubr.bf16.mxu1 %v14303_v9 }
 0x676   :  { %12563 = vmatmul.mubr.bf16.gmra.mrb[16].mxu0 %v14302_v51  ;;  %13147 = vmatmul.mubr.bf16.gmra.mrb[16].mxu1 %v14302_v51 }
 0x677   :  { %12572 = vmatprep.mubr.bf16.mxu0 %v14319_v6  ;;  %13156 = vmatprep.mubr.bf16.mxu1 %v14319_v6 }
 0x67e   :  { %12573 = vmatmul.mubr.bf16.gmra.mrb[20].mxu0 %v14318_v48  ;;  %13157 = vmatmul.mubr.bf16.gmra.mrb[20].mxu1 %v14318_v48 }
 0x67f   :  { %16175 = shalt.err (!%p16172_p2)
}
 0x680   :  { %s16176_s17 = scalar_lea.hbm %s17226_s5, 512 }
 0x681   :  { %p16177_p3 = scmp.ne.s32.totalorder %s17226_s5, %s16176_s17  ;;  %p16180_p4 = scmp.lt.u32.totalorder %s16176_s17, %s17226_s5 }
 0x683   :  { %p16182_p5 = pnand %p16180_p4, %p16177_p3 }
 0x685   :  { %16185 = shalt.err (!%p16182_p5)
}
 0x686   :  { %13208 = dma.vmem_to_hbm [thread:$0]  %s13206_s13, 512, %s17226_s5, [#allocation4]   ;;  %v9097_v59 = vld [vmem:[#allocation10] sm:$0xf] }
 0x687   :  { %v17160_v4 = vrot.slane %v9097_v59, %v1884_v61  ;;  %v17164_v2 = vrot.slane %v9097_v59, %v1892_v27  ;;  %v17168_v60 = vrot.slane %v9097_v59, %v1888_v33  ;;  %v17172_v57 = vrot.slane %v9097_v59, %v1896_v41  ;;  %s16230_s5 = smov [#allocation12]  }
 0x688   :  { %s13214_s23 = sshll.u32 %s16230_s5, 4  ;;  %s13215_s23 = int_to_ptr.vmem [resolvable:$true] %s13214_s23 }
 0x689   :  { %s16186_s24 = scalar_lea.vmem %s13215_s23, 4096  ;;  %p16191_p7 = scmp.lt.s32.totalorder %s13215_s23, %s13215_s23 }
 0x68a   :  { %p16187_p6 = scmp.ne.s32.totalorder %s13215_s23, %s16186_s24  ;;  %p16192_p8 = scmp.lt.s32.totalorder %s16186_s24, %s16186_s24 }
 0x68c   :  { %p16193_p9 = por %p16192_p8, %p16191_p7 }
 0x68e   :  { %p16194_p10 = pnand %p16193_p9, %p16187_p6 }
 0x739   :  { %v12544_v56 = vpop.f32.mrb[8].mxu0  ;;  %v13128_v23 = vpop.f32.mrb[8].mxu1 }
 0x73a   :  { %v14840_v49 = vadd.f32 %v12544_v56, %v17160_v4  ;;  %v12546_v52 = vpop.f32.mrb[9].mxu0  ;;  %v14856_v61 = vadd.f32 %v13128_v23, %v17164_v2  ;;  %v13130_v35 = vpop.f32.mrb[9].mxu1 }
 0x73b   :  { %v14841_v45 = vadd.f32 %v12546_v52, %v17168_v60  ;;  %v12548_v27 = vpop.f32.mrb[10].mxu0  ;;  %v14857_v17 = vadd.f32 %v13130_v35, %v17172_v57  ;;  %v13132_v12 = vpop.f32.mrb[10].mxu1 }
 0x73c   :  { %13167 = vst [vmem:[#allocation12] sm:$0xff] %v14840_v49  ;;  %v14842_v33 = vadd.f32 %v12548_v27, %v17160_v4  ;;  %v12550_v18 = vpop.f32.mrb[11].mxu0  ;;  %13169 = vst [vmem:[#allocation12 + $0x10] sm:$0xff] %v14856_v61  ;;  %v14858_v41 = vadd.f32 %v13132_v12, %v17164_v2  ;;  %v13134_v42 = vpop.f32.mrb[11].mxu1 }
 0x73d   :  { %13168 = vst [vmem:[#allocation12 + $0x8] sm:$0xff] %v14841_v45  ;;  %v14843_v58 = vadd.f32 %v12550_v18, %v17168_v60  ;;  %13170 = vst [vmem:[#allocation12 + $0x18] sm:$0xff] %v14857_v17  ;;  %v14859_v16 = vadd.f32 %v13134_v42, %v17172_v57 }
 0x73e   :  { %13171 = vst [vmem:[#allocation12 + $0x20] sm:$0xff] %v14842_v33  ;;  %13173 = vst [vmem:[#allocation12 + $0x30] sm:$0xff] %v14858_v41 }
 0x73f   :  { %13172 = vst [vmem:[#allocation12 + $0x28] sm:$0xff] %v14843_v58  ;;  %13174 = vst [vmem:[#allocation12 + $0x38] sm:$0xff] %v14859_v16 }
 0x741   :  { %v12554_v38 = vpop.f32.mrb[12].mxu0  ;;  %v13138_v31 = vpop.f32.mrb[12].mxu1 }
 0x742   :  { %v14844_v10 = vadd.f32 %v12554_v38, %v17160_v4  ;;  %v12556_v50 = vpop.f32.mrb[13].mxu0  ;;  %v14860_v62 = vadd.f32 %v13138_v31, %v17164_v2  ;;  %v13140_v28 = vpop.f32.mrb[13].mxu1 }
 0x743   :  { %v14845_v22 = vadd.f32 %v12556_v50, %v17168_v60  ;;  %v12558_v40 = vpop.f32.mrb[14].mxu0  ;;  %v14861_v44 = vadd.f32 %v13140_v28, %v17172_v57  ;;  %v13142_v15 = vpop.f32.mrb[14].mxu1 }
 0x744   :  { %13175 = vst [vmem:[#allocation12 + $0x40] sm:$0xff] %v14844_v10  ;;  %v14846_v1 = vadd.f32 %v12558_v40, %v17160_v4  ;;  %v12560_v8 = vpop.f32.mrb[15].mxu0  ;;  %13177 = vst [vmem:[#allocation12 + $0x50] sm:$0xff] %v14860_v62  ;;  %v14862_v34 = vadd.f32 %v13142_v15, %v17164_v2  ;;  %v13144_v43 = vpop.f32.mrb[15].mxu1 }
 0x745   :  { %13176 = vst [vmem:[#allocation12 + $0x48] sm:$0xff] %v14845_v22  ;;  %v14847_v54 = vadd.f32 %v12560_v8, %v17168_v60  ;;  %13178 = vst [vmem:[#allocation12 + $0x58] sm:$0xff] %v14861_v44  ;;  %v14863_v20 = vadd.f32 %v13144_v43, %v17172_v57 }
 0x746   :  { %13179 = vst [vmem:[#allocation12 + $0x60] sm:$0xff] %v14846_v1  ;;  %13181 = vst [vmem:[#allocation12 + $0x70] sm:$0xff] %v14862_v34 }
 0x747   :  { %13180 = vst [vmem:[#allocation12 + $0x68] sm:$0xff] %v14847_v54  ;;  %13182 = vst [vmem:[#allocation12 + $0x78] sm:$0xff] %v14863_v20 }
 0x749   :  { %v12564_v36 = vpop.f32.mrb[16].mxu0  ;;  %v13148_v19 = vpop.f32.mrb[16].mxu1 }
 0x74a   :  { %v14848_v21 = vadd.f32 %v12564_v36, %v17160_v4  ;;  %v12566_v7 = vpop.f32.mrb[17].mxu0  ;;  %v14864_v32 = vadd.f32 %v13148_v19, %v17164_v2  ;;  %v13150_v47 = vpop.f32.mrb[17].mxu1 }
 0x74b   :  { %v14849_v0 = vadd.f32 %v12566_v7, %v17168_v60  ;;  %v12568_v30 = vpop.f32.mrb[18].mxu0  ;;  %v14865_v11 = vadd.f32 %v13150_v47, %v17172_v57  ;;  %v13152_v46 = vpop.f32.mrb[18].mxu1 }
 0x74c   :  { %13183 = vst [vmem:[#allocation12 + $0x80] sm:$0xff] %v14848_v21  ;;  %v14850_v3 = vadd.f32 %v12568_v30, %v17160_v4  ;;  %v12570_v13 = vpop.f32.mrb[19].mxu0  ;;  %13185 = vst [vmem:[#allocation12 + $0x90] sm:$0xff] %v14864_v32  ;;  %v14866_v39 = vadd.f32 %v13152_v46, %v17164_v2  ;;  %v13154_v24 = vpop.f32.mrb[19].mxu1 }
 0x74d   :  { %13184 = vst [vmem:[#allocation12 + $0x88] sm:$0xff] %v14849_v0  ;;  %v14851_v37 = vadd.f32 %v12570_v13, %v17168_v60  ;;  %13186 = vst [vmem:[#allocation12 + $0x98] sm:$0xff] %v14865_v11  ;;  %v14867_v25 = vadd.f32 %v13154_v24, %v17172_v57 }
 0x74e   :  { %13187 = vst [vmem:[#allocation12 + $0xa0] sm:$0xff] %v14850_v3  ;;  %13189 = vst [vmem:[#allocation12 + $0xb0] sm:$0xff] %v14866_v39 }
 0x74f   :  { %13188 = vst [vmem:[#allocation12 + $0xa8] sm:$0xff] %v14851_v37  ;;  %13190 = vst [vmem:[#allocation12 + $0xb8] sm:$0xff] %v14867_v25 }
 0x751   :  { %v12574_v63 = vpop.f32.mrb[20].mxu0  ;;  %v13158_v29 = vpop.f32.mrb[20].mxu1 }
 0x752   :  { %v14852_v5 = vadd.f32 %v12574_v63, %v17160_v4  ;;  %v12576_v14 = vpop.f32.mrb[21].mxu0  ;;  %v14868_v53 = vadd.f32 %v13158_v29, %v17164_v2  ;;  %v13160_v51 = vpop.f32.mrb[21].mxu1 }
 0x753   :  { %v14853_v9 = vadd.f32 %v12576_v14, %v17168_v60  ;;  %v12578_v55 = vpop.f32.mrb[22].mxu0  ;;  %v14869_v26 = vadd.f32 %v13160_v51, %v17172_v57  ;;  %v13162_v48 = vpop.f32.mrb[22].mxu1 }
 0x754   :  { %13191 = vst [vmem:[#allocation12 + $0xc0] sm:$0xff] %v14852_v5  ;;  %v14854_v6 = vadd.f32 %v12578_v55, %v17160_v4  ;;  %v12580_v59 = vpop.f32.mrb[23].mxu0  ;;  %13193 = vst [vmem:[#allocation12 + $0xd0] sm:$0xff] %v14868_v53  ;;  %v14870_v56 = vadd.f32 %v13162_v48, %v17164_v2  ;;  %v13164_v23 = vpop.f32.mrb[23].mxu1 }
 0x755   :  { %13192 = vst [vmem:[#allocation12 + $0xc8] sm:$0xff] %v14853_v9  ;;  %v14855_v49 = vadd.f32 %v12580_v59, %v17168_v60  ;;  %13194 = vst [vmem:[#allocation12 + $0xd8] sm:$0xff] %v14869_v26  ;;  %v14871_v52 = vadd.f32 %v13164_v23, %v17172_v57 }
 0x756   :  { %13195 = vst [vmem:[#allocation12 + $0xe0] sm:$0xff] %v14854_v6  ;;  %13197 = vst [vmem:[#allocation12 + $0xf0] sm:$0xff] %v14870_v56 }
 0x757   :  { %13196 = vst [vmem:[#allocation12 + $0xe8] sm:$0xff] %v14855_v49  ;;  %13198 = vst [vmem:[#allocation12 + $0xf8] sm:$0xff] %v14871_v52 }
 0x758   :  { %16197 = shalt.err (!%p16194_p10)
}
 0x759   :  { %s16198_s26 = scalar_lea.hbm %s17227_s6, 4096 }
 0x75a   :  { %p16199_p11 = scmp.ne.s32.totalorder %s17227_s6, %s16198_s26  ;;  %p16202_p12 = scmp.lt.u32.totalorder %s16198_s26, %s17227_s6 }
 0x75c   :  { %p16204_p13 = pnand %p16202_p12, %p16199_p11 }
 0x75e   :  { %16207 = shalt.err (!%p16204_p13)
}
 0x75f   :  { %13220 = dma.vmem_to_hbm [thread:$0]  %s13215_s23, 4096, %s17227_s6, [#allocation13], %s16219_s7, %s16219_s7, %s16220_s8  }
 0x760   :  { %16214 = dma.done.wait [#allocation4], 512  }
 0x761   :  { %16215 = vsyncadd [#allocation4], 4294966784 }
 0x762   :  { %16216 = dma.done.wait [#allocation13], 4096  }
 0x763   :  { %16217 = vsyncadd [#allocation13], 4294963200 }
 0x764   :  { %13227 = vsyncpa [#allocation3], 1 }
 0x765   :  { %13228 = vsyncpa [#allocation6], 1 }
 0x766   :  { %13229 = vsyncpa [#allocation9], 1 }
 0x767   :  { %13230 = vsyncpa [#allocation4], 1 }
 0x768   :  { %13231 = vsyncpa [#allocation13], 1 }

</bundles_post_ra>
